<compile_context>
chip_gen: v7x
topology: tpu7x:2x2x1
jax: 0.10.0
libtpu: 0.0.40
codegen_flags: <defaults>
</compile_context>

<pallas_src>
import functools

import numpy as np
import jax
import jax.numpy as jnp
from jax import lax
from jax.experimental import pallas as pl
from jax.experimental.pallas import tpu as pltpu

NUM_BOXES = 3
NUM_CLASSES = 3


# ----------------------------- Pallas kernels --------------------------------

def _conv_relu_pool_kernel(x_ref, w_ref, b_ref, p_ref, o_ref, *,
                           rb, cout, cin_pad, W, n_iters):
    """Fused 3x3 'same' conv + bias + ReLU + 2x2/2 maxpool for one image.

    x_ref: (1, (H+2)*cin_pad, W+2)  zero-padded f32 input, rows ordered (h, c)
    w_ref: (2*rb*cout, 3*(2*rb+2)*cin_pad)  bf16 banded weights: 2*rb conv rows
           stacked on M; (dy, ci) folded into K; 3 dx-shifted slabs concat on K
    b_ref: (2*rb*cout, 1)          f32 bias replicated per stacked conv row
    p_ref: (W, W)                  bf16 even/odd column selection matrix
    o_ref: (1, (H//2)*cout, W//2)  f32 pooled output, rows ordered (h, c)
    """
    Wo = W // 2
    rc = (2 * rb + 2) * cin_pad          # input (row, channel) rows per block

    @pl.loop(0, n_iters)
    def _(i):
        row_start = pl.multiple_of(i * (2 * rb * cin_pad), 2 * rb * cin_pad)
        sbase = x_ref[0, pl.ds(row_start, rc), :]                  # (rc, W+2)
        # im2col along K: the three dx-shifted slabs stacked on the K axis.
        s = jnp.concatenate(
            [sbase[:, 0:W], sbase[:, 1:W + 1], sbase[:, 2:W + 2]],
            axis=0).astype(jnp.bfloat16)
        acc = jnp.dot(w_ref[...], s, preferred_element_type=jnp.float32)
        acc = jnp.maximum(acc + b_ref[...], 0.0)                   # (2*rb*cout, W)
        # vertical 2x max: conv-row pairs are adjacent cout-row groups
        a3 = acc.reshape(rb, 2 * cout, W)
        v = jnp.maximum(a3[:, :cout, :], a3[:, cout:, :]).reshape(rb * cout, W)
        # horizontal 2x max: even/odd column gather via one bf16 MXU matmul
        vp = jnp.dot(v.astype(jnp.bfloat16), p_ref[...],
                     preferred_element_type=jnp.float32)
        h = jnp.maximum(vp[:, :Wo], vp[:, Wo:])                    # (rb*cout, Wo)
        out_start = pl.multiple_of(i * (rb * cout), rb * cout)
        o_ref[0, pl.ds(out_start, rb * cout), :] = h


def _fc_relu_kernel(x_ref, w_ref, b_ref, o_ref, acc_ref):
    """y = relu(x @ W + b); grid = (N blocks [parallel], K blocks [arbitrary])."""
    @pl.when(pl.program_id(1) == 0)
    def _init():
        acc_ref[...] = jnp.zeros_like(acc_ref)

    acc_ref[...] += jnp.dot(x_ref[...].astype(jnp.bfloat16), w_ref[...],
                            preferred_element_type=jnp.float32)

    @pl.when(pl.program_id(1) == pl.num_programs(1) - 1)
    def _finish():
        o_ref[...] = jnp.maximum(acc_ref[...] + b_ref[...], 0.0)


# ------------------------------ Wrappers --------------------------------------

def conv3x3_relu_pool(x_flat, wbig, bias, sel, *, H, W, cin_pad, cout, rb):
    """x_flat: (B, (H+2)*cin_pad, W+2) zero padded, rows ordered (h, c)."""
    B = x_flat.shape[0]
    Hout, Wout = H // 2, W // 2
    assert Hout % rb == 0
    n_iters = Hout // rb
    M, K = wbig.shape

    kernel = functools.partial(_conv_relu_pool_kernel, rb=rb, cout=cout,
                               cin_pad=cin_pad, W=W, n_iters=n_iters)
    return pl.pallas_call(
        kernel,
        out_shape=jax.ShapeDtypeStruct((B, Hout * cout, Wout), jnp.float32),
        grid=(B,),
        in_specs=[
            pl.BlockSpec((1, (H + 2) * cin_pad, W + 2), lambda bi: (bi, 0, 0)),
            pl.BlockSpec((M, K), lambda bi: (0, 0)),
            pl.BlockSpec((M, 1), lambda bi: (0, 0)),
            pl.BlockSpec((W, W), lambda bi: (0, 0)),
        ],
        out_specs=pl.BlockSpec((1, Hout * cout, Wout), lambda bi: (bi, 0, 0)),
        compiler_params=pltpu.CompilerParams(
            dimension_semantics=("parallel",)),
    )(x_flat, wbig, bias, sel)


def fc_relu(x, w_bf16, b_row, *, tk=16384, tn=256):
    """relu(x @ W + b) with bf16 weight streaming and f32 accumulation."""
    B, K = x.shape
    N = w_bf16.shape[1]
    assert K % tk == 0 and N % tn == 0
    return pl.pallas_call(
        _fc_relu_kernel,
        out_shape=jax.ShapeDtypeStruct((B, N), jnp.float32),
        grid=(N // tn, K // tk),
        in_specs=[
            pl.BlockSpec((B, tk), lambda n, k: (0, k)),
            pl.BlockSpec((tk, tn), lambda n, k: (k, n)),
            pl.BlockSpec((1, tn), lambda n, k: (0, n)),
        ],
        out_specs=pl.BlockSpec((B, tn), lambda n, k: (0, n)),
        scratch_shapes=[pltpu.VMEM((B, tn), jnp.float32)],
        compiler_params=pltpu.CompilerParams(
            dimension_semantics=("parallel", "arbitrary"),
            vmem_limit_bytes=32 * 1024 * 1024),
    )(x, w_bf16, b_row)


def ssd_forward(x_nchw, kp):
    B = x_nchw.shape[0]
    # ---- conv1 input: pad channels 3->4, reorder rows to (h, c), zero-pad H/W
    x = jnp.pad(x_nchw, ((0, 0), (0, 1), (0, 0), (0, 0)))          # (B,4,256,256)
    x = jnp.transpose(x, (0, 2, 1, 3))                             # (B,256,4,256)
    x = jnp.pad(x, ((0, 0), (1, 1), (0, 0), (1, 1)))               # (B,258,4,258)
    x = x.reshape(B, 258 * 4, 258)
    y1 = conv3x3_relu_pool(x, kp["wbig1"], kp["bias1"], kp["sel1"],
                           H=256, W=256, cin_pad=4, cout=16, rb=4)  # (B,2048,128)
    # ---- conv2 input: zero-pad H/W, keep (h, c) row order
    y1 = y1.reshape(B, 128, 16, 128)
    y1 = jnp.pad(y1, ((0, 0), (1, 1), (0, 0), (1, 1)))             # (B,130,16,130)
    y1 = y1.reshape(B, 130 * 16, 130)
    y2 = conv3x3_relu_pool(y1, kp["wbig2"], kp["bias2"], kp["sel2"],
                           H=128, W=128, cin_pad=16, cout=32, rb=2)  # (B,2048,64)
    # ---- flatten in the kernel's natural (h, c, w) order; the FC weight rows
    # were permuted to this order once at init, so no transpose is needed.
    flat = y2.reshape(B, 32 * 64 * 64)
    # ---- FC (bf16 weight streaming, tk=16384, N parallel)
    h = fc_relu(flat, kp["wf_bf16"], kp["bf_row"], tk=16384, tn=256)  # (B,512)
    # ---- tiny SSD heads in plain jnp (2x512x21 FLOPs; XLA fuses for free)
    out = jnp.dot(h, kp["wcat"], precision=lax.Precision.HIGHEST) + kp["bcat"]
    bbox = out[:, :NUM_BOXES * 4].reshape(B, NUM_BOXES, 4)
    cls = out[:, NUM_BOXES * 4:].reshape(B, NUM_BOXES, NUM_CLASSES)
    return bbox, cls


# ----------------------- parameter init & one-time prep ----------------------

def init_params(key):
    ks = jax.random.split(key, 10)

    def w_init(k, shape, fan_in):
        return jax.random.normal(k, shape, jnp.float32) / jnp.sqrt(float(fan_in))

    return {
        "w1": w_init(ks[0], (3, 3, 3, 16), 3 * 3 * 3),
        "b1": w_init(ks[1], (16,), 3 * 3 * 3),
        "w2": w_init(ks[2], (3, 3, 16, 32), 3 * 3 * 16),
        "b2": w_init(ks[3], (32,), 3 * 3 * 16),
        "wf": w_init(ks[4], (32 * 64 * 64, 512), 32 * 64 * 64),
        "bf": w_init(ks[5], (512,), 32 * 64 * 64),
        "wbbox": w_init(ks[6], (512, NUM_BOXES * 4), 512),
        "bbbox": w_init(ks[7], (NUM_BOXES * 4,), 512),
        "wcls": w_init(ks[8], (512, NUM_BOXES * NUM_CLASSES), 512),
        "bcls": w_init(ks[9], (NUM_BOXES * NUM_CLASSES,), 512),
    }


def _banded_conv_params(w_hwio, b, cin_pad, rb):
    """Banded conv weights + tiled bias, built host-side, cast to bf16 once."""
    w = np.asarray(w_hwio, np.float32)                 # (3, 3, cin, cout)
    cin, cout = w.shape[2], w.shape[3]
    rows_in = 2 * rb + 2
    M = 2 * rb * cout
    K = 3 * rows_in * cin_pad
    wpad = np.zeros((3, 3, cin_pad, cout), np.float32)
    wpad[:, :, :cin, :] = w
    # Row j*cout+co, col dx*rows_in*cin_pad + i*cin_pad + ci holds
    # w[dy=i-j, dx, ci, co]; zero outside the band / in padded channels.
    T = np.zeros((2 * rb, cout, 3, rows_in, cin_pad), np.float32)
    for j in range(2 * rb):
        for dy in range(3):
            T[j, :, :, j + dy, :] = np.transpose(wpad[dy], (2, 0, 1))
    wbig = jnp.asarray(T.reshape(M, K), jnp.bfloat16)
    bias = jnp.asarray(np.tile(np.asarray(b, np.float32), 2 * rb).reshape(M, 1))
    return wbig, bias


def _pool_selector(W):
    """(v @ sel)[:, :W//2] = v[:, 0::2];  (v @ sel)[:, W//2:] = v[:, 1::2]."""
    Wo = W // 2
    col = np.arange(W)[None, :]
    row = np.arange(W)[:, None]
    src = np.where(col < Wo, 2 * col, 2 * (col - Wo) + 1)
    return jnp.asarray((row == src).astype(np.float32), jnp.bfloat16)


def prepare_kernel_params(p):
    """One-time derivation of kernel-ready tensors (NOT inside the forward)."""
    kp = {}
    kp["wbig1"], kp["bias1"] = _banded_conv_params(p["w1"], p["b1"], 4, 4)
    kp["sel1"] = _pool_selector(256)
    kp["wbig2"], kp["bias2"] = _banded_conv_params(p["w2"], p["b2"], 16, 2)
    kp["sel2"] = _pool_selector(128)
    # FC weight: permute rows from torch's (c, h, w) flatten order to the conv
    # kernel's natural (h, c, w) order, then cast to bf16 once.
    wf_k = jnp.transpose(p["wf"].reshape(32, 64, 64, 512), (1, 0, 2, 3))
    kp["wf_bf16"] = wf_k.reshape(32 * 64 * 64, 512).astype(jnp.bfloat16)
    kp["bf_row"] = p["bf"].reshape(1, 512)
    kp["wcat"] = jnp.concatenate([p["wbbox"], p["wcls"]], axis=1)   # (512, 21)
    kp["bcat"] = jnp.concatenate([p["bbbox"], p["bcls"]], axis=0)   # (21,)
    return kp


# --------------------------- pure-JAX reference -------------------------------

def reference_forward(x_nchw, p):
    B = x_nchw.shape[0]
    hp = lax.Precision.HIGHEST
    x = jnp.transpose(x_nchw, (0, 2, 3, 1))
    y = lax.conv_general_dilated(x, p["w1"], (1, 1), "SAME",
                                 dimension_numbers=("NHWC", "HWIO", "NHWC"),
                                 precision=hp)
    y = jnp.maximum(y + p["b1"], 0.0)
    y = lax.reduce_window(y, -jnp.inf, lax.max, (1, 2, 2, 1), (1, 2, 2, 1), "VALID")
    y = lax.conv_general_dilated(y, p["w2"], (1, 1), "SAME",
                                 dimension_numbers=("NHWC", "HWIO", "NHWC"),
                                 precision=hp)
    y = jnp.maximum(y + p["b2"], 0.0)
    y = lax.reduce_window(y, -jnp.inf, lax.max, (1, 2, 2, 1), (1, 2, 2, 1), "VALID")
    flat = jnp.transpose(y, (0, 3, 1, 2)).reshape(B, -1)
    h = jnp.maximum(jnp.dot(flat, p["wf"], precision=hp) + p["bf"], 0.0)
    bbox = (jnp.dot(h, p["wbbox"], precision=hp) + p["bbbox"]).reshape(B, NUM_BOXES, 4)
    cls = (jnp.dot(h, p["wcls"], precision=hp) + p["bcls"]).reshape(B, NUM_BOXES, NUM_CLASSES)
    return bbox, cls


# ----------------------------------- main -------------------------------------

if __name__ == "__main__":
    key = jax.random.PRNGKey(0)
    k_x, k_p = jax.random.split(key)
    B = 2
    # Spatial size 256x256 is forced by fc = Linear(32*64*64, 512); batch=2.
    x = jax.random.normal(k_x, (B, 3, 256, 256), jnp.float32)
    params = init_params(k_p)
    kparams = prepare_kernel_params(params)   # one-time, outside the jit

    bbox, cls = jax.jit(ssd_forward)(x, kparams)
    jax.block_until_ready((bbox, cls))
    assert bbox.shape == (B, NUM_BOXES, 4) and bbox.dtype == jnp.float32
    assert cls.shape == (B, NUM_BOXES, NUM_CLASSES) and cls.dtype == jnp.float32

    bbox_ref, cls_ref = jax.jit(reference_forward)(x, params)
    jax.block_until_ready((bbox_ref, cls_ref))
    # bf16 MXU compute (conv + FC, f32 accumulation) vs. an f32 HIGHEST ref.
    ok = (jnp.allclose(bbox, bbox_ref, atol=2e-2, rtol=2e-2)
          and jnp.allclose(cls, cls_ref, atol=2e-2, rtol=2e-2))
    if not bool(ok):
        raise AssertionError("Pallas SSD output does not match JAX reference")
    print("KERNEL_OK")
</pallas_src>

<mosaic_0001>
module attributes {stable_mosaic.version = 11 : i64} {
  func.func @_conv_relu_pool_kernel(%arg0: i32, %arg1: memref<1x1032x258xf32, #tpu.memory_space<vmem>>, %arg2: memref<128x120xbf16, #tpu.memory_space<vmem>>, %arg3: memref<128x1xf32, #tpu.memory_space<vmem>>, %arg4: memref<256x256xbf16, #tpu.memory_space<vmem>>, %arg5: memref<1x2048x128xf32, #tpu.memory_space<vmem>>) attributes {dimension_semantics = [#tpu.dimension_semantics<parallel>], iteration_bounds = array<i64: 2>, scalar_prefetch = 0 : i64, scratch_operands = 0 : i64, tpu.core_type = #tpu.core_type<tc>, window_params = [{transform_indices = @transform_0, window_bounds = array<i64: 1, 1032, 258>}, {pipeline_mode = #tpu.pipeline_mode<synchronous>, transform_indices = @transform_1, window_bounds = array<i64: 128, 120>}, {pipeline_mode = #tpu.pipeline_mode<synchronous>, transform_indices = @transform_2, window_bounds = array<i64: 128, 1>}, {pipeline_mode = #tpu.pipeline_mode<synchronous>, transform_indices = @transform_3, window_bounds = array<i64: 256, 256>}, {transform_indices = @transform_4, window_bounds = array<i64: 1, 2048, 128>}]} {
    %c0_i32 = arith.constant 0 : i32
    %c32_i32 = arith.constant 32 : i32
    %0 = arith.addi %c0_i32, %c32_i32 : i32
    %c1_i32 = arith.constant 1 : i32
    scf.for %arg6 = %c0_i32 to %0 step %c1_i32  : i32 {
      %c1_i32_1 = arith.constant 1 : i32
      %1 = arith.muli %arg6, %c1_i32_1 : i32
      %c0_i32_2 = arith.constant 0 : i32
      %2 = arith.addi %c0_i32_2, %1 : i32
      %c32_i32_3 = arith.constant 32 : i32
      %3 = arith.muli %2, %c32_i32_3 : i32
      %4 = tpu.assume_multiple %3, 32 : i32
      %c0 = arith.constant 0 : index
      %5 = arith.index_cast %4 : i32 to index
      %c0_4 = arith.constant 0 : index
      %6 = vector.load %arg1[%c0, %5, %c0_4] : memref<1x1032x258xf32, #tpu.memory_space<vmem>>, vector<1x40x258xf32>
      %7 = vector.shape_cast %6 : vector<1x40x258xf32> to vector<40x258xf32>
      %8 = vector.extract_strided_slice %7 {offsets = [0, 0], sizes = [40, 256], strides = [1, 1]} : vector<40x258xf32> to vector<40x256xf32>
      %9 = vector.extract_strided_slice %7 {offsets = [0, 1], sizes = [40, 256], strides = [1, 1]} : vector<40x258xf32> to vector<40x256xf32>
      %10 = vector.extract_strided_slice %7 {offsets = [0, 2], sizes = [40, 256], strides = [1, 1]} : vector<40x258xf32> to vector<40x256xf32>
      %11 = tpu.concatenate %8, %9, %10 in 0 : vector<40x256xf32>, vector<40x256xf32>, vector<40x256xf32> -> vector<120x256xf32>
      %12 = arith.truncf %11 : vector<120x256xf32> to vector<120x256xbf16>
      %c0_5 = arith.constant 0 : index
      %c0_6 = arith.constant 0 : index
      %13 = vector.load %arg2[%c0_5, %c0_6] : memref<128x120xbf16, #tpu.memory_space<vmem>>, vector<128x120xbf16>
      %cst = arith.constant dense<0.000000e+00> : vector<128x256xf32>
      %14 = tpu.matmul %13, %12, %cst {dimension_numbers = #tpu.dot_dimension_numbers<[1], [0], [0], [1], [0, 0, 1, 1], [], []>} : vector<128x120xbf16>, vector<120x256xbf16>, vector<128x256xf32> -> vector<128x256xf32>
      %c0_7 = arith.constant 0 : index
      %c0_8 = arith.constant 0 : index
      %15 = vector.load %arg3[%c0_7, %c0_8] : memref<128x1xf32, #tpu.memory_space<vmem>>, vector<128x1xf32>
      %16 = vector.broadcast %15 : vector<128x1xf32> to vector<128x256xf32>
      %17 = arith.addf %14, %16 : vector<128x256xf32>
      %cst_9 = arith.constant 0.000000e+00 : f32
      %18 = vector.broadcast %cst_9 : f32 to vector<128x256xf32>
      %19 = arith.maximumf %17, %18 : vector<128x256xf32>
      %20 = vector.shape_cast %19 : vector<128x256xf32> to vector<4x32x256xf32>
      %21 = vector.extract_strided_slice %20 {offsets = [0, 0, 0], sizes = [4, 16, 256], strides = [1, 1, 1]} : vector<4x32x256xf32> to vector<4x16x256xf32>
      %22 = vector.extract_strided_slice %20 {offsets = [0, 16, 0], sizes = [4, 16, 256], strides = [1, 1, 1]} : vector<4x32x256xf32> to vector<4x16x256xf32>
      %23 = arith.maximumf %21, %22 : vector<4x16x256xf32>
      %24 = vector.shape_cast %23 : vector<4x16x256xf32> to vector<64x256xf32>
      %25 = arith.truncf %24 : vector<64x256xf32> to vector<64x256xbf16>
      %c0_10 = arith.constant 0 : index
      %c0_11 = arith.constant 0 : index
      %26 = vector.load %arg4[%c0_10, %c0_11] : memref<256x256xbf16, #tpu.memory_space<vmem>>, vector<256x256xbf16>
      %cst_12 = arith.constant dense<0.000000e+00> : vector<64x256xf32>
      %27 = tpu.matmul %25, %26, %cst_12 {dimension_numbers = #tpu.dot_dimension_numbers<[1], [0], [0], [1], [0, 0, 1, 1], [], []>} : vector<64x256xbf16>, vector<256x256xbf16>, vector<64x256xf32> -> vector<64x256xf32>
      %28 = vector.extract_strided_slice %27 {offsets = [0, 0], sizes = [64, 128], strides = [1, 1]} : vector<64x256xf32> to vector<64x128xf32>
      %29 = vector.extract_strided_slice %27 {offsets = [0, 128], sizes = [64, 128], strides = [1, 1]} : vector<64x256xf32> to vector<64x128xf32>
      %30 = arith.maximumf %28, %29 : vector<64x128xf32>
      %c64_i32 = arith.constant 64 : i32
      %31 = arith.muli %2, %c64_i32 : i32
      %32 = tpu.assume_multiple %31, 64 : i32
      %c0_13 = arith.constant 0 : index
      %33 = arith.index_cast %32 : i32 to index
      %c0_14 = arith.constant 0 : index
      %34 = vector.load %arg5[%c0_13, %33, %c0_14] : memref<1x2048x128xf32, #tpu.memory_space<vmem>>, vector<1x64x128xf32>
      %35 = vector.shape_cast %34 : vector<1x64x128xf32> to vector<64x128xf32>
      %36 = vector.shape_cast %30 : vector<64x128xf32> to vector<1x64x128xf32>
      tpu.vector_store %arg5[%c0_13, %33, %c0_14], %36 {strides = array<i32>} : memref<1x2048x128xf32, #tpu.memory_space<vmem>>, vector<1x64x128xf32>,
    }
    %c32_i32_0 = arith.constant 32 : i32
    return
  }
  func.func @transform_0(%arg0: i32) -> (i32, i32, i32) {
    %c0_i32 = arith.constant 0 : i32
    %c0_i32_0 = arith.constant 0 : i32
    %c0_i32_1 = arith.constant 0 : i32
    return %arg0, %c0_i32, %c0_i32_0 : i32, i32, i32
  }
  func.func @transform_1(%arg0: i32) -> (i32, i32) {
    %c0_i32 = arith.constant 0 : i32
    %c0_i32_0 = arith.constant 0 : i32
    %c0_i32_1 = arith.constant 0 : i32
    return %c0_i32, %c0_i32_0 : i32, i32
  }
  func.func @transform_2(%arg0: i32) -> (i32, i32) {
    %c0_i32 = arith.constant 0 : i32
    %c0_i32_0 = arith.constant 0 : i32
    %c0_i32_1 = arith.constant 0 : i32
    return %c0_i32, %c0_i32_0 : i32, i32
  }
  func.func @transform_3(%arg0: i32) -> (i32, i32) {
    %c0_i32 = arith.constant 0 : i32
    %c0_i32_0 = arith.constant 0 : i32
    %c0_i32_1 = arith.constant 0 : i32
    return %c0_i32, %c0_i32_0 : i32, i32
  }
  func.func @transform_4(%arg0: i32) -> (i32, i32, i32) {
    %c0_i32 = arith.constant 0 : i32
    %c0_i32_0 = arith.constant 0 : i32
    %c0_i32_1 = arith.constant 0 : i32
    return %arg0, %c0_i32, %c0_i32_0 : i32, i32, i32
  }
}

module attributes {stable_mosaic.version = 11 : i64} {
  func.func @_conv_relu_pool_kernel(%arg0: i32, %arg1: memref<1x2080x130xf32, #tpu.memory_space<vmem>>, %arg2: memref<128x288xbf16, #tpu.memory_space<vmem>>, %arg3: memref<128x1xf32, #tpu.memory_space<vmem>>, %arg4: memref<128x128xbf16, #tpu.memory_space<vmem>>, %arg5: memref<1x2048x64xf32, #tpu.memory_space<vmem>>) attributes {dimension_semantics = [#tpu.dimension_semantics<parallel>], iteration_bounds = array<i64: 2>, scalar_prefetch = 0 : i64, scratch_operands = 0 : i64, tpu.core_type = #tpu.core_type<tc>, window_params = [{transform_indices = @transform_0, window_bounds = array<i64: 1, 2080, 130>}, {pipeline_mode = #tpu.pipeline_mode<synchronous>, transform_indices = @transform_1, window_bounds = array<i64: 128, 288>}, {pipeline_mode = #tpu.pipeline_mode<synchronous>, transform_indices = @transform_2, window_bounds = array<i64: 128, 1>}, {pipeline_mode = #tpu.pipeline_mode<synchronous>, transform_indices = @transform_3, window_bounds = array<i64: 128, 128>}, {transform_indices = @transform_4, window_bounds = array<i64: 1, 2048, 64>}]} {
    %c0_i32 = arith.constant 0 : i32
    %c32_i32 = arith.constant 32 : i32
    %0 = arith.addi %c0_i32, %c32_i32 : i32
    %c1_i32 = arith.constant 1 : i32
    scf.for %arg6 = %c0_i32 to %0 step %c1_i32  : i32 {
      %c1_i32_1 = arith.constant 1 : i32
      %1 = arith.muli %arg6, %c1_i32_1 : i32
      %c0_i32_2 = arith.constant 0 : i32
      %2 = arith.addi %c0_i32_2, %1 : i32
      %c64_i32 = arith.constant 64 : i32
      %3 = arith.muli %2, %c64_i32 : i32
      %4 = tpu.assume_multiple %3, 64 : i32
      %c0 = arith.constant 0 : index
      %5 = arith.index_cast %4 : i32 to index
      %c0_3 = arith.constant 0 : index
      %6 = vector.load %arg1[%c0, %5, %c0_3] : memref<1x2080x130xf32, #tpu.memory_space<vmem>>, vector<1x96x130xf32>
      %7 = vector.shape_cast %6 : vector<1x96x130xf32> to vector<96x130xf32>
      %8 = vector.extract_strided_slice %7 {offsets = [0, 0], sizes = [96, 128], strides = [1, 1]} : vector<96x130xf32> to vector<96x128xf32>
      %9 = vector.extract_strided_slice %7 {offsets = [0, 1], sizes = [96, 128], strides = [1, 1]} : vector<96x130xf32> to vector<96x128xf32>
      %10 = vector.extract_strided_slice %7 {offsets = [0, 2], sizes = [96, 128], strides = [1, 1]} : vector<96x130xf32> to vector<96x128xf32>
      %11 = tpu.concatenate %8, %9, %10 in 0 : vector<96x128xf32>, vector<96x128xf32>, vector<96x128xf32> -> vector<288x128xf32>
      %12 = arith.truncf %11 : vector<288x128xf32> to vector<288x128xbf16>
      %c0_4 = arith.constant 0 : index
      %c0_5 = arith.constant 0 : index
      %13 = vector.load %arg2[%c0_4, %c0_5] : memref<128x288xbf16, #tpu.memory_space<vmem>>, vector<128x288xbf16>
      %cst = arith.constant dense<0.000000e+00> : vector<128x128xf32>
      %14 = tpu.matmul %13, %12, %cst {dimension_numbers = #tpu.dot_dimension_numbers<[1], [0], [0], [1], [0, 0, 1, 1], [], []>} : vector<128x288xbf16>, vector<288x128xbf16>, vector<128x128xf32> -> vector<128x128xf32>
      %c0_6 = arith.constant 0 : index
      %c0_7 = arith.constant 0 : index
      %15 = vector.load %arg3[%c0_6, %c0_7] : memref<128x1xf32, #tpu.memory_space<vmem>>, vector<128x1xf32>
      %16 = vector.broadcast %15 : vector<128x1xf32> to vector<128x128xf32>
      %17 = arith.addf %14, %16 : vector<128x128xf32>
      %cst_8 = arith.constant 0.000000e+00 : f32
      %18 = vector.broadcast %cst_8 : f32 to vector<128x128xf32>
      %19 = arith.maximumf %17, %18 : vector<128x128xf32>
      %20 = vector.shape_cast %19 : vector<128x128xf32> to vector<2x64x128xf32>
      %21 = vector.extract_strided_slice %20 {offsets = [0, 0, 0], sizes = [2, 32, 128], strides = [1, 1, 1]} : vector<2x64x128xf32> to vector<2x32x128xf32>
      %22 = vector.extract_strided_slice %20 {offsets = [0, 32, 0], sizes = [2, 32, 128], strides = [1, 1, 1]} : vector<2x64x128xf32> to vector<2x32x128xf32>
      %23 = arith.maximumf %21, %22 : vector<2x32x128xf32>
      %24 = vector.shape_cast %23 : vector<2x32x128xf32> to vector<64x128xf32>
      %25 = arith.truncf %24 : vector<64x128xf32> to vector<64x128xbf16>
      %c0_9 = arith.constant 0 : index
      %c0_10 = arith.constant 0 : index
      %26 = vector.load %arg4[%c0_9, %c0_10] : memref<128x128xbf16, #tpu.memory_space<vmem>>, vector<128x128xbf16>
      %cst_11 = arith.constant dense<0.000000e+00> : vector<64x128xf32>
      %27 = tpu.matmul %25, %26, %cst_11 {dimension_numbers = #tpu.dot_dimension_numbers<[1], [0], [0], [1], [0, 0, 1, 1], [], []>} : vector<64x128xbf16>, vector<128x128xbf16>, vector<64x128xf32> -> vector<64x128xf32>
      %28 = vector.extract_strided_slice %27 {offsets = [0, 0], sizes = [64, 64], strides = [1, 1]} : vector<64x128xf32> to vector<64x64xf32>
      %29 = vector.extract_strided_slice %27 {offsets = [0, 64], sizes = [64, 64], strides = [1, 1]} : vector<64x128xf32> to vector<64x64xf32>
      %30 = arith.maximumf %28, %29 : vector<64x64xf32>
      %c64_i32_12 = arith.constant 64 : i32
      %31 = arith.muli %2, %c64_i32_12 : i32
      %32 = tpu.assume_multiple %31, 64 : i32
      %c0_13 = arith.constant 0 : index
      %33 = arith.index_cast %32 : i32 to index
      %c0_14 = arith.constant 0 : index
      %34 = vector.load %arg5[%c0_13, %33, %c0_14] : memref<1x2048x64xf32, #tpu.memory_space<vmem>>, vector<1x64x64xf32>
      %35 = vector.shape_cast %34 : vector<1x64x64xf32> to vector<64x64xf32>
      %36 = vector.shape_cast %30 : vector<64x64xf32> to vector<1x64x64xf32>
      tpu.vector_store %arg5[%c0_13, %33, %c0_14], %36 {strides = array<i32>} : memref<1x2048x64xf32, #tpu.memory_space<vmem>>, vector<1x64x64xf32>,
    }
    %c32_i32_0 = arith.constant 32 : i32
    return
  }
  func.func @transform_0(%arg0: i32) -> (i32, i32, i32) {
    %c0_i32 = arith.constant 0 : i32
    %c0_i32_0 = arith.constant 0 : i32
    %c0_i32_1 = arith.constant 0 : i32
    return %arg0, %c0_i32, %c0_i32_0 : i32, i32, i32
  }
  func.func @transform_1(%arg0: i32) -> (i32, i32) {
    %c0_i32 = arith.constant 0 : i32
    %c0_i32_0 = arith.constant 0 : i32
    %c0_i32_1 = arith.constant 0 : i32
    return %c0_i32, %c0_i32_0 : i32, i32
  }
  func.func @transform_2(%arg0: i32) -> (i32, i32) {
    %c0_i32 = arith.constant 0 : i32
    %c0_i32_0 = arith.constant 0 : i32
    %c0_i32_1 = arith.constant 0 : i32
    return %c0_i32, %c0_i32_0 : i32, i32
  }
  func.func @transform_3(%arg0: i32) -> (i32, i32) {
    %c0_i32 = arith.constant 0 : i32
    %c0_i32_0 = arith.constant 0 : i32
    %c0_i32_1 = arith.constant 0 : i32
    return %c0_i32, %c0_i32_0 : i32, i32
  }
  func.func @transform_4(%arg0: i32) -> (i32, i32, i32) {
    %c0_i32 = arith.constant 0 : i32
    %c0_i32_0 = arith.constant 0 : i32
    %c0_i32_1 = arith.constant 0 : i32
    return %arg0, %c0_i32, %c0_i32_0 : i32, i32, i32
  }
}

module attributes {stable_mosaic.version = 11 : i64} {
  func.func @_fc_relu_kernel(%arg0: i32, %arg1: i32, %arg2: memref<2x16384xf32, #tpu.memory_space<vmem>>, %arg3: memref<16384x256xbf16, #tpu.memory_space<vmem>>, %arg4: memref<1x256xf32, #tpu.memory_space<vmem>>, %arg5: memref<2x256xf32, #tpu.memory_space<vmem>>, %arg6: memref<2x256xf32, #tpu.memory_space<vmem>>) attributes {dimension_semantics = [#tpu.dimension_semantics<parallel>, #tpu.dimension_semantics<arbitrary>], iteration_bounds = array<i64: 2, 8>, scalar_prefetch = 0 : i64, scratch_operands = 1 : i64, tpu.core_type = #tpu.core_type<tc>, window_params = [{transform_indices = @transform_0, window_bounds = array<i64: 2, 16384>}, {transform_indices = @transform_1, window_bounds = array<i64: 16384, 256>}, {transform_indices = @transform_2, window_bounds = array<i64: 1, 256>}, {transform_indices = @transform_3, window_bounds = array<i64: 2, 256>}]} {
    %c0_i32 = arith.constant 0 : i32
    %0 = arith.cmpi eq, %arg1, %c0_i32 : i32
    %1 = arith.extui %0 : i1 to i32
    %c0_i32_0 = arith.constant 0 : i32
    %2 = arith.cmpi ne, %1, %c0_i32_0 : i32
    scf.if %2 {
      %cst_9 = arith.constant 0.000000e+00 : f32
      %13 = vector.broadcast %cst_9 : f32 to vector<2x256xf32>
      %c0_10 = arith.constant 0 : index
      %c0_11 = arith.constant 0 : index
      %14 = vector.load %arg6[%c0_10, %c0_11] : memref<2x256xf32, #tpu.memory_space<vmem>>, vector<2x256xf32>
      tpu.vector_store %arg6[%c0_10, %c0_11], %13 {strides = array<i32>} : memref<2x256xf32, #tpu.memory_space<vmem>>, vector<2x256xf32>,
    } else {
    }
    %c0 = arith.constant 0 : index
    %c0_1 = arith.constant 0 : index
    %3 = vector.load %arg6[%c0, %c0_1] : memref<2x256xf32, #tpu.memory_space<vmem>>, vector<2x256xf32>
    %c0_2 = arith.constant 0 : index
    %c0_3 = arith.constant 0 : index
    %4 = vector.load %arg2[%c0_2, %c0_3] : memref<2x16384xf32, #tpu.memory_space<vmem>>, vector<2x16384xf32>
    %5 = arith.truncf %4 : vector<2x16384xf32> to vector<2x16384xbf16>
    %c0_4 = arith.constant 0 : index
    %c0_5 = arith.constant 0 : index
    %6 = vector.load %arg3[%c0_4, %c0_5] : memref<16384x256xbf16, #tpu.memory_space<vmem>>, vector<16384x256xbf16>
    %cst = arith.constant dense<0.000000e+00> : vector<2x256xf32>
    %7 = tpu.matmul %5, %6, %cst {dimension_numbers = #tpu.dot_dimension_numbers<[1], [0], [0], [1], [0, 0, 1, 1], [], []>} : vector<2x16384xbf16>, vector<16384x256xbf16>, vector<2x256xf32> -> vector<2x256xf32>
    %8 = arith.addf %3, %7 : vector<2x256xf32>
    %c0_6 = arith.constant 0 : index
    %c0_7 = arith.constant 0 : index
    %9 = vector.load %arg6[%c0_6, %c0_7] : memref<2x256xf32, #tpu.memory_space<vmem>>, vector<2x256xf32>
    tpu.vector_store %arg6[%c0_6, %c0_7], %8 {strides = array<i32>} : memref<2x256xf32, #tpu.memory_space<vmem>>, vector<2x256xf32>,
    %c7_i32 = arith.constant 7 : i32
    %10 = arith.cmpi eq, %arg1, %c7_i32 : i32
    %11 = arith.extui %10 : i1 to i32
    %c0_i32_8 = arith.constant 0 : i32
    %12 = arith.cmpi ne, %11, %c0_i32_8 : i32
    scf.if %12 {
      %c0_9 = arith.constant 0 : index
      %c0_10 = arith.constant 0 : index
      %13 = vector.load %arg6[%c0_9, %c0_10] : memref<2x256xf32, #tpu.memory_space<vmem>>, vector<2x256xf32>
      %c0_11 = arith.constant 0 : index
      %c0_12 = arith.constant 0 : index
      %14 = vector.load %arg4[%c0_11, %c0_12] : memref<1x256xf32, #tpu.memory_space<vmem>>, vector<1x256xf32>
      %15 = vector.broadcast %14 : vector<1x256xf32> to vector<2x256xf32>
      %16 = arith.addf %13, %15 : vector<2x256xf32>
      %cst_13 = arith.constant 0.000000e+00 : f32
      %17 = vector.broadcast %cst_13 : f32 to vector<2x256xf32>
      %18 = arith.maximumf %16, %17 : vector<2x256xf32>
      %c0_14 = arith.constant 0 : index
      %c0_15 = arith.constant 0 : index
      %19 = vector.load %arg5[%c0_14, %c0_15] : memref<2x256xf32, #tpu.memory_space<vmem>>, vector<2x256xf32>
      tpu.vector_store %arg5[%c0_14, %c0_15], %18 {strides = array<i32>} : memref<2x256xf32, #tpu.memory_space<vmem>>, vector<2x256xf32>,
    } else {
    }
    return
  }
  func.func @transform_0(%arg0: i32, %arg1: i32) -> (i32, i32) {
    %c0_i32 = arith.constant 0 : i32
    %c0_i32_0 = arith.constant 0 : i32
    return %c0_i32, %arg1 : i32, i32
  }
  func.func @transform_1(%arg0: i32, %arg1: i32) -> (i32, i32) {
    %c0_i32 = arith.constant 0 : i32
    return %arg1, %arg0 : i32, i32
  }
  func.func @transform_2(%arg0: i32, %arg1: i32) -> (i32, i32) {
    %c0_i32 = arith.constant 0 : i32
    %c0_i32_0 = arith.constant 0 : i32
    return %c0_i32, %arg0 : i32, i32
  }
  func.func @transform_3(%arg0: i32, %arg1: i32) -> (i32, i32) {
    %c0_i32 = arith.constant 0 : i32
    %c0_i32_0 = arith.constant 0 : i32
    return %c0_i32, %arg0 : i32, i32
  }
}

</mosaic_0001>

<bundles_post_ra>
// kernel: ssd_forward.3
= control target key start
LH: loop header
LB: loop body
LE: loop exit
PB: predicated region body
PF: predicated region fallthrough
CT: control target
= control target key end

     0   :  { %s1315_s15 = smov 0   ;;  %s1581_s0 = inlined_call_operand.vmem [shape: f32[2,1032,258], index: 0, kind: input, shape index: {}]   ;;  %s1582_s1 = inlined_call_operand.vmem [shape: bf16[128,120], index: 1, kind: input, shape index: {}]   ;;  %s1583_s2 = inlined_call_operand.vmem [shape: f32[128,1], index: 2, kind: input, shape index: {}]   ;;  %s1584_s3 = inlined_call_operand.vmem [shape: bf16[256,256], index: 3, kind: input, shape index: {}]   ;;  %s1585_s4 = inlined_call_operand.vmem [shape: f32[2,2048,128], index: 4, kind: output, shape index: {}]  }
   0x1 LB: > { %s1059_s16 = sadd.s32 4294967295, %s1281_s15   ;;  %p1063_p0 = scmp.ge.s32.totalorder %s1281_s15, 1  ;;  %s1281_s15 = sphi %s1315_s15, %s14_s15  }
   0x2   : > { %p162_p1 = scmp.lt.s32.totalorder %s1281_s15, 3 }
   0x4   : > { %p163_p2 = pnand %p1063_p0, %p162_p1 }
   0x5   : > { %p188_p3 = scmp.lt.s32.totalorder (!%p163_p2), %s1059_s16, 1  ;;  %s1333_s25 = smov (!%p163_p2), 0  }
   0x6   : > { %166 = sbr.rel (%p163_p2) target bundleno = 676 (0x2a4), region = 36 }
   0xd   : > { %s1587_s16 = smov (!%p188_p3, %s1059_s16), 1 }
   0xe   : > { %s1123_s17 = smul.u32 3096, %s1587_s16  ;;  %s1121_s18 = sshll.u32 %s1587_s16, 11 }
   0xf   : > { %s1326_s21 = scalar_lea.vmem %s1585_s4, %s1121_s18 }
  0x10   : > { %s1331_s24 = scalar_lea.vmem %s1581_s0, %s1123_s17 }
  0x11 LB: >> { %s1067_s26 = sshll.u32 %s1285_s25, 5  ;;  %s1287_s30 = smov 127   ;;  %v1289_v31 = vmov 0   ;;  %v375_v33 = vld [vmem:[%s1583_s2] sm:$0xff]  ;;  %v376_v34 = vld [vmem:[%s1583_s2 + $0x8] sm:$0xff]  ;;  %v377_v35 = vld [vmem:[%s1583_s2 + $0x10] sm:$0xff]  ;;  %s1285_s25 = sphi %s1333_s25, %s204_s25  }
  0x12   : >> { %s206_s27 = sshra.s32 %s1067_s26, 3  ;;  %s1288_s5 = smov 126   ;;  %575 = vmatprep.mubr.bf16.mxu0 %v1289_v31  ;;  %1213 = vset.pattern.permute.xlu0 %v1289_v31  ;;  %v378_v36 = vld [vmem:[%s1583_s2 + $0x18] sm:$0xff]  ;;  %v1223_v37 = vld [vmem:[%s1584_s3 + $0x4] ss:$8 sps:$4 sm:$0xff]   ;;  %v381_v43 = vld [vmem:[%s1583_s2 + $0x30] sm:$0xff] }
  0x13   : >> { %s1122_s28 = smul.u32 24, %s206_s27  ;;  %1214 = vset.pattern.permute.xlu1 %v1289_v31  ;;  %v1225_v38 = vld [vmem:[%s1584_s3] ss:$8 sps:$4 sm:$0xff]   ;;  %v1226_v41 = vld [vmem:[%s1584_s3 + $0x14] ss:$8 sps:$4 sm:$0xff]   ;;  %904 = vmatprep.subr.bf16.mxu1 %v1223_v37  ;;  %vm271_vm0 = vcmask 1039360  }
  0x14   : >> { %v379_v39 = vld [vmem:[%s1583_s2 + $0x20] sm:$0xff]  ;;  %v380_v40 = vld [vmem:[%s1583_s2 + $0x28] sm:$0xff]  ;;  %905 = vmatpush1.bf16.msra.mxu1 %v1225_v38  ;;  %v1228_v42 = vld [vmem:[%s1584_s3 + $0x10] ss:$8 sps:$4 sm:$0xff]   ;;  %vm322_vm1 = vcmask 1031168   ;;  %vm536_vm2 = vcmask 1043456  }
  0x15   : >> { %s1340_s29 = scalar_lea.vmem %s1331_s24, %s1122_s28  ;;  %v382_v44 = vld [vmem:[%s1583_s2 + $0x38] sm:$0xff]  ;;  %906 = vmatprep.subr.bf16.mxu1 %v1226_v41  ;;  %v1229_v45 = vld [vmem:[%s1584_s3 + $0x24] ss:$8 sps:$4 sm:$0xff]   ;;  %v1231_v46 = vld [vmem:[%s1584_s3 + $0x20] ss:$8 sps:$4 sm:$0xff]   ;;  %vm511_vm3 = vcmask 982016  }
  0x16   : >> { %v216_v0 = vld [vmem:[%s1340_s29 + $0x28] sm:$0xff]  ;;  %v218_v1 = vld [vmem:[%s1340_s29 + $0x38] sm:$0xff]  ;;  %v215_v2 = vld [vmem:[%s1340_s29 + $0x20] sm:$0xff]  ;;  %s1118_s8 = sshll.u32 %s1285_s25, 6  ;;  %s204_s25 = sadd.s32 1, %s1285_s25  }
  0x17   : >> { %v1153_v3 = vpack.i.bf16 %v218_v1, %v216_v0  ;;  %v212_v4 = vld [vmem:[%s1340_s29 + $0x8] sm:$0xff]  ;;  %v213_v5 = vld [vmem:[%s1340_s29 + $0x10] sm:$0xff]  ;;  %v214_v6 = vld [vmem:[%s1340_s29 + $0x18] sm:$0xff]  ;;  %v1183_v26 = vpack.i.bf16 %v216_v0, %v215_v2  ;;  %s986_s9 = scalar_lea.vmem %s1326_s21, %s1118_s8  ;;  %p201_p4 = scmp.ge.s32.totalorder %s204_s25, 32  }
  0x18   : >> { %v1143_v7 = vpack.i.bf16 %v213_v5, %v212_v4  ;;  %v219_v8 = vld [vmem:[%s1340_s29 + $0x40] sm:$0xff]  ;;  %v344_v10 = vpack.c.bf16 %v215_v2, %v212_v4  ;;  %v222_v12 = vld [vmem:[%s1340_s29 + $0x58] sm:$0xff]  ;;  %v1352_v13 = vld [vmem:[%s1340_s29 + $0x68] sm:$0xff]  ;;  %907 = vmatpush1.bf16.msra.mxu1 %v1228_v42 }
  0x19   : >> { %v211_v9 = vld [vmem:[%s1340_s29] sm:$0xff]  ;;  %1154 = vrot.lane.b32.xlu1 %v1153_v3, %s1287_s30  ;;  %v1158_v11 = vpack.i.bf16 %v214_v6, %v219_v8  ;;  %v217_v15 = vld [vmem:[%s1340_s29 + $0x30] sm:$0xff]  ;;  %v220_v17 = vld [vmem:[%s1340_s29 + $0x48] sm:$0xff]  ;;  %v1168_v20 = vpack.i.bf16 %v1352_v13, %v222_v12  ;;  %v1193_v27 = vpack.i.bf16 %v219_v8, %v218_v1  ;;  %908 = vmatprep.subr.bf16.mxu1 %v1229_v45 }
  0x1a   : >> { %1144 = vrot.lane.b32.xlu0 %v1143_v7, %s1287_s30  ;;  %v1148_v14 = vpack.i.bf16 %v215_v2, %v211_v9  ;;  %v221_v16 = vld [vmem:[%s1340_s29 + $0x50] sm:$0xff]  ;;  %543 = vmatprep.subr.bf16.mxu0 %v344_v10  ;;  %v343_v18 = vpack.c.bf16 %v214_v6, %v211_v9  ;;  %v345_v22 = vpack.c.bf16 %v220_v17, %v217_v15  ;;  %v1360_v24 = vld [vmem:[%s1340_s29 + $0x60] sm:$0xff]  ;;  %v384_v48 = vld [vmem:[%s1583_s2 + $0x48] sm:$0xff] }
  0x1b   : >> { %v346_v19 = vpack.c.bf16 %v221_v16, %v218_v1  ;;  %v225_v21 = vld [vmem:[%s1340_s29 + $0x70] sm:$0xff]  ;;  %v1163_v23 = vpack.i.bf16 %v221_v16, %v217_v15  ;;  %v1188_v28 = vpack.i.bf16 %v214_v6, %v211_v9  ;;  %v1203_v29 = vpack.i.bf16 %v220_v17, %v217_v15  ;;  %v383_v47 = vld [vmem:[%s1583_s2 + $0x40] sm:$0xff]  ;;  %v386_v52 = vld [vmem:[%s1583_s2 + $0x58] sm:$0xff] }
  0x1c   : >> { %544 = vmatpush1.bf16.msra.mxu0 %v343_v18  ;;  %v1173_v25 = vpack.i.bf16 %v220_v17, %v225_v21  ;;  %v1198_v30 = vpack.i.bf16 %v222_v12, %v221_v16  ;;  %v1208_v32 = vpack.i.bf16 %v1352_v13, %v1360_v24  ;;  %v1232_v49 = vld [vmem:[%s1584_s3 + $0x34] ss:$8 sps:$4 sm:$0xff]   ;;  %909 = vmatpush1.bf16.msra.mxu1 %v1231_v46  ;;  %v1234_v50 = vld [vmem:[%s1584_s3 + $0x30] ss:$8 sps:$4 sm:$0xff]   ;;  %v1235_v53 = vld [vmem:[%s1584_s3 + $0x44] ss:$8 sps:$4 sm:$0xff]  }
  0x1d   : >> { %1159 = vrot.lane.b32.xlu1 %v1158_v11, %s1287_s30  ;;  %545 = vmatprep.subr.bf16.mxu0 %v346_v19  ;;  %v385_v51 = vld [vmem:[%s1583_s2 + $0x50] sm:$0xff]  ;;  %v1237_v54 = vld [vmem:[%s1584_s3 + $0x40] ss:$8 sps:$4 sm:$0xff]   ;;  %v390_v60 = vld [vmem:[%s1583_s2 + $0x78] sm:$0xff] }
  0x1e   : >> { %1149 = vrot.lane.b32.xlu0 %v1148_v14, %s1287_s30  ;;  %910 = vmatprep.subr.bf16.mxu1 %v1232_v49  ;;  %v387_v55 = vld [vmem:[%s1583_s2 + $0x60] sm:$0xff]  ;;  %v388_v56 = vld [vmem:[%s1583_s2 + $0x68] sm:$0xff]  ;;  %v1238_v57 = vld [vmem:[%s1584_s3 + $0x54] ss:$8 sps:$4 sm:$0xff]  }
  0x1f   : >> { %v1240_v58 = vld [vmem:[%s1584_s3 + $0x50] ss:$8 sps:$4 sm:$0xff]   ;;  %v1241_v61 = vld [vmem:[%s1584_s3 + $0x64] ss:$8 sps:$4 sm:$0xff]   ;;  %v1243_v62 = vld [vmem:[%s1584_s3 + $0x60] ss:$8 sps:$4 sm:$0xff]  }
  0x20   : >> { %546 = vmatpush1.bf16.msra.mxu0 %v345_v22  ;;  %911 = vmatpush1.bf16.msra.mxu1 %v1234_v50  ;;  %v389_v59 = vld [vmem:[%s1583_s2 + $0x70] sm:$0xff]  ;;  %v1247_v2 = vld [vmem:[%s1584_s3 + $0x84] ss:$8 sps:$4 sm:$0xff]   ;;  %v1249_v6 = vld [vmem:[%s1584_s3 + $0x80] ss:$8 sps:$4 sm:$0xff]  }
  0x21   : >> { %1169 = vrot.lane.b32.xlu1 %v1168_v20, %s1287_s30  ;;  %912 = vmatprep.subr.bf16.mxu1 %v1235_v53  ;;  %v1244_v63 = vld [vmem:[%s1584_s3 + $0x74] ss:$8 sps:$4 sm:$0xff]   ;;  %v1246_v0 = vld [vmem:[%s1584_s3 + $0x70] ss:$8 sps:$4 sm:$0xff]  }
  0x22   : >> { %1164 = vrot.lane.b32.xlu0 %v1163_v23, %s1287_s30  ;;  %v1250_v9 = vld [vmem:[%s1584_s3 + $0x94] ss:$8 sps:$4 sm:$0xff]   ;;  %v1252_v20 = vld [vmem:[%s1584_s3 + $0x90] ss:$8 sps:$4 sm:$0xff]  }
  0x24   : >> { %913 = vmatpush1.bf16.msra.mxu1 %v1237_v54 }
  0x25   : >> { %265 = vrot.lane.b32.xlu1 %v1360_v24, %s1287_s30  ;;  %914 = vmatprep.subr.bf16.mxu1 %v1238_v57 }
  0x26   : >> { %1174 = vrot.lane.b32.xlu0 %v1173_v25, %s1287_s30 }
  0x28   : >> { %915 = vmatpush1.bf16.msra.mxu1 %v1240_v58 }
  0x29   : >> { %1184 = vrot.lane.b32.xlu1 %v1183_v26, %s1288_s5  ;;  %916 = vmatprep.subr.bf16.mxu1 %v1241_v61 }
  0x2a   : >> { %1179 = vrot.lane.b32.xlu0 %v1143_v7, %s1288_s5 }
  0x2c   : >> { %917 = vmatpush1.bf16.msra.mxu1 %v1243_v62 }
  0x2d   : >> { %1194 = vrot.lane.b32.xlu1 %v1193_v27, %s1288_s5  ;;  %918 = vmatprep.subr.bf16.mxu1 %v1244_v63 }
  0x2e   : >> { %1189 = vrot.lane.b32.xlu0 %v1188_v28, %s1288_s5 }
  0x30   : >> { %919 = vmatpush1.bf16.msra.mxu1 %v1246_v0 }
  0x31   : >> { %1204 = vrot.lane.b32.xlu1 %v1203_v29, %s1288_s5  ;;  %920 = vmatprep.subr.bf16.mxu1 %v1247_v2 }
  0x32   : >> { %1199 = vrot.lane.b32.xlu0 %v1198_v30, %s1288_s5  ;;  %v1255_v30 = vld [vmem:[%s1584_s3 + $0xa0] ss:$8 sps:$4 sm:$0xff]  }
  0x34   : >> { %921 = vmatpush1.bf16.msra.mxu1 %v1249_v6 }
  0x35   : >> { %320 = vrot.lane.b32.xlu1 %v225_v21, %s1288_s5  ;;  %922 = vmatprep.subr.bf16.mxu1 %v1250_v9 }
  0x36   : >> { %1209 = vrot.lane.b32.xlu0 %v1208_v32, %s1288_s5 }
  0x38   : >> { %923 = vmatpush1.bf16.msra.mxu1 %v1252_v20 }
  0x39   : >> { %398 = vperm.xlu1 %1214, %v376_v34  }
  0x3a   : >> { %393 = vperm.xlu0 %1213, %v375_v33  }
  0x3d   : >> { %403 = vperm.xlu1 %1214, %v377_v35  }
  0x3e   : >> { %408 = vperm.xlu0 %1213, %v378_v36  }
  0x41   : >> { %413 = vperm.xlu1 %1214, %v379_v39  }
  0x42   : >> { %418 = vperm.xlu0 %1213, %v380_v40  }
  0x45   : >> { %423 = vperm.xlu1 %1214, %v381_v43  }
  0x46   : >> { %428 = vperm.xlu0 %1213, %v382_v44  }
  0x49   : >> { %433 = vperm.xlu1 %1214, %v383_v47  }
  0x4a   : >> { %438 = vperm.xlu0 %1213, %v384_v48  }
  0x4d   : >> { %443 = vperm.xlu1 %1214, %v385_v51  }
  0x4e   : >> { %448 = vperm.xlu0 %1213, %v386_v52  }
  0x51   : >> { %453 = vperm.xlu1 %1214, %v387_v55  }
  0x52   : >> { %458 = vperm.xlu0 %1213, %v388_v56  }
  0x55   : >> { %463 = vperm.xlu1 %1214, %v389_v59  }
  0x56   : >> { %468 = vperm.xlu0 %1213, %v390_v60  }
  0x8b   : >> { %v1155_v1 = vpop.permute.xlu1 %1154 }
  0x8c   : >> { %v1145_v3 = vpop.permute.xlu0 %1144  ;;  %v1157_v10 = vunpack.i.h.bf16 %v1155_v1  ;;  %v1156_v15 = vunpack.i.l.bf16 %v1155_v1 }
  0x8d   : >> { %v1147_v4 = vunpack.i.h.bf16 %v1145_v3  ;;  %v1146_v5 = vunpack.i.l.bf16 %v1145_v3 }
  0x8f   : >> { %v1160_v7 = vpop.permute.xlu1 %1159  ;;  %v273_v8 = vsel %vm271_vm0, %v1146_v5, %v1147_v4 }
  0x90   : >> { %v1161_v11 = vunpack.i.l.bf16 %v1160_v7  ;;  %v1150_v12 = vpop.permute.xlu0 %1149  ;;  %v348_v14 = vpack.c.bf16 %v273_v8, %v1352_v13  ;;  %v1162_v18 = vunpack.i.h.bf16 %v1160_v7  ;;  %v1253_v13 = vld [vmem:[%s1584_s3 + $0xa4] ss:$8 sps:$4 sm:$0xff]  }
  0x91   : >> { %v1152_v16 = vunpack.i.h.bf16 %v1150_v12  ;;  %v1151_v17 = vunpack.i.l.bf16 %v1150_v12  ;;  %924 = vmatprep.subr.bf16.mxu1 %v1253_v13  ;;  %v1217_v13 = vld [vmem:[%s1582_s1 + $0x10] sm:$0xff]  }
  0x92   : >> { %547 = vmatprep.subr.bf16.mxu0 %v348_v14  ;;  %v277_v19 = vsel %vm271_vm0, %v1157_v10, %v1161_v11  ;;  %925 = vmatpush1.bf16.msra.mxu1 %v1255_v30  ;;  %v1256_v30 = vld [vmem:[%s1584_s3 + $0xb4] ss:$8 sps:$4 sm:$0xff]  }
  0x93   : >> { %v1170_v21 = vpop.permute.xlu1 %1169  ;;  %v272_v22 = vsel %vm271_vm0, %v1151_v17, %v1146_v5  ;;  %v275_v23 = vsel %vm271_vm0, %v1152_v16, %v1156_v15  ;;  %v274_v29 = vsel %vm271_vm0, %v1162_v18, %v1152_v16  ;;  %926 = vmatprep.subr.bf16.mxu1 %v1256_v30 }
  0x94   : >> { %v1165_v25 = vpop.permute.xlu0 %1164  ;;  %v347_v26 = vpack.c.bf16 %v272_v22, %v1360_v24  ;;  %v350_v27 = vpack.c.bf16 %v277_v19, %v275_v23  ;;  %v1172_v32 = vunpack.i.h.bf16 %v1170_v21  ;;  %v1171_v33 = vunpack.i.l.bf16 %v1170_v21  ;;  %v1215_v22 = vld [vmem:[%s1582_s1] sm:$0xff]   ;;  %v1216_v23 = vld [vmem:[%s1582_s1 + $0x8] sm:$0xff]  }
  0x95   : >> { %v1166_v28 = vunpack.i.l.bf16 %v1165_v25  ;;  %v1167_v34 = vunpack.i.h.bf16 %v1165_v25  ;;  %v1218_v25 = vld [vmem:[%s1582_s1 + $0x18] sm:$0xff]  }
  0x96   : >> { %548 = vmatpush1.bf16.msra.mxu0 %v347_v26  ;;  %v1219_v26 = vld [vmem:[%s1582_s1 + $0x20] sm:$0xff]  }
  0x97   : >> { %549 = vmatprep.subr.bf16.mxu0 %v350_v27  ;;  %v266_v35 = vpop.permute.xlu1 %265  ;;  %v276_v36 = vsel %vm271_vm0, %v1166_v28, %v1157_v10  ;;  %v279_v42 = vsel %vm271_vm0, %v1167_v34, %v1171_v33  ;;  %v1220_v27 = vld [vmem:[%s1582_s1 + $0x28] sm:$0xff]   ;;  %v1221_v28 = vld [vmem:[%s1582_s1 + $0x30] sm:$0xff]  }
  0x98   : >> { %v1175_v37 = vpop.permute.xlu0 %1174  ;;  %v349_v24 = vpack.c.bf16 %v276_v36, %v274_v29  ;;  %v280_v40 = vsel %vm271_vm0, %v266_v35, %v1172_v32  ;;  %v1222_v29 = vld [vmem:[%s1582_s1 + $0x38] sm:$0xff]   ;;  %v1261_v33 = vld [vmem:[%s1584_s3 + $0xc0] ss:$8 sps:$4 sm:$0xff]   ;;  %v1265_v36 = vld [vmem:[%s1584_s3 + $0xe4] ss:$8 sps:$4 sm:$0xff]  }
  0x99   : >> { %v1177_v38 = vunpack.i.h.bf16 %v1175_v37  ;;  %v1176_v39 = vunpack.i.l.bf16 %v1175_v37  ;;  %v1264_v35 = vld [vmem:[%s1584_s3 + $0xd0] ss:$8 sps:$4 sm:$0xff]   ;;  %v1267_v37 = vld [vmem:[%s1584_s3 + $0xe0] ss:$8 sps:$4 sm:$0xff]  }
  0x9a   : >> { %550 = vmatpush1.bf16.msra.mxu0 %v349_v24  ;;  %v1268_v24 = vld [vmem:[%s1584_s3 + $0xf4] ss:$8 sps:$4 sm:$0xff]  }
  0x9b   : >> { %v1185_v41 = vpop.permute.xlu1 %1184  ;;  %v281_v43 = vsel %vm271_vm0, %v1172_v32, %v1176_v39  ;;  %v278_v44 = vsel %vm271_vm0, %v1177_v38, %v1167_v34  ;;  %v1258_v32 = vld [vmem:[%s1584_s3 + $0xb0] ss:$8 sps:$4 sm:$0xff]   ;;  %v1262_v34 = vld [vmem:[%s1584_s3 + $0xd4] ss:$8 sps:$4 sm:$0xff]  }
  0x9c   : >> { %v1187_v45 = vunpack.i.h.bf16 %v1185_v41  ;;  %v1186_v46 = vunpack.i.l.bf16 %v1185_v41  ;;  %v1180_v47 = vpop.permute.xlu0 %1179  ;;  %v352_v48 = vpack.c.bf16 %v281_v43, %v279_v42  ;;  %v351_v49 = vpack.c.bf16 %v280_v40, %v278_v44  ;;  %927 = vmatpush1.bf16.msra.mxu1 %v1258_v32  ;;  %v1270_v38 = vld [vmem:[%s1584_s3 + $0xf0] ss:$8 sps:$4 sm:$0xff]  }
  0x9d   : >> { %v1182_v50 = vunpack.i.h.bf16 %v1180_v47  ;;  %v1181_v51 = vunpack.i.l.bf16 %v1180_v47 }
  0x9e   : >> { %551 = vmatprep.subr.bf16.mxu0 %v352_v48  ;;  %v326_v52 = vsel %vm322_vm1, %v1186_v46, %v1187_v45 }
  0x9f   : >> { %552 = vmatpush1.bf16.msra.mxu0 %v351_v49  ;;  %v1195_v53 = vpop.permute.xlu1 %1194  ;;  %v324_v54 = vsel %vm322_vm1, %v1181_v51, %v1182_v50 }
  0xa0   : >> { %v1190_v55 = vpop.permute.xlu0 %1189  ;;  %v354_v56 = vpack.c.bf16 %v326_v52, %v324_v54  ;;  %v1197_v59 = vunpack.i.h.bf16 %v1195_v53  ;;  %v1196_v60 = vunpack.i.l.bf16 %v1195_v53 }
  0xa1   : >> { %v1192_v57 = vunpack.i.h.bf16 %v1190_v55  ;;  %v1191_v58 = vunpack.i.l.bf16 %v1190_v55 }
  0xa2   : >> { %553 = vmatprep.subr.bf16.mxu0 %v354_v56  ;;  %v328_v7 = vsel %vm322_vm1, %v1196_v60, %v1197_v59 }
  0xa3   : >> { %v1205_v61 = vpop.permute.xlu1 %1204  ;;  %v323_v62 = vsel %vm322_vm1, %v1191_v58, %v1181_v51  ;;  %v325_v63 = vsel %vm322_vm1, %v1192_v57, %v1186_v46 }
  0xa4   : >> { %v1207_v0 = vunpack.i.h.bf16 %v1205_v61  ;;  %v1206_v1 = vunpack.i.l.bf16 %v1205_v61  ;;  %v1200_v2 = vpop.permute.xlu0 %1199  ;;  %v353_v3 = vpack.c.bf16 %v325_v63, %v323_v62 }
  0xa5   : >> { %v1202_v4 = vunpack.i.h.bf16 %v1200_v2  ;;  %v1201_v5 = vunpack.i.l.bf16 %v1200_v2 }
  0xa6   : >> { %554 = vmatpush1.bf16.msra.mxu0 %v353_v3  ;;  %v327_v6 = vsel %vm322_vm1, %v1206_v1, %v1196_v60 }
  0xa7   : >> { %v330_v8 = vsel %vm322_vm1, %v1201_v5, %v1202_v4  ;;  %v329_v9 = vsel %vm322_vm1, %v1207_v0, %v1201_v5  ;;  %v321_v11 = vpop.permute.xlu1 %320 }
  0xa8   : >> { %v1210_v10 = vpop.permute.xlu0 %1209  ;;  %v356_v12 = vpack.c.bf16 %v330_v8, %v328_v7  ;;  %v355_v14 = vpack.c.bf16 %v329_v9, %v327_v6 }
  0xa9   : >> { %v1212_v15 = vunpack.i.h.bf16 %v1210_v10  ;;  %v1211_v16 = vunpack.i.l.bf16 %v1210_v10 }
  0xaa   : >> { %555 = vmatprep.subr.bf16.mxu0 %v356_v12 }
  0xab   : >> { %v332_v17 = vsel %vm322_vm1, %v1212_v15, %v321_v11  ;;  %556 = vmatpush1.bf16.msra.mxu0 %v355_v14  ;;  %v331_v18 = vsel %vm322_vm1, %v1211_v16, %v1212_v15 }
  0xac   : >> { %v358_v19 = vpack.c.bf16 %v332_v17, %v332_v17  ;;  %v357_v20 = vpack.c.bf16 %v331_v18, %v331_v18 }
  0xae   : >> { %1077 = vmatprep.subr.msk.bf16.mxu0 %vm536_vm2, %v358_v19  ;;  %v538_v21 = vsel %vm536_vm2, %v357_v20, 0 }
  0xaf   : >> { %558 = vmatpush1.bf16.msra.mxu0 %v538_v21 }
  0xb2   : >> { %1078 = vmatmul.mubr.msk.bf16.vlgmr.msra.gmra.mrb[0].mxu0 %vm511_vm3, %v1215_v22 }
  0xb3   : >> { %585 = vmatprep.mubr.bf16.mxu0 %v1289_v31 }
  0xb8   : >> { %v399_v40 = vpop.permute.xlu1 %398 }
  0xb9   : >> { %v394_v44 = vpop.permute.xlu0 %393 }
  0xba   : >> { %1079 = vmatmul.mubr.msk.bf16.gmra.mrb[4].mxu0 %vm511_vm3, %v1216_v23 }
  0xbb   : >> { %595 = vmatprep.mubr.bf16.mxu0 %v1289_v31 }
  0xbc   : >> { %v404_v45 = vpop.permute.xlu1 %403 }
  0xbd   : >> { %v409_v53 = vpop.permute.xlu0 %408 }
  0xc0   : >> { %v414_v10 = vpop.permute.xlu1 %413 }
  0xc1   : >> { %v419_v15 = vpop.permute.xlu0 %418 }
  0xc2   : >> { %1080 = vmatmul.mubr.msk.bf16.gmra.mrb[8].mxu0 %vm511_vm3, %v1217_v13 }
  0xc3   : >> { %605 = vmatprep.mubr.bf16.mxu0 %v1289_v31 }
  0xc4   : >> { %v424_v17 = vpop.permute.xlu1 %423 }
  0xc5   : >> { %v429_v23 = vpop.permute.xlu0 %428 }
  0xca   : >> { %1081 = vmatmul.mubr.msk.bf16.gmra.mrb[12].mxu0 %vm511_vm3, %v1218_v25 }
  0xcb   : >> { %615 = vmatprep.mubr.bf16.mxu0 %v1289_v31 }
  0xd2   : >> { %1082 = vmatmul.mubr.msk.bf16.gmra.mrb[16].mxu0 %vm511_vm3, %v1219_v26 }
  0xd3   : >> { %625 = vmatprep.mubr.bf16.mxu0 %v1289_v31 }
  0xda   : >> { %1083 = vmatmul.mubr.msk.bf16.gmra.mrb[20].mxu0 %vm511_vm3, %v1220_v27 }
  0xdb   : >> { %635 = vmatprep.mubr.bf16.mxu0 %v1289_v31 }
  0xe2   : >> { %1084 = vmatmul.mubr.msk.bf16.gmra.mrb[24].mxu0 %vm511_vm3, %v1221_v28 }
  0xe3   : >> { %645 = vmatprep.mubr.bf16.mxu0 %v1289_v31  ;;  %v1259_v31 = vld [vmem:[%s1584_s3 + $0xc4] ss:$8 sps:$4 sm:$0xff]  }
  0xe4   : >> { %928 = vmatprep.subr.bf16.mxu1 %v1259_v31 }
  0xe5   : >> { %929 = vmatpush1.bf16.msra.mxu1 %v1261_v33 }
  0xe6   : >> { %930 = vmatprep.subr.bf16.mxu1 %v1262_v34 }
  0xe9   : >> { %931 = vmatpush1.bf16.msra.mxu1 %v1264_v35 }
  0xea   : >> { %1085 = vmatmul.mubr.msk.bf16.gmra.mrb[28].mxu0 %vm511_vm3, %v1222_v29  ;;  %932 = vmatprep.subr.bf16.mxu1 %v1265_v36 }
  0xed   : >> { %933 = vmatpush1.bf16.msra.mxu1 %v1267_v37 }
  0xee   : >> { %934 = vmatprep.subr.bf16.mxu1 %v1268_v24 }
  0xf1   : >> { %935 = vmatpush1.bf16.msra.mxu1 %v1270_v38 }
 0x185   : >> { %v577_v39 = vpop.f32.mrb[0].mxu0 }
 0x186   : >> { %v579_v41 = vpop.f32.mrb[1].mxu0  ;;  %v578_v46 = vadd.f32 %v577_v39, %v394_v44 }
 0x187   : >> { %v581_v42 = vpop.f32.mrb[2].mxu0  ;;  %v580_v47 = vadd.f32 %v579_v41, %v394_v44  ;;  %v434_v44 = vpop.permute.xlu1 %433 }
 0x188   : >> { %v583_v43 = vpop.f32.mrb[3].mxu0  ;;  %v582_v49 = vadd.f32 %v581_v42, %v399_v40  ;;  %v656_v56 = vmax.f32 %v578_v46, 0.0 }
 0x189   : >> { %v584_v52 = vadd.f32 %v583_v43, %v399_v40  ;;  %v657_v60 = vmax.f32 %v580_v47, 0.0 }
 0x18a   : >> { %v658_v63 = vmax.f32 %v582_v49, 0.0 }
 0x18b   : >> { %v659_v2 = vmax.f32 %v584_v52, 0.0 }
 0x18d   : >> { %v587_v48 = vpop.f32.mrb[4].mxu0 }
 0x18e   : >> { %v588_v50 = vadd.f32 %v587_v48, %v404_v45  ;;  %v589_v51 = vpop.f32.mrb[5].mxu0  ;;  %v439_v48 = vpop.permute.xlu0 %438 }
 0x18f   : >> { %v590_v54 = vadd.f32 %v589_v51, %v404_v45  ;;  %v591_v55 = vpop.f32.mrb[6].mxu0 }
 0x190   : >> { %v660_v57 = vmax.f32 %v588_v50, 0.0  ;;  %v592_v58 = vadd.f32 %v591_v55, %v409_v53  ;;  %v593_v59 = vpop.f32.mrb[7].mxu0  ;;  %v444_v50 = vpop.permute.xlu1 %443 }
 0x191   : >> { %v661_v61 = vmax.f32 %v590_v54, 0.0  ;;  %v594_v62 = vadd.f32 %v593_v59, %v409_v53 }
 0x192   : >> { %v688_v0 = vmax.f32 %v656_v56, %v660_v57  ;;  %v662_v1 = vmax.f32 %v592_v58, 0.0  ;;  %v449_v56 = vpop.permute.xlu0 %448 }
 0x193   : >> { %v663_v3 = vmax.f32 %v594_v62, 0.0  ;;  %v689_v4 = vmax.f32 %v657_v60, %v661_v61 }
 0x194   : >> { %v690_v5 = vmax.f32 %v658_v63, %v662_v1 }
 0x195   : >> { %v597_v6 = vpop.f32.mrb[8].mxu0  ;;  %v691_v7 = vmax.f32 %v659_v2, %v663_v3 }
 0x196   : >> { %v599_v8 = vpop.f32.mrb[9].mxu0  ;;  %v704_v9 = vpack.c.bf16 %v690_v5, %v688_v0  ;;  %v598_v16 = vadd.f32 %v597_v6, %v414_v10 }
 0x197   : >> { %v601_v11 = vpop.f32.mrb[10].mxu0  ;;  %v705_v12 = vpack.c.bf16 %v691_v7, %v689_v4  ;;  %v600_v18 = vadd.f32 %v599_v8, %v414_v10 }
 0x198   : >> { %v603_v14 = vpop.f32.mrb[11].mxu0  ;;  %v602_v20 = vadd.f32 %v601_v11, %v419_v15  ;;  %v664_v27 = vmax.f32 %v598_v16, 0.0 }
 0x199   : >> { %936 = vmatprep.mubr.bf16.mxu1 %v705_v12  ;;  %v604_v13 = vadd.f32 %v603_v14, %v419_v15  ;;  %v665_v32 = vmax.f32 %v600_v18, 0.0  ;;  %v454_v15 = vpop.permute.xlu1 %453 }
 0x19a   : >> { %937 = vmatmul.mubr.bf16.vlgmr.msra.gmra.mrb[0].mxu1 %v704_v9  ;;  %v666_v34 = vmax.f32 %v602_v20, 0.0 }
 0x19b   : >> { %v667_v37 = vmax.f32 %v604_v13, 0.0 }
 0x19d   : >> { %v607_v19 = vpop.f32.mrb[12].mxu0 }
 0x19e   : >> { %v608_v21 = vadd.f32 %v607_v19, %v424_v17  ;;  %v609_v22 = vpop.f32.mrb[13].mxu0  ;;  %v459_v19 = vpop.permute.xlu0 %458 }
 0x19f   : >> { %v610_v25 = vadd.f32 %v609_v22, %v424_v17  ;;  %v611_v26 = vpop.f32.mrb[14].mxu0 }
 0x1a0   : >> { %v668_v28 = vmax.f32 %v608_v21, 0.0  ;;  %v612_v29 = vadd.f32 %v611_v26, %v429_v23  ;;  %v613_v30 = vpop.f32.mrb[15].mxu0  ;;  %v464_v21 = vpop.permute.xlu1 %463 }
 0x1a1   : >> { %v669_v31 = vmax.f32 %v610_v25, 0.0  ;;  %v614_v33 = vadd.f32 %v613_v30, %v429_v23 }
 0x1a2   : >> { %v692_v35 = vmax.f32 %v664_v27, %v668_v28  ;;  %v670_v36 = vmax.f32 %v612_v29, 0.0  ;;  %v469_v27 = vpop.permute.xlu0 %468 }
 0x1a3   : >> { %v693_v24 = vmax.f32 %v665_v32, %v669_v31  ;;  %v671_v38 = vmax.f32 %v614_v33, 0.0 }
 0x1a4   : >> { %v694_v39 = vmax.f32 %v666_v34, %v670_v36 }
 0x1a5   : >> { %v695_v40 = vmax.f32 %v667_v37, %v671_v38  ;;  %v617_v41 = vpop.f32.mrb[16].mxu0 }
 0x1a6   : >> { %v619_v42 = vpop.f32.mrb[17].mxu0  ;;  %v706_v43 = vpack.c.bf16 %v694_v39, %v692_v35  ;;  %v618_v49 = vadd.f32 %v617_v41, %v434_v44 }
 0x1a7   : >> { %v621_v45 = vpop.f32.mrb[18].mxu0  ;;  %v707_v46 = vpack.c.bf16 %v695_v40, %v693_v24  ;;  %v620_v51 = vadd.f32 %v619_v42, %v434_v44 }
 0x1a8   : >> { %v623_v47 = vpop.f32.mrb[19].mxu0  ;;  %v622_v53 = vadd.f32 %v621_v45, %v439_v48  ;;  %v672_v60 = vmax.f32 %v618_v49, 0.0 }
 0x1a9   : >> { %946 = vmatprep.mubr.bf16.mxu1 %v707_v46  ;;  %v624_v57 = vadd.f32 %v623_v47, %v439_v48  ;;  %v673_v0 = vmax.f32 %v620_v51, 0.0 }
 0x1aa   : >> { %947 = vmatmul.mubr.bf16.gmra.mrb[4].mxu1 %v706_v43  ;;  %v674_v3 = vmax.f32 %v622_v53, 0.0 }
 0x1ab   : >> { %v675_v6 = vmax.f32 %v624_v57, 0.0 }
 0x1ad   : >> { %v627_v52 = vpop.f32.mrb[20].mxu0 }
 0x1ae   : >> { %v628_v54 = vadd.f32 %v627_v52, %v444_v50  ;;  %v629_v55 = vpop.f32.mrb[21].mxu0 }
 0x1af   : >> { %v630_v58 = vadd.f32 %v629_v55, %v444_v50  ;;  %v631_v59 = vpop.f32.mrb[22].mxu0 }
 0x1b0   : >> { %v676_v61 = vmax.f32 %v628_v54, 0.0  ;;  %v632_v62 = vadd.f32 %v631_v59, %v449_v56  ;;  %v633_v63 = vpop.f32.mrb[23].mxu0 }
 0x1b1   : >> { %v677_v1 = vmax.f32 %v630_v58, 0.0  ;;  %v634_v2 = vadd.f32 %v633_v63, %v449_v56 }
 0x1b2   : >> { %v696_v4 = vmax.f32 %v672_v60, %v676_v61  ;;  %v678_v5 = vmax.f32 %v632_v62, 0.0 }
 0x1b3   : >> { %v697_v7 = vmax.f32 %v673_v0, %v677_v1  ;;  %v679_v8 = vmax.f32 %v634_v2, 0.0 }
 0x1b4   : >> { %v698_v9 = vmax.f32 %v674_v3, %v678_v5 }
 0x1b5   : >> { %v699_v10 = vmax.f32 %v675_v6, %v679_v8  ;;  %v637_v11 = vpop.f32.mrb[24].mxu0 }
 0x1b6   : >> { %v639_v12 = vpop.f32.mrb[25].mxu0  ;;  %v708_v14 = vpack.c.bf16 %v698_v9, %v696_v4  ;;  %v638_v20 = vadd.f32 %v637_v11, %v454_v15 }
 0x1b7   : >> { %v641_v16 = vpop.f32.mrb[26].mxu0  ;;  %v709_v17 = vpack.c.bf16 %v699_v10, %v697_v7  ;;  %v640_v22 = vadd.f32 %v639_v12, %v454_v15 }
 0x1b8   : >> { %v643_v18 = vpop.f32.mrb[27].mxu0  ;;  %v642_v13 = vadd.f32 %v641_v16, %v459_v19  ;;  %v680_v32 = vmax.f32 %v638_v20, 0.0 }
 0x1b9   : >> { %956 = vmatprep.mubr.bf16.mxu1 %v709_v17  ;;  %v644_v28 = vadd.f32 %v643_v18, %v459_v19  ;;  %v681_v35 = vmax.f32 %v640_v22, 0.0 }
 0x1ba   : >> { %957 = vmatmul.mubr.bf16.gmra.mrb[8].mxu1 %v708_v14  ;;  %v682_v24 = vmax.f32 %v642_v13, 0.0 }
 0x1bb   : >> { %v683_v40 = vmax.f32 %v644_v28, 0.0 }
 0x1bd   : >> { %v647_v23 = vpop.f32.mrb[28].mxu0 }
 0x1be   : >> { %v648_v25 = vadd.f32 %v647_v23, %v464_v21  ;;  %v649_v26 = vpop.f32.mrb[29].mxu0 }
 0x1bf   : >> { %v650_v29 = vadd.f32 %v649_v26, %v464_v21  ;;  %v651_v30 = vpop.f32.mrb[30].mxu0 }
 0x1c0   : >> { %v684_v31 = vmax.f32 %v648_v25, 0.0  ;;  %v652_v33 = vadd.f32 %v651_v30, %v469_v27  ;;  %v653_v34 = vpop.f32.mrb[31].mxu0 }
 0x1c1   : >> { %v685_v36 = vmax.f32 %v650_v29, 0.0  ;;  %v654_v37 = vadd.f32 %v653_v34, %v469_v27 }
 0x1c2   : >> { %v700_v38 = vmax.f32 %v680_v32, %v684_v31  ;;  %v686_v39 = vmax.f32 %v652_v33, 0.0 }
 0x1c3   : >> { %v701_v41 = vmax.f32 %v681_v35, %v685_v36  ;;  %v687_v42 = vmax.f32 %v654_v37, 0.0 }
 0x1c4   : >> { %v702_v43 = vmax.f32 %v682_v24, %v686_v39 }
 0x1c5   : >> { %v703_v44 = vmax.f32 %v683_v40, %v687_v42 }
 0x1c6   : >> { %v710_v45 = vpack.c.bf16 %v702_v43, %v700_v38 }
 0x1c7   : >> { %v711_v46 = vpack.c.bf16 %v703_v44, %v701_v41 }
 0x1c9   : >> { %966 = vmatprep.mubr.bf16.mxu1 %v711_v46 }
 0x1ca   : >> { %967 = vmatmul.mubr.bf16.gmra.mrb[12].mxu1 %v710_v45 }
 0x26d   : >> { %v938_v47 = vpop.f32.mrb[0].mxu1 }
 0x26e   : >> { %v940_v48 = vpop.f32.mrb[1].mxu1 }
 0x26f   : >> { %v977_v49 = vmax.f32 %v938_v47, %v940_v48  ;;  %v942_v50 = vpop.f32.mrb[2].mxu1 }
 0x270   : >> { %v944_v51 = vpop.f32.mrb[3].mxu1 }
 0x271   : >> { %987 = vst [vmem:[%s986_s9] sm:$0xff] %v977_v49  ;;  %v978_v52 = vmax.f32 %v942_v50, %v944_v51 }
 0x273   : >> { %988 = vst [vmem:[%s986_s9 + $0x8] sm:$0xff] %v978_v52 }
 0x27d   : >> { %v948_v53 = vpop.f32.mrb[4].mxu1 }
 0x27e   : >> { %v950_v54 = vpop.f32.mrb[5].mxu1 }
 0x27f   : >> { %v979_v55 = vmax.f32 %v948_v53, %v950_v54  ;;  %v952_v56 = vpop.f32.mrb[6].mxu1 }
 0x280   : >> { %v954_v57 = vpop.f32.mrb[7].mxu1 }
 0x281   : >> { %989 = vst [vmem:[%s986_s9 + $0x10] sm:$0xff] %v979_v55  ;;  %v980_v58 = vmax.f32 %v952_v56, %v954_v57 }
 0x283   : >> { %990 = vst [vmem:[%s986_s9 + $0x18] sm:$0xff] %v980_v58 }
 0x28d   : >> { %v958_v59 = vpop.f32.mrb[8].mxu1 }
 0x28e   : >> { %v960_v60 = vpop.f32.mrb[9].mxu1 }
 0x28f   : >> { %v981_v61 = vmax.f32 %v958_v59, %v960_v60  ;;  %v962_v62 = vpop.f32.mrb[10].mxu1 }
 0x290   : >> { %v964_v63 = vpop.f32.mrb[11].mxu1 }
 0x291   : >> { %991 = vst [vmem:[%s986_s9 + $0x20] sm:$0xff] %v981_v61  ;;  %v982_v0 = vmax.f32 %v962_v62, %v964_v63 }
 0x293   : >> { %992 = vst [vmem:[%s986_s9 + $0x28] sm:$0xff] %v982_v0 }
 0x29d   : >> { %v968_v1 = vpop.f32.mrb[12].mxu1  ;;  %203 = sbr.rel (!%p201_p4) target bundleno = 17 (0x11), region = 75 }
 0x29e   : >> { %v970_v2 = vpop.f32.mrb[13].mxu1 }
 0x29f   : >> { %v983_v3 = vmax.f32 %v968_v1, %v970_v2  ;;  %v972_v4 = vpop.f32.mrb[14].mxu1 }
 0x2a0   : >> { %v974_v5 = vpop.f32.mrb[15].mxu1 }
 0x2a1   : >> { %993 = vst [vmem:[%s986_s9 + $0x30] sm:$0xff] %v983_v3  ;;  %v984_v6 = vmax.f32 %v972_v4, %v974_v5 }
 0x2a3   : >> { %994 = vst [vmem:[%s986_s9 + $0x38] sm:$0xff] %v984_v6 }
 0x2a4 PF: > { %s14_s15 = sadd.s32 1, %s1281_s15  }
 0x2a5   : > { %p11_p5 = scmp.ge.s32.totalorder %s14_s15, 4  }
 0x2a7   :  { %13 = sbr.rel (!%p11_p5) target bundleno = 1 (0x1), region = 86 }

// kernel: ssd_forward.4
= control target key start
LH: loop header
LB: loop body
LE: loop exit
PB: predicated region body
PF: predicated region fallthrough
CT: control target
= control target key end

     0   :  { %s1590_s15 = smov 0   ;;  %s1896_s0 = inlined_call_operand.vmem [shape: f32[2,2080,130], index: 0, kind: input, shape index: {}]   ;;  %s1897_s1 = inlined_call_operand.vmem [shape: bf16[128,288], index: 1, kind: input, shape index: {}]   ;;  %s1898_s2 = inlined_call_operand.vmem [shape: f32[128,1], index: 2, kind: input, shape index: {}]   ;;  %s1899_s3 = inlined_call_operand.vmem [shape: bf16[128,128], index: 3, kind: input, shape index: {}]   ;;  %s1900_s4 = inlined_call_operand.vmem [shape: f32[2,2048,64], index: 4, kind: output, shape index: {}]  }
   0x1 LB: > { %s1161_s16 = sadd.s32 4294967295, %s1555_s15   ;;  %p1165_p0 = scmp.ge.s32.totalorder %s1555_s15, 1  ;;  %s1555_s15 = sphi %s1590_s15, %s14_s15  }
   0x2   : > { %p162_p1 = scmp.lt.s32.totalorder %s1555_s15, 3 }
   0x4   : > { %p163_p2 = pnand %p1165_p0, %p162_p1 }
   0x5   : > { %p188_p3 = scmp.lt.s32.totalorder (!%p163_p2), %s1161_s16, 1  ;;  %s1608_s25 = smov (!%p163_p2), 0  }
   0x6   : > { %166 = sbr.rel (%p163_p2) target bundleno = 797 (0x31d), region = 36 }
   0xd   : > { %s1902_s16 = smov (!%p188_p3, %s1161_s16), 1 }
   0xe   : > { %s1362_s17 = smul.u32 4160, %s1902_s16  ;;  %s1214_s18 = sshll.u32 %s1902_s16, 11 }
   0xf   : > { %s1601_s21 = scalar_lea.vmem %s1900_s4, %s1214_s18 }
  0x10   : > { %s1606_s24 = scalar_lea.vmem %s1896_s0, %s1362_s17 }
  0x11 LB: >> { %s1169_s26 = sshll.u32 %s1559_s25, 6  ;;  %s1561_s30 = smov 127   ;;  %v1507_v42 = vld [vmem:[%s1897_s1 + $0x4] ss:$12 sps:$4 sm:$0xff]   ;;  %v1510_v43 = vld [vmem:[%s1897_s1 + $0xac] ss:$12 sps:$4 sm:$0xff]   ;;  %s1559_s25 = sphi %s1608_s25, %s204_s25  }
  0x12   : >> { %s206_s27 = sshra.s32 %s1169_s26, 3  ;;  %s1562_s5 = smov 126   ;;  %728 = vmatprep.mubr.bf16.mxu0 %v1507_v42  ;;  %784 = vmatprep.mubr.bf16.mxu1 %v1510_v43  ;;  %v456_v44 = vld [vmem:[%s1898_s2 + $0x8] sm:$0xff]  ;;  %v455_v45 = vld [vmem:[%s1898_s2] sm:$0xff]  ;;  %v1563_v46 = vmov 0   ;;  %v457_v49 = vld [vmem:[%s1898_s2 + $0x10] sm:$0xff] }
  0x13   : >> { %s1215_s28 = sshll.u32 %s206_s27, 4  ;;  %1504 = vset.pattern.permute.xlu1 %v1563_v46  ;;  %1503 = vset.pattern.permute.xlu0 %v1563_v46  ;;  %v459_v47 = vld [vmem:[%s1898_s2 + $0x20] sm:$0xff]  ;;  %v460_v48 = vld [vmem:[%s1898_s2 + $0x28] sm:$0xff]  ;;  %v458_v50 = vld [vmem:[%s1898_s2 + $0x18] sm:$0xff]  ;;  %vm307_vm0 = vcmask 1039360   ;;  %vm380_vm1 = vcmask 1031168   ;;  %s1087_s20 = scalar_lea.vmem %s1601_s21, %s1169_s26 }
  0x14   : >> { %s1617_s29 = scalar_lea.vmem %s1606_s24, %s1215_s28  ;;  %v461_v51 = vld [vmem:[%s1898_s2 + $0x30] sm:$0xff]  ;;  %v462_v52 = vld [vmem:[%s1898_s2 + $0x38] sm:$0xff]  ;;  %v463_v53 = vld [vmem:[%s1898_s2 + $0x40] sm:$0xff]  ;;  %vm671_vm2 = vcmask 261120   ;;  %s1564_s19 = smov 64   ;;  %vm1088_vm3 = vcmask 523264  }
  0x15   : >> { %v223_v0 = vld [vmem:[%s1617_s29 + $0x60] sm:$0xff]  ;;  %v224_v1 = vld [vmem:[%s1617_s29 + $0x68] sm:$0xff]  ;;  %v225_v5 = vld [vmem:[%s1617_s29 + $0x70] sm:$0xff]  ;;  %s204_s25 = sadd.s32 1, %s1559_s25  }
  0x16   : >> { %v219_v2 = vld [vmem:[%s1617_s29 + $0x40] sm:$0xff]  ;;  %v1393_v3 = vpack.i.bf16 %v224_v1, %v223_v0  ;;  %v220_v4 = vld [vmem:[%s1617_s29 + $0x48] sm:$0xff]  ;;  %v226_v6 = vld [vmem:[%s1617_s29 + $0x78] sm:$0xff]  ;;  %v1652_v32 = vpack.c.bf16 %v225_v5, %v223_v0  ;;  %p201_p4 = scmp.ge.s32.totalorder %s204_s25, 32  }
  0x17   : >> { %v1383_v7 = vpack.i.bf16 %v220_v4, %v219_v2  ;;  %v221_v8 = vld [vmem:[%s1617_s29 + $0x50] sm:$0xff]  ;;  %v222_v9 = vld [vmem:[%s1617_s29 + $0x58] sm:$0xff]  ;;  %v1398_v10 = vpack.i.bf16 %v226_v6, %v225_v5  ;;  %v227_v14 = vld [vmem:[%s1617_s29 + $0x80] sm:$0xff] }
  0x18   : >> { %1394 = vrot.lane.b32.xlu1 %v1393_v3, %s1561_s30  ;;  %v1388_v11 = vpack.i.bf16 %v222_v9, %v221_v8  ;;  %v229_v12 = vld [vmem:[%s1617_s29 + $0x90] sm:$0xff]  ;;  %v230_v13 = vld [vmem:[%s1617_s29 + $0x98] sm:$0xff]  ;;  %v228_v15 = vld [vmem:[%s1617_s29 + $0x88] sm:$0xff]  ;;  %v1644_v26 = vpack.c.bf16 %v221_v8, %v219_v2 }
  0x19   : >> { %1384 = vrot.lane.b32.xlu0 %v1383_v7, %s1561_s30  ;;  %v233_v16 = vld [vmem:[%s1617_s29 + $0xb0] sm:$0xff]  ;;  %v234_v17 = vld [vmem:[%s1617_s29 + $0xb8] sm:$0xff]  ;;  %v211_v19 = vld [vmem:[%s1617_s29] sm:$0xff]  ;;  %v1408_v20 = vpack.i.bf16 %v230_v13, %v229_v12  ;;  %v1403_v27 = vpack.i.bf16 %v228_v15, %v227_v14  ;;  %v1658_v37 = vpack.c.bf16 %v229_v12, %v227_v14 }
  0x1a   : >> { %v213_v18 = vld [vmem:[%s1617_s29 + $0x10] sm:$0xff]  ;;  %v231_v21 = vld [vmem:[%s1617_s29 + $0xa0] sm:$0xff]  ;;  %v232_v22 = vld [vmem:[%s1617_s29 + $0xa8] sm:$0xff]  ;;  %v1418_v30 = vpack.i.bf16 %v234_v17, %v233_v16 }
  0x1b   : >> { %v217_v23 = vld [vmem:[%s1617_s29 + $0x30] sm:$0xff]  ;;  %v215_v24 = vld [vmem:[%s1617_s29 + $0x20] sm:$0xff]  ;;  %v1642_v25 = vpack.c.bf16 %v213_v18, %v211_v19  ;;  %v214_v29 = vld [vmem:[%s1617_s29 + $0x18] sm:$0xff]  ;;  %v1413_v33 = vpack.i.bf16 %v232_v22, %v231_v21  ;;  %v1661_v40 = vpack.c.bf16 %v233_v16, %v231_v21 }
  0x1c   : >> { %1399 = vrot.lane.b32.xlu1 %v1398_v10, %s1561_s30  ;;  %v1647_v28 = vpack.c.bf16 %v217_v23, %v215_v24  ;;  %v212_v31 = vld [vmem:[%s1617_s29 + $0x8] sm:$0xff]  ;;  %v218_v34 = vld [vmem:[%s1617_s29 + $0x38] sm:$0xff]  ;;  %v1428_v35 = vpack.i.bf16 %v214_v29, %v213_v18  ;;  %v467_v55 = vld [vmem:[%s1898_s2 + $0x60] sm:$0xff] }
  0x1d   : >> { %1389 = vrot.lane.b32.xlu0 %v1388_v11, %s1561_s30  ;;  %v216_v36 = vld [vmem:[%s1617_s29 + $0x28] sm:$0xff]  ;;  %v1423_v38 = vpack.i.bf16 %v212_v31, %v211_v19  ;;  %v1438_v39 = vpack.i.bf16 %v218_v34, %v217_v23  ;;  %v465_v57 = vld [vmem:[%s1898_s2 + $0x50] sm:$0xff]  ;;  %v466_v58 = vld [vmem:[%s1898_s2 + $0x58] sm:$0xff] }
  0x1e   : >> { %v1433_v41 = vpack.i.bf16 %v216_v36, %v215_v24  ;;  %v464_v54 = vld [vmem:[%s1898_s2 + $0x48] sm:$0xff]  ;;  %v469_v59 = vld [vmem:[%s1898_s2 + $0x70] sm:$0xff]  ;;  %v470_v60 = vld [vmem:[%s1898_s2 + $0x78] sm:$0xff] }
  0x1f   : >> { %v468_v56 = vld [vmem:[%s1898_s2 + $0x68] sm:$0xff] }
  0x20   : >> { %1409 = vrot.lane.b32.xlu1 %v1408_v20, %s1561_s30 }
  0x21   : >> { %1404 = vrot.lane.b32.xlu0 %v1403_v27, %s1561_s30 }
  0x24   : >> { %1419 = vrot.lane.b32.xlu1 %v1418_v30, %s1561_s30 }
  0x25   : >> { %1414 = vrot.lane.b32.xlu0 %v1413_v33, %s1561_s30 }
  0x28   : >> { %1429 = vrot.lane.b32.xlu1 %v1428_v35, %s1562_s5 }
  0x29   : >> { %1424 = vrot.lane.b32.xlu0 %v1423_v38, %s1562_s5 }
  0x2c   : >> { %1439 = vrot.lane.b32.xlu1 %v1438_v39, %s1562_s5 }
  0x2d   : >> { %1434 = vrot.lane.b32.xlu0 %v1433_v41, %s1562_s5 }
  0x30   : >> { %1449 = vrot.lane.b32.xlu1 %v1388_v11, %s1562_s5 }
  0x31   : >> { %1444 = vrot.lane.b32.xlu0 %v1383_v7, %s1562_s5 }
  0x34   : >> { %1459 = vrot.lane.b32.xlu1 %v1428_v35, %s1561_s30 }
  0x35   : >> { %1454 = vrot.lane.b32.xlu0 %v1423_v38, %s1561_s30 }
  0x38   : >> { %1469 = vrot.lane.b32.xlu1 %v1398_v10, %s1562_s5 }
  0x39   : >> { %1464 = vrot.lane.b32.xlu0 %v1393_v3, %s1562_s5 }
  0x3c   : >> { %1479 = vrot.lane.b32.xlu1 %v1438_v39, %s1561_s30 }
  0x3d   : >> { %1474 = vrot.lane.b32.xlu0 %v1433_v41, %s1561_s30 }
  0x40   : >> { %1489 = vrot.lane.b32.xlu1 %v1408_v20, %s1562_s5 }
  0x41   : >> { %1484 = vrot.lane.b32.xlu0 %v1403_v27, %s1562_s5 }
  0x44   : >> { %1499 = vrot.lane.b32.xlu1 %v1418_v30, %s1562_s5 }
  0x45   : >> { %1494 = vrot.lane.b32.xlu0 %v1413_v33, %s1562_s5 }
  0x48   : >> { %478 = vperm.xlu1 %1504, %v456_v44  }
  0x49   : >> { %473 = vperm.xlu0 %1503, %v455_v45  }
  0x4c   : >> { %493 = vperm.xlu1 %1504, %v459_v47  }
  0x4d   : >> { %498 = vperm.xlu0 %1503, %v460_v48  }
  0x50   : >> { %483 = vperm.xlu1 %1504, %v457_v49  }
  0x51   : >> { %488 = vperm.xlu0 %1503, %v458_v50  }
  0x54   : >> { %503 = vperm.xlu1 %1504, %v461_v51  }
  0x55   : >> { %508 = vperm.xlu0 %1503, %v462_v52  }
  0x58   : >> { %513 = vperm.xlu1 %1504, %v463_v53  }
  0x59   : >> { %518 = vperm.xlu0 %1503, %v464_v54  }
  0x5c   : >> { %533 = vperm.xlu1 %1504, %v467_v55  }
  0x5d   : >> { %538 = vperm.xlu0 %1503, %v468_v56  }
  0x60   : >> { %523 = vperm.xlu1 %1504, %v465_v57  }
  0x61   : >> { %528 = vperm.xlu0 %1503, %v466_v58  }
  0x64   : >> { %543 = vperm.xlu1 %1504, %v469_v59  }
  0x65   : >> { %548 = vperm.xlu0 %1503, %v470_v60  }
  0x8a   : >> { %v1395_v61 = vpop.permute.xlu1 %1394 }
  0x8b   : >> { %v1385_v62 = vpop.permute.xlu0 %1384  ;;  %v1397_v5 = vunpack.i.h.bf16 %v1395_v61  ;;  %v1396_v6 = vunpack.i.l.bf16 %v1395_v61 }
  0x8c   : >> { %v1387_v63 = vunpack.i.h.bf16 %v1385_v62  ;;  %v1386_v0 = vunpack.i.l.bf16 %v1385_v62 }
  0x8d   : >> { %v314_v19 = vsel %vm307_vm0, %v1396_v6, %v1397_v5 }
  0x8e   : >> { %v1400_v1 = vpop.permute.xlu1 %1399  ;;  %v312_v10 = vsel %vm307_vm0, %v1386_v0, %v1387_v63 }
  0x8f   : >> { %v1402_v2 = vunpack.i.h.bf16 %v1400_v1  ;;  %v1401_v3 = vunpack.i.l.bf16 %v1400_v1  ;;  %v1390_v4 = vpop.permute.xlu0 %1389 }
  0x90   : >> { %v1392_v7 = vunpack.i.h.bf16 %v1390_v4  ;;  %v1391_v8 = vunpack.i.l.bf16 %v1390_v4 }
  0x91   : >> { %v315_v12 = vsel %vm307_vm0, %v1401_v3, %v1402_v2 }
  0x92   : >> { %v1410_v9 = vpop.permute.xlu1 %1409  ;;  %v313_v11 = vsel %vm307_vm0, %v1391_v8, %v1392_v7  ;;  %v414_v20 = vpack.c.bf16 %v315_v12, %v314_v19 }
  0x93   : >> { %v1412_v13 = vunpack.i.h.bf16 %v1410_v9  ;;  %v1411_v14 = vunpack.i.l.bf16 %v1410_v9  ;;  %v1405_v15 = vpop.permute.xlu0 %1404  ;;  %v413_v16 = vpack.c.bf16 %v313_v11, %v312_v10 }
  0x94   : >> { %v1407_v17 = vunpack.i.h.bf16 %v1405_v15  ;;  %v1406_v18 = vunpack.i.l.bf16 %v1405_v15 }
  0x95   : >> { %1216 = vmatprep.subr.bf16.mxu0 %v413_v16  ;;  %1346 = vmatprep.subr.bf16.mxu1 %v413_v16  ;;  %v317_v23 = vsel %vm307_vm0, %v1411_v14, %v1412_v13 }
  0x96   : >> { %1217 = vmatpush3.bf16.msra.mxu0 %v1642_v25  ;;  %1354 = vmatpush3.bf16.msra.mxu1 %v1642_v25  ;;  %v1420_v21 = vpop.permute.xlu1 %1419  ;;  %v316_v22 = vsel %vm307_vm0, %v1406_v18, %v1407_v17 }
  0x97   : >> { %v1422_v24 = vunpack.i.h.bf16 %v1420_v21  ;;  %v1421_v27 = vunpack.i.l.bf16 %v1420_v21  ;;  %v1415_v29 = vpop.permute.xlu0 %1414  ;;  %1218 = vmatprep.subr.bf16.mxu0 %v414_v20  ;;  %1347 = vmatprep.subr.bf16.mxu1 %v414_v20  ;;  %v415_v33 = vpack.c.bf16 %v317_v23, %v316_v22 }
  0x98   : >> { %v1417_v30 = vunpack.i.h.bf16 %v1415_v29  ;;  %v1416_v31 = vunpack.i.l.bf16 %v1415_v29 }
  0x99   : >> { %v319_v35 = vsel %vm307_vm0, %v1421_v27, %v1422_v24 }
  0x9a   : >> { %1219 = vmatpush3.bf16.msra.mxu0 %v1647_v28  ;;  %1355 = vmatpush3.bf16.msra.mxu1 %v1647_v28  ;;  %v1430_v34 = vpop.permute.xlu1 %1429  ;;  %v318_v25 = vsel %vm307_vm0, %v1416_v31, %v1417_v30 }
  0x9b   : >> { %v1432_v36 = vunpack.i.h.bf16 %v1430_v34  ;;  %v1431_v38 = vunpack.i.l.bf16 %v1430_v34  ;;  %v1425_v39 = vpop.permute.xlu0 %1424  ;;  %1220 = vmatprep.subr.bf16.mxu0 %v415_v33  ;;  %1348 = vmatprep.subr.bf16.mxu1 %v415_v33  ;;  %v416_v43 = vpack.c.bf16 %v319_v35, %v318_v25  ;;  %v1505_v33 = vld [vmem:[%s1897_s1] ss:$12 sps:$4 sm:$0xff]   ;;  %v1508_v34 = vld [vmem:[%s1897_s1 + $0xa8] ss:$12 sps:$4 sm:$0xff]  }
  0x9c   : >> { %v1427_v41 = vunpack.i.h.bf16 %v1425_v39  ;;  %v1426_v42 = vunpack.i.l.bf16 %v1425_v39  ;;  %v1511_v35 = vld [vmem:[%s1897_s1 + $0x1c] ss:$12 sps:$4 sm:$0xff]  }
  0x9d   : >> { %v382_v45 = vsel %vm380_vm1, %v1431_v38, %v1432_v36  ;;  %v1514_v39 = vld [vmem:[%s1897_s1 + $0x8] ss:$12 sps:$4 sm:$0xff]  }
  0x9e   : >> { %1221 = vmatpush3.bf16.msra.mxu0 %v1644_v26  ;;  %1356 = vmatpush3.bf16.msra.mxu1 %v1644_v26  ;;  %v1440_v44 = vpop.permute.xlu1 %1439  ;;  %v381_v28 = vsel %vm380_vm1, %v1426_v42, %v1427_v41 }
  0x9f   : >> { %v1442_v46 = vunpack.i.h.bf16 %v1440_v44  ;;  %v1441_v47 = vunpack.i.l.bf16 %v1440_v44  ;;  %v1435_v48 = vpop.permute.xlu0 %1434  ;;  %1222 = vmatprep.subr.bf16.mxu0 %v416_v43  ;;  %1349 = vmatprep.subr.bf16.mxu1 %v416_v43  ;;  %v417_v51 = vpack.c.bf16 %v382_v45, %v381_v28 }
  0xa0   : >> { %v1437_v49 = vunpack.i.h.bf16 %v1435_v48  ;;  %v1436_v50 = vunpack.i.l.bf16 %v1435_v48 }
  0xa1   : >> { %v384_v53 = vsel %vm380_vm1, %v1441_v47, %v1442_v46 }
  0xa2   : >> { %1223 = vmatpush3.bf16.msra.mxu0 %v1652_v32  ;;  %1357 = vmatpush3.bf16.msra.mxu1 %v1652_v32  ;;  %v1450_v52 = vpop.permute.xlu1 %1449  ;;  %v383_v26 = vsel %vm380_vm1, %v1436_v50, %v1437_v49  ;;  %v1513_v49 = vld [vmem:[%s1897_s1 + $0x18] ss:$12 sps:$4 sm:$0xff]   ;;  %v1515_v50 = vld [vmem:[%s1897_s1 + $0x20] ss:$12 sps:$4 sm:$0xff]  }
  0xa3   : >> { %v1452_v54 = vunpack.i.h.bf16 %v1450_v52  ;;  %v1451_v55 = vunpack.i.l.bf16 %v1450_v52  ;;  %v1445_v56 = vpop.permute.xlu0 %1444  ;;  %1224 = vmatprep.subr.bf16.mxu0 %v417_v51  ;;  %1350 = vmatprep.subr.bf16.mxu1 %v417_v51  ;;  %v418_v59 = vpack.c.bf16 %v384_v53, %v383_v26  ;;  %v1516_v51 = vld [vmem:[%s1897_s1 + $0x34] ss:$12 sps:$4 sm:$0xff]   ;;  %v1519_v52 = vld [vmem:[%s1897_s1 + $0x38] ss:$12 sps:$4 sm:$0xff]   ;;  %v1518_v26 = vld [vmem:[%s1897_s1 + $0x30] ss:$12 sps:$4 sm:$0xff]  }
  0xa4   : >> { %v1447_v57 = vunpack.i.h.bf16 %v1445_v56  ;;  %v1446_v58 = vunpack.i.l.bf16 %v1445_v56  ;;  %v1520_v53 = vld [vmem:[%s1897_s1 + $0x50] ss:$12 sps:$4 sm:$0xff]   ;;  %v1523_v56 = vld [vmem:[%s1897_s1 + $0x48] ss:$12 sps:$4 sm:$0xff]  }
  0xa5   : >> { %v386_v61 = vsel %vm380_vm1, %v1451_v55, %v1452_v54  ;;  %v1521_v54 = vld [vmem:[%s1897_s1 + $0x4c] ss:$12 sps:$4 sm:$0xff]   ;;  %v1524_v55 = vld [vmem:[%s1897_s1 + $0x68] ss:$12 sps:$4 sm:$0xff]  }
  0xa6   : >> { %1225 = vmatpush3.bf16.msra.mxu0 %v1658_v37  ;;  %1358 = vmatpush3.bf16.msra.mxu1 %v1658_v37  ;;  %v1460_v60 = vpop.permute.xlu1 %1459  ;;  %v385_v32 = vsel %vm380_vm1, %v1446_v58, %v1447_v57  ;;  %v1525_v57 = vld [vmem:[%s1897_s1 + $0x80] ss:$12 sps:$4 sm:$0xff]   ;;  %v1526_v58 = vld [vmem:[%s1897_s1 + $0x64] ss:$12 sps:$4 sm:$0xff]  }
  0xa7   : >> { %v1462_v62 = vunpack.i.h.bf16 %v1460_v60  ;;  %v1461_v63 = vunpack.i.l.bf16 %v1460_v60  ;;  %v1455_v0 = vpop.permute.xlu0 %1454  ;;  %1226 = vmatprep.subr.bf16.mxu0 %v418_v59  ;;  %1351 = vmatprep.subr.bf16.mxu1 %v418_v59  ;;  %v419_v3 = vpack.c.bf16 %v386_v61, %v385_v32  ;;  %v1529_v59 = vld [vmem:[%s1897_s1 + $0x98] ss:$12 sps:$4 sm:$0xff]   ;;  %v1528_v60 = vld [vmem:[%s1897_s1 + $0x60] ss:$12 sps:$4 sm:$0xff]   ;;  %v1530_v32 = vld [vmem:[%s1897_s1 + $0xb0] ss:$12 sps:$4 sm:$0xff]  }
  0xa8   : >> { %v1457_v1 = vunpack.i.h.bf16 %v1455_v0  ;;  %v1456_v2 = vunpack.i.l.bf16 %v1455_v0  ;;  %v1531_v61 = vld [vmem:[%s1897_s1 + $0x7c] ss:$12 sps:$4 sm:$0xff]  }
  0xa9   : >> { %v309_v4 = vsel %vm307_vm0, %v1461_v63, %v1462_v62  ;;  %v1533_v62 = vld [vmem:[%s1897_s1 + $0x78] ss:$12 sps:$4 sm:$0xff]   ;;  %v1534_v63 = vld [vmem:[%s1897_s1 + $0x94] ss:$12 sps:$4 sm:$0xff]   ;;  %v1536_v0 = vld [vmem:[%s1897_s1 + $0x90] ss:$12 sps:$4 sm:$0xff]  }
  0xaa   : >> { %1227 = vmatpush3.bf16.msra.mxu0 %v1661_v40  ;;  %1359 = vmatpush3.bf16.msra.mxu1 %v1661_v40  ;;  %v1470_v37 = vpop.permute.xlu1 %1469  ;;  %v308_v5 = vsel %vm307_vm0, %v1456_v2, %v1457_v1  ;;  %v1537_v1 = vld [vmem:[%s1899_s3] sm:$0xff]   ;;  %v1538_v2 = vld [vmem:[%s1899_s3 + $0x8] sm:$0xff]  }
  0xab   : >> { %v1472_v6 = vunpack.i.h.bf16 %v1470_v37  ;;  %v1471_v7 = vunpack.i.l.bf16 %v1470_v37  ;;  %v1465_v8 = vpop.permute.xlu0 %1464  ;;  %1228 = vmatprep.subr.bf16.mxu0 %v419_v3  ;;  %1352 = vmatprep.subr.bf16.mxu1 %v419_v3  ;;  %v411_v9 = vpack.c.bf16 %v309_v4, %v308_v5  ;;  %v1539_v3 = vld [vmem:[%s1899_s3 + $0x10] sm:$0xff]   ;;  %v1540_v4 = vld [vmem:[%s1899_s3 + $0x18] sm:$0xff]   ;;  %v1541_v37 = vld [vmem:[%s1899_s3 + $0x20] sm:$0xff]  }
  0xac   : >> { %v1467_v10 = vunpack.i.h.bf16 %v1465_v8  ;;  %v1466_v11 = vunpack.i.l.bf16 %v1465_v8  ;;  %v1542_v5 = vld [vmem:[%s1899_s3 + $0x28] sm:$0xff]  }
  0xad   : >> { %v388_v12 = vsel %vm380_vm1, %v1471_v7, %v1472_v6  ;;  %v1543_v6 = vld [vmem:[%s1899_s3 + $0x30] sm:$0xff]   ;;  %v1544_v7 = vld [vmem:[%s1899_s3 + $0x38] sm:$0xff]  }
  0xae   : >> { %1229 = vmatpush3.bf16.msra.mxu0 %v411_v9  ;;  %1360 = vmatpush3.bf16.msra.mxu1 %v411_v9  ;;  %v1480_v13 = vpop.permute.xlu1 %1479  ;;  %v387_v14 = vsel %vm380_vm1, %v1466_v11, %v1467_v10 }
  0xaf   : >> { %v1482_v15 = vunpack.i.h.bf16 %v1480_v13  ;;  %v1481_v40 = vunpack.i.l.bf16 %v1480_v13  ;;  %v1475_v16 = vpop.permute.xlu0 %1474  ;;  %v420_v17 = vpack.c.bf16 %v388_v12, %v387_v14 }
  0xb0   : >> { %v1477_v18 = vunpack.i.h.bf16 %v1475_v16  ;;  %v1476_v19 = vunpack.i.l.bf16 %v1475_v16 }
  0xb1   : >> { %1230 = vmatprep.subr.bf16.mxu0 %v420_v17  ;;  %1353 = vmatprep.subr.bf16.mxu1 %v420_v17  ;;  %v311_v20 = vsel %vm307_vm0, %v1481_v40, %v1482_v15 }
  0xb2   : >> { %v1490_v21 = vpop.permute.xlu1 %1489  ;;  %v310_v22 = vsel %vm307_vm0, %v1476_v19, %v1477_v18 }
  0xb3   : >> { %v1492_v23 = vunpack.i.h.bf16 %v1490_v21  ;;  %v1491_v24 = vunpack.i.l.bf16 %v1490_v21  ;;  %v1485_v27 = vpop.permute.xlu0 %1484  ;;  %v412_v29 = vpack.c.bf16 %v311_v20, %v310_v22 }
  0xb4   : >> { %v1487_v30 = vunpack.i.h.bf16 %v1485_v27  ;;  %v1486_v31 = vunpack.i.l.bf16 %v1485_v27 }
  0xb5   : >> { %1231 = vmatpush3.bf16.msra.mxu0 %v412_v29  ;;  %1361 = vmatpush3.bf16.msra.mxu1 %v412_v29  ;;  %v390_v25 = vsel %vm380_vm1, %v1491_v24, %v1492_v23 }
  0xb6   : >> { %v1500_v36 = vpop.permute.xlu1 %1499  ;;  %v389_v38 = vsel %vm380_vm1, %v1486_v31, %v1487_v30 }
  0xb7   : >> { %v1502_v41 = vunpack.i.h.bf16 %v1500_v36  ;;  %v1501_v42 = vunpack.i.l.bf16 %v1500_v36  ;;  %v1495_v43 = vpop.permute.xlu0 %1494  ;;  %v421_v44 = vpack.c.bf16 %v390_v25, %v389_v38 }
  0xb8   : >> { %v1497_v28 = vunpack.i.h.bf16 %v1495_v43  ;;  %v1496_v45 = vunpack.i.l.bf16 %v1495_v43  ;;  %729 = vmatmul.mubr.bf16.vlgmr.msra.gmra.mrb[0].mxu0 %v1505_v33  ;;  %785 = vmatmul.mubr.bf16.vlgmr.msra.gmra.mrb[0].mxu1 %v1508_v34 }
  0xb9   : >> { %1302 = vmatprep.subr.bf16.mxu1 %v421_v44  ;;  %v392_v46 = vsel %vm380_vm1, %v1501_v42, %v1502_v41  ;;  %736 = vmatprep.mubr.bf16.mxu0 %v1511_v35 }
  0xba   : >> { %1303 = vmatpush3.bf16.msra.mxu1 %v421_v44  ;;  %v391_v47 = vsel %vm380_vm1, %v1496_v45, %v1497_v28  ;;  %1306 = vmatprep.mubr.msk.bf16.mxu1 %vm671_vm2, %v1514_v39 }
  0xbb   : >> { %v422_v48 = vpack.c.bf16 %v392_v46, %v391_v47 }
  0xbd   : >> { %1304 = vmatprep.subr.bf16.mxu1 %v422_v48 }
  0xbe   : >> { %1305 = vmatpush3.bf16.msra.mxu1 %v422_v48 }
  0xbf   : >> { %1322 = vmatprep.subr.bf16.mxu1 %v1537_v1 }
  0xc0   : >> { %737 = vmatmul.mubr.bf16.gmra.mrb[4].mxu0 %v1513_v49 }
  0xc1   : >> { %1307 = vmatmul.mubr.msk.bf16.vlgmr.msra.gmra.mrb[4].mxu1 %vm671_vm2, %v1515_v50  ;;  %744 = vmatprep.mubr.bf16.mxu0 %v1516_v51 }
  0xc2   : >> { %1310 = vmatprep.mubr.msk.bf16.mxu1 %vm671_vm2, %v1519_v52  ;;  %1323 = vmatpush3.bf16.msra.mxu1 %v1537_v1 }
  0xc3   : >> { %1324 = vmatprep.subr.bf16.mxu1 %v1538_v2 }
  0xc6   : >> { %1325 = vmatpush3.bf16.msra.mxu1 %v1538_v2 }
  0xc7   : >> { %1326 = vmatprep.subr.bf16.mxu1 %v1539_v3  ;;  %v479_v8 = vpop.permute.xlu1 %478 }
  0xc8   : >> { %745 = vmatmul.mubr.bf16.gmra.mrb[8].mxu0 %v1518_v26  ;;  %v474_v9 = vpop.permute.xlu0 %473 }
  0xc9   : >> { %1311 = vmatmul.mubr.msk.bf16.gmra.mrb[8].mxu1 %vm671_vm2, %v1520_v53  ;;  %752 = vmatprep.mubr.bf16.mxu0 %v1521_v54 }
  0xca   : >> { %1314 = vmatprep.mubr.msk.bf16.mxu1 %vm671_vm2, %v1524_v55  ;;  %1327 = vmatpush3.bf16.msra.mxu1 %v1539_v3 }
  0xcb   : >> { %1328 = vmatprep.subr.bf16.mxu1 %v1540_v4  ;;  %v494_v10 = vpop.permute.xlu1 %493 }
  0xcc   : >> { %v499_v11 = vpop.permute.xlu0 %498 }
  0xce   : >> { %1329 = vmatpush3.bf16.msra.mxu1 %v1540_v4 }
  0xcf   : >> { %1330 = vmatprep.subr.bf16.mxu1 %v1541_v37  ;;  %v484_v12 = vpop.permute.xlu1 %483 }
  0xd0   : >> { %753 = vmatmul.mubr.bf16.gmra.mrb[12].mxu0 %v1523_v56  ;;  %v489_v13 = vpop.permute.xlu0 %488 }
  0xd1   : >> { %1315 = vmatmul.mubr.msk.bf16.gmra.mrb[12].mxu1 %vm671_vm2, %v1525_v57  ;;  %760 = vmatprep.mubr.bf16.mxu0 %v1526_v58 }
  0xd2   : >> { %1318 = vmatprep.mubr.msk.bf16.mxu1 %vm671_vm2, %v1529_v59  ;;  %1331 = vmatpush3.bf16.msra.mxu1 %v1541_v37 }
  0xd3   : >> { %1332 = vmatprep.subr.bf16.mxu1 %v1542_v5  ;;  %v1855_v14 = vpop.permute.xlu1 %503 }
  0xd4   : >> { %v1857_v15 = vpop.permute.xlu0 %508 }
  0xd6   : >> { %1333 = vmatpush3.bf16.msra.mxu1 %v1542_v5 }
  0xd7   : >> { %1334 = vmatprep.subr.bf16.mxu1 %v1543_v6  ;;  %v1863_v30 = vpop.permute.xlu1 %513 }
  0xd8   : >> { %761 = vmatmul.mubr.bf16.gmra.mrb[16].mxu0 %v1528_v60  ;;  %v1865_v33 = vpop.permute.xlu0 %518 }
  0xd9   : >> { %1319 = vmatmul.mubr.msk.bf16.gmra.mrb[16].mxu1 %vm671_vm2, %v1530_v32  ;;  %768 = vmatprep.mubr.bf16.mxu0 %v1531_v61 }
  0xda   : >> { %1335 = vmatpush3.bf16.msra.mxu1 %v1543_v6 }
  0xdb   : >> { %1336 = vmatprep.subr.bf16.mxu1 %v1544_v7  ;;  %v1867_v50 = vpop.permute.xlu1 %533 }
  0xdc   : >> { %v1869_v52 = vpop.permute.xlu0 %538 }
  0xde   : >> { %1337 = vmatpush3.bf16.msra.mxu1 %v1544_v7 }
  0xe0   : >> { %769 = vmatmul.mubr.bf16.gmra.mrb[20].mxu0 %v1533_v62  ;;  %v529_v2 = vpop.permute.xlu0 %528 }
  0xe1   : >> { %776 = vmatprep.mubr.bf16.mxu0 %v1534_v63 }
  0xe8   : >> { %777 = vmatmul.mubr.bf16.gmra.mrb[24].mxu0 %v1536_v0  ;;  %v524_v0 = vpop.permute.xlu1 %523 }
 0x18b   : >> { %v1232_v40 = vpop.f32.mrb[0].mxu0  ;;  %v1274_v16 = vpop.f32.mrb[0].mxu1 }
 0x18c   : >> { %v1233_v17 = vpop.f32.mrb[1].mxu0  ;;  %v1275_v18 = vpop.f32.mrb[1].mxu1 }
 0x18d   : >> { %v1234_v19 = vadd.f32 %v1233_v17, %v1232_v40  ;;  %v1235_v20 = vpop.f32.mrb[2].mxu0  ;;  %v1859_v21 = vadd.f32 %v1275_v18, %v1274_v16  ;;  %v1277_v22 = vpop.f32.mrb[2].mxu1 }
 0x18e   : >> { %v1236_v23 = vpop.f32.mrb[3].mxu0  ;;  %v1278_v24 = vpop.f32.mrb[3].mxu1 }
 0x18f   : >> { %v1237_v27 = vadd.f32 %v1236_v23, %v1235_v20  ;;  %v1861_v29 = vadd.f32 %v1278_v24, %v1277_v22  ;;  %v731_v35 = vadd.f32 %v1234_v19, %v474_v9  ;;  %v544_v20 = vpop.permute.xlu1 %543 }
 0x191   : >> { %v734_v44 = vadd.f32 %v1237_v27, %v479_v8 }
 0x193   : >> { %v1238_v31 = vpop.f32.mrb[4].mxu0 }
 0x194   : >> { %v1239_v34 = vpop.f32.mrb[5].mxu0  ;;  %v1308_v25 = vpop.f32.mrb[4].mxu1 }
 0x195   : >> { %v1240_v36 = vadd.f32 %v1239_v34, %v1238_v31  ;;  %v1241_v38 = vpop.f32.mrb[6].mxu0  ;;  %v827_v39 = vpop.f32.mrb[5].mxu1  ;;  %v787_v31 = vadd.f32 %v1859_v21, %v544_v20 }
 0x196   : >> { %v828_v41 = vadd.f32 %v827_v39, %v731_v35  ;;  %v1242_v42 = vpop.f32.mrb[7].mxu0  ;;  %v1309_v43 = vpop.f32.mrb[6].mxu1 }
 0x197   : >> { %v739_v28 = vadd.f32 %v1240_v36, %v484_v12  ;;  %v1243_v45 = vadd.f32 %v1242_v42, %v1241_v38  ;;  %v830_v46 = vpop.f32.mrb[7].mxu1  ;;  %v549_v34 = vpop.permute.xlu0 %548 }
 0x198   : >> { %v831_v47 = vadd.f32 %v830_v46, %v734_v44  ;;  %v890_v1 = vmax.f32 %v828_v41, 0.0 }
 0x199   : >> { %v836_v48 = vadd.f32 %v1308_v25, %v739_v28  ;;  %v742_v49 = vadd.f32 %v1243_v45, %v489_v13 }
 0x19a   : >> { %v891_v7 = vmax.f32 %v831_v47, 0.0 }
 0x19b   : >> { %v839_v51 = vadd.f32 %v1309_v43, %v742_v49  ;;  %v1244_v26 = vpop.f32.mrb[8].mxu0  ;;  %v892_v27 = vmax.f32 %v836_v48, 0.0 }
 0x19c   : >> { %v1245_v53 = vpop.f32.mrb[9].mxu0  ;;  %v1312_v54 = vpop.f32.mrb[8].mxu1 }
 0x19d   : >> { %v1246_v55 = vadd.f32 %v1245_v53, %v1244_v26  ;;  %v1247_v56 = vpop.f32.mrb[10].mxu0  ;;  %v843_v57 = vpop.f32.mrb[9].mxu1  ;;  %v893_v38 = vmax.f32 %v839_v51, 0.0 }
 0x19e   : >> { %v1248_v58 = vpop.f32.mrb[11].mxu0  ;;  %v1313_v59 = vpop.f32.mrb[10].mxu1 }
 0x19f   : >> { %v1249_v60 = vadd.f32 %v1248_v58, %v1247_v56  ;;  %v747_v32 = vadd.f32 %v1246_v55, %v494_v10  ;;  %v846_v61 = vpop.f32.mrb[11].mxu1 }
 0x1a1   : >> { %v844_v62 = vadd.f32 %v843_v57, %v747_v32  ;;  %v750_v63 = vadd.f32 %v1249_v60, %v499_v11 }
 0x1a3   : >> { %v894_v3 = vmax.f32 %v844_v62, 0.0  ;;  %v847_v4 = vadd.f32 %v846_v61, %v750_v63  ;;  %v1250_v37 = vpop.f32.mrb[12].mxu0 }
 0x1a4   : >> { %v1251_v5 = vpop.f32.mrb[13].mxu0  ;;  %v1316_v6 = vpop.f32.mrb[12].mxu1 }
 0x1a5   : >> { %v906_v8 = vmax.f32 %v890_v1, %v894_v3  ;;  %v895_v9 = vmax.f32 %v847_v4, 0.0  ;;  %v1252_v12 = vadd.f32 %v1251_v5, %v1250_v37  ;;  %v1253_v13 = vpop.f32.mrb[14].mxu0  ;;  %v859_v40 = vpop.f32.mrb[13].mxu1 }
 0x1a6   : >> { %v1254_v16 = vpop.f32.mrb[15].mxu0  ;;  %v1317_v17 = vpop.f32.mrb[14].mxu1 }
 0x1a7   : >> { %v907_v10 = vmax.f32 %v891_v7, %v895_v9  ;;  %v755_v18 = vadd.f32 %v1252_v12, %v1855_v14  ;;  %v1255_v11 = vadd.f32 %v1254_v16, %v1253_v13  ;;  %v862_v19 = vpop.f32.mrb[15].mxu1 }
 0x1a9   : >> { %v852_v22 = vadd.f32 %v1312_v54, %v755_v18  ;;  %v758_v23 = vadd.f32 %v1255_v11, %v1857_v15  ;;  %v914_v24 = vpack.c.bf16 %v907_v10, %v906_v8  ;;  %v790_v15 = vadd.f32 %v1861_v29, %v549_v34 }
 0x1ab   : >> { %v896_v25 = vmax.f32 %v852_v22, 0.0  ;;  %v855_v35 = vadd.f32 %v1313_v59, %v758_v23  ;;  %v1256_v36 = vpop.f32.mrb[16].mxu0  ;;  %1338 = vmatprep.mubr.bf16.mxu1 %v914_v24 }
 0x1ac   : >> { %v1257_v39 = vpop.f32.mrb[17].mxu0  ;;  %v1320_v41 = vpop.f32.mrb[16].mxu1 }
 0x1ad   : >> { %v908_v42 = vmax.f32 %v892_v27, %v896_v25  ;;  %v897_v14 = vmax.f32 %v855_v35, 0.0  ;;  %v1258_v43 = vadd.f32 %v1257_v39, %v1256_v36  ;;  %v884_v44 = vadd.f32 %v1320_v41, %v787_v31  ;;  %v1259_v28 = vpop.f32.mrb[18].mxu0  ;;  %v875_v45 = vpop.f32.mrb[17].mxu1 }
 0x1ae   : >> { %v1260_v46 = vpop.f32.mrb[19].mxu0  ;;  %v1321_v47 = vpop.f32.mrb[18].mxu1 }
 0x1af   : >> { %v909_v48 = vmax.f32 %v893_v38, %v897_v14  ;;  %v763_v21 = vadd.f32 %v1258_v43, %v1863_v30  ;;  %v1261_v49 = vadd.f32 %v1260_v46, %v1259_v28  ;;  %v878_v26 = vpop.f32.mrb[19].mxu1  ;;  %v887_v53 = vadd.f32 %v1321_v47, %v790_v15 }
 0x1b0   : >> { %v904_v1 = vmax.f32 %v884_v44, 0.0 }
 0x1b1   : >> { %v915_v54 = vpack.c.bf16 %v909_v48, %v908_v42  ;;  %v860_v51 = vadd.f32 %v859_v40, %v763_v21  ;;  %v766_v55 = vadd.f32 %v1261_v49, %v1865_v33  ;;  %v905_v5 = vmax.f32 %v887_v53, 0.0 }
 0x1b3   : >> { %v863_v56 = vadd.f32 %v862_v19, %v766_v55  ;;  %v1262_v57 = vpop.f32.mrb[20].mxu0  ;;  %1339 = vmatmul.mubr.bf16.vlgmr.msra.gmra.mrb[20].mxu1 %v915_v54 }
 0x1b4   : >> { %v1263_v58 = vpop.f32.mrb[21].mxu0 }
 0x1b5   : >> { %v1264_v59 = vadd.f32 %v1263_v58, %v1262_v57  ;;  %v1265_v60 = vpop.f32.mrb[22].mxu0 }
 0x1b6   : >> { %v1266_v32 = vpop.f32.mrb[23].mxu0 }
 0x1b7   : >> { %v771_v29 = vadd.f32 %v1264_v59, %v524_v0  ;;  %v1267_v61 = vadd.f32 %v1266_v32, %v1265_v60 }
 0x1b9   : >> { %v868_v62 = vadd.f32 %v1316_v6, %v771_v29  ;;  %v774_v63 = vadd.f32 %v1267_v61, %v529_v2  ;;  %v898_v2 = vmax.f32 %v860_v51, 0.0 }
 0x1bb   : >> { %v900_v30 = vmax.f32 %v868_v62, 0.0  ;;  %v871_v3 = vadd.f32 %v1317_v17, %v774_v63  ;;  %v1268_v4 = vpop.f32.mrb[24].mxu0  ;;  %v899_v17 = vmax.f32 %v863_v56, 0.0 }
 0x1bc   : >> { %v1269_v37 = vpop.f32.mrb[25].mxu0 }
 0x1bd   : >> { %v901_v7 = vmax.f32 %v871_v3, 0.0  ;;  %v1270_v8 = vadd.f32 %v1269_v37, %v1268_v4  ;;  %v1271_v33 = vpop.f32.mrb[26].mxu0  ;;  %v912_v9 = vmax.f32 %v900_v30, %v904_v1 }
 0x1be   : >> { %v1272_v12 = vpop.f32.mrb[27].mxu0 }
 0x1bf   : >> { %v779_v13 = vadd.f32 %v1270_v8, %v1867_v50  ;;  %v1273_v40 = vadd.f32 %v1272_v12, %v1271_v33  ;;  %v913_v16 = vmax.f32 %v901_v7, %v905_v5 }
 0x1c1   : >> { %v876_v10 = vadd.f32 %v875_v45, %v779_v13  ;;  %v782_v0 = vadd.f32 %v1273_v40, %v1869_v52  ;;  %v917_v6 = vpack.c.bf16 %v913_v16, %v912_v9 }
 0x1c3   : >> { %v902_v18 = vmax.f32 %v876_v10, 0.0  ;;  %v879_v11 = vadd.f32 %v878_v26, %v782_v0 }
 0x1c5   : >> { %v903_v19 = vmax.f32 %v879_v11, 0.0  ;;  %v910_v20 = vmax.f32 %v898_v2, %v902_v18 }
 0x1c7   : >> { %v911_v22 = vmax.f32 %v899_v17, %v903_v19 }
 0x1c9   : >> { %v916_v23 = vpack.c.bf16 %v911_v22, %v910_v20 }
 0x1cb   : >> { %1342 = vmatprep.mubr.bf16.mxu1 %v916_v23 }
 0x1cc   : >> { %1343 = vmatmul.mubr.bf16.gmra.mrb[24].mxu1 %v917_v6 }
 0x286   : >> { %v1340_v24 = vpop.f32.mrb[20].mxu1 }
 0x287   : >> { %1059 = vrot.lane.b32.xlu1 %v1340_v24, %s1564_s19  ;;  %v1016_v50 = vpop.f32.mrb[21].mxu1 }
 0x288   : >> { %v1341_v27 = vpop.f32.mrb[22].mxu1 }
 0x289   : >> { %1061 = vrot.lane.b32.xlu0 %v1341_v27, %s1564_s19  ;;  %v1019_v52 = vpop.f32.mrb[23].mxu1 }
 0x28b   : >> { %1055 = vrot.lane.b32.xlu1 %v1016_v50, %s1564_s19 }
 0x28d   : >> { %1057 = vrot.lane.b32.xlu0 %v1019_v52, %s1564_s19 }
 0x29f   : >> { %v1344_v31 = vpop.f32.mrb[24].mxu1 }
 0x2a0   : >> { %v1032_v34 = vpop.f32.mrb[25].mxu1 }
 0x2a1   : >> { %1063 = vrot.lane.b32.xlu1 %v1032_v34, %s1564_s19  ;;  %v1345_v25 = vpop.f32.mrb[26].mxu1 }
 0x2a2   : >> { %v1035_v35 = vpop.f32.mrb[27].mxu1 }
 0x2a3   : >> { %1065 = vrot.lane.b32.xlu0 %v1035_v35, %s1564_s19 }
 0x2a5   : >> { %1067 = vrot.lane.b32.xlu1 %v1344_v31, %s1564_s19 }
 0x2a7   : >> { %1069 = vrot.lane.b32.xlu0 %v1345_v25, %s1564_s19 }
 0x2f9   : >> { %v1060_v36 = vpop.permute.xlu1 %1059 }
 0x2fa   : >> { %v1081_v38 = vmax.f32 %v1340_v24, %v1060_v36 }
 0x2fb   : >> { %v1062_v39 = vpop.permute.xlu0 %1061 }
 0x2fc   : >> { %1091 = vst.msk [vmem:[%s1087_s20 + $0x10] sm:$0xff] %vm1088_vm3, %v1081_v38  ;;  %v1082_v41 = vmax.f32 %v1341_v27, %v1062_v39 }
 0x2fd   : >> { %v1056_v42 = vpop.permute.xlu1 %1055 }
 0x2fe   : >> { %1092 = vst.msk [vmem:[%s1087_s20 + $0x18] sm:$0xff] %vm1088_vm3, %v1082_v41  ;;  %v1079_v14 = vmax.f32 %v1016_v50, %v1056_v42 }
 0x2ff   : >> { %v1058_v43 = vpop.permute.xlu0 %1057 }
 0x300   : >> { %1089 = vst.msk [vmem:[%s1087_s20] sm:$0xff] %vm1088_vm3, %v1079_v14  ;;  %v1080_v44 = vmax.f32 %v1019_v52, %v1058_v43 }
 0x302   : >> { %1090 = vst.msk [vmem:[%s1087_s20 + $0x8] sm:$0xff] %vm1088_vm3, %v1080_v44 }
 0x313   : >> { %v1064_v28 = vpop.permute.xlu1 %1063 }
 0x314   : >> { %v1083_v45 = vmax.f32 %v1032_v34, %v1064_v28 }
 0x315   : >> { %v1066_v15 = vpop.permute.xlu0 %1065 }
 0x316   : >> { %1093 = vst.msk [vmem:[%s1087_s20 + $0x20] sm:$0xff] %vm1088_vm3, %v1083_v45  ;;  %v1084_v46 = vmax.f32 %v1035_v35, %v1066_v15  ;;  %203 = sbr.rel (!%p201_p4) target bundleno = 17 (0x11), region = 75 }
 0x317   : >> { %v1068_v47 = vpop.permute.xlu1 %1067 }
 0x318   : >> { %1094 = vst.msk [vmem:[%s1087_s20 + $0x28] sm:$0xff] %vm1088_vm3, %v1084_v46  ;;  %v1085_v48 = vmax.f32 %v1344_v31, %v1068_v47 }
 0x319   : >> { %v1070_v21 = vpop.permute.xlu0 %1069 }
 0x31a   : >> { %1095 = vst.msk [vmem:[%s1087_s20 + $0x30] sm:$0xff] %vm1088_vm3, %v1085_v48  ;;  %v1086_v49 = vmax.f32 %v1345_v25, %v1070_v21 }
 0x31c   : >> { %1096 = vst.msk [vmem:[%s1087_s20 + $0x38] sm:$0xff] %vm1088_vm3, %v1086_v49 }
 0x31d PF: > { %s14_s15 = sadd.s32 1, %s1555_s15  }
 0x31e   : > { %p11_p5 = scmp.ge.s32.totalorder %s14_s15, 4  }
 0x320   :  { %13 = sbr.rel (!%p11_p5) target bundleno = 1 (0x1), region = 86 }

// kernel: ssd_forward.5
= control target key start
LH: loop header
LB: loop body
LE: loop exit
PB: predicated region body
PF: predicated region fallthrough
CT: control target
= control target key end

     0   :  { %8 = vsyncpa [#allocation4], 0  ;;  %s24654_s0 = inlined_call_operand.vmem [shape: f32[2,131072], index: 0, kind: input, shape index: {}]   ;;  %s24655_s1 = inlined_call_operand.hbm [shape: bf16[131072,512], index: 1, kind: input, shape index: {}]   ;;  %s24656_s2 = inlined_call_operand.vmem [shape: f32[1,512], index: 2, kind: input, shape index: {}]   ;;  %s24657_s3 = inlined_call_operand.vmem [shape: f32[2,512], index: 3, kind: output, shape index: {}]  }
   0x1   :  { %10 = vsyncpa [#allocation4 + $0x1], 0  ;;  %s21800_s12 = smov 0   ;;  %s21802_s13 = smov 0  }
   0x2   :  { %s21804_s14 = smov 0   ;;  %s21806_s15 = smov 0  }
   0x3   :  { %s21808_s16 = smov 0   ;;  %s21810_s17 = smov 0  }
   0x4   :  { %s21812_s18 = smov 0   ;;  %s21814_s19 = smov 0  }
   0x5 LB: > { %s16177_s20 = sadd.s32 4294967295, %s21772_s19   ;;  %s25_s21 = sadd.s32 1, %s21764_s17  ;;  %s21772_s19 = sphi %s21814_s19, %s16_s19   ;;  %s21768_s18 = sphi %s21812_s18, %s24667_s18   ;;  %s21764_s17 = sphi %s21810_s17, %s24666_s17   ;;  %s21760_s16 = sphi %s21808_s16, %s24665_s16   ;;  %s21756_s15 = sphi %s21806_s15, %s24664_s15   ;;  %s21752_s14 = sphi %s21804_s14, %s24663_s14   ;;  %s21748_s13 = sphi %s21802_s13, %s24662_s13   ;;  %s21744_s12 = sphi %s21800_s12, %s24661_s12  }
   0x6   : > { %p26_p0 = scmp.ge.s32.totalorder %s25_s21, 8  ;;  %s28_s22 = sadd.s32 1, %s21768_s18 }
   0x7   : > { %s63_s23 = sadd.s32 1, %s21752_s14  ;;  %p70_p1 = scmp.ne.s32.totalorder %s21752_s14, %s21748_s13 }
   0x8   : > { %s24669_s21 = smov (%p26_p0, %s25_s21), 0  ;;  %s24671_s22 = smov (!%p26_p0, %s28_s22), %s21768_s18 }
   0x9   : > { %s58_s24 = ssub.s32 %s21764_s17, %s24669_s21  ;;  %p71_p2 = scmp.eq.s32.totalorder %s21772_s19, 0 }
   0xa   : > { %p30_p3 = scmp.ge.s32.totalorder %s24671_s22, 2  ;;  %p76_p4 = scmp.ne.s32.totalorder %s21748_s13, %s21744_s12 }
   0xb   : > { %p21851_p5 = por %p71_p2, %p70_p1  ;;  %p77_p6 = scmp.eq.s32.totalorder %s16177_s20, 0 }
   0xc   : > { %s24673_s22 = smov (%p30_p3, %s24671_s22), 0  ;;  %p18502_p8 = scmp.lt.s32.totalorder %s21772_s19, 16 }
   0xd   : > { %p21857_p7 = por %p77_p6, %p76_p4  ;;  %s59_s27 = ssub.s32 %s21768_s18, %s24673_s22 }
   0xe   : > { %s60_s28 = sor.u32 %s59_s27, %s58_s24  ;;  %s161_s29 = sand.u32 1, %s21752_s14  }
   0xf   : > { %p61_p9 = scmp.eq.s32.totalorder %s60_s28, 0  ;;  %s16181_s30 = sshll.u32 %s161_s29, 14 }
  0x10   : > { %s16183_s4 = sshll.u32 %s21768_s18, 1  ;;  %s18245_s6 = sshll.u32 %s21764_s17, 13 }
  0x11   : > { %s21867_s5 = scalar_select %p61_p9, %s21752_s14, %s63_s23  }
  0x12   : > { %s172_s7 = sadd.s32 %s18245_s6, %s16183_s4  ;;  %s165_s8 = scalar_lea.vmem [#allocation3], %s16181_s30 }
  0x13   : > { %s175_s9 = sshll.u32 %s165_s8, 4  ;;  %s16185_s10 = sshll.u32 %s172_s7, 6  ;;  %s21870_s9 = int_to_ptr.vmem [resolvable:$true] %s175_s9 }
  0x14   : > { %s21875_s20 = scalar_lea.hbm %s24655_s1, %s16185_s10  ;;  %p21881_p10 = pnand %p18502_p8, %p21851_p5 }
  0x15   : > { %s21885_s24 = scalar_lea.sflag [#allocation4], %s161_s29  ;;  %s21676_s27 = scalar_lea.hbm %s21875_s20, 262144 }
  0x16   : > { %p21677_p11 = scmp.ne.s32.totalorder %s21875_s20, %s21676_s27  ;;  %p21678_p12 = pneg %p21881_p10 }
  0x17   : > { %s21681_s30 = scalar_lea.hbm %s24655_s1, 4194304  ;;  %p21682_p1 = scmp.lt.u32.totalorder %s21875_s20, %s24655_s1 }
  0x18   : > { %p21679_p13 = pnand %p21678_p12, %p21677_p11  ;;  %p21683_p2 = scmp.lt.u32.totalorder %s21681_s30, %s21676_s27 }
  0x19   : > { %p21685_p4 = scmp.lt.u32.totalorder %s21676_s27, %s21875_s20 }
  0x1a   : > { %p21680_p0 = pneg %p21679_p13  ;;  %p21684_p3 = por %p21683_p2, %p21682_p1 }
  0x1c   : > { %p21686_p5 = por %p21685_p4, %p21684_p3 }
  0x1e   : > { %p21687_p6 = pnand %p21686_p5, %p21680_p0 }
  0x20   : > { %21690 = shalt.err (!%p21687_p6)
}
  0x21   : > { %s21691_s29 = scalar_lea.vmem %s21870_s9, 262144  ;;  %s21774_s7 = smov [#allocation3]  }
  0x22   : > { %p21692_p8 = scmp.ne.s32.totalorder %s21870_s9, %s21691_s29  ;;  %s21696_s8 = sshll.u32 %s21774_s7, 4  ;;  %s21697_s8 = int_to_ptr.vmem [resolvable:$false] %s21696_s8 }
  0x23   : > { %s21698_s10 = scalar_lea.vmem %s21697_s8, 524288  ;;  %p21699_p13 = scmp.lt.s32.totalorder %s21870_s9, %s21697_s8 }
  0x24   : > { %p21694_p9 = pnand %p21692_p8, %p21678_p12  ;;  %p21700_p1 = scmp.lt.s32.totalorder %s21698_s10, %s21691_s29 }
  0x26   : > { %p21695_p11 = pneg %p21694_p9  ;;  %p21701_p2 = por %p21700_p1, %p21699_p13 }
  0x28   : > { %p21702_p3 = pnand %p21701_p2, %p21695_p11 }
  0x2a   : > { %21705 = shalt.err (!%p21702_p3)
}
  0x2b   : > { %s21775_s11 = smov 256   ;;  %s21776_s12 = smov 128  }
  0x2c   : > { %s21777_s27 = smov 8   ;;  %p16186_p12 = scmp.ge.s32.totalorder %s21772_s19, 1 }
  0x2d   : > { %18501 = dma.hbm_to_vmem [thread:$0]  (!%p21881_p10), %s21875_s20, 262144, %s21870_s9, %s21885_s24, %s21775_s11, %s21776_s12, %s21777_s27  }
  0x2e   : > { %p191_p0 = scmp.lt.s32.totalorder %s21772_s19, 17 }
  0x30   : > { %p192_p4 = pnand %p16186_p12, %p191_p0 }
  0x31   : > { %s197_s25 = sand.u32 (!%p192_p4), 1, %s21748_s13  }
  0x32   : > { %195 = sbr.rel (%p192_p4) target bundleno = 2355 (0x933), region = 32  ;;  %s16187_s28 = sshll.u32 (!%p192_p4), %s197_s25, 14 }
  0x33   : > { %s198_s30 = scalar_lea.sflag (!%p192_p4), [#allocation4], %s197_s25  ;;  %s21916_s4 = scalar_lea.vmem (!%p192_p4), [#allocation3], %s16187_s28 }
  0x39   : > { %21739 = dma.done.wait (%p21857_p7), %s198_s30, 262144  }
  0x3a   : > { %21741 = vsyncadd (%p21857_p7), %s198_s30, 4294705152  ;;  %s16188_s23 = sshll.u32 %s21756_s15, 7  ;;  %s16190_s9 = sshll.u32 %s21760_s16, 1 }
  0x3b   : > { %p234_p10 = scmp.lt.s32.totalorder %s16188_s23, 1023  ;;  %p242_p5 = scmp.lt.s32.totalorder %s16190_s9, 3 }
  0x3c   : > { %p16193_p7 = scmp.ne.s32.totalorder %s21756_s15, 0 }
  0x3d   : > { %s24675_s23 = smov (!%p234_p10, %s16188_s23), 1023  ;;  %s24677_s9 = smov (!%p242_p5, %s16190_s9), 3 }
  0x3e   : > { %s16189_s20 = sshll.u32 %s24675_s23, 1  ;;  %s244_s8 = scalar_lea.vmem %s24656_s2, %s24677_s9  ;;  %v21778_v0 = vmov (!%p16193_p7), 0.0  }
  0x3f   : > { %s21929_s29 = scalar_lea.vmem %s24654_s0, %s16189_s20  ;;  %s16192_s10 = sshll.u32 %s24677_s9, 1  ;;  %256 = vst [vmem:[#allocation2] sm:$0xf] (!%p16193_p7), %v21778_v0 }
  0x40   : > { %s21939_s12 = scalar_lea.vmem %s24657_s3, %s16192_s10  ;;  %255 = sbr.rel (%p16193_p7) target bundleno = 71 (0x47), region = 40 }
  0x47 PF: > { %v18572_v1 = vld [vmem:[%s21916_s4 + $0x4] ss:$8 sps:$4 sm:$0xff]   ;;  %v18576_v3 = vld [vmem:[%s21916_s4] ss:$8 sps:$4 sm:$0xff]   ;;  %v18578_v5 = vld [vmem:[%s21916_s4 + $0x14] ss:$8 sps:$4 sm:$0xff]   ;;  %v326_v39 = vlaneseq }
  0x48   : > { %v18574_v2 = vld [vmem:[%s21916_s4 + $0x2004] ss:$8 sps:$4 sm:$0xff]   ;;  %13410 = vmatprep.subr.bf16.mxu1 %v18572_v1  ;;  %v18577_v4 = vld [vmem:[%s21916_s4 + $0x2000] ss:$8 sps:$4 sm:$0xff]   ;;  %v18580_v6 = vld [vmem:[%s21916_s4 + $0x2014] ss:$8 sps:$4 sm:$0xff]  }
  0x49   : > { %14722 = vmatprep.subr.bf16.mxu0 %v18574_v2  ;;  %13411 = vmatpush1.bf16.msra.mxu1 %v18576_v3  ;;  %v18582_v7 = vld [vmem:[%s21916_s4 + $0x10] ss:$8 sps:$4 sm:$0xff]   ;;  %v18584_v9 = vld [vmem:[%s21916_s4 + $0x24] ss:$8 sps:$4 sm:$0xff]   ;;  %v18588_v11 = vld [vmem:[%s21916_s4 + $0x20] ss:$8 sps:$4 sm:$0xff]  }
  0x4a   : > { %14723 = vmatpush1.bf16.msra.mxu0 %v18577_v4  ;;  %13412 = vmatprep.subr.bf16.mxu1 %v18578_v5  ;;  %v18583_v8 = vld [vmem:[%s21916_s4 + $0x2010] ss:$8 sps:$4 sm:$0xff]   ;;  %v18586_v10 = vld [vmem:[%s21916_s4 + $0x2024] ss:$8 sps:$4 sm:$0xff]   ;;  %v18589_v12 = vld [vmem:[%s21916_s4 + $0x2020] ss:$8 sps:$4 sm:$0xff]  }
  0x4b   : > { %14724 = vmatprep.subr.bf16.mxu0 %v18580_v6  ;;  %v18590_v13 = vld [vmem:[%s21916_s4 + $0x34] ss:$8 sps:$4 sm:$0xff]   ;;  %v18594_v15 = vld [vmem:[%s21916_s4 + $0x30] ss:$8 sps:$4 sm:$0xff]   ;;  %v18596_v17 = vld [vmem:[%s21916_s4 + $0x44] ss:$8 sps:$4 sm:$0xff]  }
  0x4c   : > { %v18592_v14 = vld [vmem:[%s21916_s4 + $0x2034] ss:$8 sps:$4 sm:$0xff]   ;;  %v18595_v16 = vld [vmem:[%s21916_s4 + $0x2030] ss:$8 sps:$4 sm:$0xff]   ;;  %v18598_v18 = vld [vmem:[%s21916_s4 + $0x2044] ss:$8 sps:$4 sm:$0xff]  }
  0x4d   : > { %13413 = vmatpush1.bf16.msra.mxu1 %v18582_v7  ;;  %v18600_v19 = vld [vmem:[%s21916_s4 + $0x40] ss:$8 sps:$4 sm:$0xff]   ;;  %v18602_v21 = vld [vmem:[%s21916_s4 + $0x54] ss:$8 sps:$4 sm:$0xff]   ;;  %v18606_v23 = vld [vmem:[%s21916_s4 + $0x50] ss:$8 sps:$4 sm:$0xff]  }
  0x4e   : > { %14725 = vmatpush1.bf16.msra.mxu0 %v18583_v8  ;;  %13414 = vmatprep.subr.bf16.mxu1 %v18584_v9  ;;  %v18601_v20 = vld [vmem:[%s21916_s4 + $0x2040] ss:$8 sps:$4 sm:$0xff]   ;;  %v18604_v22 = vld [vmem:[%s21916_s4 + $0x2054] ss:$8 sps:$4 sm:$0xff]   ;;  %v18607_v24 = vld [vmem:[%s21916_s4 + $0x2050] ss:$8 sps:$4 sm:$0xff]  }
  0x4f   : > { %14726 = vmatprep.subr.bf16.mxu0 %v18586_v10  ;;  %v18608_v25 = vld [vmem:[%s21916_s4 + $0x64] ss:$8 sps:$4 sm:$0xff]   ;;  %v18612_v27 = vld [vmem:[%s21916_s4 + $0x60] ss:$8 sps:$4 sm:$0xff]   ;;  %v18614_v29 = vld [vmem:[%s21916_s4 + $0x74] ss:$8 sps:$4 sm:$0xff]  }
  0x50   : > { %v18610_v26 = vld [vmem:[%s21916_s4 + $0x2064] ss:$8 sps:$4 sm:$0xff]   ;;  %v18613_v28 = vld [vmem:[%s21916_s4 + $0x2060] ss:$8 sps:$4 sm:$0xff]   ;;  %v18616_v30 = vld [vmem:[%s21916_s4 + $0x2074] ss:$8 sps:$4 sm:$0xff]  }
  0x51   : > { %13415 = vmatpush1.bf16.msra.mxu1 %v18588_v11  ;;  %v18618_v31 = vld [vmem:[%s21916_s4 + $0x70] ss:$8 sps:$4 sm:$0xff]   ;;  %v18620_v33 = vld [vmem:[%s21916_s4 + $0x84] ss:$8 sps:$4 sm:$0xff]   ;;  %v18624_v35 = vld [vmem:[%s21916_s4 + $0x80] ss:$8 sps:$4 sm:$0xff]  }
  0x52   : > { %14727 = vmatpush1.bf16.msra.mxu0 %v18589_v12  ;;  %13416 = vmatprep.subr.bf16.mxu1 %v18590_v13  ;;  %v18619_v32 = vld [vmem:[%s21916_s4 + $0x2070] ss:$8 sps:$4 sm:$0xff]   ;;  %v18622_v34 = vld [vmem:[%s21916_s4 + $0x2084] ss:$8 sps:$4 sm:$0xff]   ;;  %v18625_v36 = vld [vmem:[%s21916_s4 + $0x2080] ss:$8 sps:$4 sm:$0xff]  }
  0x53   : > { %14728 = vmatprep.subr.bf16.mxu0 %v18592_v14  ;;  %v21779_v37 = vmov 1983009808   ;;  %v18626_v40 = vld [vmem:[%s21916_s4 + $0x94] ss:$8 sps:$4 sm:$0xff]   ;;  %v18630_v42 = vld [vmem:[%s21916_s4 + $0x90] ss:$8 sps:$4 sm:$0xff]  }
  0x54   : > { %v324_v38 = vunpack.c.l.s4 %v21779_v37  ;;  %v18628_v41 = vld [vmem:[%s21916_s4 + $0x2094] ss:$8 sps:$4 sm:$0xff]   ;;  %v21981_v44 = vshrl.u32 %v326_v39, 7  ;;  %v18631_v45 = vld [vmem:[%s21916_s4 + $0x2090] ss:$8 sps:$4 sm:$0xff]   ;;  %p18242_p6 = scmp.ne.s32.totalorder %s21756_s15, 7 }
  0x55   : > { %13417 = vmatpush1.bf16.msra.mxu1 %v18594_v15  ;;  %v18632_v46 = vld [vmem:[%s21916_s4 + $0xa4] ss:$8 sps:$4 sm:$0xff]   ;;  %v18636_v48 = vld [vmem:[%s21916_s4 + $0xa0] ss:$8 sps:$4 sm:$0xff]   ;;  %v18638_v51 = vld [vmem:[%s21916_s4 + $0xb4] ss:$8 sps:$4 sm:$0xff]  }
  0x56   : > { %14729 = vmatpush1.bf16.msra.mxu0 %v18595_v16  ;;  %13418 = vmatprep.subr.bf16.mxu1 %v18596_v17  ;;  %v325_v43 = vunpack.c.0.s8 %v324_v38  ;;  %v18634_v47 = vld [vmem:[%s21916_s4 + $0x20a4] ss:$8 sps:$4 sm:$0xff]   ;;  %v18637_v49 = vld [vmem:[%s21916_s4 + $0x20a0] ss:$8 sps:$4 sm:$0xff]   ;;  %v18640_v52 = vld [vmem:[%s21916_s4 + $0x20b4] ss:$8 sps:$4 sm:$0xff]  }
  0x57   : > { %14730 = vmatprep.subr.bf16.mxu0 %v18598_v18  ;;  %v258_v53 = vld [vmem:[%s21929_s29] sm:$0xff]  ;;  %v18642_v54 = vld [vmem:[%s21916_s4 + $0xb0] ss:$8 sps:$4 sm:$0xff]   ;;  %v18644_v58 = vld [vmem:[%s21916_s4 + $0xc4] ss:$8 sps:$4 sm:$0xff]  }
  0x58   : > { %v21989_v50 = vsub.s32 %v325_v43, %v21981_v44  ;;  %v18643_v56 = vld [vmem:[%s21916_s4 + $0x20b0] ss:$8 sps:$4 sm:$0xff]   ;;  %v274_v57 = vld [vmem:[%s21929_s29 + $0x80] sm:$0xff]  ;;  %v18646_v59 = vld [vmem:[%s21916_s4 + $0x20c4] ss:$8 sps:$4 sm:$0xff]   ;;  %v322_v9 = vcombine.high %v258_v53, %v258_v53 }
  0x59   : > { %13419 = vmatpush1.bf16.msra.mxu1 %v18600_v19  ;;  %v18648_v0 = vld [vmem:[%s21916_s4 + $0xc0] ss:$8 sps:$4 sm:$0xff]   ;;  %v18650_v2 = vld [vmem:[%s21916_s4 + $0xd4] ss:$8 sps:$4 sm:$0xff]   ;;  %v18654_v5 = vld [vmem:[%s21916_s4 + $0xd0] ss:$8 sps:$4 sm:$0xff]   ;;  %v594_v10 = vcombine.high %v274_v57, %v274_v57 }
  0x5a   : > { %14731 = vmatpush1.bf16.msra.mxu0 %v18601_v20  ;;  %13420 = vmatprep.subr.bf16.mxu1 %v18602_v21  ;;  %v21996_v55 = vrot.slane %v258_v53, %v21989_v50  ;;  %v601_v61 = vrot.slane %v274_v57, %v21989_v50  ;;  %v18649_v1 = vld [vmem:[%s21916_s4 + $0x20c0] ss:$8 sps:$4 sm:$0xff]   ;;  %v18652_v3 = vld [vmem:[%s21916_s4 + $0x20d4] ss:$8 sps:$4 sm:$0xff]   ;;  %v18655_v6 = vld [vmem:[%s21916_s4 + $0x20d0] ss:$8 sps:$4 sm:$0xff]   ;;  %v22018_v15 = vrot.slane %v322_v9, %v21989_v50 }
  0x5b   : > { %14732 = vmatprep.subr.bf16.mxu0 %v18604_v22  ;;  %v18656_v7 = vld [vmem:[%s21916_s4 + $0xe4] ss:$8 sps:$4 sm:$0xff]   ;;  %v18660_v11 = vld [vmem:[%s21916_s4 + $0xe0] ss:$8 sps:$4 sm:$0xff]   ;;  %v18662_v13 = vld [vmem:[%s21916_s4 + $0xf4] ss:$8 sps:$4 sm:$0xff]   ;;  %v22021_v16 = vrot.slane %v594_v10, %v21989_v50 }
  0x5c   : > { %v337_v60 = vcombine.high %v21996_v55, %v21996_v55  ;;  %v609_v63 = vcombine.high %v601_v61, %v601_v61  ;;  %v18658_v8 = vld [vmem:[%s21916_s4 + $0x20e4] ss:$8 sps:$4 sm:$0xff]   ;;  %v18661_v12 = vld [vmem:[%s21916_s4 + $0x20e0] ss:$8 sps:$4 sm:$0xff]   ;;  %v18664_v14 = vld [vmem:[%s21916_s4 + $0x20f4] ss:$8 sps:$4 sm:$0xff]   ;;  %v338_v21 = vcombine.high %v22018_v15, %v22018_v15 }
  0x5d   : > { %13421 = vmatpush1.bf16.msra.mxu1 %v18606_v23  ;;  %v18666_v17 = vld [vmem:[%s21916_s4 + $0xf0] ss:$8 sps:$4 sm:$0xff]   ;;  %v18671_v19 = vld [vmem:[%s21916_s4 + $0x104] ss:$8 sps:$4 sm:$0xff]   ;;  %v610_v22 = vcombine.high %v22021_v16, %v22021_v16  ;;  %v994_v23 = vpack.c.bf16 %v21996_v55, %v21996_v55  ;;  %v18690_v37 = vld [vmem:[%s21916_s4 + $0x134] ss:$8 sps:$4 sm:$0xff]  }
  0x5e   : > { %14733 = vmatpush1.bf16.msra.mxu0 %v18607_v24  ;;  %13422 = vmatprep.subr.bf16.mxu1 %v18608_v25  ;;  %v995_v62 = vpack.c.bf16 %v337_v60, %v337_v60  ;;  %v1059_v4 = vpack.c.bf16 %v609_v63, %v609_v63  ;;  %v18667_v18 = vld [vmem:[%s21916_s4 + $0x20f0] ss:$8 sps:$4 sm:$0xff]   ;;  %v18675_v20 = vld [vmem:[%s21916_s4 + $0x2104] ss:$8 sps:$4 sm:$0xff]   ;;  %v1058_v24 = vpack.c.bf16 %v601_v61, %v601_v61  ;;  %v18669_v25 = vld [vmem:[%s21916_s4 + $0x100] ss:$8 sps:$4 sm:$0xff]  }
  0x5f   : > { %14734 = vmatprep.subr.bf16.mxu0 %v18610_v26  ;;  %v18673_v26 = vld [vmem:[%s21916_s4 + $0x2100] ss:$8 sps:$4 sm:$0xff]   ;;  %v18693_v38 = vld [vmem:[%s21916_s4 + $0x2134] ss:$8 sps:$4 sm:$0xff]   ;;  %v18688_v39 = vld [vmem:[%s21916_s4 + $0x130] ss:$8 sps:$4 sm:$0xff]  }
  0x60   : > { %13442 = vmatprep.mubr.bf16.mxu1 %v995_v62  ;;  %14754 = vmatprep.mubr.bf16.mxu0 %v1059_v4  ;;  %v18694_v43 = vld [vmem:[%s21916_s4 + $0x140] ss:$8 sps:$4 sm:$0xff]   ;;  %v18714_v55 = vld [vmem:[%s21916_s4 + $0x174] ss:$8 sps:$4 sm:$0xff]   ;;  %v18712_v57 = vld [vmem:[%s21916_s4 + $0x170] ss:$8 sps:$4 sm:$0xff]  }
  0x61   : > { %13423 = vmatpush1.bf16.msra.mxu1 %v18612_v27  ;;  %v18678_v27 = vld [vmem:[%s21916_s4 + $0x114] ss:$8 sps:$4 sm:$0xff]   ;;  %v18706_v53 = vld [vmem:[%s21916_s4 + $0x160] ss:$8 sps:$4 sm:$0xff]   ;;  %v18723_v60 = vld [vmem:[%s21916_s4 + $0x2184] ss:$8 sps:$4 sm:$0xff]  }
  0x62   : > { %14735 = vmatpush1.bf16.msra.mxu0 %v18613_v28  ;;  %13424 = vmatprep.subr.bf16.mxu1 %v18614_v29  ;;  %v18681_v28 = vld [vmem:[%s21916_s4 + $0x2114] ss:$8 sps:$4 sm:$0xff]   ;;  %v997_v29 = vpack.c.bf16 %v338_v21, %v338_v21  ;;  %v18718_v61 = vld [vmem:[%s21916_s4 + $0x180] ss:$8 sps:$4 sm:$0xff]   ;;  %v18735_v4 = vld [vmem:[%s21916_s4 + $0x21a4] ss:$8 sps:$4 sm:$0xff]  }
  0x63   : > { %14736 = vmatprep.subr.bf16.mxu0 %v18616_v30  ;;  %v1061_v30 = vpack.c.bf16 %v610_v22, %v610_v22  ;;  %v18721_v62 = vld [vmem:[%s21916_s4 + $0x2180] ss:$8 sps:$4 sm:$0xff]   ;;  %v18726_v63 = vld [vmem:[%s21916_s4 + $0x194] ss:$8 sps:$4 sm:$0xff]   ;;  %v18736_v9 = vld [vmem:[%s21916_s4 + $0x1b0] ss:$8 sps:$4 sm:$0xff]  }
  0x64   : > { %v18739_v10 = vld [vmem:[%s21916_s4 + $0x21b0] ss:$8 sps:$4 sm:$0xff]   ;;  %v18756_v21 = vld [vmem:[%s21916_s4 + $0x1e4] ss:$8 sps:$4 sm:$0xff]  }
  0x65   : > { %13425 = vmatpush1.bf16.msra.mxu1 %v18618_v31  ;;  %v18676_v31 = vld [vmem:[%s21916_s4 + $0x110] ss:$8 sps:$4 sm:$0xff]   ;;  %v18759_v22 = vld [vmem:[%s21916_s4 + $0x21e4] ss:$8 sps:$4 sm:$0xff]  }
  0x66   : > { %14737 = vmatpush1.bf16.msra.mxu0 %v18619_v32  ;;  %13426 = vmatprep.subr.bf16.mxu1 %v18620_v33  ;;  %v18679_v32 = vld [vmem:[%s21916_s4 + $0x2110] ss:$8 sps:$4 sm:$0xff]   ;;  %v18684_v33 = vld [vmem:[%s21916_s4 + $0x124] ss:$8 sps:$4 sm:$0xff]  }
  0x67   : > { %14738 = vmatprep.subr.bf16.mxu0 %v18622_v34  ;;  %v18687_v34 = vld [vmem:[%s21916_s4 + $0x2124] ss:$8 sps:$4 sm:$0xff]  }
  0x69   : > { %13427 = vmatpush1.bf16.msra.mxu1 %v18624_v35  ;;  %v18682_v35 = vld [vmem:[%s21916_s4 + $0x120] ss:$8 sps:$4 sm:$0xff]  }
  0x6a   : > { %14739 = vmatpush1.bf16.msra.mxu0 %v18625_v36  ;;  %13428 = vmatprep.subr.bf16.mxu1 %v18626_v40  ;;  %v18685_v36 = vld [vmem:[%s21916_s4 + $0x2120] ss:$8 sps:$4 sm:$0xff]   ;;  %v18691_v40 = vld [vmem:[%s21916_s4 + $0x2130] ss:$8 sps:$4 sm:$0xff]  }
  0x6b   : > { %14740 = vmatprep.subr.bf16.mxu0 %v18628_v41  ;;  %v18696_v41 = vld [vmem:[%s21916_s4 + $0x144] ss:$8 sps:$4 sm:$0xff]  }
  0x6d   : > { %13429 = vmatpush1.bf16.msra.mxu1 %v18630_v42  ;;  %v18699_v42 = vld [vmem:[%s21916_s4 + $0x2144] ss:$8 sps:$4 sm:$0xff]  }
  0x6e   : > { %14741 = vmatpush1.bf16.msra.mxu0 %v18631_v45  ;;  %13430 = vmatprep.subr.bf16.mxu1 %v18632_v46  ;;  %v18697_v45 = vld [vmem:[%s21916_s4 + $0x2140] ss:$8 sps:$4 sm:$0xff]   ;;  %v18702_v46 = vld [vmem:[%s21916_s4 + $0x154] ss:$8 sps:$4 sm:$0xff]  }
  0x6f   : > { %14742 = vmatprep.subr.bf16.mxu0 %v18634_v47  ;;  %v18705_v47 = vld [vmem:[%s21916_s4 + $0x2154] ss:$8 sps:$4 sm:$0xff]  }
  0x71   : > { %13431 = vmatpush1.bf16.msra.mxu1 %v18636_v48  ;;  %v18700_v48 = vld [vmem:[%s21916_s4 + $0x150] ss:$8 sps:$4 sm:$0xff]  }
  0x72   : > { %14743 = vmatpush1.bf16.msra.mxu0 %v18637_v49  ;;  %13432 = vmatprep.subr.bf16.mxu1 %v18638_v51  ;;  %v18703_v49 = vld [vmem:[%s21916_s4 + $0x2150] ss:$8 sps:$4 sm:$0xff]   ;;  %v18708_v51 = vld [vmem:[%s21916_s4 + $0x164] ss:$8 sps:$4 sm:$0xff]  }
  0x73   : > { %14744 = vmatprep.subr.bf16.mxu0 %v18640_v52  ;;  %v18711_v52 = vld [vmem:[%s21916_s4 + $0x2164] ss:$8 sps:$4 sm:$0xff]  }
  0x75   : > { %13433 = vmatpush1.bf16.msra.mxu1 %v18642_v54  ;;  %v18709_v54 = vld [vmem:[%s21916_s4 + $0x2160] ss:$8 sps:$4 sm:$0xff]  }
  0x76   : > { %14745 = vmatpush1.bf16.msra.mxu0 %v18643_v56  ;;  %13434 = vmatprep.subr.bf16.mxu1 %v18644_v58  ;;  %v18717_v56 = vld [vmem:[%s21916_s4 + $0x2174] ss:$8 sps:$4 sm:$0xff]   ;;  %v18715_v58 = vld [vmem:[%s21916_s4 + $0x2170] ss:$8 sps:$4 sm:$0xff]  }
  0x77   : > { %14746 = vmatprep.subr.bf16.mxu0 %v18646_v59  ;;  %v18720_v59 = vld [vmem:[%s21916_s4 + $0x184] ss:$8 sps:$4 sm:$0xff]  }
  0x79   : > { %13435 = vmatpush1.bf16.msra.mxu1 %v18648_v0  ;;  %v18729_v0 = vld [vmem:[%s21916_s4 + $0x2194] ss:$8 sps:$4 sm:$0xff]  }
  0x7a   : > { %14747 = vmatpush1.bf16.msra.mxu0 %v18649_v1  ;;  %13436 = vmatprep.subr.bf16.mxu1 %v18650_v2  ;;  %v18724_v1 = vld [vmem:[%s21916_s4 + $0x190] ss:$8 sps:$4 sm:$0xff]  }
  0x7b   : > { %14748 = vmatprep.subr.bf16.mxu0 %v18652_v3  ;;  %v18727_v2 = vld [vmem:[%s21916_s4 + $0x2190] ss:$8 sps:$4 sm:$0xff]   ;;  %v18732_v3 = vld [vmem:[%s21916_s4 + $0x1a4] ss:$8 sps:$4 sm:$0xff]  }
  0x7d   : > { %13437 = vmatpush1.bf16.msra.mxu1 %v18654_v5  ;;  %v18730_v5 = vld [vmem:[%s21916_s4 + $0x1a0] ss:$8 sps:$4 sm:$0xff]  }
  0x7e   : > { %14749 = vmatpush1.bf16.msra.mxu0 %v18655_v6  ;;  %13438 = vmatprep.subr.bf16.mxu1 %v18656_v7  ;;  %v18733_v6 = vld [vmem:[%s21916_s4 + $0x21a0] ss:$8 sps:$4 sm:$0xff]   ;;  %v18738_v7 = vld [vmem:[%s21916_s4 + $0x1b4] ss:$8 sps:$4 sm:$0xff]  }
  0x7f   : > { %14750 = vmatprep.subr.bf16.mxu0 %v18658_v8  ;;  %v18741_v8 = vld [vmem:[%s21916_s4 + $0x21b4] ss:$8 sps:$4 sm:$0xff]  }
  0x81   : > { %13439 = vmatpush1.bf16.msra.mxu1 %v18660_v11  ;;  %v18744_v11 = vld [vmem:[%s21916_s4 + $0x1c4] ss:$8 sps:$4 sm:$0xff]  }
  0x82   : > { %14751 = vmatpush1.bf16.msra.mxu0 %v18661_v12  ;;  %13440 = vmatprep.subr.bf16.mxu1 %v18662_v13  ;;  %v18747_v12 = vld [vmem:[%s21916_s4 + $0x21c4] ss:$8 sps:$4 sm:$0xff]   ;;  %v18742_v13 = vld [vmem:[%s21916_s4 + $0x1c0] ss:$8 sps:$4 sm:$0xff]  }
  0x83   : > { %14752 = vmatprep.subr.bf16.mxu0 %v18664_v14  ;;  %v18745_v14 = vld [vmem:[%s21916_s4 + $0x21c0] ss:$8 sps:$4 sm:$0xff]  }
  0x85   : > { %13441 = vmatpush1.bf16.msra.mxu1 %v18666_v17  ;;  %v18750_v17 = vld [vmem:[%s21916_s4 + $0x1d4] ss:$8 sps:$4 sm:$0xff]  }
  0x86   : > { %14753 = vmatpush1.bf16.msra.mxu0 %v18667_v18  ;;  %13451 = vmatprep.subr.bf16.mxu1 %v18671_v19  ;;  %v18753_v18 = vld [vmem:[%s21916_s4 + $0x21d4] ss:$8 sps:$4 sm:$0xff]   ;;  %v18748_v19 = vld [vmem:[%s21916_s4 + $0x1d0] ss:$8 sps:$4 sm:$0xff]  }
  0x87   : > { %14763 = vmatprep.subr.bf16.mxu0 %v18675_v20  ;;  %v18751_v20 = vld [vmem:[%s21916_s4 + $0x21d0] ss:$8 sps:$4 sm:$0xff]  }
  0x88   : > { %13443 = vmatmul.mubr.bf16.vlgmr.msra.gmra.mrb[0].mxu1 %v994_v23  ;;  %v18754_v23 = vld [vmem:[%s21916_s4 + $0x1e0] ss:$8 sps:$4 sm:$0xff]  }
  0x89   : > { %14755 = vmatmul.mubr.bf16.vlgmr.msra.gmra.mrb[0].mxu0 %v1058_v24  ;;  %13452 = vmatpush1.bf16.msra.mxu1 %v18669_v25  ;;  %v18757_v24 = vld [vmem:[%s21916_s4 + $0x21e0] ss:$8 sps:$4 sm:$0xff]   ;;  %v18762_v25 = vld [vmem:[%s21916_s4 + $0x1f4] ss:$8 sps:$4 sm:$0xff]  }
  0x8a   : > { %14764 = vmatpush1.bf16.msra.mxu0 %v18673_v26  ;;  %13453 = vmatprep.subr.bf16.mxu1 %v18678_v27  ;;  %v18765_v26 = vld [vmem:[%s21916_s4 + $0x21f4] ss:$8 sps:$4 sm:$0xff]   ;;  %v18760_v27 = vld [vmem:[%s21916_s4 + $0x1f0] ss:$8 sps:$4 sm:$0xff]  }
  0x8b   : > { %14765 = vmatprep.subr.bf16.mxu0 %v18681_v28  ;;  %13483 = vmatprep.mubr.bf16.mxu1 %v997_v29  ;;  %v18763_v28 = vld [vmem:[%s21916_s4 + $0x21f0] ss:$8 sps:$4 sm:$0xff]   ;;  %v18768_v29 = vld [vmem:[%s21916_s4 + $0x204] ss:$8 sps:$4 sm:$0xff]  }
  0x8c   : > { %14795 = vmatprep.mubr.bf16.mxu0 %v1061_v30  ;;  %v18771_v30 = vld [vmem:[%s21916_s4 + $0x2204] ss:$8 sps:$4 sm:$0xff]  }
  0x8d   : > { %13454 = vmatpush1.bf16.msra.mxu1 %v18676_v31  ;;  %v18766_v31 = vld [vmem:[%s21916_s4 + $0x200] ss:$8 sps:$4 sm:$0xff]  }
  0x8e   : > { %14766 = vmatpush1.bf16.msra.mxu0 %v18679_v32  ;;  %13455 = vmatprep.subr.bf16.mxu1 %v18684_v33  ;;  %v996_v32 = vpack.c.bf16 %v22018_v15, %v22018_v15  ;;  %v1060_v33 = vpack.c.bf16 %v22021_v16, %v22021_v16  ;;  %v22113_v15 = vld [vmem:[%s21929_s29 + $0x88] sm:$0xff]  ;;  %v18772_v16 = vld [vmem:[%s21916_s4 + $0x210] ss:$8 sps:$4 sm:$0xff]  }
  0x8f   : > { %14767 = vmatprep.subr.bf16.mxu0 %v18687_v34  ;;  %v18769_v34 = vld [vmem:[%s21916_s4 + $0x2200] ss:$8 sps:$4 sm:$0xff]  }
  0x91   : > { %13456 = vmatpush1.bf16.msra.mxu1 %v18682_v35  ;;  %v18774_v35 = vld [vmem:[%s21916_s4 + $0x214] ss:$8 sps:$4 sm:$0xff]  }
  0x92   : > { %14768 = vmatpush1.bf16.msra.mxu0 %v18685_v36  ;;  %13457 = vmatprep.subr.bf16.mxu1 %v18690_v37  ;;  %v22105_v36 = vld [vmem:[%s21929_s29 + $0x8] sm:$0xff]  ;;  %v18777_v37 = vld [vmem:[%s21916_s4 + $0x2214] ss:$8 sps:$4 sm:$0xff]  }
  0x93   : > { %14769 = vmatprep.subr.bf16.mxu0 %v18693_v38  ;;  %v22110_v38 = vrot.slane %v22105_v36, %v21989_v50 }
  0x95   : > { %13458 = vmatpush1.bf16.msra.mxu1 %v18688_v39  ;;  %v18775_v39 = vld [vmem:[%s21916_s4 + $0x2210] ss:$8 sps:$4 sm:$0xff]  }
  0x96   : > { %14770 = vmatpush1.bf16.msra.mxu0 %v18691_v40  ;;  %13459 = vmatprep.subr.bf16.mxu1 %v18696_v41  ;;  %v354_v40 = vcombine.high %v22110_v38, %v22110_v38  ;;  %v22121_v41 = vrot.slane %v22113_v15, %v21989_v50 }
  0x97   : > { %14771 = vmatprep.subr.bf16.mxu0 %v18699_v42  ;;  %v18780_v42 = vld [vmem:[%s21916_s4 + $0x224] ss:$8 sps:$4 sm:$0xff]  }
  0x99   : > { %13460 = vmatpush1.bf16.msra.mxu1 %v18694_v43  ;;  %v18783_v43 = vld [vmem:[%s21916_s4 + $0x2224] ss:$8 sps:$4 sm:$0xff]  }
  0x9a   : > { %14772 = vmatpush1.bf16.msra.mxu0 %v18697_v45  ;;  %13461 = vmatprep.subr.bf16.mxu1 %v18702_v46  ;;  %v999_v45 = vpack.c.bf16 %v354_v40, %v354_v40  ;;  %v626_v46 = vcombine.high %v22121_v41, %v22121_v41  ;;  %v18858_v40 = vld [vmem:[%s21916_s4 + $0x2f4] ss:$8 sps:$4 sm:$0xff]  }
  0x9b   : > { %14773 = vmatprep.subr.bf16.mxu0 %v18705_v47  ;;  %v18778_v47 = vld [vmem:[%s21916_s4 + $0x220] ss:$8 sps:$4 sm:$0xff]  }
  0x9d   : > { %13462 = vmatpush1.bf16.msra.mxu1 %v18700_v48  ;;  %v18781_v48 = vld [vmem:[%s21916_s4 + $0x2220] ss:$8 sps:$4 sm:$0xff]  }
  0x9e   : > { %14774 = vmatpush1.bf16.msra.mxu0 %v18703_v49  ;;  %13463 = vmatprep.subr.bf16.mxu1 %v18708_v51  ;;  %v1063_v49 = vpack.c.bf16 %v626_v46, %v626_v46  ;;  %v18786_v51 = vld [vmem:[%s21916_s4 + $0x234] ss:$8 sps:$4 sm:$0xff]   ;;  %v18864_v46 = vld [vmem:[%s21916_s4 + $0x304] ss:$8 sps:$4 sm:$0xff]  }
  0x9f   : > { %14775 = vmatprep.subr.bf16.mxu0 %v18711_v52  ;;  %v18789_v52 = vld [vmem:[%s21916_s4 + $0x2234] ss:$8 sps:$4 sm:$0xff]  }
  0xa1   : > { %13464 = vmatpush1.bf16.msra.mxu1 %v18706_v53  ;;  %v18784_v53 = vld [vmem:[%s21916_s4 + $0x230] ss:$8 sps:$4 sm:$0xff]  }
  0xa2   : > { %14776 = vmatpush1.bf16.msra.mxu0 %v18709_v54  ;;  %13465 = vmatprep.subr.bf16.mxu1 %v18714_v55  ;;  %v18787_v54 = vld [vmem:[%s21916_s4 + $0x2230] ss:$8 sps:$4 sm:$0xff]   ;;  %v18792_v55 = vld [vmem:[%s21916_s4 + $0x244] ss:$8 sps:$4 sm:$0xff]  }
  0xa3   : > { %14777 = vmatprep.subr.bf16.mxu0 %v18717_v56  ;;  %v18795_v56 = vld [vmem:[%s21916_s4 + $0x2244] ss:$8 sps:$4 sm:$0xff]  }
  0xa5   : > { %13466 = vmatpush1.bf16.msra.mxu1 %v18712_v57  ;;  %v18790_v57 = vld [vmem:[%s21916_s4 + $0x240] ss:$8 sps:$4 sm:$0xff]  }
  0xa6   : > { %14778 = vmatpush1.bf16.msra.mxu0 %v18715_v58  ;;  %13467 = vmatprep.subr.bf16.mxu1 %v18720_v59  ;;  %v18793_v58 = vld [vmem:[%s21916_s4 + $0x2240] ss:$8 sps:$4 sm:$0xff]   ;;  %v18798_v59 = vld [vmem:[%s21916_s4 + $0x254] ss:$8 sps:$4 sm:$0xff]  }
  0xa7   : > { %14779 = vmatprep.subr.bf16.mxu0 %v18723_v60  ;;  %v18801_v60 = vld [vmem:[%s21916_s4 + $0x2254] ss:$8 sps:$4 sm:$0xff]  }
  0xa9   : > { %13468 = vmatpush1.bf16.msra.mxu1 %v18718_v61  ;;  %v18796_v61 = vld [vmem:[%s21916_s4 + $0x250] ss:$8 sps:$4 sm:$0xff]  }
  0xaa   : > { %14780 = vmatpush1.bf16.msra.mxu0 %v18721_v62  ;;  %13469 = vmatprep.subr.bf16.mxu1 %v18726_v63  ;;  %v18799_v62 = vld [vmem:[%s21916_s4 + $0x2250] ss:$8 sps:$4 sm:$0xff]   ;;  %v18804_v63 = vld [vmem:[%s21916_s4 + $0x264] ss:$8 sps:$4 sm:$0xff]  }
  0xab   : > { %14781 = vmatprep.subr.bf16.mxu0 %v18729_v0  ;;  %v18807_v0 = vld [vmem:[%s21916_s4 + $0x2264] ss:$8 sps:$4 sm:$0xff]  }
  0xad   : > { %13470 = vmatpush1.bf16.msra.mxu1 %v18724_v1  ;;  %v18802_v1 = vld [vmem:[%s21916_s4 + $0x260] ss:$8 sps:$4 sm:$0xff]  }
  0xae   : > { %14782 = vmatpush1.bf16.msra.mxu0 %v18727_v2  ;;  %13471 = vmatprep.subr.bf16.mxu1 %v18732_v3  ;;  %v18805_v2 = vld [vmem:[%s21916_s4 + $0x2260] ss:$8 sps:$4 sm:$0xff]   ;;  %v18810_v3 = vld [vmem:[%s21916_s4 + $0x274] ss:$8 sps:$4 sm:$0xff]  }
  0xaf   : > { %14783 = vmatprep.subr.bf16.mxu0 %v18735_v4  ;;  %v18813_v4 = vld [vmem:[%s21916_s4 + $0x2274] ss:$8 sps:$4 sm:$0xff]  }
  0xb1   : > { %13472 = vmatpush1.bf16.msra.mxu1 %v18730_v5  ;;  %v18808_v5 = vld [vmem:[%s21916_s4 + $0x270] ss:$8 sps:$4 sm:$0xff]  }
  0xb2   : > { %14784 = vmatpush1.bf16.msra.mxu0 %v18733_v6  ;;  %13473 = vmatprep.subr.bf16.mxu1 %v18738_v7  ;;  %v18811_v6 = vld [vmem:[%s21916_s4 + $0x2270] ss:$8 sps:$4 sm:$0xff]   ;;  %v18816_v7 = vld [vmem:[%s21916_s4 + $0x284] ss:$8 sps:$4 sm:$0xff]  }
  0xb3   : > { %14785 = vmatprep.subr.bf16.mxu0 %v18741_v8  ;;  %v18819_v8 = vld [vmem:[%s21916_s4 + $0x2284] ss:$8 sps:$4 sm:$0xff]  }
  0xb5   : > { %13474 = vmatpush1.bf16.msra.mxu1 %v18736_v9  ;;  %v18814_v9 = vld [vmem:[%s21916_s4 + $0x280] ss:$8 sps:$4 sm:$0xff]  }
  0xb6   : > { %14786 = vmatpush1.bf16.msra.mxu0 %v18739_v10  ;;  %13475 = vmatprep.subr.bf16.mxu1 %v18744_v11  ;;  %v18817_v10 = vld [vmem:[%s21916_s4 + $0x2280] ss:$8 sps:$4 sm:$0xff]   ;;  %v18822_v11 = vld [vmem:[%s21916_s4 + $0x294] ss:$8 sps:$4 sm:$0xff]  }
  0xb7   : > { %14787 = vmatprep.subr.bf16.mxu0 %v18747_v12  ;;  %v18825_v12 = vld [vmem:[%s21916_s4 + $0x2294] ss:$8 sps:$4 sm:$0xff]  }
  0xb9   : > { %13476 = vmatpush1.bf16.msra.mxu1 %v18742_v13  ;;  %v18820_v13 = vld [vmem:[%s21916_s4 + $0x290] ss:$8 sps:$4 sm:$0xff]  }
  0xba   : > { %14788 = vmatpush1.bf16.msra.mxu0 %v18745_v14  ;;  %13477 = vmatprep.subr.bf16.mxu1 %v18750_v17  ;;  %v18823_v14 = vld [vmem:[%s21916_s4 + $0x2290] ss:$8 sps:$4 sm:$0xff]   ;;  %v18828_v17 = vld [vmem:[%s21916_s4 + $0x2a4] ss:$8 sps:$4 sm:$0xff]  }
  0xbb   : > { %14789 = vmatprep.subr.bf16.mxu0 %v18753_v18  ;;  %v18831_v18 = vld [vmem:[%s21916_s4 + $0x22a4] ss:$8 sps:$4 sm:$0xff]  }
  0xbd   : > { %13478 = vmatpush1.bf16.msra.mxu1 %v18748_v19  ;;  %v18826_v19 = vld [vmem:[%s21916_s4 + $0x2a0] ss:$8 sps:$4 sm:$0xff]  }
  0xbe   : > { %14790 = vmatpush1.bf16.msra.mxu0 %v18751_v20  ;;  %13479 = vmatprep.subr.bf16.mxu1 %v18756_v21  ;;  %v18829_v20 = vld [vmem:[%s21916_s4 + $0x22a0] ss:$8 sps:$4 sm:$0xff]   ;;  %v18834_v21 = vld [vmem:[%s21916_s4 + $0x2b4] ss:$8 sps:$4 sm:$0xff]  }
  0xbf   : > { %14791 = vmatprep.subr.bf16.mxu0 %v18759_v22  ;;  %v18837_v22 = vld [vmem:[%s21916_s4 + $0x22b4] ss:$8 sps:$4 sm:$0xff]  }
  0xc1   : > { %13480 = vmatpush1.bf16.msra.mxu1 %v18754_v23  ;;  %v18832_v23 = vld [vmem:[%s21916_s4 + $0x2b0] ss:$8 sps:$4 sm:$0xff]  }
  0xc2   : > { %14792 = vmatpush1.bf16.msra.mxu0 %v18757_v24  ;;  %13481 = vmatprep.subr.bf16.mxu1 %v18762_v25  ;;  %v18835_v24 = vld [vmem:[%s21916_s4 + $0x22b0] ss:$8 sps:$4 sm:$0xff]   ;;  %v18840_v25 = vld [vmem:[%s21916_s4 + $0x2c4] ss:$8 sps:$4 sm:$0xff]  }
  0xc3   : > { %14793 = vmatprep.subr.bf16.mxu0 %v18765_v26  ;;  %v18843_v26 = vld [vmem:[%s21916_s4 + $0x22c4] ss:$8 sps:$4 sm:$0xff]  }
  0xc5   : > { %13482 = vmatpush1.bf16.msra.mxu1 %v18760_v27  ;;  %v18838_v27 = vld [vmem:[%s21916_s4 + $0x2c0] ss:$8 sps:$4 sm:$0xff]  }
  0xc6   : > { %14794 = vmatpush1.bf16.msra.mxu0 %v18763_v28  ;;  %13492 = vmatprep.subr.bf16.mxu1 %v18768_v29  ;;  %v18841_v28 = vld [vmem:[%s21916_s4 + $0x22c0] ss:$8 sps:$4 sm:$0xff]   ;;  %v18846_v29 = vld [vmem:[%s21916_s4 + $0x2d4] ss:$8 sps:$4 sm:$0xff]  }
  0xc7   : > { %14804 = vmatprep.subr.bf16.mxu0 %v18771_v30  ;;  %v18849_v30 = vld [vmem:[%s21916_s4 + $0x22d4] ss:$8 sps:$4 sm:$0xff]  }
  0xc8   : > { %13484 = vmatmul.mubr.bf16.vlgmr.msra.gmra.mrb[0].mxu1 %v996_v32  ;;  %v18847_v32 = vld [vmem:[%s21916_s4 + $0x22d0] ss:$8 sps:$4 sm:$0xff]  }
  0xc9   : > { %14796 = vmatmul.mubr.bf16.vlgmr.msra.gmra.mrb[0].mxu0 %v1060_v33  ;;  %13493 = vmatpush1.bf16.msra.mxu1 %v18766_v31  ;;  %v18844_v31 = vld [vmem:[%s21916_s4 + $0x2d0] ss:$8 sps:$4 sm:$0xff]   ;;  %v18852_v33 = vld [vmem:[%s21916_s4 + $0x2e4] ss:$8 sps:$4 sm:$0xff]  }
  0xca   : > { %14805 = vmatpush1.bf16.msra.mxu0 %v18769_v34  ;;  %13494 = vmatprep.subr.bf16.mxu1 %v18774_v35  ;;  %v18855_v34 = vld [vmem:[%s21916_s4 + $0x22e4] ss:$8 sps:$4 sm:$0xff]   ;;  %v339_v35 = vcombine.high %v22105_v36, %v22105_v36 }
  0xcb   : > { %14806 = vmatprep.subr.bf16.mxu0 %v18777_v37  ;;  %13524 = vmatprep.mubr.bf16.mxu1 %v999_v45  ;;  %v611_v37 = vcombine.high %v22113_v15, %v22113_v15  ;;  %v18856_v45 = vld [vmem:[%s21916_s4 + $0x2f0] ss:$8 sps:$4 sm:$0xff]  }
  0xcc   : > { %14836 = vmatprep.mubr.bf16.mxu0 %v1063_v49  ;;  %v18859_v15 = vld [vmem:[%s21916_s4 + $0x22f0] ss:$8 sps:$4 sm:$0xff]  }
  0xcd   : > { %13495 = vmatpush1.bf16.msra.mxu1 %v18772_v16  ;;  %v18850_v16 = vld [vmem:[%s21916_s4 + $0x2e0] ss:$8 sps:$4 sm:$0xff]   ;;  %v22187_v36 = vrot.slane %v611_v37, %v21989_v50  ;;  %v18931_v37 = vld [vmem:[%s21916_s4 + $0x23b0] ss:$8 sps:$4 sm:$0xff]  }
  0xce   : > { %14807 = vmatpush1.bf16.msra.mxu0 %v18775_v39  ;;  %13496 = vmatprep.subr.bf16.mxu1 %v18780_v42  ;;  %v18853_v39 = vld [vmem:[%s21916_s4 + $0x22e0] ss:$8 sps:$4 sm:$0xff]   ;;  %v18861_v42 = vld [vmem:[%s21916_s4 + $0x22f4] ss:$8 sps:$4 sm:$0xff]  }
  0xcf   : > { %14808 = vmatprep.subr.bf16.mxu0 %v18783_v43  ;;  %v22184_v43 = vrot.slane %v339_v35, %v21989_v50  ;;  %v627_v49 = vcombine.high %v22187_v36, %v22187_v36  ;;  %v18928_v35 = vld [vmem:[%s21916_s4 + $0x3b0] ss:$8 sps:$4 sm:$0xff]  }
  0xd1   : > { %13497 = vmatpush1.bf16.msra.mxu1 %v18778_v47  ;;  %v18867_v47 = vld [vmem:[%s21916_s4 + $0x2304] ss:$8 sps:$4 sm:$0xff]  }
  0xd2   : > { %14809 = vmatpush1.bf16.msra.mxu0 %v18781_v48  ;;  %13498 = vmatprep.subr.bf16.mxu1 %v18786_v51  ;;  %v355_v48 = vcombine.high %v22184_v43, %v22184_v43  ;;  %v18862_v51 = vld [vmem:[%s21916_s4 + $0x300] ss:$8 sps:$4 sm:$0xff]  }
  0xd3   : > { %14810 = vmatprep.subr.bf16.mxu0 %v18789_v52  ;;  %v18865_v52 = vld [vmem:[%s21916_s4 + $0x2300] ss:$8 sps:$4 sm:$0xff]  }
  0xd5   : > { %13499 = vmatpush1.bf16.msra.mxu1 %v18784_v53  ;;  %v998_v53 = vpack.c.bf16 %v22110_v38, %v22110_v38  ;;  %v18871_v38 = vld [vmem:[%s21916_s4 + $0x2310] ss:$8 sps:$4 sm:$0xff]  }
  0xd6   : > { %14811 = vmatpush1.bf16.msra.mxu0 %v18787_v54  ;;  %13500 = vmatprep.subr.bf16.mxu1 %v18792_v55  ;;  %v1062_v54 = vpack.c.bf16 %v22121_v41, %v22121_v41  ;;  %v18870_v55 = vld [vmem:[%s21916_s4 + $0x314] ss:$8 sps:$4 sm:$0xff]   ;;  %v18876_v41 = vld [vmem:[%s21916_s4 + $0x324] ss:$8 sps:$4 sm:$0xff]  }
  0xd7   : > { %14812 = vmatprep.subr.bf16.mxu0 %v18795_v56  ;;  %v18873_v56 = vld [vmem:[%s21916_s4 + $0x2314] ss:$8 sps:$4 sm:$0xff]  }
  0xd9   : > { %13501 = vmatpush1.bf16.msra.mxu1 %v18790_v57  ;;  %v1001_v57 = vpack.c.bf16 %v355_v48, %v355_v48  ;;  %v18948_v48 = vld [vmem:[%s21916_s4 + $0x3e4] ss:$8 sps:$4 sm:$0xff]  }
  0xda   : > { %14813 = vmatpush1.bf16.msra.mxu0 %v18793_v58  ;;  %13502 = vmatprep.subr.bf16.mxu1 %v18798_v59  ;;  %v1065_v58 = vpack.c.bf16 %v627_v49, %v627_v49  ;;  %v18868_v59 = vld [vmem:[%s21916_s4 + $0x310] ss:$8 sps:$4 sm:$0xff]   ;;  %v18951_v49 = vld [vmem:[%s21916_s4 + $0x23e4] ss:$8 sps:$4 sm:$0xff]  }
  0xdb   : > { %14814 = vmatprep.subr.bf16.mxu0 %v18801_v60  ;;  %v18879_v60 = vld [vmem:[%s21916_s4 + $0x2324] ss:$8 sps:$4 sm:$0xff]  }
  0xdd   : > { %13503 = vmatpush1.bf16.msra.mxu1 %v18796_v61  ;;  %v18874_v61 = vld [vmem:[%s21916_s4 + $0x320] ss:$8 sps:$4 sm:$0xff]  }
  0xde   : > { %14815 = vmatpush1.bf16.msra.mxu0 %v18799_v62  ;;  %13504 = vmatprep.subr.bf16.mxu1 %v18804_v63  ;;  %v18877_v62 = vld [vmem:[%s21916_s4 + $0x2320] ss:$8 sps:$4 sm:$0xff]   ;;  %v18882_v63 = vld [vmem:[%s21916_s4 + $0x334] ss:$8 sps:$4 sm:$0xff]  }
  0xdf   : > { %14816 = vmatprep.subr.bf16.mxu0 %v18807_v0  ;;  %v18885_v0 = vld [vmem:[%s21916_s4 + $0x2334] ss:$8 sps:$4 sm:$0xff]  }
  0xe1   : > { %13505 = vmatpush1.bf16.msra.mxu1 %v18802_v1  ;;  %v18880_v1 = vld [vmem:[%s21916_s4 + $0x330] ss:$8 sps:$4 sm:$0xff]  }
  0xe2   : > { %14817 = vmatpush1.bf16.msra.mxu0 %v18805_v2  ;;  %13506 = vmatprep.subr.bf16.mxu1 %v18810_v3  ;;  %v18883_v2 = vld [vmem:[%s21916_s4 + $0x2330] ss:$8 sps:$4 sm:$0xff]   ;;  %v18888_v3 = vld [vmem:[%s21916_s4 + $0x344] ss:$8 sps:$4 sm:$0xff]  }
  0xe3   : > { %14818 = vmatprep.subr.bf16.mxu0 %v18813_v4  ;;  %v18891_v4 = vld [vmem:[%s21916_s4 + $0x2344] ss:$8 sps:$4 sm:$0xff]  }
  0xe5   : > { %13507 = vmatpush1.bf16.msra.mxu1 %v18808_v5  ;;  %v18886_v5 = vld [vmem:[%s21916_s4 + $0x340] ss:$8 sps:$4 sm:$0xff]  }
  0xe6   : > { %14819 = vmatpush1.bf16.msra.mxu0 %v18811_v6  ;;  %13508 = vmatprep.subr.bf16.mxu1 %v18816_v7  ;;  %v18889_v6 = vld [vmem:[%s21916_s4 + $0x2340] ss:$8 sps:$4 sm:$0xff]   ;;  %v18894_v7 = vld [vmem:[%s21916_s4 + $0x354] ss:$8 sps:$4 sm:$0xff]  }
  0xe7   : > { %14820 = vmatprep.subr.bf16.mxu0 %v18819_v8  ;;  %v18897_v8 = vld [vmem:[%s21916_s4 + $0x2354] ss:$8 sps:$4 sm:$0xff]  }
  0xe9   : > { %13509 = vmatpush1.bf16.msra.mxu1 %v18814_v9  ;;  %v18892_v9 = vld [vmem:[%s21916_s4 + $0x350] ss:$8 sps:$4 sm:$0xff]  }
  0xea   : > { %14821 = vmatpush1.bf16.msra.mxu0 %v18817_v10  ;;  %13510 = vmatprep.subr.bf16.mxu1 %v18822_v11  ;;  %v18895_v10 = vld [vmem:[%s21916_s4 + $0x2350] ss:$8 sps:$4 sm:$0xff]   ;;  %v18900_v11 = vld [vmem:[%s21916_s4 + $0x364] ss:$8 sps:$4 sm:$0xff]  }
  0xeb   : > { %14822 = vmatprep.subr.bf16.mxu0 %v18825_v12  ;;  %v18903_v12 = vld [vmem:[%s21916_s4 + $0x2364] ss:$8 sps:$4 sm:$0xff]  }
  0xed   : > { %13511 = vmatpush1.bf16.msra.mxu1 %v18820_v13  ;;  %v18898_v13 = vld [vmem:[%s21916_s4 + $0x360] ss:$8 sps:$4 sm:$0xff]  }
  0xee   : > { %14823 = vmatpush1.bf16.msra.mxu0 %v18823_v14  ;;  %13512 = vmatprep.subr.bf16.mxu1 %v18828_v17  ;;  %v18901_v14 = vld [vmem:[%s21916_s4 + $0x2360] ss:$8 sps:$4 sm:$0xff]   ;;  %v18906_v17 = vld [vmem:[%s21916_s4 + $0x374] ss:$8 sps:$4 sm:$0xff]  }
  0xef   : > { %14824 = vmatprep.subr.bf16.mxu0 %v18831_v18  ;;  %v18909_v18 = vld [vmem:[%s21916_s4 + $0x2374] ss:$8 sps:$4 sm:$0xff]  }
  0xf1   : > { %13513 = vmatpush1.bf16.msra.mxu1 %v18826_v19  ;;  %v18904_v19 = vld [vmem:[%s21916_s4 + $0x370] ss:$8 sps:$4 sm:$0xff]  }
  0xf2   : > { %14825 = vmatpush1.bf16.msra.mxu0 %v18829_v20  ;;  %13514 = vmatprep.subr.bf16.mxu1 %v18834_v21  ;;  %v18907_v20 = vld [vmem:[%s21916_s4 + $0x2370] ss:$8 sps:$4 sm:$0xff]   ;;  %v18912_v21 = vld [vmem:[%s21916_s4 + $0x384] ss:$8 sps:$4 sm:$0xff]  }
  0xf3   : > { %14826 = vmatprep.subr.bf16.mxu0 %v18837_v22  ;;  %v18915_v22 = vld [vmem:[%s21916_s4 + $0x2384] ss:$8 sps:$4 sm:$0xff]  }
  0xf5   : > { %13515 = vmatpush1.bf16.msra.mxu1 %v18832_v23  ;;  %v18910_v23 = vld [vmem:[%s21916_s4 + $0x380] ss:$8 sps:$4 sm:$0xff]  }
  0xf6   : > { %14827 = vmatpush1.bf16.msra.mxu0 %v18835_v24  ;;  %13516 = vmatprep.subr.bf16.mxu1 %v18840_v25  ;;  %v18913_v24 = vld [vmem:[%s21916_s4 + $0x2380] ss:$8 sps:$4 sm:$0xff]   ;;  %v18918_v25 = vld [vmem:[%s21916_s4 + $0x394] ss:$8 sps:$4 sm:$0xff]  }
  0xf7   : > { %14828 = vmatprep.subr.bf16.mxu0 %v18843_v26  ;;  %v18921_v26 = vld [vmem:[%s21916_s4 + $0x2394] ss:$8 sps:$4 sm:$0xff]  }
  0xf9   : > { %13517 = vmatpush1.bf16.msra.mxu1 %v18838_v27  ;;  %v18916_v27 = vld [vmem:[%s21916_s4 + $0x390] ss:$8 sps:$4 sm:$0xff]  }
  0xfa   : > { %14829 = vmatpush1.bf16.msra.mxu0 %v18841_v28  ;;  %13518 = vmatprep.subr.bf16.mxu1 %v18846_v29  ;;  %v18919_v28 = vld [vmem:[%s21916_s4 + $0x2390] ss:$8 sps:$4 sm:$0xff]   ;;  %v18924_v29 = vld [vmem:[%s21916_s4 + $0x3a4] ss:$8 sps:$4 sm:$0xff]  }
  0xfb   : > { %14830 = vmatprep.subr.bf16.mxu0 %v18849_v30  ;;  %v18927_v30 = vld [vmem:[%s21916_s4 + $0x23a4] ss:$8 sps:$4 sm:$0xff]  }
  0xfd   : > { %13519 = vmatpush1.bf16.msra.mxu1 %v18844_v31  ;;  %v18922_v31 = vld [vmem:[%s21916_s4 + $0x3a0] ss:$8 sps:$4 sm:$0xff]  }
  0xfe   : > { %14831 = vmatpush1.bf16.msra.mxu0 %v18847_v32  ;;  %13520 = vmatprep.subr.bf16.mxu1 %v18852_v33  ;;  %v18925_v32 = vld [vmem:[%s21916_s4 + $0x23a0] ss:$8 sps:$4 sm:$0xff]   ;;  %v18930_v33 = vld [vmem:[%s21916_s4 + $0x3b4] ss:$8 sps:$4 sm:$0xff]  }
  0xff   : > { %14832 = vmatprep.subr.bf16.mxu0 %v18855_v34  ;;  %v18933_v34 = vld [vmem:[%s21916_s4 + $0x23b4] ss:$8 sps:$4 sm:$0xff]  }
 0x101   : > { %13521 = vmatpush1.bf16.msra.mxu1 %v18850_v16  ;;  %v18936_v16 = vld [vmem:[%s21916_s4 + $0x3c4] ss:$8 sps:$4 sm:$0xff]  }
 0x102   : > { %14833 = vmatpush1.bf16.msra.mxu0 %v18853_v39  ;;  %13522 = vmatprep.subr.bf16.mxu1 %v18858_v40  ;;  %v18939_v39 = vld [vmem:[%s21916_s4 + $0x23c4] ss:$8 sps:$4 sm:$0xff]   ;;  %v18934_v40 = vld [vmem:[%s21916_s4 + $0x3c0] ss:$8 sps:$4 sm:$0xff]  }
 0x103   : > { %14834 = vmatprep.subr.bf16.mxu0 %v18861_v42  ;;  %v18937_v42 = vld [vmem:[%s21916_s4 + $0x23c0] ss:$8 sps:$4 sm:$0xff]  }
 0x105   : > { %13523 = vmatpush1.bf16.msra.mxu1 %v18856_v45  ;;  %v18942_v45 = vld [vmem:[%s21916_s4 + $0x3d4] ss:$8 sps:$4 sm:$0xff]  }
 0x106   : > { %14835 = vmatpush1.bf16.msra.mxu0 %v18859_v15  ;;  %13533 = vmatprep.subr.bf16.mxu1 %v18864_v46  ;;  %v18945_v15 = vld [vmem:[%s21916_s4 + $0x23d4] ss:$8 sps:$4 sm:$0xff]   ;;  %v18940_v46 = vld [vmem:[%s21916_s4 + $0x3d0] ss:$8 sps:$4 sm:$0xff]  }
 0x107   : > { %14845 = vmatprep.subr.bf16.mxu0 %v18867_v47  ;;  %v18943_v47 = vld [vmem:[%s21916_s4 + $0x23d0] ss:$8 sps:$4 sm:$0xff]  }
 0x108   : > { %13525 = vmatmul.mubr.bf16.vlgmr.msra.gmra.mrb[0].mxu1 %v998_v53  ;;  %v18946_v53 = vld [vmem:[%s21916_s4 + $0x3e0] ss:$8 sps:$4 sm:$0xff]  }
 0x109   : > { %14837 = vmatmul.mubr.bf16.vlgmr.msra.gmra.mrb[0].mxu0 %v1062_v54  ;;  %13534 = vmatpush1.bf16.msra.mxu1 %v18862_v51  ;;  %v22258_v51 = vld [vmem:[%s21929_s29 + $0x10] sm:$0xff]  ;;  %v18949_v54 = vld [vmem:[%s21916_s4 + $0x23e0] ss:$8 sps:$4 sm:$0xff]  }
 0x10a   : > { %14846 = vmatpush1.bf16.msra.mxu0 %v18865_v52  ;;  %13535 = vmatprep.subr.bf16.mxu1 %v18870_v55  ;;  %v22261_v52 = vld [vmem:[%s21929_s29 + $0x90] sm:$0xff]  ;;  %v18954_v55 = vld [vmem:[%s21916_s4 + $0x3f4] ss:$8 sps:$4 sm:$0xff]  }
 0x10b   : > { %14847 = vmatprep.subr.bf16.mxu0 %v18873_v56  ;;  %13565 = vmatprep.mubr.bf16.mxu1 %v1001_v57  ;;  %v18957_v56 = vld [vmem:[%s21916_s4 + $0x23f4] ss:$8 sps:$4 sm:$0xff]   ;;  %v22269_v57 = vrot.slane %v22258_v51, %v21989_v50 }
 0x10c   : > { %14877 = vmatprep.mubr.bf16.mxu0 %v1065_v58  ;;  %v22273_v58 = vrot.slane %v22261_v52, %v21989_v50 }
 0x10d   : > { %13536 = vmatpush1.bf16.msra.mxu1 %v18868_v59  ;;  %v18952_v59 = vld [vmem:[%s21916_s4 + $0x3f0] ss:$8 sps:$4 sm:$0xff]  }
 0x10e   : > { %14848 = vmatpush1.bf16.msra.mxu0 %v18871_v38  ;;  %13537 = vmatprep.subr.bf16.mxu1 %v18876_v41  ;;  %v18955_v38 = vld [vmem:[%s21916_s4 + $0x23f0] ss:$8 sps:$4 sm:$0xff]   ;;  %v18961_v41 = vld [vmem:[%s21916_s4 + $0x404] ss:$8 sps:$4 sm:$0xff]  }
 0x10f   : > { %14849 = vmatprep.subr.bf16.mxu0 %v18879_v60  ;;  %v18965_v60 = vld [vmem:[%s21916_s4 + $0x2404] ss:$8 sps:$4 sm:$0xff]  }
 0x111   : > { %13538 = vmatpush1.bf16.msra.mxu1 %v18874_v61  ;;  %v371_v61 = vcombine.high %v22269_v57, %v22269_v57 }
 0x112   : > { %14850 = vmatpush1.bf16.msra.mxu0 %v18877_v62  ;;  %13539 = vmatprep.subr.bf16.mxu1 %v18882_v63  ;;  %v643_v62 = vcombine.high %v22273_v58, %v22273_v58  ;;  %v1000_v63 = vpack.c.bf16 %v22184_v43, %v22184_v43  ;;  %v18966_v43 = vld [vmem:[%s21916_s4 + $0x410] ss:$8 sps:$4 sm:$0xff]  }
 0x113   : > { %14851 = vmatprep.subr.bf16.mxu0 %v18885_v0  ;;  %v1064_v0 = vpack.c.bf16 %v22187_v36, %v22187_v36  ;;  %v18969_v36 = vld [vmem:[%s21916_s4 + $0x2410] ss:$8 sps:$4 sm:$0xff]  }
 0x115   : > { %13540 = vmatpush1.bf16.msra.mxu1 %v18880_v1  ;;  %v18959_v1 = vld [vmem:[%s21916_s4 + $0x400] ss:$8 sps:$4 sm:$0xff]  }
 0x116   : > { %14852 = vmatpush1.bf16.msra.mxu0 %v18883_v2  ;;  %13541 = vmatprep.subr.bf16.mxu1 %v18888_v3  ;;  %v18963_v2 = vld [vmem:[%s21916_s4 + $0x2400] ss:$8 sps:$4 sm:$0xff]   ;;  %v18968_v3 = vld [vmem:[%s21916_s4 + $0x414] ss:$8 sps:$4 sm:$0xff]  }
 0x117   : > { %14853 = vmatprep.subr.bf16.mxu0 %v18891_v4  ;;  %v18971_v4 = vld [vmem:[%s21916_s4 + $0x2414] ss:$8 sps:$4 sm:$0xff]  }
 0x119   : > { %13542 = vmatpush1.bf16.msra.mxu1 %v18886_v5  ;;  %v1003_v5 = vpack.c.bf16 %v371_v61, %v371_v61  ;;  %v19038_v61 = vld [vmem:[%s21916_s4 + $0x4d0] ss:$8 sps:$4 sm:$0xff]  }
 0x11a   : > { %14854 = vmatpush1.bf16.msra.mxu0 %v18889_v6  ;;  %13543 = vmatprep.subr.bf16.mxu1 %v18894_v7  ;;  %v1067_v6 = vpack.c.bf16 %v643_v62, %v643_v62  ;;  %v18974_v7 = vld [vmem:[%s21916_s4 + $0x424] ss:$8 sps:$4 sm:$0xff]   ;;  %v19041_v62 = vld [vmem:[%s21916_s4 + $0x24d0] ss:$8 sps:$4 sm:$0xff]  }
 0x11b   : > { %14855 = vmatprep.subr.bf16.mxu0 %v18897_v8  ;;  %v18977_v8 = vld [vmem:[%s21916_s4 + $0x2424] ss:$8 sps:$4 sm:$0xff]  }
 0x11d   : > { %13544 = vmatpush1.bf16.msra.mxu1 %v18892_v9  ;;  %v18972_v9 = vld [vmem:[%s21916_s4 + $0x420] ss:$8 sps:$4 sm:$0xff]  }
 0x11e   : > { %14856 = vmatpush1.bf16.msra.mxu0 %v18895_v10  ;;  %13545 = vmatprep.subr.bf16.mxu1 %v18900_v11  ;;  %v18975_v10 = vld [vmem:[%s21916_s4 + $0x2420] ss:$8 sps:$4 sm:$0xff]   ;;  %v18980_v11 = vld [vmem:[%s21916_s4 + $0x434] ss:$8 sps:$4 sm:$0xff]  }
 0x11f   : > { %14857 = vmatprep.subr.bf16.mxu0 %v18903_v12  ;;  %v18983_v12 = vld [vmem:[%s21916_s4 + $0x2434] ss:$8 sps:$4 sm:$0xff]  }
 0x121   : > { %13546 = vmatpush1.bf16.msra.mxu1 %v18898_v13  ;;  %v18978_v13 = vld [vmem:[%s21916_s4 + $0x430] ss:$8 sps:$4 sm:$0xff]  }
 0x122   : > { %14858 = vmatpush1.bf16.msra.mxu0 %v18901_v14  ;;  %13547 = vmatprep.subr.bf16.mxu1 %v18906_v17  ;;  %v18981_v14 = vld [vmem:[%s21916_s4 + $0x2430] ss:$8 sps:$4 sm:$0xff]   ;;  %v18986_v17 = vld [vmem:[%s21916_s4 + $0x444] ss:$8 sps:$4 sm:$0xff]  }
 0x123   : > { %14859 = vmatprep.subr.bf16.mxu0 %v18909_v18  ;;  %v18989_v18 = vld [vmem:[%s21916_s4 + $0x2444] ss:$8 sps:$4 sm:$0xff]  }
 0x125   : > { %13548 = vmatpush1.bf16.msra.mxu1 %v18904_v19  ;;  %v18984_v19 = vld [vmem:[%s21916_s4 + $0x440] ss:$8 sps:$4 sm:$0xff]  }
 0x126   : > { %14860 = vmatpush1.bf16.msra.mxu0 %v18907_v20  ;;  %13549 = vmatprep.subr.bf16.mxu1 %v18912_v21  ;;  %v18987_v20 = vld [vmem:[%s21916_s4 + $0x2440] ss:$8 sps:$4 sm:$0xff]   ;;  %v18992_v21 = vld [vmem:[%s21916_s4 + $0x454] ss:$8 sps:$4 sm:$0xff]  }
 0x127   : > { %14861 = vmatprep.subr.bf16.mxu0 %v18915_v22  ;;  %v18995_v22 = vld [vmem:[%s21916_s4 + $0x2454] ss:$8 sps:$4 sm:$0xff]  }
 0x129   : > { %13550 = vmatpush1.bf16.msra.mxu1 %v18910_v23  ;;  %v18990_v23 = vld [vmem:[%s21916_s4 + $0x450] ss:$8 sps:$4 sm:$0xff]  }
 0x12a   : > { %14862 = vmatpush1.bf16.msra.mxu0 %v18913_v24  ;;  %13551 = vmatprep.subr.bf16.mxu1 %v18918_v25  ;;  %v18993_v24 = vld [vmem:[%s21916_s4 + $0x2450] ss:$8 sps:$4 sm:$0xff]   ;;  %v18998_v25 = vld [vmem:[%s21916_s4 + $0x464] ss:$8 sps:$4 sm:$0xff]  }
 0x12b   : > { %14863 = vmatprep.subr.bf16.mxu0 %v18921_v26  ;;  %v19001_v26 = vld [vmem:[%s21916_s4 + $0x2464] ss:$8 sps:$4 sm:$0xff]  }
 0x12d   : > { %13552 = vmatpush1.bf16.msra.mxu1 %v18916_v27  ;;  %v18996_v27 = vld [vmem:[%s21916_s4 + $0x460] ss:$8 sps:$4 sm:$0xff]  }
 0x12e   : > { %14864 = vmatpush1.bf16.msra.mxu0 %v18919_v28  ;;  %13553 = vmatprep.subr.bf16.mxu1 %v18924_v29  ;;  %v18999_v28 = vld [vmem:[%s21916_s4 + $0x2460] ss:$8 sps:$4 sm:$0xff]   ;;  %v19004_v29 = vld [vmem:[%s21916_s4 + $0x474] ss:$8 sps:$4 sm:$0xff]  }
 0x12f   : > { %14865 = vmatprep.subr.bf16.mxu0 %v18927_v30  ;;  %v19007_v30 = vld [vmem:[%s21916_s4 + $0x2474] ss:$8 sps:$4 sm:$0xff]  }
 0x131   : > { %13554 = vmatpush1.bf16.msra.mxu1 %v18922_v31  ;;  %v19002_v31 = vld [vmem:[%s21916_s4 + $0x470] ss:$8 sps:$4 sm:$0xff]  }
 0x132   : > { %14866 = vmatpush1.bf16.msra.mxu0 %v18925_v32  ;;  %13555 = vmatprep.subr.bf16.mxu1 %v18930_v33  ;;  %v19005_v32 = vld [vmem:[%s21916_s4 + $0x2470] ss:$8 sps:$4 sm:$0xff]   ;;  %v19010_v33 = vld [vmem:[%s21916_s4 + $0x484] ss:$8 sps:$4 sm:$0xff]  }
 0x133   : > { %14867 = vmatprep.subr.bf16.mxu0 %v18933_v34  ;;  %v19013_v34 = vld [vmem:[%s21916_s4 + $0x2484] ss:$8 sps:$4 sm:$0xff]  }
 0x135   : > { %13556 = vmatpush1.bf16.msra.mxu1 %v18928_v35  ;;  %v19008_v35 = vld [vmem:[%s21916_s4 + $0x480] ss:$8 sps:$4 sm:$0xff]  }
 0x136   : > { %14868 = vmatpush1.bf16.msra.mxu0 %v18931_v37  ;;  %13557 = vmatprep.subr.bf16.mxu1 %v18936_v16  ;;  %v19011_v37 = vld [vmem:[%s21916_s4 + $0x2480] ss:$8 sps:$4 sm:$0xff]   ;;  %v19016_v16 = vld [vmem:[%s21916_s4 + $0x494] ss:$8 sps:$4 sm:$0xff]  }
 0x137   : > { %14869 = vmatprep.subr.bf16.mxu0 %v18939_v39  ;;  %v19019_v39 = vld [vmem:[%s21916_s4 + $0x2494] ss:$8 sps:$4 sm:$0xff]  }
 0x139   : > { %13558 = vmatpush1.bf16.msra.mxu1 %v18934_v40  ;;  %v19014_v40 = vld [vmem:[%s21916_s4 + $0x490] ss:$8 sps:$4 sm:$0xff]  }
 0x13a   : > { %14870 = vmatpush1.bf16.msra.mxu0 %v18937_v42  ;;  %13559 = vmatprep.subr.bf16.mxu1 %v18942_v45  ;;  %v19017_v42 = vld [vmem:[%s21916_s4 + $0x2490] ss:$8 sps:$4 sm:$0xff]   ;;  %v19022_v45 = vld [vmem:[%s21916_s4 + $0x4a4] ss:$8 sps:$4 sm:$0xff]  }
 0x13b   : > { %14871 = vmatprep.subr.bf16.mxu0 %v18945_v15  ;;  %v19025_v15 = vld [vmem:[%s21916_s4 + $0x24a4] ss:$8 sps:$4 sm:$0xff]  }
 0x13d   : > { %13560 = vmatpush1.bf16.msra.mxu1 %v18940_v46  ;;  %v19020_v46 = vld [vmem:[%s21916_s4 + $0x4a0] ss:$8 sps:$4 sm:$0xff]  }
 0x13e   : > { %14872 = vmatpush1.bf16.msra.mxu0 %v18943_v47  ;;  %13561 = vmatprep.subr.bf16.mxu1 %v18948_v48  ;;  %v19023_v47 = vld [vmem:[%s21916_s4 + $0x24a0] ss:$8 sps:$4 sm:$0xff]   ;;  %v19028_v48 = vld [vmem:[%s21916_s4 + $0x4b4] ss:$8 sps:$4 sm:$0xff]  }
 0x13f   : > { %14873 = vmatprep.subr.bf16.mxu0 %v18951_v49  ;;  %v19031_v49 = vld [vmem:[%s21916_s4 + $0x24b4] ss:$8 sps:$4 sm:$0xff]  }
 0x141   : > { %13562 = vmatpush1.bf16.msra.mxu1 %v18946_v53  ;;  %v19026_v53 = vld [vmem:[%s21916_s4 + $0x4b0] ss:$8 sps:$4 sm:$0xff]  }
 0x142   : > { %14874 = vmatpush1.bf16.msra.mxu0 %v18949_v54  ;;  %13563 = vmatprep.subr.bf16.mxu1 %v18954_v55  ;;  %v19029_v54 = vld [vmem:[%s21916_s4 + $0x24b0] ss:$8 sps:$4 sm:$0xff]   ;;  %v19034_v55 = vld [vmem:[%s21916_s4 + $0x4c4] ss:$8 sps:$4 sm:$0xff]  }
 0x143   : > { %14875 = vmatprep.subr.bf16.mxu0 %v18957_v56  ;;  %v19037_v56 = vld [vmem:[%s21916_s4 + $0x24c4] ss:$8 sps:$4 sm:$0xff]  }
 0x145   : > { %13564 = vmatpush1.bf16.msra.mxu1 %v18952_v59  ;;  %v19032_v59 = vld [vmem:[%s21916_s4 + $0x4c0] ss:$8 sps:$4 sm:$0xff]  }
 0x146   : > { %14876 = vmatpush1.bf16.msra.mxu0 %v18955_v38  ;;  %13574 = vmatprep.subr.bf16.mxu1 %v18961_v41  ;;  %v19035_v38 = vld [vmem:[%s21916_s4 + $0x24c0] ss:$8 sps:$4 sm:$0xff]   ;;  %v19040_v41 = vld [vmem:[%s21916_s4 + $0x4d4] ss:$8 sps:$4 sm:$0xff]  }
 0x147   : > { %14886 = vmatprep.subr.bf16.mxu0 %v18965_v60  ;;  %v19043_v60 = vld [vmem:[%s21916_s4 + $0x24d4] ss:$8 sps:$4 sm:$0xff]  }
 0x148   : > { %13566 = vmatmul.mubr.bf16.vlgmr.msra.gmra.mrb[0].mxu1 %v1000_v63  ;;  %v19046_v63 = vld [vmem:[%s21916_s4 + $0x4e4] ss:$8 sps:$4 sm:$0xff]  }
 0x149   : > { %14878 = vmatmul.mubr.bf16.vlgmr.msra.gmra.mrb[0].mxu0 %v1064_v0  ;;  %13575 = vmatpush1.bf16.msra.mxu1 %v18959_v1  ;;  %v19049_v0 = vld [vmem:[%s21916_s4 + $0x24e4] ss:$8 sps:$4 sm:$0xff]   ;;  %v356_v1 = vcombine.high %v22258_v51, %v22258_v51  ;;  %v19050_v51 = vld [vmem:[%s21916_s4 + $0x4f0] ss:$8 sps:$4 sm:$0xff]  }
 0x14a   : > { %14887 = vmatpush1.bf16.msra.mxu0 %v18963_v2  ;;  %13576 = vmatprep.subr.bf16.mxu1 %v18968_v3  ;;  %v628_v2 = vcombine.high %v22261_v52, %v22261_v52  ;;  %v19044_v3 = vld [vmem:[%s21916_s4 + $0x4e0] ss:$8 sps:$4 sm:$0xff]   ;;  %v19053_v52 = vld [vmem:[%s21916_s4 + $0x24f0] ss:$8 sps:$4 sm:$0xff]  }
 0x14b   : > { %14888 = vmatprep.subr.bf16.mxu0 %v18971_v4  ;;  %13606 = vmatprep.mubr.bf16.mxu1 %v1003_v5  ;;  %v19047_v4 = vld [vmem:[%s21916_s4 + $0x24e0] ss:$8 sps:$4 sm:$0xff]   ;;  %v19052_v5 = vld [vmem:[%s21916_s4 + $0x4f4] ss:$8 sps:$4 sm:$0xff]  }
 0x14c   : > { %14918 = vmatprep.mubr.bf16.mxu0 %v1067_v6  ;;  %v19055_v6 = vld [vmem:[%s21916_s4 + $0x24f4] ss:$8 sps:$4 sm:$0xff]  }
 0x14d   : > { %13577 = vmatpush1.bf16.msra.mxu1 %v18966_v43  ;;  %v22352_v43 = vrot.slane %v356_v1, %v21989_v50  ;;  %v19122_v1 = vld [vmem:[%s21916_s4 + $0x5b0] ss:$8 sps:$4 sm:$0xff]  }
 0x14e   : > { %14889 = vmatpush1.bf16.msra.mxu0 %v18969_v36  ;;  %13578 = vmatprep.subr.bf16.mxu1 %v18974_v7  ;;  %v22355_v36 = vrot.slane %v628_v2, %v21989_v50  ;;  %v19058_v7 = vld [vmem:[%s21916_s4 + $0x504] ss:$8 sps:$4 sm:$0xff]   ;;  %v19125_v2 = vld [vmem:[%s21916_s4 + $0x25b0] ss:$8 sps:$4 sm:$0xff]  }
 0x14f   : > { %14890 = vmatprep.subr.bf16.mxu0 %v18977_v8  ;;  %v19061_v8 = vld [vmem:[%s21916_s4 + $0x2504] ss:$8 sps:$4 sm:$0xff]  }
 0x151   : > { %13579 = vmatpush1.bf16.msra.mxu1 %v18972_v9  ;;  %v372_v9 = vcombine.high %v22352_v43, %v22352_v43 }
 0x152   : > { %14891 = vmatpush1.bf16.msra.mxu0 %v18975_v10  ;;  %13580 = vmatprep.subr.bf16.mxu1 %v18980_v11  ;;  %v644_v10 = vcombine.high %v22355_v36, %v22355_v36  ;;  %v1002_v11 = vpack.c.bf16 %v22269_v57, %v22269_v57  ;;  %v19062_v57 = vld [vmem:[%s21916_s4 + $0x510] ss:$8 sps:$4 sm:$0xff]  }
 0x153   : > { %14892 = vmatprep.subr.bf16.mxu0 %v18983_v12  ;;  %v1066_v12 = vpack.c.bf16 %v22273_v58, %v22273_v58  ;;  %v19065_v58 = vld [vmem:[%s21916_s4 + $0x2510] ss:$8 sps:$4 sm:$0xff]  }
 0x155   : > { %13581 = vmatpush1.bf16.msra.mxu1 %v18978_v13  ;;  %v19056_v13 = vld [vmem:[%s21916_s4 + $0x500] ss:$8 sps:$4 sm:$0xff]  }
 0x156   : > { %14893 = vmatpush1.bf16.msra.mxu0 %v18981_v14  ;;  %13582 = vmatprep.subr.bf16.mxu1 %v18986_v17  ;;  %v19059_v14 = vld [vmem:[%s21916_s4 + $0x2500] ss:$8 sps:$4 sm:$0xff]   ;;  %v19064_v17 = vld [vmem:[%s21916_s4 + $0x514] ss:$8 sps:$4 sm:$0xff]  }
 0x157   : > { %14894 = vmatprep.subr.bf16.mxu0 %v18989_v18  ;;  %v19067_v18 = vld [vmem:[%s21916_s4 + $0x2514] ss:$8 sps:$4 sm:$0xff]  }
 0x159   : > { %13583 = vmatpush1.bf16.msra.mxu1 %v18984_v19  ;;  %v1005_v19 = vpack.c.bf16 %v372_v9, %v372_v9  ;;  %v19142_v9 = vld [vmem:[%s21916_s4 + $0x5e4] ss:$8 sps:$4 sm:$0xff]  }
 0x15a   : > { %14895 = vmatpush1.bf16.msra.mxu0 %v18987_v20  ;;  %13584 = vmatprep.subr.bf16.mxu1 %v18992_v21  ;;  %v1069_v20 = vpack.c.bf16 %v644_v10, %v644_v10  ;;  %v19070_v21 = vld [vmem:[%s21916_s4 + $0x524] ss:$8 sps:$4 sm:$0xff]  }
 0x15b   : > { %14896 = vmatprep.subr.bf16.mxu0 %v18995_v22  ;;  %v19073_v22 = vld [vmem:[%s21916_s4 + $0x2524] ss:$8 sps:$4 sm:$0xff]  }
 0x15c   : > { %v19145_v10 = vld [vmem:[%s21916_s4 + $0x25e4] ss:$8 sps:$4 sm:$0xff]  }
 0x15d   : > { %13585 = vmatpush1.bf16.msra.mxu1 %v18990_v23  ;;  %v19068_v23 = vld [vmem:[%s21916_s4 + $0x520] ss:$8 sps:$4 sm:$0xff]  }
 0x15e   : > { %14897 = vmatpush1.bf16.msra.mxu0 %v18993_v24  ;;  %13586 = vmatprep.subr.bf16.mxu1 %v18998_v25  ;;  %v19071_v24 = vld [vmem:[%s21916_s4 + $0x2520] ss:$8 sps:$4 sm:$0xff]   ;;  %v19076_v25 = vld [vmem:[%s21916_s4 + $0x534] ss:$8 sps:$4 sm:$0xff]  }
 0x15f   : > { %14898 = vmatprep.subr.bf16.mxu0 %v19001_v26  ;;  %v19079_v26 = vld [vmem:[%s21916_s4 + $0x2534] ss:$8 sps:$4 sm:$0xff]  }
 0x161   : > { %13587 = vmatpush1.bf16.msra.mxu1 %v18996_v27  ;;  %v19074_v27 = vld [vmem:[%s21916_s4 + $0x530] ss:$8 sps:$4 sm:$0xff]  }
 0x162   : > { %14899 = vmatpush1.bf16.msra.mxu0 %v18999_v28  ;;  %13588 = vmatprep.subr.bf16.mxu1 %v19004_v29  ;;  %v19077_v28 = vld [vmem:[%s21916_s4 + $0x2530] ss:$8 sps:$4 sm:$0xff]   ;;  %v19082_v29 = vld [vmem:[%s21916_s4 + $0x544] ss:$8 sps:$4 sm:$0xff]  }
 0x163   : > { %14900 = vmatprep.subr.bf16.mxu0 %v19007_v30  ;;  %v19085_v30 = vld [vmem:[%s21916_s4 + $0x2544] ss:$8 sps:$4 sm:$0xff]  }
 0x165   : > { %13589 = vmatpush1.bf16.msra.mxu1 %v19002_v31  ;;  %v19080_v31 = vld [vmem:[%s21916_s4 + $0x540] ss:$8 sps:$4 sm:$0xff]  }
 0x166   : > { %14901 = vmatpush1.bf16.msra.mxu0 %v19005_v32  ;;  %13590 = vmatprep.subr.bf16.mxu1 %v19010_v33  ;;  %v19083_v32 = vld [vmem:[%s21916_s4 + $0x2540] ss:$8 sps:$4 sm:$0xff]   ;;  %v19088_v33 = vld [vmem:[%s21916_s4 + $0x554] ss:$8 sps:$4 sm:$0xff]  }
 0x167   : > { %14902 = vmatprep.subr.bf16.mxu0 %v19013_v34  ;;  %v19091_v34 = vld [vmem:[%s21916_s4 + $0x2554] ss:$8 sps:$4 sm:$0xff]  }
 0x169   : > { %13591 = vmatpush1.bf16.msra.mxu1 %v19008_v35  ;;  %v19086_v35 = vld [vmem:[%s21916_s4 + $0x550] ss:$8 sps:$4 sm:$0xff]  }
 0x16a   : > { %14903 = vmatpush1.bf16.msra.mxu0 %v19011_v37  ;;  %13592 = vmatprep.subr.bf16.mxu1 %v19016_v16  ;;  %v19089_v37 = vld [vmem:[%s21916_s4 + $0x2550] ss:$8 sps:$4 sm:$0xff]   ;;  %v19094_v16 = vld [vmem:[%s21916_s4 + $0x564] ss:$8 sps:$4 sm:$0xff]  }
 0x16b   : > { %14904 = vmatprep.subr.bf16.mxu0 %v19019_v39  ;;  %v19097_v39 = vld [vmem:[%s21916_s4 + $0x2564] ss:$8 sps:$4 sm:$0xff]  }
 0x16d   : > { %13593 = vmatpush1.bf16.msra.mxu1 %v19014_v40  ;;  %v19092_v40 = vld [vmem:[%s21916_s4 + $0x560] ss:$8 sps:$4 sm:$0xff]  }
 0x16e   : > { %14905 = vmatpush1.bf16.msra.mxu0 %v19017_v42  ;;  %13594 = vmatprep.subr.bf16.mxu1 %v19022_v45  ;;  %v19095_v42 = vld [vmem:[%s21916_s4 + $0x2560] ss:$8 sps:$4 sm:$0xff]   ;;  %v19100_v45 = vld [vmem:[%s21916_s4 + $0x574] ss:$8 sps:$4 sm:$0xff]  }
 0x16f   : > { %14906 = vmatprep.subr.bf16.mxu0 %v19025_v15  ;;  %v19103_v15 = vld [vmem:[%s21916_s4 + $0x2574] ss:$8 sps:$4 sm:$0xff]  }
 0x171   : > { %13595 = vmatpush1.bf16.msra.mxu1 %v19020_v46  ;;  %v19098_v46 = vld [vmem:[%s21916_s4 + $0x570] ss:$8 sps:$4 sm:$0xff]  }
 0x172   : > { %14907 = vmatpush1.bf16.msra.mxu0 %v19023_v47  ;;  %13596 = vmatprep.subr.bf16.mxu1 %v19028_v48  ;;  %v19101_v47 = vld [vmem:[%s21916_s4 + $0x2570] ss:$8 sps:$4 sm:$0xff]   ;;  %v19106_v48 = vld [vmem:[%s21916_s4 + $0x584] ss:$8 sps:$4 sm:$0xff]  }
 0x173   : > { %14908 = vmatprep.subr.bf16.mxu0 %v19031_v49  ;;  %v19109_v49 = vld [vmem:[%s21916_s4 + $0x2584] ss:$8 sps:$4 sm:$0xff]  }
 0x175   : > { %13597 = vmatpush1.bf16.msra.mxu1 %v19026_v53  ;;  %v19104_v53 = vld [vmem:[%s21916_s4 + $0x580] ss:$8 sps:$4 sm:$0xff]  }
 0x176   : > { %14909 = vmatpush1.bf16.msra.mxu0 %v19029_v54  ;;  %13598 = vmatprep.subr.bf16.mxu1 %v19034_v55  ;;  %v19107_v54 = vld [vmem:[%s21916_s4 + $0x2580] ss:$8 sps:$4 sm:$0xff]   ;;  %v19112_v55 = vld [vmem:[%s21916_s4 + $0x594] ss:$8 sps:$4 sm:$0xff]  }
 0x177   : > { %14910 = vmatprep.subr.bf16.mxu0 %v19037_v56  ;;  %v19115_v56 = vld [vmem:[%s21916_s4 + $0x2594] ss:$8 sps:$4 sm:$0xff]  }
 0x179   : > { %13599 = vmatpush1.bf16.msra.mxu1 %v19032_v59  ;;  %v19110_v59 = vld [vmem:[%s21916_s4 + $0x590] ss:$8 sps:$4 sm:$0xff]  }
 0x17a   : > { %14911 = vmatpush1.bf16.msra.mxu0 %v19035_v38  ;;  %13600 = vmatprep.subr.bf16.mxu1 %v19040_v41  ;;  %v19113_v38 = vld [vmem:[%s21916_s4 + $0x2590] ss:$8 sps:$4 sm:$0xff]   ;;  %v19118_v41 = vld [vmem:[%s21916_s4 + $0x5a4] ss:$8 sps:$4 sm:$0xff]  }
 0x17b   : > { %14912 = vmatprep.subr.bf16.mxu0 %v19043_v60  ;;  %v19121_v60 = vld [vmem:[%s21916_s4 + $0x25a4] ss:$8 sps:$4 sm:$0xff]  }
 0x17d   : > { %13601 = vmatpush1.bf16.msra.mxu1 %v19038_v61  ;;  %v19116_v61 = vld [vmem:[%s21916_s4 + $0x5a0] ss:$8 sps:$4 sm:$0xff]  }
 0x17e   : > { %14913 = vmatpush1.bf16.msra.mxu0 %v19041_v62  ;;  %13602 = vmatprep.subr.bf16.mxu1 %v19046_v63  ;;  %v19119_v62 = vld [vmem:[%s21916_s4 + $0x25a0] ss:$8 sps:$4 sm:$0xff]   ;;  %v19124_v63 = vld [vmem:[%s21916_s4 + $0x5b4] ss:$8 sps:$4 sm:$0xff]  }
 0x17f   : > { %14914 = vmatprep.subr.bf16.mxu0 %v19049_v0  ;;  %v19127_v0 = vld [vmem:[%s21916_s4 + $0x25b4] ss:$8 sps:$4 sm:$0xff]  }
 0x181   : > { %13603 = vmatpush1.bf16.msra.mxu1 %v19044_v3  ;;  %v19130_v3 = vld [vmem:[%s21916_s4 + $0x5c4] ss:$8 sps:$4 sm:$0xff]  }
 0x182   : > { %14915 = vmatpush1.bf16.msra.mxu0 %v19047_v4  ;;  %13604 = vmatprep.subr.bf16.mxu1 %v19052_v5  ;;  %v19133_v4 = vld [vmem:[%s21916_s4 + $0x25c4] ss:$8 sps:$4 sm:$0xff]   ;;  %v19128_v5 = vld [vmem:[%s21916_s4 + $0x5c0] ss:$8 sps:$4 sm:$0xff]  }
 0x183   : > { %14916 = vmatprep.subr.bf16.mxu0 %v19055_v6  ;;  %v19131_v6 = vld [vmem:[%s21916_s4 + $0x25c0] ss:$8 sps:$4 sm:$0xff]  }
 0x185   : > { %13605 = vmatpush1.bf16.msra.mxu1 %v19050_v51  ;;  %v19136_v51 = vld [vmem:[%s21916_s4 + $0x5d4] ss:$8 sps:$4 sm:$0xff]  }
 0x186   : > { %14917 = vmatpush1.bf16.msra.mxu0 %v19053_v52  ;;  %13615 = vmatprep.subr.bf16.mxu1 %v19058_v7  ;;  %v19139_v52 = vld [vmem:[%s21916_s4 + $0x25d4] ss:$8 sps:$4 sm:$0xff]   ;;  %v19134_v7 = vld [vmem:[%s21916_s4 + $0x5d0] ss:$8 sps:$4 sm:$0xff]  }
 0x187   : > { %14927 = vmatprep.subr.bf16.mxu0 %v19061_v8  ;;  %v19137_v8 = vld [vmem:[%s21916_s4 + $0x25d0] ss:$8 sps:$4 sm:$0xff]  }
 0x188   : > { %13607 = vmatmul.mubr.bf16.vlgmr.msra.gmra.mrb[0].mxu1 %v1002_v11  ;;  %v22426_v11 = vld [vmem:[%s21929_s29 + $0x18] sm:$0xff] }
 0x189   : > { %14919 = vmatmul.mubr.bf16.vlgmr.msra.gmra.mrb[0].mxu0 %v1066_v12  ;;  %13616 = vmatpush1.bf16.msra.mxu1 %v19056_v13  ;;  %v22429_v12 = vld [vmem:[%s21929_s29 + $0x98] sm:$0xff]  ;;  %v19140_v13 = vld [vmem:[%s21916_s4 + $0x5e0] ss:$8 sps:$4 sm:$0xff]  }
 0x18a   : > { %14928 = vmatpush1.bf16.msra.mxu0 %v19059_v14  ;;  %13617 = vmatprep.subr.bf16.mxu1 %v19064_v17  ;;  %v19143_v14 = vld [vmem:[%s21916_s4 + $0x25e0] ss:$8 sps:$4 sm:$0xff]   ;;  %v19148_v17 = vld [vmem:[%s21916_s4 + $0x5f4] ss:$8 sps:$4 sm:$0xff]  }
 0x18b   : > { %14929 = vmatprep.subr.bf16.mxu0 %v19067_v18  ;;  %13647 = vmatprep.mubr.bf16.mxu1 %v1005_v19  ;;  %v19151_v18 = vld [vmem:[%s21916_s4 + $0x25f4] ss:$8 sps:$4 sm:$0xff]   ;;  %v22437_v19 = vrot.slane %v22426_v11, %v21989_v50 }
 0x18c   : > { %14959 = vmatprep.mubr.bf16.mxu0 %v1069_v20  ;;  %v22441_v20 = vrot.slane %v22429_v12, %v21989_v50 }
 0x18d   : > { %13618 = vmatpush1.bf16.msra.mxu1 %v19062_v57  ;;  %v19146_v57 = vld [vmem:[%s21916_s4 + $0x5f0] ss:$8 sps:$4 sm:$0xff]  }
 0x18e   : > { %14930 = vmatpush1.bf16.msra.mxu0 %v19065_v58  ;;  %13619 = vmatprep.subr.bf16.mxu1 %v19070_v21  ;;  %v19149_v58 = vld [vmem:[%s21916_s4 + $0x25f0] ss:$8 sps:$4 sm:$0xff]   ;;  %v19155_v21 = vld [vmem:[%s21916_s4 + $0x604] ss:$8 sps:$4 sm:$0xff]  }
 0x18f   : > { %14931 = vmatprep.subr.bf16.mxu0 %v19073_v22  ;;  %v19159_v22 = vld [vmem:[%s21916_s4 + $0x2604] ss:$8 sps:$4 sm:$0xff]  }
 0x191   : > { %13620 = vmatpush1.bf16.msra.mxu1 %v19068_v23  ;;  %v388_v23 = vcombine.high %v22437_v19, %v22437_v19 }
 0x192   : > { %14932 = vmatpush1.bf16.msra.mxu0 %v19071_v24  ;;  %13621 = vmatprep.subr.bf16.mxu1 %v19076_v25  ;;  %v660_v24 = vcombine.high %v22441_v20, %v22441_v20  ;;  %v1004_v25 = vpack.c.bf16 %v22352_v43, %v22352_v43  ;;  %v19160_v43 = vld [vmem:[%s21916_s4 + $0x610] ss:$8 sps:$4 sm:$0xff]  }
 0x193   : > { %14933 = vmatprep.subr.bf16.mxu0 %v19079_v26  ;;  %v1068_v26 = vpack.c.bf16 %v22355_v36, %v22355_v36  ;;  %v19163_v36 = vld [vmem:[%s21916_s4 + $0x2610] ss:$8 sps:$4 sm:$0xff]  }
 0x195   : > { %13622 = vmatpush1.bf16.msra.mxu1 %v19074_v27  ;;  %v19153_v27 = vld [vmem:[%s21916_s4 + $0x600] ss:$8 sps:$4 sm:$0xff]  }
 0x196   : > { %14934 = vmatpush1.bf16.msra.mxu0 %v19077_v28  ;;  %13623 = vmatprep.subr.bf16.mxu1 %v19082_v29  ;;  %v19157_v28 = vld [vmem:[%s21916_s4 + $0x2600] ss:$8 sps:$4 sm:$0xff]   ;;  %v19162_v29 = vld [vmem:[%s21916_s4 + $0x614] ss:$8 sps:$4 sm:$0xff]  }
 0x197   : > { %14935 = vmatprep.subr.bf16.mxu0 %v19085_v30  ;;  %v19165_v30 = vld [vmem:[%s21916_s4 + $0x2614] ss:$8 sps:$4 sm:$0xff]  }
 0x199   : > { %13624 = vmatpush1.bf16.msra.mxu1 %v19080_v31  ;;  %v1007_v31 = vpack.c.bf16 %v388_v23, %v388_v23  ;;  %v19232_v23 = vld [vmem:[%s21916_s4 + $0x6d0] ss:$8 sps:$4 sm:$0xff]  }
 0x19a   : > { %14936 = vmatpush1.bf16.msra.mxu0 %v19083_v32  ;;  %13625 = vmatprep.subr.bf16.mxu1 %v19088_v33  ;;  %v1071_v32 = vpack.c.bf16 %v660_v24, %v660_v24  ;;  %v19168_v33 = vld [vmem:[%s21916_s4 + $0x624] ss:$8 sps:$4 sm:$0xff]   ;;  %v19235_v24 = vld [vmem:[%s21916_s4 + $0x26d0] ss:$8 sps:$4 sm:$0xff]  }
 0x19b   : > { %14937 = vmatprep.subr.bf16.mxu0 %v19091_v34  ;;  %v19171_v34 = vld [vmem:[%s21916_s4 + $0x2624] ss:$8 sps:$4 sm:$0xff]  }
 0x19d   : > { %13626 = vmatpush1.bf16.msra.mxu1 %v19086_v35  ;;  %v19166_v35 = vld [vmem:[%s21916_s4 + $0x620] ss:$8 sps:$4 sm:$0xff]  }
 0x19e   : > { %14938 = vmatpush1.bf16.msra.mxu0 %v19089_v37  ;;  %13627 = vmatprep.subr.bf16.mxu1 %v19094_v16  ;;  %v19169_v37 = vld [vmem:[%s21916_s4 + $0x2620] ss:$8 sps:$4 sm:$0xff]   ;;  %v19174_v16 = vld [vmem:[%s21916_s4 + $0x634] ss:$8 sps:$4 sm:$0xff]  }
 0x19f   : > { %14939 = vmatprep.subr.bf16.mxu0 %v19097_v39  ;;  %v19177_v39 = vld [vmem:[%s21916_s4 + $0x2634] ss:$8 sps:$4 sm:$0xff]  }
 0x1a1   : > { %13628 = vmatpush1.bf16.msra.mxu1 %v19092_v40  ;;  %v19172_v40 = vld [vmem:[%s21916_s4 + $0x630] ss:$8 sps:$4 sm:$0xff]  }
 0x1a2   : > { %14940 = vmatpush1.bf16.msra.mxu0 %v19095_v42  ;;  %13629 = vmatprep.subr.bf16.mxu1 %v19100_v45  ;;  %v19175_v42 = vld [vmem:[%s21916_s4 + $0x2630] ss:$8 sps:$4 sm:$0xff]   ;;  %v19180_v45 = vld [vmem:[%s21916_s4 + $0x644] ss:$8 sps:$4 sm:$0xff]  }
 0x1a3   : > { %14941 = vmatprep.subr.bf16.mxu0 %v19103_v15  ;;  %v19183_v15 = vld [vmem:[%s21916_s4 + $0x2644] ss:$8 sps:$4 sm:$0xff]  }
 0x1a5   : > { %13630 = vmatpush1.bf16.msra.mxu1 %v19098_v46  ;;  %v19178_v46 = vld [vmem:[%s21916_s4 + $0x640] ss:$8 sps:$4 sm:$0xff]  }
 0x1a6   : > { %14942 = vmatpush1.bf16.msra.mxu0 %v19101_v47  ;;  %13631 = vmatprep.subr.bf16.mxu1 %v19106_v48  ;;  %v19181_v47 = vld [vmem:[%s21916_s4 + $0x2640] ss:$8 sps:$4 sm:$0xff]   ;;  %v19186_v48 = vld [vmem:[%s21916_s4 + $0x654] ss:$8 sps:$4 sm:$0xff]  }
 0x1a7   : > { %14943 = vmatprep.subr.bf16.mxu0 %v19109_v49  ;;  %v19189_v49 = vld [vmem:[%s21916_s4 + $0x2654] ss:$8 sps:$4 sm:$0xff]  }
 0x1a9   : > { %13632 = vmatpush1.bf16.msra.mxu1 %v19104_v53  ;;  %v19184_v53 = vld [vmem:[%s21916_s4 + $0x650] ss:$8 sps:$4 sm:$0xff]  }
 0x1aa   : > { %14944 = vmatpush1.bf16.msra.mxu0 %v19107_v54  ;;  %13633 = vmatprep.subr.bf16.mxu1 %v19112_v55  ;;  %v19187_v54 = vld [vmem:[%s21916_s4 + $0x2650] ss:$8 sps:$4 sm:$0xff]   ;;  %v19192_v55 = vld [vmem:[%s21916_s4 + $0x664] ss:$8 sps:$4 sm:$0xff]  }
 0x1ab   : > { %14945 = vmatprep.subr.bf16.mxu0 %v19115_v56  ;;  %v19195_v56 = vld [vmem:[%s21916_s4 + $0x2664] ss:$8 sps:$4 sm:$0xff]  }
 0x1ad   : > { %13634 = vmatpush1.bf16.msra.mxu1 %v19110_v59  ;;  %v19190_v59 = vld [vmem:[%s21916_s4 + $0x660] ss:$8 sps:$4 sm:$0xff]  }
 0x1ae   : > { %14946 = vmatpush1.bf16.msra.mxu0 %v19113_v38  ;;  %13635 = vmatprep.subr.bf16.mxu1 %v19118_v41  ;;  %v19193_v38 = vld [vmem:[%s21916_s4 + $0x2660] ss:$8 sps:$4 sm:$0xff]   ;;  %v19198_v41 = vld [vmem:[%s21916_s4 + $0x674] ss:$8 sps:$4 sm:$0xff]  }
 0x1af   : > { %14947 = vmatprep.subr.bf16.mxu0 %v19121_v60  ;;  %v19201_v60 = vld [vmem:[%s21916_s4 + $0x2674] ss:$8 sps:$4 sm:$0xff]  }
 0x1b1   : > { %13636 = vmatpush1.bf16.msra.mxu1 %v19116_v61  ;;  %v19196_v61 = vld [vmem:[%s21916_s4 + $0x670] ss:$8 sps:$4 sm:$0xff]  }
 0x1b2   : > { %14948 = vmatpush1.bf16.msra.mxu0 %v19119_v62  ;;  %13637 = vmatprep.subr.bf16.mxu1 %v19124_v63  ;;  %v19199_v62 = vld [vmem:[%s21916_s4 + $0x2670] ss:$8 sps:$4 sm:$0xff]   ;;  %v19204_v63 = vld [vmem:[%s21916_s4 + $0x684] ss:$8 sps:$4 sm:$0xff]  }
 0x1b3   : > { %14949 = vmatprep.subr.bf16.mxu0 %v19127_v0  ;;  %v19207_v0 = vld [vmem:[%s21916_s4 + $0x2684] ss:$8 sps:$4 sm:$0xff]  }
 0x1b5   : > { %13638 = vmatpush1.bf16.msra.mxu1 %v19122_v1  ;;  %v19202_v1 = vld [vmem:[%s21916_s4 + $0x680] ss:$8 sps:$4 sm:$0xff]  }
 0x1b6   : > { %14950 = vmatpush1.bf16.msra.mxu0 %v19125_v2  ;;  %13639 = vmatprep.subr.bf16.mxu1 %v19130_v3  ;;  %v19205_v2 = vld [vmem:[%s21916_s4 + $0x2680] ss:$8 sps:$4 sm:$0xff]   ;;  %v19210_v3 = vld [vmem:[%s21916_s4 + $0x694] ss:$8 sps:$4 sm:$0xff]  }
 0x1b7   : > { %14951 = vmatprep.subr.bf16.mxu0 %v19133_v4  ;;  %v19213_v4 = vld [vmem:[%s21916_s4 + $0x2694] ss:$8 sps:$4 sm:$0xff]  }
 0x1b9   : > { %13640 = vmatpush1.bf16.msra.mxu1 %v19128_v5  ;;  %v19208_v5 = vld [vmem:[%s21916_s4 + $0x690] ss:$8 sps:$4 sm:$0xff]  }
 0x1ba   : > { %14952 = vmatpush1.bf16.msra.mxu0 %v19131_v6  ;;  %13641 = vmatprep.subr.bf16.mxu1 %v19136_v51  ;;  %v19211_v6 = vld [vmem:[%s21916_s4 + $0x2690] ss:$8 sps:$4 sm:$0xff]   ;;  %v19216_v51 = vld [vmem:[%s21916_s4 + $0x6a4] ss:$8 sps:$4 sm:$0xff]  }
 0x1bb   : > { %14953 = vmatprep.subr.bf16.mxu0 %v19139_v52  ;;  %v19219_v52 = vld [vmem:[%s21916_s4 + $0x26a4] ss:$8 sps:$4 sm:$0xff]  }
 0x1bd   : > { %13642 = vmatpush1.bf16.msra.mxu1 %v19134_v7  ;;  %v19214_v7 = vld [vmem:[%s21916_s4 + $0x6a0] ss:$8 sps:$4 sm:$0xff]  }
 0x1be   : > { %14954 = vmatpush1.bf16.msra.mxu0 %v19137_v8  ;;  %13643 = vmatprep.subr.bf16.mxu1 %v19142_v9  ;;  %v19217_v8 = vld [vmem:[%s21916_s4 + $0x26a0] ss:$8 sps:$4 sm:$0xff]   ;;  %v19222_v9 = vld [vmem:[%s21916_s4 + $0x6b4] ss:$8 sps:$4 sm:$0xff]  }
 0x1bf   : > { %14955 = vmatprep.subr.bf16.mxu0 %v19145_v10  ;;  %v19225_v10 = vld [vmem:[%s21916_s4 + $0x26b4] ss:$8 sps:$4 sm:$0xff]  }
 0x1c1   : > { %13644 = vmatpush1.bf16.msra.mxu1 %v19140_v13  ;;  %v19220_v13 = vld [vmem:[%s21916_s4 + $0x6b0] ss:$8 sps:$4 sm:$0xff]  }
 0x1c2   : > { %14956 = vmatpush1.bf16.msra.mxu0 %v19143_v14  ;;  %13645 = vmatprep.subr.bf16.mxu1 %v19148_v17  ;;  %v19223_v14 = vld [vmem:[%s21916_s4 + $0x26b0] ss:$8 sps:$4 sm:$0xff]   ;;  %v19228_v17 = vld [vmem:[%s21916_s4 + $0x6c4] ss:$8 sps:$4 sm:$0xff]  }
 0x1c3   : > { %14957 = vmatprep.subr.bf16.mxu0 %v19151_v18  ;;  %v19231_v18 = vld [vmem:[%s21916_s4 + $0x26c4] ss:$8 sps:$4 sm:$0xff]  }
 0x1c5   : > { %13646 = vmatpush1.bf16.msra.mxu1 %v19146_v57  ;;  %v19226_v57 = vld [vmem:[%s21916_s4 + $0x6c0] ss:$8 sps:$4 sm:$0xff]  }
 0x1c6   : > { %14958 = vmatpush1.bf16.msra.mxu0 %v19149_v58  ;;  %13656 = vmatprep.subr.bf16.mxu1 %v19155_v21  ;;  %v19229_v58 = vld [vmem:[%s21916_s4 + $0x26c0] ss:$8 sps:$4 sm:$0xff]   ;;  %v19234_v21 = vld [vmem:[%s21916_s4 + $0x6d4] ss:$8 sps:$4 sm:$0xff]  }
 0x1c7   : > { %14968 = vmatprep.subr.bf16.mxu0 %v19159_v22  ;;  %v19237_v22 = vld [vmem:[%s21916_s4 + $0x26d4] ss:$8 sps:$4 sm:$0xff]  }
 0x1c8   : > { %13648 = vmatmul.mubr.bf16.vlgmr.msra.gmra.mrb[0].mxu1 %v1004_v25  ;;  %v19240_v25 = vld [vmem:[%s21916_s4 + $0x6e4] ss:$8 sps:$4 sm:$0xff]  }
 0x1c9   : > { %14960 = vmatmul.mubr.bf16.vlgmr.msra.gmra.mrb[0].mxu0 %v1068_v26  ;;  %13657 = vmatpush1.bf16.msra.mxu1 %v19153_v27  ;;  %v19243_v26 = vld [vmem:[%s21916_s4 + $0x26e4] ss:$8 sps:$4 sm:$0xff]   ;;  %v373_v27 = vcombine.high %v22426_v11, %v22426_v11  ;;  %v19244_v11 = vld [vmem:[%s21916_s4 + $0x6f0] ss:$8 sps:$4 sm:$0xff]  }
 0x1ca   : > { %14969 = vmatpush1.bf16.msra.mxu0 %v19157_v28  ;;  %13658 = vmatprep.subr.bf16.mxu1 %v19162_v29  ;;  %v645_v28 = vcombine.high %v22429_v12, %v22429_v12  ;;  %v19238_v29 = vld [vmem:[%s21916_s4 + $0x6e0] ss:$8 sps:$4 sm:$0xff]   ;;  %v19247_v12 = vld [vmem:[%s21916_s4 + $0x26f0] ss:$8 sps:$4 sm:$0xff]  }
 0x1cb   : > { %14970 = vmatprep.subr.bf16.mxu0 %v19165_v30  ;;  %13688 = vmatprep.mubr.bf16.mxu1 %v1007_v31  ;;  %v19241_v30 = vld [vmem:[%s21916_s4 + $0x26e0] ss:$8 sps:$4 sm:$0xff]   ;;  %v19246_v31 = vld [vmem:[%s21916_s4 + $0x6f4] ss:$8 sps:$4 sm:$0xff]  }
 0x1cc   : > { %15000 = vmatprep.mubr.bf16.mxu0 %v1071_v32  ;;  %v19249_v32 = vld [vmem:[%s21916_s4 + $0x26f4] ss:$8 sps:$4 sm:$0xff]  }
 0x1cd   : > { %13659 = vmatpush1.bf16.msra.mxu1 %v19160_v43  ;;  %v22520_v43 = vrot.slane %v373_v27, %v21989_v50  ;;  %v19316_v27 = vld [vmem:[%s21916_s4 + $0x7b0] ss:$8 sps:$4 sm:$0xff]  }
 0x1ce   : > { %14971 = vmatpush1.bf16.msra.mxu0 %v19163_v36  ;;  %13660 = vmatprep.subr.bf16.mxu1 %v19168_v33  ;;  %v22523_v36 = vrot.slane %v645_v28, %v21989_v50  ;;  %v19252_v33 = vld [vmem:[%s21916_s4 + $0x704] ss:$8 sps:$4 sm:$0xff]   ;;  %v19319_v28 = vld [vmem:[%s21916_s4 + $0x27b0] ss:$8 sps:$4 sm:$0xff]  }
 0x1cf   : > { %14972 = vmatprep.subr.bf16.mxu0 %v19171_v34  ;;  %v19255_v34 = vld [vmem:[%s21916_s4 + $0x2704] ss:$8 sps:$4 sm:$0xff]  }
 0x1d1   : > { %13661 = vmatpush1.bf16.msra.mxu1 %v19166_v35  ;;  %v389_v35 = vcombine.high %v22520_v43, %v22520_v43 }
 0x1d2   : > { %14973 = vmatpush1.bf16.msra.mxu0 %v19169_v37  ;;  %13662 = vmatprep.subr.bf16.mxu1 %v19174_v16  ;;  %v661_v37 = vcombine.high %v22523_v36, %v22523_v36  ;;  %v1006_v16 = vpack.c.bf16 %v22437_v19, %v22437_v19  ;;  %v19256_v19 = vld [vmem:[%s21916_s4 + $0x710] ss:$8 sps:$4 sm:$0xff]  }
 0x1d3   : > { %14974 = vmatprep.subr.bf16.mxu0 %v19177_v39  ;;  %v1070_v39 = vpack.c.bf16 %v22441_v20, %v22441_v20  ;;  %v19259_v20 = vld [vmem:[%s21916_s4 + $0x2710] ss:$8 sps:$4 sm:$0xff]  }
 0x1d5   : > { %13663 = vmatpush1.bf16.msra.mxu1 %v19172_v40  ;;  %v19250_v40 = vld [vmem:[%s21916_s4 + $0x700] ss:$8 sps:$4 sm:$0xff]  }
 0x1d6   : > { %14975 = vmatpush1.bf16.msra.mxu0 %v19175_v42  ;;  %13664 = vmatprep.subr.bf16.mxu1 %v19180_v45  ;;  %v19253_v42 = vld [vmem:[%s21916_s4 + $0x2700] ss:$8 sps:$4 sm:$0xff]   ;;  %v19258_v45 = vld [vmem:[%s21916_s4 + $0x714] ss:$8 sps:$4 sm:$0xff]  }
 0x1d7   : > { %14976 = vmatprep.subr.bf16.mxu0 %v19183_v15  ;;  %v19261_v15 = vld [vmem:[%s21916_s4 + $0x2714] ss:$8 sps:$4 sm:$0xff]  }
 0x1d9   : > { %13665 = vmatpush1.bf16.msra.mxu1 %v19178_v46  ;;  %v1009_v46 = vpack.c.bf16 %v389_v35, %v389_v35  ;;  %v19336_v35 = vld [vmem:[%s21916_s4 + $0x7e4] ss:$8 sps:$4 sm:$0xff]  }
 0x1da   : > { %14977 = vmatpush1.bf16.msra.mxu0 %v19181_v47  ;;  %13666 = vmatprep.subr.bf16.mxu1 %v19186_v48  ;;  %v1073_v47 = vpack.c.bf16 %v661_v37, %v661_v37  ;;  %v19264_v48 = vld [vmem:[%s21916_s4 + $0x724] ss:$8 sps:$4 sm:$0xff]  }
 0x1db   : > { %14978 = vmatprep.subr.bf16.mxu0 %v19189_v49  ;;  %v19267_v49 = vld [vmem:[%s21916_s4 + $0x2724] ss:$8 sps:$4 sm:$0xff]  }
 0x1dc   : > { %v19339_v37 = vld [vmem:[%s21916_s4 + $0x27e4] ss:$8 sps:$4 sm:$0xff]  }
 0x1dd   : > { %13667 = vmatpush1.bf16.msra.mxu1 %v19184_v53  ;;  %v19262_v53 = vld [vmem:[%s21916_s4 + $0x720] ss:$8 sps:$4 sm:$0xff]  }
 0x1de   : > { %14979 = vmatpush1.bf16.msra.mxu0 %v19187_v54  ;;  %13668 = vmatprep.subr.bf16.mxu1 %v19192_v55  ;;  %v19265_v54 = vld [vmem:[%s21916_s4 + $0x2720] ss:$8 sps:$4 sm:$0xff]   ;;  %v19270_v55 = vld [vmem:[%s21916_s4 + $0x734] ss:$8 sps:$4 sm:$0xff]  }
 0x1df   : > { %14980 = vmatprep.subr.bf16.mxu0 %v19195_v56  ;;  %v19273_v56 = vld [vmem:[%s21916_s4 + $0x2734] ss:$8 sps:$4 sm:$0xff]  }
 0x1e1   : > { %13669 = vmatpush1.bf16.msra.mxu1 %v19190_v59  ;;  %v19268_v59 = vld [vmem:[%s21916_s4 + $0x730] ss:$8 sps:$4 sm:$0xff]  }
 0x1e2   : > { %14981 = vmatpush1.bf16.msra.mxu0 %v19193_v38  ;;  %13670 = vmatprep.subr.bf16.mxu1 %v19198_v41  ;;  %v19271_v38 = vld [vmem:[%s21916_s4 + $0x2730] ss:$8 sps:$4 sm:$0xff]   ;;  %v19276_v41 = vld [vmem:[%s21916_s4 + $0x744] ss:$8 sps:$4 sm:$0xff]  }
 0x1e3   : > { %14982 = vmatprep.subr.bf16.mxu0 %v19201_v60  ;;  %v19279_v60 = vld [vmem:[%s21916_s4 + $0x2744] ss:$8 sps:$4 sm:$0xff]  }
 0x1e5   : > { %13671 = vmatpush1.bf16.msra.mxu1 %v19196_v61  ;;  %v19274_v61 = vld [vmem:[%s21916_s4 + $0x740] ss:$8 sps:$4 sm:$0xff]  }
 0x1e6   : > { %14983 = vmatpush1.bf16.msra.mxu0 %v19199_v62  ;;  %13672 = vmatprep.subr.bf16.mxu1 %v19204_v63  ;;  %v19277_v62 = vld [vmem:[%s21916_s4 + $0x2740] ss:$8 sps:$4 sm:$0xff]   ;;  %v19282_v63 = vld [vmem:[%s21916_s4 + $0x754] ss:$8 sps:$4 sm:$0xff]  }
 0x1e7   : > { %14984 = vmatprep.subr.bf16.mxu0 %v19207_v0  ;;  %v19285_v0 = vld [vmem:[%s21916_s4 + $0x2754] ss:$8 sps:$4 sm:$0xff]  }
 0x1e9   : > { %13673 = vmatpush1.bf16.msra.mxu1 %v19202_v1  ;;  %v19280_v1 = vld [vmem:[%s21916_s4 + $0x750] ss:$8 sps:$4 sm:$0xff]  }
 0x1ea   : > { %14985 = vmatpush1.bf16.msra.mxu0 %v19205_v2  ;;  %13674 = vmatprep.subr.bf16.mxu1 %v19210_v3  ;;  %v19283_v2 = vld [vmem:[%s21916_s4 + $0x2750] ss:$8 sps:$4 sm:$0xff]   ;;  %v19288_v3 = vld [vmem:[%s21916_s4 + $0x764] ss:$8 sps:$4 sm:$0xff]  }
 0x1eb   : > { %14986 = vmatprep.subr.bf16.mxu0 %v19213_v4  ;;  %v19291_v4 = vld [vmem:[%s21916_s4 + $0x2764] ss:$8 sps:$4 sm:$0xff]  }
 0x1ed   : > { %13675 = vmatpush1.bf16.msra.mxu1 %v19208_v5  ;;  %v19286_v5 = vld [vmem:[%s21916_s4 + $0x760] ss:$8 sps:$4 sm:$0xff]  }
 0x1ee   : > { %14987 = vmatpush1.bf16.msra.mxu0 %v19211_v6  ;;  %13676 = vmatprep.subr.bf16.mxu1 %v19216_v51  ;;  %v19289_v6 = vld [vmem:[%s21916_s4 + $0x2760] ss:$8 sps:$4 sm:$0xff]   ;;  %v19294_v51 = vld [vmem:[%s21916_s4 + $0x774] ss:$8 sps:$4 sm:$0xff]  }
 0x1ef   : > { %14988 = vmatprep.subr.bf16.mxu0 %v19219_v52  ;;  %v19297_v52 = vld [vmem:[%s21916_s4 + $0x2774] ss:$8 sps:$4 sm:$0xff]  }
 0x1f1   : > { %13677 = vmatpush1.bf16.msra.mxu1 %v19214_v7  ;;  %v19292_v7 = vld [vmem:[%s21916_s4 + $0x770] ss:$8 sps:$4 sm:$0xff]  }
 0x1f2   : > { %14989 = vmatpush1.bf16.msra.mxu0 %v19217_v8  ;;  %13678 = vmatprep.subr.bf16.mxu1 %v19222_v9  ;;  %v19295_v8 = vld [vmem:[%s21916_s4 + $0x2770] ss:$8 sps:$4 sm:$0xff]   ;;  %v19300_v9 = vld [vmem:[%s21916_s4 + $0x784] ss:$8 sps:$4 sm:$0xff]  }
 0x1f3   : > { %14990 = vmatprep.subr.bf16.mxu0 %v19225_v10  ;;  %v19303_v10 = vld [vmem:[%s21916_s4 + $0x2784] ss:$8 sps:$4 sm:$0xff]  }
 0x1f5   : > { %13679 = vmatpush1.bf16.msra.mxu1 %v19220_v13  ;;  %v19298_v13 = vld [vmem:[%s21916_s4 + $0x780] ss:$8 sps:$4 sm:$0xff]  }
 0x1f6   : > { %14991 = vmatpush1.bf16.msra.mxu0 %v19223_v14  ;;  %13680 = vmatprep.subr.bf16.mxu1 %v19228_v17  ;;  %v19301_v14 = vld [vmem:[%s21916_s4 + $0x2780] ss:$8 sps:$4 sm:$0xff]   ;;  %v19306_v17 = vld [vmem:[%s21916_s4 + $0x794] ss:$8 sps:$4 sm:$0xff]  }
 0x1f7   : > { %14992 = vmatprep.subr.bf16.mxu0 %v19231_v18  ;;  %v19309_v18 = vld [vmem:[%s21916_s4 + $0x2794] ss:$8 sps:$4 sm:$0xff]  }
 0x1f9   : > { %13681 = vmatpush1.bf16.msra.mxu1 %v19226_v57  ;;  %v19304_v57 = vld [vmem:[%s21916_s4 + $0x790] ss:$8 sps:$4 sm:$0xff]  }
 0x1fa   : > { %14993 = vmatpush1.bf16.msra.mxu0 %v19229_v58  ;;  %13682 = vmatprep.subr.bf16.mxu1 %v19234_v21  ;;  %v19307_v58 = vld [vmem:[%s21916_s4 + $0x2790] ss:$8 sps:$4 sm:$0xff]   ;;  %v19312_v21 = vld [vmem:[%s21916_s4 + $0x7a4] ss:$8 sps:$4 sm:$0xff]  }
 0x1fb   : > { %14994 = vmatprep.subr.bf16.mxu0 %v19237_v22  ;;  %v19315_v22 = vld [vmem:[%s21916_s4 + $0x27a4] ss:$8 sps:$4 sm:$0xff]  }
 0x1fd   : > { %13683 = vmatpush1.bf16.msra.mxu1 %v19232_v23  ;;  %v19310_v23 = vld [vmem:[%s21916_s4 + $0x7a0] ss:$8 sps:$4 sm:$0xff]  }
 0x1fe   : > { %14995 = vmatpush1.bf16.msra.mxu0 %v19235_v24  ;;  %13684 = vmatprep.subr.bf16.mxu1 %v19240_v25  ;;  %v19313_v24 = vld [vmem:[%s21916_s4 + $0x27a0] ss:$8 sps:$4 sm:$0xff]   ;;  %v19318_v25 = vld [vmem:[%s21916_s4 + $0x7b4] ss:$8 sps:$4 sm:$0xff]  }
 0x1ff   : > { %14996 = vmatprep.subr.bf16.mxu0 %v19243_v26  ;;  %v19321_v26 = vld [vmem:[%s21916_s4 + $0x27b4] ss:$8 sps:$4 sm:$0xff]  }
 0x201   : > { %13685 = vmatpush1.bf16.msra.mxu1 %v19238_v29  ;;  %v19324_v29 = vld [vmem:[%s21916_s4 + $0x7c4] ss:$8 sps:$4 sm:$0xff]  }
 0x202   : > { %14997 = vmatpush1.bf16.msra.mxu0 %v19241_v30  ;;  %13686 = vmatprep.subr.bf16.mxu1 %v19246_v31  ;;  %v19327_v30 = vld [vmem:[%s21916_s4 + $0x27c4] ss:$8 sps:$4 sm:$0xff]   ;;  %v19322_v31 = vld [vmem:[%s21916_s4 + $0x7c0] ss:$8 sps:$4 sm:$0xff]  }
 0x203   : > { %14998 = vmatprep.subr.bf16.mxu0 %v19249_v32  ;;  %v19325_v32 = vld [vmem:[%s21916_s4 + $0x27c0] ss:$8 sps:$4 sm:$0xff]  }
 0x205   : > { %13687 = vmatpush1.bf16.msra.mxu1 %v19244_v11  ;;  %v19330_v11 = vld [vmem:[%s21916_s4 + $0x7d4] ss:$8 sps:$4 sm:$0xff]  }
 0x206   : > { %14999 = vmatpush1.bf16.msra.mxu0 %v19247_v12  ;;  %13697 = vmatprep.subr.bf16.mxu1 %v19252_v33  ;;  %v19333_v12 = vld [vmem:[%s21916_s4 + $0x27d4] ss:$8 sps:$4 sm:$0xff]   ;;  %v19328_v33 = vld [vmem:[%s21916_s4 + $0x7d0] ss:$8 sps:$4 sm:$0xff]  }
 0x207   : > { %15009 = vmatprep.subr.bf16.mxu0 %v19255_v34  ;;  %v19331_v34 = vld [vmem:[%s21916_s4 + $0x27d0] ss:$8 sps:$4 sm:$0xff]  }
 0x208   : > { %13689 = vmatmul.mubr.bf16.vlgmr.msra.gmra.mrb[0].mxu1 %v1006_v16  ;;  %v22594_v16 = vld [vmem:[%s21929_s29 + $0x20] sm:$0xff] }
 0x209   : > { %15001 = vmatmul.mubr.bf16.vlgmr.msra.gmra.mrb[0].mxu0 %v1070_v39  ;;  %13698 = vmatpush1.bf16.msra.mxu1 %v19250_v40  ;;  %v22597_v39 = vld [vmem:[%s21929_s29 + $0xa0] sm:$0xff] }
 0x20a   : > { %15010 = vmatpush1.bf16.msra.mxu0 %v19253_v42  ;;  %13699 = vmatprep.subr.bf16.mxu1 %v19258_v45  ;;  %v19334_v40 = vld [vmem:[%s21916_s4 + $0x7e0] ss:$8 sps:$4 sm:$0xff]   ;;  %v19342_v45 = vld [vmem:[%s21916_s4 + $0x7f4] ss:$8 sps:$4 sm:$0xff]  }
 0x20b   : > { %15011 = vmatprep.subr.bf16.mxu0 %v19261_v15  ;;  %13729 = vmatprep.mubr.bf16.mxu1 %v1009_v46  ;;  %v19337_v42 = vld [vmem:[%s21916_s4 + $0x27e0] ss:$8 sps:$4 sm:$0xff]   ;;  %v19345_v15 = vld [vmem:[%s21916_s4 + $0x27f4] ss:$8 sps:$4 sm:$0xff]   ;;  %v22605_v46 = vrot.slane %v22594_v16, %v21989_v50 }
 0x20c   : > { %15041 = vmatprep.mubr.bf16.mxu0 %v1073_v47  ;;  %v22609_v47 = vrot.slane %v22597_v39, %v21989_v50 }
 0x20d   : > { %13700 = vmatpush1.bf16.msra.mxu1 %v19256_v19  ;;  %v19340_v19 = vld [vmem:[%s21916_s4 + $0x7f0] ss:$8 sps:$4 sm:$0xff]  }
 0x20e   : > { %15012 = vmatpush1.bf16.msra.mxu0 %v19259_v20  ;;  %13701 = vmatprep.subr.bf16.mxu1 %v19264_v48  ;;  %v19343_v20 = vld [vmem:[%s21916_s4 + $0x27f0] ss:$8 sps:$4 sm:$0xff]   ;;  %v19349_v48 = vld [vmem:[%s21916_s4 + $0x804] ss:$8 sps:$4 sm:$0xff]  }
 0x20f   : > { %15013 = vmatprep.subr.bf16.mxu0 %v19267_v49  ;;  %v19353_v49 = vld [vmem:[%s21916_s4 + $0x2804] ss:$8 sps:$4 sm:$0xff]  }
 0x211   : > { %13702 = vmatpush1.bf16.msra.mxu1 %v19262_v53  ;;  %v405_v53 = vcombine.high %v22605_v46, %v22605_v46 }
 0x212   : > { %15014 = vmatpush1.bf16.msra.mxu0 %v19265_v54  ;;  %13703 = vmatprep.subr.bf16.mxu1 %v19270_v55  ;;  %v677_v54 = vcombine.high %v22609_v47, %v22609_v47  ;;  %v1008_v55 = vpack.c.bf16 %v22520_v43, %v22520_v43  ;;  %v19354_v43 = vld [vmem:[%s21916_s4 + $0x810] ss:$8 sps:$4 sm:$0xff]  }
 0x213   : > { %15015 = vmatprep.subr.bf16.mxu0 %v19273_v56  ;;  %v1072_v56 = vpack.c.bf16 %v22523_v36, %v22523_v36  ;;  %v19357_v36 = vld [vmem:[%s21916_s4 + $0x2810] ss:$8 sps:$4 sm:$0xff]  }
 0x215   : > { %13704 = vmatpush1.bf16.msra.mxu1 %v19268_v59  ;;  %v19347_v59 = vld [vmem:[%s21916_s4 + $0x800] ss:$8 sps:$4 sm:$0xff]  }
 0x216   : > { %15016 = vmatpush1.bf16.msra.mxu0 %v19271_v38  ;;  %13705 = vmatprep.subr.bf16.mxu1 %v19276_v41  ;;  %v19351_v38 = vld [vmem:[%s21916_s4 + $0x2800] ss:$8 sps:$4 sm:$0xff]   ;;  %v19356_v41 = vld [vmem:[%s21916_s4 + $0x814] ss:$8 sps:$4 sm:$0xff]  }
 0x217   : > { %15017 = vmatprep.subr.bf16.mxu0 %v19279_v60  ;;  %v19359_v60 = vld [vmem:[%s21916_s4 + $0x2814] ss:$8 sps:$4 sm:$0xff]  }
 0x219   : > { %13706 = vmatpush1.bf16.msra.mxu1 %v19274_v61  ;;  %v1011_v61 = vpack.c.bf16 %v405_v53, %v405_v53  ;;  %v19426_v53 = vld [vmem:[%s21916_s4 + $0x8d0] ss:$8 sps:$4 sm:$0xff]  }
 0x21a   : > { %15018 = vmatpush1.bf16.msra.mxu0 %v19277_v62  ;;  %13707 = vmatprep.subr.bf16.mxu1 %v19282_v63  ;;  %v1075_v62 = vpack.c.bf16 %v677_v54, %v677_v54  ;;  %v19362_v63 = vld [vmem:[%s21916_s4 + $0x824] ss:$8 sps:$4 sm:$0xff]   ;;  %v19429_v54 = vld [vmem:[%s21916_s4 + $0x28d0] ss:$8 sps:$4 sm:$0xff]  }
 0x21b   : > { %15019 = vmatprep.subr.bf16.mxu0 %v19285_v0  ;;  %v19365_v0 = vld [vmem:[%s21916_s4 + $0x2824] ss:$8 sps:$4 sm:$0xff]  }
 0x21d   : > { %13708 = vmatpush1.bf16.msra.mxu1 %v19280_v1  ;;  %v19360_v1 = vld [vmem:[%s21916_s4 + $0x820] ss:$8 sps:$4 sm:$0xff]  }
 0x21e   : > { %15020 = vmatpush1.bf16.msra.mxu0 %v19283_v2  ;;  %13709 = vmatprep.subr.bf16.mxu1 %v19288_v3  ;;  %v19363_v2 = vld [vmem:[%s21916_s4 + $0x2820] ss:$8 sps:$4 sm:$0xff]   ;;  %v19368_v3 = vld [vmem:[%s21916_s4 + $0x834] ss:$8 sps:$4 sm:$0xff]  }
 0x21f   : > { %15021 = vmatprep.subr.bf16.mxu0 %v19291_v4  ;;  %v19371_v4 = vld [vmem:[%s21916_s4 + $0x2834] ss:$8 sps:$4 sm:$0xff]  }
 0x221   : > { %13710 = vmatpush1.bf16.msra.mxu1 %v19286_v5  ;;  %v19366_v5 = vld [vmem:[%s21916_s4 + $0x830] ss:$8 sps:$4 sm:$0xff]  }
 0x222   : > { %15022 = vmatpush1.bf16.msra.mxu0 %v19289_v6  ;;  %13711 = vmatprep.subr.bf16.mxu1 %v19294_v51  ;;  %v19369_v6 = vld [vmem:[%s21916_s4 + $0x2830] ss:$8 sps:$4 sm:$0xff]   ;;  %v19374_v51 = vld [vmem:[%s21916_s4 + $0x844] ss:$8 sps:$4 sm:$0xff]  }
 0x223   : > { %15023 = vmatprep.subr.bf16.mxu0 %v19297_v52  ;;  %v19377_v52 = vld [vmem:[%s21916_s4 + $0x2844] ss:$8 sps:$4 sm:$0xff]  }
 0x225   : > { %13712 = vmatpush1.bf16.msra.mxu1 %v19292_v7  ;;  %v19372_v7 = vld [vmem:[%s21916_s4 + $0x840] ss:$8 sps:$4 sm:$0xff]  }
 0x226   : > { %15024 = vmatpush1.bf16.msra.mxu0 %v19295_v8  ;;  %13713 = vmatprep.subr.bf16.mxu1 %v19300_v9  ;;  %v19375_v8 = vld [vmem:[%s21916_s4 + $0x2840] ss:$8 sps:$4 sm:$0xff]   ;;  %v19380_v9 = vld [vmem:[%s21916_s4 + $0x854] ss:$8 sps:$4 sm:$0xff]  }
 0x227   : > { %15025 = vmatprep.subr.bf16.mxu0 %v19303_v10  ;;  %v19383_v10 = vld [vmem:[%s21916_s4 + $0x2854] ss:$8 sps:$4 sm:$0xff]  }
 0x229   : > { %13714 = vmatpush1.bf16.msra.mxu1 %v19298_v13  ;;  %v19378_v13 = vld [vmem:[%s21916_s4 + $0x850] ss:$8 sps:$4 sm:$0xff]  }
 0x22a   : > { %15026 = vmatpush1.bf16.msra.mxu0 %v19301_v14  ;;  %13715 = vmatprep.subr.bf16.mxu1 %v19306_v17  ;;  %v19381_v14 = vld [vmem:[%s21916_s4 + $0x2850] ss:$8 sps:$4 sm:$0xff]   ;;  %v19386_v17 = vld [vmem:[%s21916_s4 + $0x864] ss:$8 sps:$4 sm:$0xff]  }
 0x22b   : > { %15027 = vmatprep.subr.bf16.mxu0 %v19309_v18  ;;  %v19389_v18 = vld [vmem:[%s21916_s4 + $0x2864] ss:$8 sps:$4 sm:$0xff]  }
 0x22d   : > { %13716 = vmatpush1.bf16.msra.mxu1 %v19304_v57  ;;  %v19384_v57 = vld [vmem:[%s21916_s4 + $0x860] ss:$8 sps:$4 sm:$0xff]  }
 0x22e   : > { %15028 = vmatpush1.bf16.msra.mxu0 %v19307_v58  ;;  %13717 = vmatprep.subr.bf16.mxu1 %v19312_v21  ;;  %v19387_v58 = vld [vmem:[%s21916_s4 + $0x2860] ss:$8 sps:$4 sm:$0xff]   ;;  %v19392_v21 = vld [vmem:[%s21916_s4 + $0x874] ss:$8 sps:$4 sm:$0xff]  }
 0x22f   : > { %15029 = vmatprep.subr.bf16.mxu0 %v19315_v22  ;;  %v19395_v22 = vld [vmem:[%s21916_s4 + $0x2874] ss:$8 sps:$4 sm:$0xff]  }
 0x231   : > { %13718 = vmatpush1.bf16.msra.mxu1 %v19310_v23  ;;  %v19390_v23 = vld [vmem:[%s21916_s4 + $0x870] ss:$8 sps:$4 sm:$0xff]  }
 0x232   : > { %15030 = vmatpush1.bf16.msra.mxu0 %v19313_v24  ;;  %13719 = vmatprep.subr.bf16.mxu1 %v19318_v25  ;;  %v19393_v24 = vld [vmem:[%s21916_s4 + $0x2870] ss:$8 sps:$4 sm:$0xff]   ;;  %v19398_v25 = vld [vmem:[%s21916_s4 + $0x884] ss:$8 sps:$4 sm:$0xff]  }
 0x233   : > { %15031 = vmatprep.subr.bf16.mxu0 %v19321_v26  ;;  %v19401_v26 = vld [vmem:[%s21916_s4 + $0x2884] ss:$8 sps:$4 sm:$0xff]  }
 0x235   : > { %13720 = vmatpush1.bf16.msra.mxu1 %v19316_v27  ;;  %v19396_v27 = vld [vmem:[%s21916_s4 + $0x880] ss:$8 sps:$4 sm:$0xff]  }
 0x236   : > { %15032 = vmatpush1.bf16.msra.mxu0 %v19319_v28  ;;  %13721 = vmatprep.subr.bf16.mxu1 %v19324_v29  ;;  %v19399_v28 = vld [vmem:[%s21916_s4 + $0x2880] ss:$8 sps:$4 sm:$0xff]   ;;  %v19404_v29 = vld [vmem:[%s21916_s4 + $0x894] ss:$8 sps:$4 sm:$0xff]  }
 0x237   : > { %15033 = vmatprep.subr.bf16.mxu0 %v19327_v30  ;;  %v19407_v30 = vld [vmem:[%s21916_s4 + $0x2894] ss:$8 sps:$4 sm:$0xff]  }
 0x239   : > { %13722 = vmatpush1.bf16.msra.mxu1 %v19322_v31  ;;  %v19402_v31 = vld [vmem:[%s21916_s4 + $0x890] ss:$8 sps:$4 sm:$0xff]  }
 0x23a   : > { %15034 = vmatpush1.bf16.msra.mxu0 %v19325_v32  ;;  %13723 = vmatprep.subr.bf16.mxu1 %v19330_v11  ;;  %v19405_v32 = vld [vmem:[%s21916_s4 + $0x2890] ss:$8 sps:$4 sm:$0xff]   ;;  %v19410_v11 = vld [vmem:[%s21916_s4 + $0x8a4] ss:$8 sps:$4 sm:$0xff]  }
 0x23b   : > { %15035 = vmatprep.subr.bf16.mxu0 %v19333_v12  ;;  %v19413_v12 = vld [vmem:[%s21916_s4 + $0x28a4] ss:$8 sps:$4 sm:$0xff]  }
 0x23d   : > { %13724 = vmatpush1.bf16.msra.mxu1 %v19328_v33  ;;  %v19408_v33 = vld [vmem:[%s21916_s4 + $0x8a0] ss:$8 sps:$4 sm:$0xff]  }
 0x23e   : > { %15036 = vmatpush1.bf16.msra.mxu0 %v19331_v34  ;;  %13725 = vmatprep.subr.bf16.mxu1 %v19336_v35  ;;  %v19411_v34 = vld [vmem:[%s21916_s4 + $0x28a0] ss:$8 sps:$4 sm:$0xff]   ;;  %v19416_v35 = vld [vmem:[%s21916_s4 + $0x8b4] ss:$8 sps:$4 sm:$0xff]  }
 0x23f   : > { %15037 = vmatprep.subr.bf16.mxu0 %v19339_v37  ;;  %v19419_v37 = vld [vmem:[%s21916_s4 + $0x28b4] ss:$8 sps:$4 sm:$0xff]  }
 0x241   : > { %13726 = vmatpush1.bf16.msra.mxu1 %v19334_v40  ;;  %v19414_v40 = vld [vmem:[%s21916_s4 + $0x8b0] ss:$8 sps:$4 sm:$0xff]  }
 0x242   : > { %15038 = vmatpush1.bf16.msra.mxu0 %v19337_v42  ;;  %13727 = vmatprep.subr.bf16.mxu1 %v19342_v45  ;;  %v19417_v42 = vld [vmem:[%s21916_s4 + $0x28b0] ss:$8 sps:$4 sm:$0xff]   ;;  %v19422_v45 = vld [vmem:[%s21916_s4 + $0x8c4] ss:$8 sps:$4 sm:$0xff]  }
 0x243   : > { %15039 = vmatprep.subr.bf16.mxu0 %v19345_v15  ;;  %v19425_v15 = vld [vmem:[%s21916_s4 + $0x28c4] ss:$8 sps:$4 sm:$0xff]  }
 0x245   : > { %13728 = vmatpush1.bf16.msra.mxu1 %v19340_v19  ;;  %v19420_v19 = vld [vmem:[%s21916_s4 + $0x8c0] ss:$8 sps:$4 sm:$0xff]  }
 0x246   : > { %15040 = vmatpush1.bf16.msra.mxu0 %v19343_v20  ;;  %13738 = vmatprep.subr.bf16.mxu1 %v19349_v48  ;;  %v19423_v20 = vld [vmem:[%s21916_s4 + $0x28c0] ss:$8 sps:$4 sm:$0xff]   ;;  %v19428_v48 = vld [vmem:[%s21916_s4 + $0x8d4] ss:$8 sps:$4 sm:$0xff]  }
 0x247   : > { %15050 = vmatprep.subr.bf16.mxu0 %v19353_v49  ;;  %v19431_v49 = vld [vmem:[%s21916_s4 + $0x28d4] ss:$8 sps:$4 sm:$0xff]  }
 0x248   : > { %13730 = vmatmul.mubr.bf16.vlgmr.msra.gmra.mrb[0].mxu1 %v1008_v55  ;;  %v19434_v55 = vld [vmem:[%s21916_s4 + $0x8e4] ss:$8 sps:$4 sm:$0xff]  }
 0x249   : > { %15042 = vmatmul.mubr.bf16.vlgmr.msra.gmra.mrb[0].mxu0 %v1072_v56  ;;  %13739 = vmatpush1.bf16.msra.mxu1 %v19347_v59  ;;  %v19437_v56 = vld [vmem:[%s21916_s4 + $0x28e4] ss:$8 sps:$4 sm:$0xff]   ;;  %v390_v59 = vcombine.high %v22594_v16, %v22594_v16  ;;  %v19438_v16 = vld [vmem:[%s21916_s4 + $0x8f0] ss:$8 sps:$4 sm:$0xff]  }
 0x24a   : > { %15051 = vmatpush1.bf16.msra.mxu0 %v19351_v38  ;;  %13740 = vmatprep.subr.bf16.mxu1 %v19356_v41  ;;  %v662_v38 = vcombine.high %v22597_v39, %v22597_v39  ;;  %v19432_v41 = vld [vmem:[%s21916_s4 + $0x8e0] ss:$8 sps:$4 sm:$0xff]   ;;  %v19441_v39 = vld [vmem:[%s21916_s4 + $0x28f0] ss:$8 sps:$4 sm:$0xff]  }
 0x24b   : > { %15052 = vmatprep.subr.bf16.mxu0 %v19359_v60  ;;  %13770 = vmatprep.mubr.bf16.mxu1 %v1011_v61  ;;  %v19435_v60 = vld [vmem:[%s21916_s4 + $0x28e0] ss:$8 sps:$4 sm:$0xff]   ;;  %v19440_v61 = vld [vmem:[%s21916_s4 + $0x8f4] ss:$8 sps:$4 sm:$0xff]  }
 0x24c   : > { %15082 = vmatprep.mubr.bf16.mxu0 %v1075_v62  ;;  %v19443_v62 = vld [vmem:[%s21916_s4 + $0x28f4] ss:$8 sps:$4 sm:$0xff]  }
 0x24d   : > { %13741 = vmatpush1.bf16.msra.mxu1 %v19354_v43  ;;  %v22688_v43 = vrot.slane %v390_v59, %v21989_v50  ;;  %v19510_v59 = vld [vmem:[%s21916_s4 + $0x9b0] ss:$8 sps:$4 sm:$0xff]  }
 0x24e   : > { %15053 = vmatpush1.bf16.msra.mxu0 %v19357_v36  ;;  %13742 = vmatprep.subr.bf16.mxu1 %v19362_v63  ;;  %v22691_v36 = vrot.slane %v662_v38, %v21989_v50  ;;  %v19446_v63 = vld [vmem:[%s21916_s4 + $0x904] ss:$8 sps:$4 sm:$0xff]   ;;  %v19513_v38 = vld [vmem:[%s21916_s4 + $0x29b0] ss:$8 sps:$4 sm:$0xff]  }
 0x24f   : > { %15054 = vmatprep.subr.bf16.mxu0 %v19365_v0  ;;  %v19449_v0 = vld [vmem:[%s21916_s4 + $0x2904] ss:$8 sps:$4 sm:$0xff]  }
 0x251   : > { %13743 = vmatpush1.bf16.msra.mxu1 %v19360_v1  ;;  %v406_v1 = vcombine.high %v22688_v43, %v22688_v43 }
 0x252   : > { %15055 = vmatpush1.bf16.msra.mxu0 %v19363_v2  ;;  %13744 = vmatprep.subr.bf16.mxu1 %v19368_v3  ;;  %v678_v2 = vcombine.high %v22691_v36, %v22691_v36  ;;  %v1010_v3 = vpack.c.bf16 %v22605_v46, %v22605_v46  ;;  %v19450_v46 = vld [vmem:[%s21916_s4 + $0x910] ss:$8 sps:$4 sm:$0xff]  }
 0x253   : > { %15056 = vmatprep.subr.bf16.mxu0 %v19371_v4  ;;  %v1074_v4 = vpack.c.bf16 %v22609_v47, %v22609_v47  ;;  %v19453_v47 = vld [vmem:[%s21916_s4 + $0x2910] ss:$8 sps:$4 sm:$0xff]  }
 0x255   : > { %13745 = vmatpush1.bf16.msra.mxu1 %v19366_v5  ;;  %v19444_v5 = vld [vmem:[%s21916_s4 + $0x900] ss:$8 sps:$4 sm:$0xff]  }
 0x256   : > { %15057 = vmatpush1.bf16.msra.mxu0 %v19369_v6  ;;  %13746 = vmatprep.subr.bf16.mxu1 %v19374_v51  ;;  %v19447_v6 = vld [vmem:[%s21916_s4 + $0x2900] ss:$8 sps:$4 sm:$0xff]   ;;  %v19452_v51 = vld [vmem:[%s21916_s4 + $0x914] ss:$8 sps:$4 sm:$0xff]  }
 0x257   : > { %15058 = vmatprep.subr.bf16.mxu0 %v19377_v52  ;;  %v19455_v52 = vld [vmem:[%s21916_s4 + $0x2914] ss:$8 sps:$4 sm:$0xff]  }
 0x259   : > { %13747 = vmatpush1.bf16.msra.mxu1 %v19372_v7  ;;  %v1013_v7 = vpack.c.bf16 %v406_v1, %v406_v1  ;;  %v19530_v1 = vld [vmem:[%s21916_s4 + $0x9e4] ss:$8 sps:$4 sm:$0xff]  }
 0x25a   : > { %15059 = vmatpush1.bf16.msra.mxu0 %v19375_v8  ;;  %13748 = vmatprep.subr.bf16.mxu1 %v19380_v9  ;;  %v1077_v8 = vpack.c.bf16 %v678_v2, %v678_v2  ;;  %v19458_v9 = vld [vmem:[%s21916_s4 + $0x924] ss:$8 sps:$4 sm:$0xff]  }
 0x25b   : > { %15060 = vmatprep.subr.bf16.mxu0 %v19383_v10  ;;  %v19461_v10 = vld [vmem:[%s21916_s4 + $0x2924] ss:$8 sps:$4 sm:$0xff]  }
 0x25c   : > { %v19533_v2 = vld [vmem:[%s21916_s4 + $0x29e4] ss:$8 sps:$4 sm:$0xff]  }
 0x25d   : > { %13749 = vmatpush1.bf16.msra.mxu1 %v19378_v13  ;;  %v19456_v13 = vld [vmem:[%s21916_s4 + $0x920] ss:$8 sps:$4 sm:$0xff]  }
 0x25e   : > { %15061 = vmatpush1.bf16.msra.mxu0 %v19381_v14  ;;  %13750 = vmatprep.subr.bf16.mxu1 %v19386_v17  ;;  %v19459_v14 = vld [vmem:[%s21916_s4 + $0x2920] ss:$8 sps:$4 sm:$0xff]   ;;  %v19464_v17 = vld [vmem:[%s21916_s4 + $0x934] ss:$8 sps:$4 sm:$0xff]  }
 0x25f   : > { %15062 = vmatprep.subr.bf16.mxu0 %v19389_v18  ;;  %v19467_v18 = vld [vmem:[%s21916_s4 + $0x2934] ss:$8 sps:$4 sm:$0xff]  }
 0x261   : > { %13751 = vmatpush1.bf16.msra.mxu1 %v19384_v57  ;;  %v19462_v57 = vld [vmem:[%s21916_s4 + $0x930] ss:$8 sps:$4 sm:$0xff]  }
 0x262   : > { %15063 = vmatpush1.bf16.msra.mxu0 %v19387_v58  ;;  %13752 = vmatprep.subr.bf16.mxu1 %v19392_v21  ;;  %v19465_v58 = vld [vmem:[%s21916_s4 + $0x2930] ss:$8 sps:$4 sm:$0xff]   ;;  %v19470_v21 = vld [vmem:[%s21916_s4 + $0x944] ss:$8 sps:$4 sm:$0xff]  }
 0x263   : > { %15064 = vmatprep.subr.bf16.mxu0 %v19395_v22  ;;  %v19473_v22 = vld [vmem:[%s21916_s4 + $0x2944] ss:$8 sps:$4 sm:$0xff]  }
 0x265   : > { %13753 = vmatpush1.bf16.msra.mxu1 %v19390_v23  ;;  %v19468_v23 = vld [vmem:[%s21916_s4 + $0x940] ss:$8 sps:$4 sm:$0xff]  }
 0x266   : > { %15065 = vmatpush1.bf16.msra.mxu0 %v19393_v24  ;;  %13754 = vmatprep.subr.bf16.mxu1 %v19398_v25  ;;  %v19471_v24 = vld [vmem:[%s21916_s4 + $0x2940] ss:$8 sps:$4 sm:$0xff]   ;;  %v19476_v25 = vld [vmem:[%s21916_s4 + $0x954] ss:$8 sps:$4 sm:$0xff]  }
 0x267   : > { %15066 = vmatprep.subr.bf16.mxu0 %v19401_v26  ;;  %v19479_v26 = vld [vmem:[%s21916_s4 + $0x2954] ss:$8 sps:$4 sm:$0xff]  }
 0x269   : > { %13755 = vmatpush1.bf16.msra.mxu1 %v19396_v27  ;;  %v19474_v27 = vld [vmem:[%s21916_s4 + $0x950] ss:$8 sps:$4 sm:$0xff]  }
 0x26a   : > { %15067 = vmatpush1.bf16.msra.mxu0 %v19399_v28  ;;  %13756 = vmatprep.subr.bf16.mxu1 %v19404_v29  ;;  %v19477_v28 = vld [vmem:[%s21916_s4 + $0x2950] ss:$8 sps:$4 sm:$0xff]   ;;  %v19482_v29 = vld [vmem:[%s21916_s4 + $0x964] ss:$8 sps:$4 sm:$0xff]  }
 0x26b   : > { %15068 = vmatprep.subr.bf16.mxu0 %v19407_v30  ;;  %v19485_v30 = vld [vmem:[%s21916_s4 + $0x2964] ss:$8 sps:$4 sm:$0xff]  }
 0x26d   : > { %13757 = vmatpush1.bf16.msra.mxu1 %v19402_v31  ;;  %v19480_v31 = vld [vmem:[%s21916_s4 + $0x960] ss:$8 sps:$4 sm:$0xff]  }
 0x26e   : > { %15069 = vmatpush1.bf16.msra.mxu0 %v19405_v32  ;;  %13758 = vmatprep.subr.bf16.mxu1 %v19410_v11  ;;  %v19483_v32 = vld [vmem:[%s21916_s4 + $0x2960] ss:$8 sps:$4 sm:$0xff]   ;;  %v19488_v11 = vld [vmem:[%s21916_s4 + $0x974] ss:$8 sps:$4 sm:$0xff]  }
 0x26f   : > { %15070 = vmatprep.subr.bf16.mxu0 %v19413_v12  ;;  %v19491_v12 = vld [vmem:[%s21916_s4 + $0x2974] ss:$8 sps:$4 sm:$0xff]  }
 0x271   : > { %13759 = vmatpush1.bf16.msra.mxu1 %v19408_v33  ;;  %v19486_v33 = vld [vmem:[%s21916_s4 + $0x970] ss:$8 sps:$4 sm:$0xff]  }
 0x272   : > { %15071 = vmatpush1.bf16.msra.mxu0 %v19411_v34  ;;  %13760 = vmatprep.subr.bf16.mxu1 %v19416_v35  ;;  %v19489_v34 = vld [vmem:[%s21916_s4 + $0x2970] ss:$8 sps:$4 sm:$0xff]   ;;  %v19494_v35 = vld [vmem:[%s21916_s4 + $0x984] ss:$8 sps:$4 sm:$0xff]  }
 0x273   : > { %15072 = vmatprep.subr.bf16.mxu0 %v19419_v37  ;;  %v19497_v37 = vld [vmem:[%s21916_s4 + $0x2984] ss:$8 sps:$4 sm:$0xff]  }
 0x275   : > { %13761 = vmatpush1.bf16.msra.mxu1 %v19414_v40  ;;  %v19492_v40 = vld [vmem:[%s21916_s4 + $0x980] ss:$8 sps:$4 sm:$0xff]  }
 0x276   : > { %15073 = vmatpush1.bf16.msra.mxu0 %v19417_v42  ;;  %13762 = vmatprep.subr.bf16.mxu1 %v19422_v45  ;;  %v19495_v42 = vld [vmem:[%s21916_s4 + $0x2980] ss:$8 sps:$4 sm:$0xff]   ;;  %v19500_v45 = vld [vmem:[%s21916_s4 + $0x994] ss:$8 sps:$4 sm:$0xff]  }
 0x277   : > { %15074 = vmatprep.subr.bf16.mxu0 %v19425_v15  ;;  %v19503_v15 = vld [vmem:[%s21916_s4 + $0x2994] ss:$8 sps:$4 sm:$0xff]  }
 0x279   : > { %13763 = vmatpush1.bf16.msra.mxu1 %v19420_v19  ;;  %v19498_v19 = vld [vmem:[%s21916_s4 + $0x990] ss:$8 sps:$4 sm:$0xff]  }
 0x27a   : > { %15075 = vmatpush1.bf16.msra.mxu0 %v19423_v20  ;;  %13764 = vmatprep.subr.bf16.mxu1 %v19428_v48  ;;  %v19501_v20 = vld [vmem:[%s21916_s4 + $0x2990] ss:$8 sps:$4 sm:$0xff]   ;;  %v19506_v48 = vld [vmem:[%s21916_s4 + $0x9a4] ss:$8 sps:$4 sm:$0xff]  }
 0x27b   : > { %15076 = vmatprep.subr.bf16.mxu0 %v19431_v49  ;;  %v19509_v49 = vld [vmem:[%s21916_s4 + $0x29a4] ss:$8 sps:$4 sm:$0xff]  }
 0x27d   : > { %13765 = vmatpush1.bf16.msra.mxu1 %v19426_v53  ;;  %v19504_v53 = vld [vmem:[%s21916_s4 + $0x9a0] ss:$8 sps:$4 sm:$0xff]  }
 0x27e   : > { %15077 = vmatpush1.bf16.msra.mxu0 %v19429_v54  ;;  %13766 = vmatprep.subr.bf16.mxu1 %v19434_v55  ;;  %v19507_v54 = vld [vmem:[%s21916_s4 + $0x29a0] ss:$8 sps:$4 sm:$0xff]   ;;  %v19512_v55 = vld [vmem:[%s21916_s4 + $0x9b4] ss:$8 sps:$4 sm:$0xff]  }
 0x27f   : > { %15078 = vmatprep.subr.bf16.mxu0 %v19437_v56  ;;  %v19515_v56 = vld [vmem:[%s21916_s4 + $0x29b4] ss:$8 sps:$4 sm:$0xff]  }
 0x281   : > { %13767 = vmatpush1.bf16.msra.mxu1 %v19432_v41  ;;  %v19518_v41 = vld [vmem:[%s21916_s4 + $0x9c4] ss:$8 sps:$4 sm:$0xff]  }
 0x282   : > { %15079 = vmatpush1.bf16.msra.mxu0 %v19435_v60  ;;  %13768 = vmatprep.subr.bf16.mxu1 %v19440_v61  ;;  %v19521_v60 = vld [vmem:[%s21916_s4 + $0x29c4] ss:$8 sps:$4 sm:$0xff]   ;;  %v19516_v61 = vld [vmem:[%s21916_s4 + $0x9c0] ss:$8 sps:$4 sm:$0xff]  }
 0x283   : > { %15080 = vmatprep.subr.bf16.mxu0 %v19443_v62  ;;  %v19519_v62 = vld [vmem:[%s21916_s4 + $0x29c0] ss:$8 sps:$4 sm:$0xff]  }
 0x285   : > { %13769 = vmatpush1.bf16.msra.mxu1 %v19438_v16  ;;  %v19524_v16 = vld [vmem:[%s21916_s4 + $0x9d4] ss:$8 sps:$4 sm:$0xff]  }
 0x286   : > { %15081 = vmatpush1.bf16.msra.mxu0 %v19441_v39  ;;  %13779 = vmatprep.subr.bf16.mxu1 %v19446_v63  ;;  %v19527_v39 = vld [vmem:[%s21916_s4 + $0x29d4] ss:$8 sps:$4 sm:$0xff]   ;;  %v19522_v63 = vld [vmem:[%s21916_s4 + $0x9d0] ss:$8 sps:$4 sm:$0xff]  }
 0x287   : > { %15091 = vmatprep.subr.bf16.mxu0 %v19449_v0  ;;  %v19525_v0 = vld [vmem:[%s21916_s4 + $0x29d0] ss:$8 sps:$4 sm:$0xff]  }
 0x288   : > { %13771 = vmatmul.mubr.bf16.vlgmr.msra.gmra.mrb[0].mxu1 %v1010_v3  ;;  %v22762_v3 = vld [vmem:[%s21929_s29 + $0x28] sm:$0xff] }
 0x289   : > { %15083 = vmatmul.mubr.bf16.vlgmr.msra.gmra.mrb[0].mxu0 %v1074_v4  ;;  %13780 = vmatpush1.bf16.msra.mxu1 %v19444_v5  ;;  %v22765_v4 = vld [vmem:[%s21929_s29 + $0xa8] sm:$0xff] }
 0x28a   : > { %15092 = vmatpush1.bf16.msra.mxu0 %v19447_v6  ;;  %13781 = vmatprep.subr.bf16.mxu1 %v19452_v51  ;;  %v19528_v5 = vld [vmem:[%s21916_s4 + $0x9e0] ss:$8 sps:$4 sm:$0xff]   ;;  %v19536_v51 = vld [vmem:[%s21916_s4 + $0x9f4] ss:$8 sps:$4 sm:$0xff]  }
 0x28b   : > { %15093 = vmatprep.subr.bf16.mxu0 %v19455_v52  ;;  %13811 = vmatprep.mubr.bf16.mxu1 %v1013_v7  ;;  %v19531_v6 = vld [vmem:[%s21916_s4 + $0x29e0] ss:$8 sps:$4 sm:$0xff]   ;;  %v19539_v52 = vld [vmem:[%s21916_s4 + $0x29f4] ss:$8 sps:$4 sm:$0xff]   ;;  %v22773_v7 = vrot.slane %v22762_v3, %v21989_v50 }
 0x28c   : > { %15123 = vmatprep.mubr.bf16.mxu0 %v1077_v8  ;;  %v22777_v8 = vrot.slane %v22765_v4, %v21989_v50 }
 0x28d   : > { %13782 = vmatpush1.bf16.msra.mxu1 %v19450_v46  ;;  %v19534_v46 = vld [vmem:[%s21916_s4 + $0x9f0] ss:$8 sps:$4 sm:$0xff]  }
 0x28e   : > { %15094 = vmatpush1.bf16.msra.mxu0 %v19453_v47  ;;  %13783 = vmatprep.subr.bf16.mxu1 %v19458_v9  ;;  %v19537_v47 = vld [vmem:[%s21916_s4 + $0x29f0] ss:$8 sps:$4 sm:$0xff]   ;;  %v19543_v9 = vld [vmem:[%s21916_s4 + $0xa04] ss:$8 sps:$4 sm:$0xff]  }
 0x28f   : > { %15095 = vmatprep.subr.bf16.mxu0 %v19461_v10  ;;  %v19547_v10 = vld [vmem:[%s21916_s4 + $0x2a04] ss:$8 sps:$4 sm:$0xff]  }
 0x291   : > { %13784 = vmatpush1.bf16.msra.mxu1 %v19456_v13  ;;  %v422_v13 = vcombine.high %v22773_v7, %v22773_v7 }
 0x292   : > { %15096 = vmatpush1.bf16.msra.mxu0 %v19459_v14  ;;  %13785 = vmatprep.subr.bf16.mxu1 %v19464_v17  ;;  %v694_v14 = vcombine.high %v22777_v8, %v22777_v8  ;;  %v1012_v17 = vpack.c.bf16 %v22688_v43, %v22688_v43  ;;  %v19548_v43 = vld [vmem:[%s21916_s4 + $0xa10] ss:$8 sps:$4 sm:$0xff]  }
 0x293   : > { %15097 = vmatprep.subr.bf16.mxu0 %v19467_v18  ;;  %v1076_v18 = vpack.c.bf16 %v22691_v36, %v22691_v36  ;;  %v19551_v36 = vld [vmem:[%s21916_s4 + $0x2a10] ss:$8 sps:$4 sm:$0xff]  }
 0x295   : > { %13786 = vmatpush1.bf16.msra.mxu1 %v19462_v57  ;;  %v19541_v57 = vld [vmem:[%s21916_s4 + $0xa00] ss:$8 sps:$4 sm:$0xff]  }
 0x296   : > { %15098 = vmatpush1.bf16.msra.mxu0 %v19465_v58  ;;  %13787 = vmatprep.subr.bf16.mxu1 %v19470_v21  ;;  %v19545_v58 = vld [vmem:[%s21916_s4 + $0x2a00] ss:$8 sps:$4 sm:$0xff]   ;;  %v19550_v21 = vld [vmem:[%s21916_s4 + $0xa14] ss:$8 sps:$4 sm:$0xff]  }
 0x297   : > { %15099 = vmatprep.subr.bf16.mxu0 %v19473_v22  ;;  %v19553_v22 = vld [vmem:[%s21916_s4 + $0x2a14] ss:$8 sps:$4 sm:$0xff]  }
 0x299   : > { %13788 = vmatpush1.bf16.msra.mxu1 %v19468_v23  ;;  %v1015_v23 = vpack.c.bf16 %v422_v13, %v422_v13  ;;  %v19620_v13 = vld [vmem:[%s21916_s4 + $0xad0] ss:$8 sps:$4 sm:$0xff]  }
 0x29a   : > { %15100 = vmatpush1.bf16.msra.mxu0 %v19471_v24  ;;  %13789 = vmatprep.subr.bf16.mxu1 %v19476_v25  ;;  %v1079_v24 = vpack.c.bf16 %v694_v14, %v694_v14  ;;  %v19556_v25 = vld [vmem:[%s21916_s4 + $0xa24] ss:$8 sps:$4 sm:$0xff]   ;;  %v19623_v14 = vld [vmem:[%s21916_s4 + $0x2ad0] ss:$8 sps:$4 sm:$0xff]  }
 0x29b   : > { %15101 = vmatprep.subr.bf16.mxu0 %v19479_v26  ;;  %v19559_v26 = vld [vmem:[%s21916_s4 + $0x2a24] ss:$8 sps:$4 sm:$0xff]  }
 0x29d   : > { %13790 = vmatpush1.bf16.msra.mxu1 %v19474_v27  ;;  %v19554_v27 = vld [vmem:[%s21916_s4 + $0xa20] ss:$8 sps:$4 sm:$0xff]  }
 0x29e   : > { %15102 = vmatpush1.bf16.msra.mxu0 %v19477_v28  ;;  %13791 = vmatprep.subr.bf16.mxu1 %v19482_v29  ;;  %v19557_v28 = vld [vmem:[%s21916_s4 + $0x2a20] ss:$8 sps:$4 sm:$0xff]   ;;  %v19562_v29 = vld [vmem:[%s21916_s4 + $0xa34] ss:$8 sps:$4 sm:$0xff]  }
 0x29f   : > { %15103 = vmatprep.subr.bf16.mxu0 %v19485_v30  ;;  %v19565_v30 = vld [vmem:[%s21916_s4 + $0x2a34] ss:$8 sps:$4 sm:$0xff]  }
 0x2a1   : > { %13792 = vmatpush1.bf16.msra.mxu1 %v19480_v31  ;;  %v19560_v31 = vld [vmem:[%s21916_s4 + $0xa30] ss:$8 sps:$4 sm:$0xff]  }
 0x2a2   : > { %15104 = vmatpush1.bf16.msra.mxu0 %v19483_v32  ;;  %13793 = vmatprep.subr.bf16.mxu1 %v19488_v11  ;;  %v19563_v32 = vld [vmem:[%s21916_s4 + $0x2a30] ss:$8 sps:$4 sm:$0xff]   ;;  %v19568_v11 = vld [vmem:[%s21916_s4 + $0xa44] ss:$8 sps:$4 sm:$0xff]  }
 0x2a3   : > { %15105 = vmatprep.subr.bf16.mxu0 %v19491_v12  ;;  %v19571_v12 = vld [vmem:[%s21916_s4 + $0x2a44] ss:$8 sps:$4 sm:$0xff]  }
 0x2a5   : > { %13794 = vmatpush1.bf16.msra.mxu1 %v19486_v33  ;;  %v19566_v33 = vld [vmem:[%s21916_s4 + $0xa40] ss:$8 sps:$4 sm:$0xff]  }
 0x2a6   : > { %15106 = vmatpush1.bf16.msra.mxu0 %v19489_v34  ;;  %13795 = vmatprep.subr.bf16.mxu1 %v19494_v35  ;;  %v19569_v34 = vld [vmem:[%s21916_s4 + $0x2a40] ss:$8 sps:$4 sm:$0xff]   ;;  %v19574_v35 = vld [vmem:[%s21916_s4 + $0xa54] ss:$8 sps:$4 sm:$0xff]  }
 0x2a7   : > { %15107 = vmatprep.subr.bf16.mxu0 %v19497_v37  ;;  %v19577_v37 = vld [vmem:[%s21916_s4 + $0x2a54] ss:$8 sps:$4 sm:$0xff]  }
 0x2a9   : > { %13796 = vmatpush1.bf16.msra.mxu1 %v19492_v40  ;;  %v19572_v40 = vld [vmem:[%s21916_s4 + $0xa50] ss:$8 sps:$4 sm:$0xff]  }
 0x2aa   : > { %15108 = vmatpush1.bf16.msra.mxu0 %v19495_v42  ;;  %13797 = vmatprep.subr.bf16.mxu1 %v19500_v45  ;;  %v19575_v42 = vld [vmem:[%s21916_s4 + $0x2a50] ss:$8 sps:$4 sm:$0xff]   ;;  %v19580_v45 = vld [vmem:[%s21916_s4 + $0xa64] ss:$8 sps:$4 sm:$0xff]  }
 0x2ab   : > { %15109 = vmatprep.subr.bf16.mxu0 %v19503_v15  ;;  %v19583_v15 = vld [vmem:[%s21916_s4 + $0x2a64] ss:$8 sps:$4 sm:$0xff]  }
 0x2ad   : > { %13798 = vmatpush1.bf16.msra.mxu1 %v19498_v19  ;;  %v19578_v19 = vld [vmem:[%s21916_s4 + $0xa60] ss:$8 sps:$4 sm:$0xff]  }
 0x2ae   : > { %15110 = vmatpush1.bf16.msra.mxu0 %v19501_v20  ;;  %13799 = vmatprep.subr.bf16.mxu1 %v19506_v48  ;;  %v19581_v20 = vld [vmem:[%s21916_s4 + $0x2a60] ss:$8 sps:$4 sm:$0xff]   ;;  %v19586_v48 = vld [vmem:[%s21916_s4 + $0xa74] ss:$8 sps:$4 sm:$0xff]  }
 0x2af   : > { %15111 = vmatprep.subr.bf16.mxu0 %v19509_v49  ;;  %v19589_v49 = vld [vmem:[%s21916_s4 + $0x2a74] ss:$8 sps:$4 sm:$0xff]  }
 0x2b1   : > { %13800 = vmatpush1.bf16.msra.mxu1 %v19504_v53  ;;  %v19584_v53 = vld [vmem:[%s21916_s4 + $0xa70] ss:$8 sps:$4 sm:$0xff]  }
 0x2b2   : > { %15112 = vmatpush1.bf16.msra.mxu0 %v19507_v54  ;;  %13801 = vmatprep.subr.bf16.mxu1 %v19512_v55  ;;  %v19587_v54 = vld [vmem:[%s21916_s4 + $0x2a70] ss:$8 sps:$4 sm:$0xff]   ;;  %v19592_v55 = vld [vmem:[%s21916_s4 + $0xa84] ss:$8 sps:$4 sm:$0xff]  }
 0x2b3   : > { %15113 = vmatprep.subr.bf16.mxu0 %v19515_v56  ;;  %v19595_v56 = vld [vmem:[%s21916_s4 + $0x2a84] ss:$8 sps:$4 sm:$0xff]  }
 0x2b5   : > { %13802 = vmatpush1.bf16.msra.mxu1 %v19510_v59  ;;  %v19590_v59 = vld [vmem:[%s21916_s4 + $0xa80] ss:$8 sps:$4 sm:$0xff]  }
 0x2b6   : > { %15114 = vmatpush1.bf16.msra.mxu0 %v19513_v38  ;;  %13803 = vmatprep.subr.bf16.mxu1 %v19518_v41  ;;  %v19593_v38 = vld [vmem:[%s21916_s4 + $0x2a80] ss:$8 sps:$4 sm:$0xff]   ;;  %v19598_v41 = vld [vmem:[%s21916_s4 + $0xa94] ss:$8 sps:$4 sm:$0xff]  }
 0x2b7   : > { %15115 = vmatprep.subr.bf16.mxu0 %v19521_v60  ;;  %v19601_v60 = vld [vmem:[%s21916_s4 + $0x2a94] ss:$8 sps:$4 sm:$0xff]  }
 0x2b9   : > { %13804 = vmatpush1.bf16.msra.mxu1 %v19516_v61  ;;  %v19596_v61 = vld [vmem:[%s21916_s4 + $0xa90] ss:$8 sps:$4 sm:$0xff]  }
 0x2ba   : > { %15116 = vmatpush1.bf16.msra.mxu0 %v19519_v62  ;;  %13805 = vmatprep.subr.bf16.mxu1 %v19524_v16  ;;  %v19599_v62 = vld [vmem:[%s21916_s4 + $0x2a90] ss:$8 sps:$4 sm:$0xff]   ;;  %v19604_v16 = vld [vmem:[%s21916_s4 + $0xaa4] ss:$8 sps:$4 sm:$0xff]  }
 0x2bb   : > { %15117 = vmatprep.subr.bf16.mxu0 %v19527_v39  ;;  %v19607_v39 = vld [vmem:[%s21916_s4 + $0x2aa4] ss:$8 sps:$4 sm:$0xff]  }
 0x2bd   : > { %13806 = vmatpush1.bf16.msra.mxu1 %v19522_v63  ;;  %v19602_v63 = vld [vmem:[%s21916_s4 + $0xaa0] ss:$8 sps:$4 sm:$0xff]  }
 0x2be   : > { %15118 = vmatpush1.bf16.msra.mxu0 %v19525_v0  ;;  %13807 = vmatprep.subr.bf16.mxu1 %v19530_v1  ;;  %v19605_v0 = vld [vmem:[%s21916_s4 + $0x2aa0] ss:$8 sps:$4 sm:$0xff]   ;;  %v19610_v1 = vld [vmem:[%s21916_s4 + $0xab4] ss:$8 sps:$4 sm:$0xff]  }
 0x2bf   : > { %15119 = vmatprep.subr.bf16.mxu0 %v19533_v2  ;;  %v19613_v2 = vld [vmem:[%s21916_s4 + $0x2ab4] ss:$8 sps:$4 sm:$0xff]  }
 0x2c1   : > { %13808 = vmatpush1.bf16.msra.mxu1 %v19528_v5  ;;  %v19608_v5 = vld [vmem:[%s21916_s4 + $0xab0] ss:$8 sps:$4 sm:$0xff]  }
 0x2c2   : > { %15120 = vmatpush1.bf16.msra.mxu0 %v19531_v6  ;;  %13809 = vmatprep.subr.bf16.mxu1 %v19536_v51  ;;  %v19611_v6 = vld [vmem:[%s21916_s4 + $0x2ab0] ss:$8 sps:$4 sm:$0xff]   ;;  %v19616_v51 = vld [vmem:[%s21916_s4 + $0xac4] ss:$8 sps:$4 sm:$0xff]  }
 0x2c3   : > { %15121 = vmatprep.subr.bf16.mxu0 %v19539_v52  ;;  %v19619_v52 = vld [vmem:[%s21916_s4 + $0x2ac4] ss:$8 sps:$4 sm:$0xff]  }
 0x2c5   : > { %13810 = vmatpush1.bf16.msra.mxu1 %v19534_v46  ;;  %v19614_v46 = vld [vmem:[%s21916_s4 + $0xac0] ss:$8 sps:$4 sm:$0xff]  }
 0x2c6   : > { %15122 = vmatpush1.bf16.msra.mxu0 %v19537_v47  ;;  %13820 = vmatprep.subr.bf16.mxu1 %v19543_v9  ;;  %v19617_v47 = vld [vmem:[%s21916_s4 + $0x2ac0] ss:$8 sps:$4 sm:$0xff]   ;;  %v19622_v9 = vld [vmem:[%s21916_s4 + $0xad4] ss:$8 sps:$4 sm:$0xff]  }
 0x2c7   : > { %15132 = vmatprep.subr.bf16.mxu0 %v19547_v10  ;;  %v19625_v10 = vld [vmem:[%s21916_s4 + $0x2ad4] ss:$8 sps:$4 sm:$0xff]  }
 0x2c8   : > { %13812 = vmatmul.mubr.bf16.vlgmr.msra.gmra.mrb[0].mxu1 %v1012_v17  ;;  %v19628_v17 = vld [vmem:[%s21916_s4 + $0xae4] ss:$8 sps:$4 sm:$0xff]  }
 0x2c9   : > { %15124 = vmatmul.mubr.bf16.vlgmr.msra.gmra.mrb[0].mxu0 %v1076_v18  ;;  %13821 = vmatpush1.bf16.msra.mxu1 %v19541_v57  ;;  %v19631_v18 = vld [vmem:[%s21916_s4 + $0x2ae4] ss:$8 sps:$4 sm:$0xff]   ;;  %v407_v57 = vcombine.high %v22762_v3, %v22762_v3  ;;  %v19632_v3 = vld [vmem:[%s21916_s4 + $0xaf0] ss:$8 sps:$4 sm:$0xff]  }
 0x2ca   : > { %15133 = vmatpush1.bf16.msra.mxu0 %v19545_v58  ;;  %13822 = vmatprep.subr.bf16.mxu1 %v19550_v21  ;;  %v679_v58 = vcombine.high %v22765_v4, %v22765_v4  ;;  %v19626_v21 = vld [vmem:[%s21916_s4 + $0xae0] ss:$8 sps:$4 sm:$0xff]   ;;  %v19635_v4 = vld [vmem:[%s21916_s4 + $0x2af0] ss:$8 sps:$4 sm:$0xff]  }
 0x2cb   : > { %15134 = vmatprep.subr.bf16.mxu0 %v19553_v22  ;;  %13852 = vmatprep.mubr.bf16.mxu1 %v1015_v23  ;;  %v19629_v22 = vld [vmem:[%s21916_s4 + $0x2ae0] ss:$8 sps:$4 sm:$0xff]   ;;  %v19634_v23 = vld [vmem:[%s21916_s4 + $0xaf4] ss:$8 sps:$4 sm:$0xff]  }
 0x2cc   : > { %15164 = vmatprep.mubr.bf16.mxu0 %v1079_v24  ;;  %v19637_v24 = vld [vmem:[%s21916_s4 + $0x2af4] ss:$8 sps:$4 sm:$0xff]  }
 0x2cd   : > { %13823 = vmatpush1.bf16.msra.mxu1 %v19548_v43  ;;  %v22856_v43 = vrot.slane %v407_v57, %v21989_v50  ;;  %v19704_v57 = vld [vmem:[%s21916_s4 + $0xbb0] ss:$8 sps:$4 sm:$0xff]  }
 0x2ce   : > { %15135 = vmatpush1.bf16.msra.mxu0 %v19551_v36  ;;  %13824 = vmatprep.subr.bf16.mxu1 %v19556_v25  ;;  %v22859_v36 = vrot.slane %v679_v58, %v21989_v50  ;;  %v19640_v25 = vld [vmem:[%s21916_s4 + $0xb04] ss:$8 sps:$4 sm:$0xff]   ;;  %v19707_v58 = vld [vmem:[%s21916_s4 + $0x2bb0] ss:$8 sps:$4 sm:$0xff]  }
 0x2cf   : > { %15136 = vmatprep.subr.bf16.mxu0 %v19559_v26  ;;  %v19643_v26 = vld [vmem:[%s21916_s4 + $0x2b04] ss:$8 sps:$4 sm:$0xff]  }
 0x2d1   : > { %13825 = vmatpush1.bf16.msra.mxu1 %v19554_v27  ;;  %v423_v27 = vcombine.high %v22856_v43, %v22856_v43 }
 0x2d2   : > { %15137 = vmatpush1.bf16.msra.mxu0 %v19557_v28  ;;  %13826 = vmatprep.subr.bf16.mxu1 %v19562_v29  ;;  %v695_v28 = vcombine.high %v22859_v36, %v22859_v36  ;;  %v1014_v29 = vpack.c.bf16 %v22773_v7, %v22773_v7  ;;  %v19644_v7 = vld [vmem:[%s21916_s4 + $0xb10] ss:$8 sps:$4 sm:$0xff]  }
 0x2d3   : > { %15138 = vmatprep.subr.bf16.mxu0 %v19565_v30  ;;  %v1078_v30 = vpack.c.bf16 %v22777_v8, %v22777_v8  ;;  %v19647_v8 = vld [vmem:[%s21916_s4 + $0x2b10] ss:$8 sps:$4 sm:$0xff]  }
 0x2d5   : > { %13827 = vmatpush1.bf16.msra.mxu1 %v19560_v31  ;;  %v19638_v31 = vld [vmem:[%s21916_s4 + $0xb00] ss:$8 sps:$4 sm:$0xff]  }
 0x2d6   : > { %15139 = vmatpush1.bf16.msra.mxu0 %v19563_v32  ;;  %13828 = vmatprep.subr.bf16.mxu1 %v19568_v11  ;;  %v19641_v32 = vld [vmem:[%s21916_s4 + $0x2b00] ss:$8 sps:$4 sm:$0xff]   ;;  %v19646_v11 = vld [vmem:[%s21916_s4 + $0xb14] ss:$8 sps:$4 sm:$0xff]  }
 0x2d7   : > { %15140 = vmatprep.subr.bf16.mxu0 %v19571_v12  ;;  %v19649_v12 = vld [vmem:[%s21916_s4 + $0x2b14] ss:$8 sps:$4 sm:$0xff]  }
 0x2d9   : > { %13829 = vmatpush1.bf16.msra.mxu1 %v19566_v33  ;;  %v1017_v33 = vpack.c.bf16 %v423_v27, %v423_v27  ;;  %v19724_v27 = vld [vmem:[%s21916_s4 + $0xbe4] ss:$8 sps:$4 sm:$0xff]  }
 0x2da   : > { %15141 = vmatpush1.bf16.msra.mxu0 %v19569_v34  ;;  %13830 = vmatprep.subr.bf16.mxu1 %v19574_v35  ;;  %v1081_v34 = vpack.c.bf16 %v695_v28, %v695_v28  ;;  %v19652_v35 = vld [vmem:[%s21916_s4 + $0xb24] ss:$8 sps:$4 sm:$0xff]  }
 0x2db   : > { %15142 = vmatprep.subr.bf16.mxu0 %v19577_v37  ;;  %v19655_v37 = vld [vmem:[%s21916_s4 + $0x2b24] ss:$8 sps:$4 sm:$0xff]  }
 0x2dc   : > { %v19727_v28 = vld [vmem:[%s21916_s4 + $0x2be4] ss:$8 sps:$4 sm:$0xff]  }
 0x2dd   : > { %13831 = vmatpush1.bf16.msra.mxu1 %v19572_v40  ;;  %v19650_v40 = vld [vmem:[%s21916_s4 + $0xb20] ss:$8 sps:$4 sm:$0xff]  }
 0x2de   : > { %15143 = vmatpush1.bf16.msra.mxu0 %v19575_v42  ;;  %13832 = vmatprep.subr.bf16.mxu1 %v19580_v45  ;;  %v19653_v42 = vld [vmem:[%s21916_s4 + $0x2b20] ss:$8 sps:$4 sm:$0xff]   ;;  %v19658_v45 = vld [vmem:[%s21916_s4 + $0xb34] ss:$8 sps:$4 sm:$0xff]  }
 0x2df   : > { %15144 = vmatprep.subr.bf16.mxu0 %v19583_v15  ;;  %v19661_v15 = vld [vmem:[%s21916_s4 + $0x2b34] ss:$8 sps:$4 sm:$0xff]  }
 0x2e1   : > { %13833 = vmatpush1.bf16.msra.mxu1 %v19578_v19  ;;  %v19656_v19 = vld [vmem:[%s21916_s4 + $0xb30] ss:$8 sps:$4 sm:$0xff]  }
 0x2e2   : > { %15145 = vmatpush1.bf16.msra.mxu0 %v19581_v20  ;;  %13834 = vmatprep.subr.bf16.mxu1 %v19586_v48  ;;  %v19659_v20 = vld [vmem:[%s21916_s4 + $0x2b30] ss:$8 sps:$4 sm:$0xff]   ;;  %v19664_v48 = vld [vmem:[%s21916_s4 + $0xb44] ss:$8 sps:$4 sm:$0xff]  }
 0x2e3   : > { %15146 = vmatprep.subr.bf16.mxu0 %v19589_v49  ;;  %v19667_v49 = vld [vmem:[%s21916_s4 + $0x2b44] ss:$8 sps:$4 sm:$0xff]  }
 0x2e5   : > { %13835 = vmatpush1.bf16.msra.mxu1 %v19584_v53  ;;  %v19662_v53 = vld [vmem:[%s21916_s4 + $0xb40] ss:$8 sps:$4 sm:$0xff]  }
 0x2e6   : > { %15147 = vmatpush1.bf16.msra.mxu0 %v19587_v54  ;;  %13836 = vmatprep.subr.bf16.mxu1 %v19592_v55  ;;  %v19665_v54 = vld [vmem:[%s21916_s4 + $0x2b40] ss:$8 sps:$4 sm:$0xff]   ;;  %v19670_v55 = vld [vmem:[%s21916_s4 + $0xb54] ss:$8 sps:$4 sm:$0xff]  }
 0x2e7   : > { %15148 = vmatprep.subr.bf16.mxu0 %v19595_v56  ;;  %v19673_v56 = vld [vmem:[%s21916_s4 + $0x2b54] ss:$8 sps:$4 sm:$0xff]  }
 0x2e9   : > { %13837 = vmatpush1.bf16.msra.mxu1 %v19590_v59  ;;  %v19668_v59 = vld [vmem:[%s21916_s4 + $0xb50] ss:$8 sps:$4 sm:$0xff]  }
 0x2ea   : > { %15149 = vmatpush1.bf16.msra.mxu0 %v19593_v38  ;;  %13838 = vmatprep.subr.bf16.mxu1 %v19598_v41  ;;  %v19671_v38 = vld [vmem:[%s21916_s4 + $0x2b50] ss:$8 sps:$4 sm:$0xff]   ;;  %v19676_v41 = vld [vmem:[%s21916_s4 + $0xb64] ss:$8 sps:$4 sm:$0xff]  }
 0x2eb   : > { %15150 = vmatprep.subr.bf16.mxu0 %v19601_v60  ;;  %v19679_v60 = vld [vmem:[%s21916_s4 + $0x2b64] ss:$8 sps:$4 sm:$0xff]  }
 0x2ed   : > { %13839 = vmatpush1.bf16.msra.mxu1 %v19596_v61  ;;  %v19674_v61 = vld [vmem:[%s21916_s4 + $0xb60] ss:$8 sps:$4 sm:$0xff]  }
 0x2ee   : > { %15151 = vmatpush1.bf16.msra.mxu0 %v19599_v62  ;;  %13840 = vmatprep.subr.bf16.mxu1 %v19604_v16  ;;  %v19677_v62 = vld [vmem:[%s21916_s4 + $0x2b60] ss:$8 sps:$4 sm:$0xff]   ;;  %v19682_v16 = vld [vmem:[%s21916_s4 + $0xb74] ss:$8 sps:$4 sm:$0xff]  }
 0x2ef   : > { %15152 = vmatprep.subr.bf16.mxu0 %v19607_v39  ;;  %v19685_v39 = vld [vmem:[%s21916_s4 + $0x2b74] ss:$8 sps:$4 sm:$0xff]  }
 0x2f1   : > { %13841 = vmatpush1.bf16.msra.mxu1 %v19602_v63  ;;  %v19680_v63 = vld [vmem:[%s21916_s4 + $0xb70] ss:$8 sps:$4 sm:$0xff]  }
 0x2f2   : > { %15153 = vmatpush1.bf16.msra.mxu0 %v19605_v0  ;;  %13842 = vmatprep.subr.bf16.mxu1 %v19610_v1  ;;  %v19683_v0 = vld [vmem:[%s21916_s4 + $0x2b70] ss:$8 sps:$4 sm:$0xff]   ;;  %v19688_v1 = vld [vmem:[%s21916_s4 + $0xb84] ss:$8 sps:$4 sm:$0xff]  }
 0x2f3   : > { %15154 = vmatprep.subr.bf16.mxu0 %v19613_v2  ;;  %v19691_v2 = vld [vmem:[%s21916_s4 + $0x2b84] ss:$8 sps:$4 sm:$0xff]  }
 0x2f5   : > { %13843 = vmatpush1.bf16.msra.mxu1 %v19608_v5  ;;  %v19686_v5 = vld [vmem:[%s21916_s4 + $0xb80] ss:$8 sps:$4 sm:$0xff]  }
 0x2f6   : > { %15155 = vmatpush1.bf16.msra.mxu0 %v19611_v6  ;;  %13844 = vmatprep.subr.bf16.mxu1 %v19616_v51  ;;  %v19689_v6 = vld [vmem:[%s21916_s4 + $0x2b80] ss:$8 sps:$4 sm:$0xff]   ;;  %v19694_v51 = vld [vmem:[%s21916_s4 + $0xb94] ss:$8 sps:$4 sm:$0xff]  }
 0x2f7   : > { %15156 = vmatprep.subr.bf16.mxu0 %v19619_v52  ;;  %v19697_v52 = vld [vmem:[%s21916_s4 + $0x2b94] ss:$8 sps:$4 sm:$0xff]  }
 0x2f9   : > { %13845 = vmatpush1.bf16.msra.mxu1 %v19614_v46  ;;  %v19692_v46 = vld [vmem:[%s21916_s4 + $0xb90] ss:$8 sps:$4 sm:$0xff]  }
 0x2fa   : > { %15157 = vmatpush1.bf16.msra.mxu0 %v19617_v47  ;;  %13846 = vmatprep.subr.bf16.mxu1 %v19622_v9  ;;  %v19695_v47 = vld [vmem:[%s21916_s4 + $0x2b90] ss:$8 sps:$4 sm:$0xff]   ;;  %v19700_v9 = vld [vmem:[%s21916_s4 + $0xba4] ss:$8 sps:$4 sm:$0xff]  }
 0x2fb   : > { %15158 = vmatprep.subr.bf16.mxu0 %v19625_v10  ;;  %v19703_v10 = vld [vmem:[%s21916_s4 + $0x2ba4] ss:$8 sps:$4 sm:$0xff]  }
 0x2fd   : > { %13847 = vmatpush1.bf16.msra.mxu1 %v19620_v13  ;;  %v19698_v13 = vld [vmem:[%s21916_s4 + $0xba0] ss:$8 sps:$4 sm:$0xff]  }
 0x2fe   : > { %15159 = vmatpush1.bf16.msra.mxu0 %v19623_v14  ;;  %13848 = vmatprep.subr.bf16.mxu1 %v19628_v17  ;;  %v19701_v14 = vld [vmem:[%s21916_s4 + $0x2ba0] ss:$8 sps:$4 sm:$0xff]   ;;  %v19706_v17 = vld [vmem:[%s21916_s4 + $0xbb4] ss:$8 sps:$4 sm:$0xff]  }
 0x2ff   : > { %15160 = vmatprep.subr.bf16.mxu0 %v19631_v18  ;;  %v19709_v18 = vld [vmem:[%s21916_s4 + $0x2bb4] ss:$8 sps:$4 sm:$0xff]  }
 0x301   : > { %13849 = vmatpush1.bf16.msra.mxu1 %v19626_v21  ;;  %v19712_v21 = vld [vmem:[%s21916_s4 + $0xbc4] ss:$8 sps:$4 sm:$0xff]  }
 0x302   : > { %15161 = vmatpush1.bf16.msra.mxu0 %v19629_v22  ;;  %13850 = vmatprep.subr.bf16.mxu1 %v19634_v23  ;;  %v19715_v22 = vld [vmem:[%s21916_s4 + $0x2bc4] ss:$8 sps:$4 sm:$0xff]   ;;  %v19710_v23 = vld [vmem:[%s21916_s4 + $0xbc0] ss:$8 sps:$4 sm:$0xff]  }
 0x303   : > { %15162 = vmatprep.subr.bf16.mxu0 %v19637_v24  ;;  %v19713_v24 = vld [vmem:[%s21916_s4 + $0x2bc0] ss:$8 sps:$4 sm:$0xff]  }
 0x305   : > { %13851 = vmatpush1.bf16.msra.mxu1 %v19632_v3  ;;  %v19718_v3 = vld [vmem:[%s21916_s4 + $0xbd4] ss:$8 sps:$4 sm:$0xff]  }
 0x306   : > { %15163 = vmatpush1.bf16.msra.mxu0 %v19635_v4  ;;  %13861 = vmatprep.subr.bf16.mxu1 %v19640_v25  ;;  %v19721_v4 = vld [vmem:[%s21916_s4 + $0x2bd4] ss:$8 sps:$4 sm:$0xff]   ;;  %v19716_v25 = vld [vmem:[%s21916_s4 + $0xbd0] ss:$8 sps:$4 sm:$0xff]  }
 0x307   : > { %15173 = vmatprep.subr.bf16.mxu0 %v19643_v26  ;;  %v19719_v26 = vld [vmem:[%s21916_s4 + $0x2bd0] ss:$8 sps:$4 sm:$0xff]  }
 0x308   : > { %13853 = vmatmul.mubr.bf16.vlgmr.msra.gmra.mrb[0].mxu1 %v1014_v29  ;;  %v22930_v29 = vld [vmem:[%s21929_s29 + $0x30] sm:$0xff] }
 0x309   : > { %15165 = vmatmul.mubr.bf16.vlgmr.msra.gmra.mrb[0].mxu0 %v1078_v30  ;;  %13862 = vmatpush1.bf16.msra.mxu1 %v19638_v31  ;;  %v22933_v30 = vld [vmem:[%s21929_s29 + $0xb0] sm:$0xff]  ;;  %v19722_v31 = vld [vmem:[%s21916_s4 + $0xbe0] ss:$8 sps:$4 sm:$0xff]  }
 0x30a   : > { %15174 = vmatpush1.bf16.msra.mxu0 %v19641_v32  ;;  %13863 = vmatprep.subr.bf16.mxu1 %v19646_v11  ;;  %v19725_v32 = vld [vmem:[%s21916_s4 + $0x2be0] ss:$8 sps:$4 sm:$0xff]   ;;  %v19730_v11 = vld [vmem:[%s21916_s4 + $0xbf4] ss:$8 sps:$4 sm:$0xff]  }
 0x30b   : > { %15175 = vmatprep.subr.bf16.mxu0 %v19649_v12  ;;  %13893 = vmatprep.mubr.bf16.mxu1 %v1017_v33  ;;  %v19733_v12 = vld [vmem:[%s21916_s4 + $0x2bf4] ss:$8 sps:$4 sm:$0xff]   ;;  %v22941_v33 = vrot.slane %v22930_v29, %v21989_v50 }
 0x30c   : > { %15205 = vmatprep.mubr.bf16.mxu0 %v1081_v34  ;;  %v22945_v34 = vrot.slane %v22933_v30, %v21989_v50 }
 0x30d   : > { %13864 = vmatpush1.bf16.msra.mxu1 %v19644_v7  ;;  %v19728_v7 = vld [vmem:[%s21916_s4 + $0xbf0] ss:$8 sps:$4 sm:$0xff]  }
 0x30e   : > { %15176 = vmatpush1.bf16.msra.mxu0 %v19647_v8  ;;  %13865 = vmatprep.subr.bf16.mxu1 %v19652_v35  ;;  %v19731_v8 = vld [vmem:[%s21916_s4 + $0x2bf0] ss:$8 sps:$4 sm:$0xff]   ;;  %v19737_v35 = vld [vmem:[%s21916_s4 + $0xc04] ss:$8 sps:$4 sm:$0xff]  }
 0x30f   : > { %15177 = vmatprep.subr.bf16.mxu0 %v19655_v37  ;;  %v19741_v37 = vld [vmem:[%s21916_s4 + $0x2c04] ss:$8 sps:$4 sm:$0xff]  }
 0x311   : > { %13866 = vmatpush1.bf16.msra.mxu1 %v19650_v40  ;;  %v439_v40 = vcombine.high %v22941_v33, %v22941_v33 }
 0x312   : > { %15178 = vmatpush1.bf16.msra.mxu0 %v19653_v42  ;;  %13867 = vmatprep.subr.bf16.mxu1 %v19658_v45  ;;  %v711_v42 = vcombine.high %v22945_v34, %v22945_v34  ;;  %v1016_v45 = vpack.c.bf16 %v22856_v43, %v22856_v43  ;;  %v19742_v43 = vld [vmem:[%s21916_s4 + $0xc10] ss:$8 sps:$4 sm:$0xff]  }
 0x313   : > { %15179 = vmatprep.subr.bf16.mxu0 %v19661_v15  ;;  %v1080_v15 = vpack.c.bf16 %v22859_v36, %v22859_v36  ;;  %v19745_v36 = vld [vmem:[%s21916_s4 + $0x2c10] ss:$8 sps:$4 sm:$0xff]  }
 0x315   : > { %13868 = vmatpush1.bf16.msra.mxu1 %v19656_v19  ;;  %v19735_v19 = vld [vmem:[%s21916_s4 + $0xc00] ss:$8 sps:$4 sm:$0xff]  }
 0x316   : > { %15180 = vmatpush1.bf16.msra.mxu0 %v19659_v20  ;;  %13869 = vmatprep.subr.bf16.mxu1 %v19664_v48  ;;  %v19739_v20 = vld [vmem:[%s21916_s4 + $0x2c00] ss:$8 sps:$4 sm:$0xff]   ;;  %v19744_v48 = vld [vmem:[%s21916_s4 + $0xc14] ss:$8 sps:$4 sm:$0xff]  }
 0x317   : > { %15181 = vmatprep.subr.bf16.mxu0 %v19667_v49  ;;  %v19747_v49 = vld [vmem:[%s21916_s4 + $0x2c14] ss:$8 sps:$4 sm:$0xff]  }
 0x319   : > { %13870 = vmatpush1.bf16.msra.mxu1 %v19662_v53  ;;  %v1019_v53 = vpack.c.bf16 %v439_v40, %v439_v40  ;;  %v19814_v40 = vld [vmem:[%s21916_s4 + $0xcd0] ss:$8 sps:$4 sm:$0xff]  }
 0x31a   : > { %15182 = vmatpush1.bf16.msra.mxu0 %v19665_v54  ;;  %13871 = vmatprep.subr.bf16.mxu1 %v19670_v55  ;;  %v1083_v54 = vpack.c.bf16 %v711_v42, %v711_v42  ;;  %v19750_v55 = vld [vmem:[%s21916_s4 + $0xc24] ss:$8 sps:$4 sm:$0xff]   ;;  %v19817_v42 = vld [vmem:[%s21916_s4 + $0x2cd0] ss:$8 sps:$4 sm:$0xff]  }
 0x31b   : > { %15183 = vmatprep.subr.bf16.mxu0 %v19673_v56  ;;  %v19753_v56 = vld [vmem:[%s21916_s4 + $0x2c24] ss:$8 sps:$4 sm:$0xff]  }
 0x31d   : > { %13872 = vmatpush1.bf16.msra.mxu1 %v19668_v59  ;;  %v19748_v59 = vld [vmem:[%s21916_s4 + $0xc20] ss:$8 sps:$4 sm:$0xff]  }
 0x31e   : > { %15184 = vmatpush1.bf16.msra.mxu0 %v19671_v38  ;;  %13873 = vmatprep.subr.bf16.mxu1 %v19676_v41  ;;  %v19751_v38 = vld [vmem:[%s21916_s4 + $0x2c20] ss:$8 sps:$4 sm:$0xff]   ;;  %v19756_v41 = vld [vmem:[%s21916_s4 + $0xc34] ss:$8 sps:$4 sm:$0xff]  }
 0x31f   : > { %15185 = vmatprep.subr.bf16.mxu0 %v19679_v60  ;;  %v19759_v60 = vld [vmem:[%s21916_s4 + $0x2c34] ss:$8 sps:$4 sm:$0xff]  }
 0x321   : > { %13874 = vmatpush1.bf16.msra.mxu1 %v19674_v61  ;;  %v19754_v61 = vld [vmem:[%s21916_s4 + $0xc30] ss:$8 sps:$4 sm:$0xff]  }
 0x322   : > { %15186 = vmatpush1.bf16.msra.mxu0 %v19677_v62  ;;  %13875 = vmatprep.subr.bf16.mxu1 %v19682_v16  ;;  %v19757_v62 = vld [vmem:[%s21916_s4 + $0x2c30] ss:$8 sps:$4 sm:$0xff]   ;;  %v19762_v16 = vld [vmem:[%s21916_s4 + $0xc44] ss:$8 sps:$4 sm:$0xff]  }
 0x323   : > { %15187 = vmatprep.subr.bf16.mxu0 %v19685_v39  ;;  %v19765_v39 = vld [vmem:[%s21916_s4 + $0x2c44] ss:$8 sps:$4 sm:$0xff]  }
 0x325   : > { %13876 = vmatpush1.bf16.msra.mxu1 %v19680_v63  ;;  %v19760_v63 = vld [vmem:[%s21916_s4 + $0xc40] ss:$8 sps:$4 sm:$0xff]  }
 0x326   : > { %15188 = vmatpush1.bf16.msra.mxu0 %v19683_v0  ;;  %13877 = vmatprep.subr.bf16.mxu1 %v19688_v1  ;;  %v19763_v0 = vld [vmem:[%s21916_s4 + $0x2c40] ss:$8 sps:$4 sm:$0xff]   ;;  %v19768_v1 = vld [vmem:[%s21916_s4 + $0xc54] ss:$8 sps:$4 sm:$0xff]  }
 0x327   : > { %15189 = vmatprep.subr.bf16.mxu0 %v19691_v2  ;;  %v19771_v2 = vld [vmem:[%s21916_s4 + $0x2c54] ss:$8 sps:$4 sm:$0xff]  }
 0x329   : > { %13878 = vmatpush1.bf16.msra.mxu1 %v19686_v5  ;;  %v19766_v5 = vld [vmem:[%s21916_s4 + $0xc50] ss:$8 sps:$4 sm:$0xff]  }
 0x32a   : > { %15190 = vmatpush1.bf16.msra.mxu0 %v19689_v6  ;;  %13879 = vmatprep.subr.bf16.mxu1 %v19694_v51  ;;  %v19769_v6 = vld [vmem:[%s21916_s4 + $0x2c50] ss:$8 sps:$4 sm:$0xff]   ;;  %v19774_v51 = vld [vmem:[%s21916_s4 + $0xc64] ss:$8 sps:$4 sm:$0xff]  }
 0x32b   : > { %15191 = vmatprep.subr.bf16.mxu0 %v19697_v52  ;;  %v19777_v52 = vld [vmem:[%s21916_s4 + $0x2c64] ss:$8 sps:$4 sm:$0xff]  }
 0x32d   : > { %13880 = vmatpush1.bf16.msra.mxu1 %v19692_v46  ;;  %v19772_v46 = vld [vmem:[%s21916_s4 + $0xc60] ss:$8 sps:$4 sm:$0xff]  }
 0x32e   : > { %15192 = vmatpush1.bf16.msra.mxu0 %v19695_v47  ;;  %13881 = vmatprep.subr.bf16.mxu1 %v19700_v9  ;;  %v19775_v47 = vld [vmem:[%s21916_s4 + $0x2c60] ss:$8 sps:$4 sm:$0xff]   ;;  %v19780_v9 = vld [vmem:[%s21916_s4 + $0xc74] ss:$8 sps:$4 sm:$0xff]  }
 0x32f   : > { %15193 = vmatprep.subr.bf16.mxu0 %v19703_v10  ;;  %v19783_v10 = vld [vmem:[%s21916_s4 + $0x2c74] ss:$8 sps:$4 sm:$0xff]  }
 0x331   : > { %13882 = vmatpush1.bf16.msra.mxu1 %v19698_v13  ;;  %v19778_v13 = vld [vmem:[%s21916_s4 + $0xc70] ss:$8 sps:$4 sm:$0xff]  }
 0x332   : > { %15194 = vmatpush1.bf16.msra.mxu0 %v19701_v14  ;;  %13883 = vmatprep.subr.bf16.mxu1 %v19706_v17  ;;  %v19781_v14 = vld [vmem:[%s21916_s4 + $0x2c70] ss:$8 sps:$4 sm:$0xff]   ;;  %v19786_v17 = vld [vmem:[%s21916_s4 + $0xc84] ss:$8 sps:$4 sm:$0xff]  }
 0x333   : > { %15195 = vmatprep.subr.bf16.mxu0 %v19709_v18  ;;  %v19789_v18 = vld [vmem:[%s21916_s4 + $0x2c84] ss:$8 sps:$4 sm:$0xff]  }
 0x335   : > { %13884 = vmatpush1.bf16.msra.mxu1 %v19704_v57  ;;  %v19784_v57 = vld [vmem:[%s21916_s4 + $0xc80] ss:$8 sps:$4 sm:$0xff]  }
 0x336   : > { %15196 = vmatpush1.bf16.msra.mxu0 %v19707_v58  ;;  %13885 = vmatprep.subr.bf16.mxu1 %v19712_v21  ;;  %v19787_v58 = vld [vmem:[%s21916_s4 + $0x2c80] ss:$8 sps:$4 sm:$0xff]   ;;  %v19792_v21 = vld [vmem:[%s21916_s4 + $0xc94] ss:$8 sps:$4 sm:$0xff]  }
 0x337   : > { %15197 = vmatprep.subr.bf16.mxu0 %v19715_v22  ;;  %v19795_v22 = vld [vmem:[%s21916_s4 + $0x2c94] ss:$8 sps:$4 sm:$0xff]  }
 0x339   : > { %13886 = vmatpush1.bf16.msra.mxu1 %v19710_v23  ;;  %v19790_v23 = vld [vmem:[%s21916_s4 + $0xc90] ss:$8 sps:$4 sm:$0xff]  }
 0x33a   : > { %15198 = vmatpush1.bf16.msra.mxu0 %v19713_v24  ;;  %13887 = vmatprep.subr.bf16.mxu1 %v19718_v3  ;;  %v19793_v24 = vld [vmem:[%s21916_s4 + $0x2c90] ss:$8 sps:$4 sm:$0xff]   ;;  %v19798_v3 = vld [vmem:[%s21916_s4 + $0xca4] ss:$8 sps:$4 sm:$0xff]  }
 0x33b   : > { %15199 = vmatprep.subr.bf16.mxu0 %v19721_v4  ;;  %v19801_v4 = vld [vmem:[%s21916_s4 + $0x2ca4] ss:$8 sps:$4 sm:$0xff]  }
 0x33d   : > { %13888 = vmatpush1.bf16.msra.mxu1 %v19716_v25  ;;  %v19796_v25 = vld [vmem:[%s21916_s4 + $0xca0] ss:$8 sps:$4 sm:$0xff]  }
 0x33e   : > { %15200 = vmatpush1.bf16.msra.mxu0 %v19719_v26  ;;  %13889 = vmatprep.subr.bf16.mxu1 %v19724_v27  ;;  %v19799_v26 = vld [vmem:[%s21916_s4 + $0x2ca0] ss:$8 sps:$4 sm:$0xff]   ;;  %v19804_v27 = vld [vmem:[%s21916_s4 + $0xcb4] ss:$8 sps:$4 sm:$0xff]  }
 0x33f   : > { %15201 = vmatprep.subr.bf16.mxu0 %v19727_v28  ;;  %v19807_v28 = vld [vmem:[%s21916_s4 + $0x2cb4] ss:$8 sps:$4 sm:$0xff]  }
 0x341   : > { %13890 = vmatpush1.bf16.msra.mxu1 %v19722_v31  ;;  %v19802_v31 = vld [vmem:[%s21916_s4 + $0xcb0] ss:$8 sps:$4 sm:$0xff]  }
 0x342   : > { %15202 = vmatpush1.bf16.msra.mxu0 %v19725_v32  ;;  %13891 = vmatprep.subr.bf16.mxu1 %v19730_v11  ;;  %v19805_v32 = vld [vmem:[%s21916_s4 + $0x2cb0] ss:$8 sps:$4 sm:$0xff]   ;;  %v19810_v11 = vld [vmem:[%s21916_s4 + $0xcc4] ss:$8 sps:$4 sm:$0xff]  }
 0x343   : > { %15203 = vmatprep.subr.bf16.mxu0 %v19733_v12  ;;  %v19813_v12 = vld [vmem:[%s21916_s4 + $0x2cc4] ss:$8 sps:$4 sm:$0xff]  }
 0x345   : > { %13892 = vmatpush1.bf16.msra.mxu1 %v19728_v7  ;;  %v19808_v7 = vld [vmem:[%s21916_s4 + $0xcc0] ss:$8 sps:$4 sm:$0xff]  }
 0x346   : > { %15204 = vmatpush1.bf16.msra.mxu0 %v19731_v8  ;;  %13902 = vmatprep.subr.bf16.mxu1 %v19737_v35  ;;  %v19811_v8 = vld [vmem:[%s21916_s4 + $0x2cc0] ss:$8 sps:$4 sm:$0xff]   ;;  %v19816_v35 = vld [vmem:[%s21916_s4 + $0xcd4] ss:$8 sps:$4 sm:$0xff]  }
 0x347   : > { %15214 = vmatprep.subr.bf16.mxu0 %v19741_v37  ;;  %v19819_v37 = vld [vmem:[%s21916_s4 + $0x2cd4] ss:$8 sps:$4 sm:$0xff]  }
 0x348   : > { %13894 = vmatmul.mubr.bf16.vlgmr.msra.gmra.mrb[0].mxu1 %v1016_v45  ;;  %v19822_v45 = vld [vmem:[%s21916_s4 + $0xce4] ss:$8 sps:$4 sm:$0xff]  }
 0x349   : > { %15206 = vmatmul.mubr.bf16.vlgmr.msra.gmra.mrb[0].mxu0 %v1080_v15  ;;  %13903 = vmatpush1.bf16.msra.mxu1 %v19735_v19  ;;  %v19825_v15 = vld [vmem:[%s21916_s4 + $0x2ce4] ss:$8 sps:$4 sm:$0xff]   ;;  %v424_v19 = vcombine.high %v22930_v29, %v22930_v29  ;;  %v19826_v29 = vld [vmem:[%s21916_s4 + $0xcf0] ss:$8 sps:$4 sm:$0xff]  }
 0x34a   : > { %15215 = vmatpush1.bf16.msra.mxu0 %v19739_v20  ;;  %13904 = vmatprep.subr.bf16.mxu1 %v19744_v48  ;;  %v696_v20 = vcombine.high %v22933_v30, %v22933_v30  ;;  %v19820_v48 = vld [vmem:[%s21916_s4 + $0xce0] ss:$8 sps:$4 sm:$0xff]   ;;  %v19829_v30 = vld [vmem:[%s21916_s4 + $0x2cf0] ss:$8 sps:$4 sm:$0xff]  }
 0x34b   : > { %15216 = vmatprep.subr.bf16.mxu0 %v19747_v49  ;;  %13934 = vmatprep.mubr.bf16.mxu1 %v1019_v53  ;;  %v19823_v49 = vld [vmem:[%s21916_s4 + $0x2ce0] ss:$8 sps:$4 sm:$0xff]   ;;  %v19828_v53 = vld [vmem:[%s21916_s4 + $0xcf4] ss:$8 sps:$4 sm:$0xff]  }
 0x34c   : > { %15246 = vmatprep.mubr.bf16.mxu0 %v1083_v54  ;;  %v19831_v54 = vld [vmem:[%s21916_s4 + $0x2cf4] ss:$8 sps:$4 sm:$0xff]  }
 0x34d   : > { %13905 = vmatpush1.bf16.msra.mxu1 %v19742_v43  ;;  %v23024_v43 = vrot.slane %v424_v19, %v21989_v50  ;;  %v19898_v19 = vld [vmem:[%s21916_s4 + $0xdb0] ss:$8 sps:$4 sm:$0xff]  }
 0x34e   : > { %15217 = vmatpush1.bf16.msra.mxu0 %v19745_v36  ;;  %13906 = vmatprep.subr.bf16.mxu1 %v19750_v55  ;;  %v23027_v36 = vrot.slane %v696_v20, %v21989_v50  ;;  %v19834_v55 = vld [vmem:[%s21916_s4 + $0xd04] ss:$8 sps:$4 sm:$0xff]   ;;  %v19901_v20 = vld [vmem:[%s21916_s4 + $0x2db0] ss:$8 sps:$4 sm:$0xff]  }
 0x34f   : > { %15218 = vmatprep.subr.bf16.mxu0 %v19753_v56  ;;  %v19837_v56 = vld [vmem:[%s21916_s4 + $0x2d04] ss:$8 sps:$4 sm:$0xff]  }
 0x351   : > { %13907 = vmatpush1.bf16.msra.mxu1 %v19748_v59  ;;  %v440_v59 = vcombine.high %v23024_v43, %v23024_v43 }
 0x352   : > { %15219 = vmatpush1.bf16.msra.mxu0 %v19751_v38  ;;  %13908 = vmatprep.subr.bf16.mxu1 %v19756_v41  ;;  %v712_v38 = vcombine.high %v23027_v36, %v23027_v36  ;;  %v1018_v41 = vpack.c.bf16 %v22941_v33, %v22941_v33  ;;  %v19838_v33 = vld [vmem:[%s21916_s4 + $0xd10] ss:$8 sps:$4 sm:$0xff]  }
 0x353   : > { %15220 = vmatprep.subr.bf16.mxu0 %v19759_v60  ;;  %v1082_v60 = vpack.c.bf16 %v22945_v34, %v22945_v34  ;;  %v19841_v34 = vld [vmem:[%s21916_s4 + $0x2d10] ss:$8 sps:$4 sm:$0xff]  }
 0x355   : > { %13909 = vmatpush1.bf16.msra.mxu1 %v19754_v61  ;;  %v19832_v61 = vld [vmem:[%s21916_s4 + $0xd00] ss:$8 sps:$4 sm:$0xff]  }
 0x356   : > { %15221 = vmatpush1.bf16.msra.mxu0 %v19757_v62  ;;  %13910 = vmatprep.subr.bf16.mxu1 %v19762_v16  ;;  %v19835_v62 = vld [vmem:[%s21916_s4 + $0x2d00] ss:$8 sps:$4 sm:$0xff]   ;;  %v19840_v16 = vld [vmem:[%s21916_s4 + $0xd14] ss:$8 sps:$4 sm:$0xff]  }
 0x357   : > { %15222 = vmatprep.subr.bf16.mxu0 %v19765_v39  ;;  %v19843_v39 = vld [vmem:[%s21916_s4 + $0x2d14] ss:$8 sps:$4 sm:$0xff]  }
 0x359   : > { %13911 = vmatpush1.bf16.msra.mxu1 %v19760_v63  ;;  %v1021_v63 = vpack.c.bf16 %v440_v59, %v440_v59  ;;  %v19918_v59 = vld [vmem:[%s21916_s4 + $0xde4] ss:$8 sps:$4 sm:$0xff]  }
 0x35a   : > { %15223 = vmatpush1.bf16.msra.mxu0 %v19763_v0  ;;  %13912 = vmatprep.subr.bf16.mxu1 %v19768_v1  ;;  %v1085_v0 = vpack.c.bf16 %v712_v38, %v712_v38  ;;  %v19846_v1 = vld [vmem:[%s21916_s4 + $0xd24] ss:$8 sps:$4 sm:$0xff]  }
 0x35b   : > { %15224 = vmatprep.subr.bf16.mxu0 %v19771_v2  ;;  %v19849_v2 = vld [vmem:[%s21916_s4 + $0x2d24] ss:$8 sps:$4 sm:$0xff]  }
 0x35c   : > { %v19921_v38 = vld [vmem:[%s21916_s4 + $0x2de4] ss:$8 sps:$4 sm:$0xff]  }
 0x35d   : > { %13913 = vmatpush1.bf16.msra.mxu1 %v19766_v5  ;;  %v19844_v5 = vld [vmem:[%s21916_s4 + $0xd20] ss:$8 sps:$4 sm:$0xff]  }
 0x35e   : > { %15225 = vmatpush1.bf16.msra.mxu0 %v19769_v6  ;;  %13914 = vmatprep.subr.bf16.mxu1 %v19774_v51  ;;  %v19847_v6 = vld [vmem:[%s21916_s4 + $0x2d20] ss:$8 sps:$4 sm:$0xff]   ;;  %v19852_v51 = vld [vmem:[%s21916_s4 + $0xd34] ss:$8 sps:$4 sm:$0xff]  }
 0x35f   : > { %15226 = vmatprep.subr.bf16.mxu0 %v19777_v52  ;;  %v19855_v52 = vld [vmem:[%s21916_s4 + $0x2d34] ss:$8 sps:$4 sm:$0xff]  }
 0x361   : > { %13915 = vmatpush1.bf16.msra.mxu1 %v19772_v46  ;;  %v19850_v46 = vld [vmem:[%s21916_s4 + $0xd30] ss:$8 sps:$4 sm:$0xff]  }
 0x362   : > { %15227 = vmatpush1.bf16.msra.mxu0 %v19775_v47  ;;  %13916 = vmatprep.subr.bf16.mxu1 %v19780_v9  ;;  %v19853_v47 = vld [vmem:[%s21916_s4 + $0x2d30] ss:$8 sps:$4 sm:$0xff]   ;;  %v19858_v9 = vld [vmem:[%s21916_s4 + $0xd44] ss:$8 sps:$4 sm:$0xff]  }
 0x363   : > { %15228 = vmatprep.subr.bf16.mxu0 %v19783_v10  ;;  %v19861_v10 = vld [vmem:[%s21916_s4 + $0x2d44] ss:$8 sps:$4 sm:$0xff]  }
 0x365   : > { %13917 = vmatpush1.bf16.msra.mxu1 %v19778_v13  ;;  %v19856_v13 = vld [vmem:[%s21916_s4 + $0xd40] ss:$8 sps:$4 sm:$0xff]  }
 0x366   : > { %15229 = vmatpush1.bf16.msra.mxu0 %v19781_v14  ;;  %13918 = vmatprep.subr.bf16.mxu1 %v19786_v17  ;;  %v19859_v14 = vld [vmem:[%s21916_s4 + $0x2d40] ss:$8 sps:$4 sm:$0xff]   ;;  %v19864_v17 = vld [vmem:[%s21916_s4 + $0xd54] ss:$8 sps:$4 sm:$0xff]  }
 0x367   : > { %15230 = vmatprep.subr.bf16.mxu0 %v19789_v18  ;;  %v19867_v18 = vld [vmem:[%s21916_s4 + $0x2d54] ss:$8 sps:$4 sm:$0xff]  }
 0x369   : > { %13919 = vmatpush1.bf16.msra.mxu1 %v19784_v57  ;;  %v19862_v57 = vld [vmem:[%s21916_s4 + $0xd50] ss:$8 sps:$4 sm:$0xff]  }
 0x36a   : > { %15231 = vmatpush1.bf16.msra.mxu0 %v19787_v58  ;;  %13920 = vmatprep.subr.bf16.mxu1 %v19792_v21  ;;  %v19865_v58 = vld [vmem:[%s21916_s4 + $0x2d50] ss:$8 sps:$4 sm:$0xff]   ;;  %v19870_v21 = vld [vmem:[%s21916_s4 + $0xd64] ss:$8 sps:$4 sm:$0xff]  }
 0x36b   : > { %15232 = vmatprep.subr.bf16.mxu0 %v19795_v22  ;;  %v19873_v22 = vld [vmem:[%s21916_s4 + $0x2d64] ss:$8 sps:$4 sm:$0xff]  }
 0x36d   : > { %13921 = vmatpush1.bf16.msra.mxu1 %v19790_v23  ;;  %v19868_v23 = vld [vmem:[%s21916_s4 + $0xd60] ss:$8 sps:$4 sm:$0xff]  }
 0x36e   : > { %15233 = vmatpush1.bf16.msra.mxu0 %v19793_v24  ;;  %13922 = vmatprep.subr.bf16.mxu1 %v19798_v3  ;;  %v19871_v24 = vld [vmem:[%s21916_s4 + $0x2d60] ss:$8 sps:$4 sm:$0xff]   ;;  %v19876_v3 = vld [vmem:[%s21916_s4 + $0xd74] ss:$8 sps:$4 sm:$0xff]  }
 0x36f   : > { %15234 = vmatprep.subr.bf16.mxu0 %v19801_v4  ;;  %v19879_v4 = vld [vmem:[%s21916_s4 + $0x2d74] ss:$8 sps:$4 sm:$0xff]  }
 0x371   : > { %13923 = vmatpush1.bf16.msra.mxu1 %v19796_v25  ;;  %v19874_v25 = vld [vmem:[%s21916_s4 + $0xd70] ss:$8 sps:$4 sm:$0xff]  }
 0x372   : > { %15235 = vmatpush1.bf16.msra.mxu0 %v19799_v26  ;;  %13924 = vmatprep.subr.bf16.mxu1 %v19804_v27  ;;  %v19877_v26 = vld [vmem:[%s21916_s4 + $0x2d70] ss:$8 sps:$4 sm:$0xff]   ;;  %v19882_v27 = vld [vmem:[%s21916_s4 + $0xd84] ss:$8 sps:$4 sm:$0xff]  }
 0x373   : > { %15236 = vmatprep.subr.bf16.mxu0 %v19807_v28  ;;  %v19885_v28 = vld [vmem:[%s21916_s4 + $0x2d84] ss:$8 sps:$4 sm:$0xff]  }
 0x375   : > { %13925 = vmatpush1.bf16.msra.mxu1 %v19802_v31  ;;  %v19880_v31 = vld [vmem:[%s21916_s4 + $0xd80] ss:$8 sps:$4 sm:$0xff]  }
 0x376   : > { %15237 = vmatpush1.bf16.msra.mxu0 %v19805_v32  ;;  %13926 = vmatprep.subr.bf16.mxu1 %v19810_v11  ;;  %v19883_v32 = vld [vmem:[%s21916_s4 + $0x2d80] ss:$8 sps:$4 sm:$0xff]   ;;  %v19888_v11 = vld [vmem:[%s21916_s4 + $0xd94] ss:$8 sps:$4 sm:$0xff]  }
 0x377   : > { %15238 = vmatprep.subr.bf16.mxu0 %v19813_v12  ;;  %v19891_v12 = vld [vmem:[%s21916_s4 + $0x2d94] ss:$8 sps:$4 sm:$0xff]  }
 0x379   : > { %13927 = vmatpush1.bf16.msra.mxu1 %v19808_v7  ;;  %v19886_v7 = vld [vmem:[%s21916_s4 + $0xd90] ss:$8 sps:$4 sm:$0xff]  }
 0x37a   : > { %15239 = vmatpush1.bf16.msra.mxu0 %v19811_v8  ;;  %13928 = vmatprep.subr.bf16.mxu1 %v19816_v35  ;;  %v19889_v8 = vld [vmem:[%s21916_s4 + $0x2d90] ss:$8 sps:$4 sm:$0xff]   ;;  %v19894_v35 = vld [vmem:[%s21916_s4 + $0xda4] ss:$8 sps:$4 sm:$0xff]  }
 0x37b   : > { %15240 = vmatprep.subr.bf16.mxu0 %v19819_v37  ;;  %v19897_v37 = vld [vmem:[%s21916_s4 + $0x2da4] ss:$8 sps:$4 sm:$0xff]  }
 0x37d   : > { %13929 = vmatpush1.bf16.msra.mxu1 %v19814_v40  ;;  %v19892_v40 = vld [vmem:[%s21916_s4 + $0xda0] ss:$8 sps:$4 sm:$0xff]  }
 0x37e   : > { %15241 = vmatpush1.bf16.msra.mxu0 %v19817_v42  ;;  %13930 = vmatprep.subr.bf16.mxu1 %v19822_v45  ;;  %v19895_v42 = vld [vmem:[%s21916_s4 + $0x2da0] ss:$8 sps:$4 sm:$0xff]   ;;  %v19900_v45 = vld [vmem:[%s21916_s4 + $0xdb4] ss:$8 sps:$4 sm:$0xff]  }
 0x37f   : > { %15242 = vmatprep.subr.bf16.mxu0 %v19825_v15  ;;  %v19903_v15 = vld [vmem:[%s21916_s4 + $0x2db4] ss:$8 sps:$4 sm:$0xff]  }
 0x381   : > { %13931 = vmatpush1.bf16.msra.mxu1 %v19820_v48  ;;  %v19906_v48 = vld [vmem:[%s21916_s4 + $0xdc4] ss:$8 sps:$4 sm:$0xff]  }
 0x382   : > { %15243 = vmatpush1.bf16.msra.mxu0 %v19823_v49  ;;  %13932 = vmatprep.subr.bf16.mxu1 %v19828_v53  ;;  %v19909_v49 = vld [vmem:[%s21916_s4 + $0x2dc4] ss:$8 sps:$4 sm:$0xff]   ;;  %v19904_v53 = vld [vmem:[%s21916_s4 + $0xdc0] ss:$8 sps:$4 sm:$0xff]  }
 0x383   : > { %15244 = vmatprep.subr.bf16.mxu0 %v19831_v54  ;;  %v19907_v54 = vld [vmem:[%s21916_s4 + $0x2dc0] ss:$8 sps:$4 sm:$0xff]  }
 0x385   : > { %13933 = vmatpush1.bf16.msra.mxu1 %v19826_v29  ;;  %v19912_v29 = vld [vmem:[%s21916_s4 + $0xdd4] ss:$8 sps:$4 sm:$0xff]  }
 0x386   : > { %15245 = vmatpush1.bf16.msra.mxu0 %v19829_v30  ;;  %13943 = vmatprep.subr.bf16.mxu1 %v19834_v55  ;;  %v19915_v30 = vld [vmem:[%s21916_s4 + $0x2dd4] ss:$8 sps:$4 sm:$0xff]   ;;  %v19910_v55 = vld [vmem:[%s21916_s4 + $0xdd0] ss:$8 sps:$4 sm:$0xff]  }
 0x387   : > { %15255 = vmatprep.subr.bf16.mxu0 %v19837_v56  ;;  %v19913_v56 = vld [vmem:[%s21916_s4 + $0x2dd0] ss:$8 sps:$4 sm:$0xff]  }
 0x388   : > { %13935 = vmatmul.mubr.bf16.vlgmr.msra.gmra.mrb[0].mxu1 %v1018_v41  ;;  %v23098_v41 = vld [vmem:[%s21929_s29 + $0x38] sm:$0xff] }
 0x389   : > { %15247 = vmatmul.mubr.bf16.vlgmr.msra.gmra.mrb[0].mxu0 %v1082_v60  ;;  %13944 = vmatpush1.bf16.msra.mxu1 %v19832_v61  ;;  %v23101_v60 = vld [vmem:[%s21929_s29 + $0xb8] sm:$0xff]  ;;  %v19916_v61 = vld [vmem:[%s21916_s4 + $0xde0] ss:$8 sps:$4 sm:$0xff]  }
 0x38a   : > { %15256 = vmatpush1.bf16.msra.mxu0 %v19835_v62  ;;  %13945 = vmatprep.subr.bf16.mxu1 %v19840_v16  ;;  %v19919_v62 = vld [vmem:[%s21916_s4 + $0x2de0] ss:$8 sps:$4 sm:$0xff]   ;;  %v19924_v16 = vld [vmem:[%s21916_s4 + $0xdf4] ss:$8 sps:$4 sm:$0xff]  }
 0x38b   : > { %15257 = vmatprep.subr.bf16.mxu0 %v19843_v39  ;;  %13975 = vmatprep.mubr.bf16.mxu1 %v1021_v63  ;;  %v19927_v39 = vld [vmem:[%s21916_s4 + $0x2df4] ss:$8 sps:$4 sm:$0xff]   ;;  %v23109_v63 = vrot.slane %v23098_v41, %v21989_v50 }
 0x38c   : > { %15287 = vmatprep.mubr.bf16.mxu0 %v1085_v0  ;;  %v23113_v0 = vrot.slane %v23101_v60, %v21989_v50 }
 0x38d   : > { %13946 = vmatpush1.bf16.msra.mxu1 %v19838_v33  ;;  %v19922_v33 = vld [vmem:[%s21916_s4 + $0xdf0] ss:$8 sps:$4 sm:$0xff]  }
 0x38e   : > { %15258 = vmatpush1.bf16.msra.mxu0 %v19841_v34  ;;  %13947 = vmatprep.subr.bf16.mxu1 %v19846_v1  ;;  %v19925_v34 = vld [vmem:[%s21916_s4 + $0x2df0] ss:$8 sps:$4 sm:$0xff]   ;;  %v19931_v1 = vld [vmem:[%s21916_s4 + $0xe04] ss:$8 sps:$4 sm:$0xff]  }
 0x38f   : > { %15259 = vmatprep.subr.bf16.mxu0 %v19849_v2  ;;  %v19935_v2 = vld [vmem:[%s21916_s4 + $0x2e04] ss:$8 sps:$4 sm:$0xff]  }
 0x391   : > { %13948 = vmatpush1.bf16.msra.mxu1 %v19844_v5  ;;  %v456_v5 = vcombine.high %v23109_v63, %v23109_v63 }
 0x392   : > { %15260 = vmatpush1.bf16.msra.mxu0 %v19847_v6  ;;  %13949 = vmatprep.subr.bf16.mxu1 %v19852_v51  ;;  %v728_v6 = vcombine.high %v23113_v0, %v23113_v0  ;;  %v1020_v51 = vpack.c.bf16 %v23024_v43, %v23024_v43  ;;  %v19936_v43 = vld [vmem:[%s21916_s4 + $0xe10] ss:$8 sps:$4 sm:$0xff]  }
 0x393   : > { %15261 = vmatprep.subr.bf16.mxu0 %v19855_v52  ;;  %v1084_v52 = vpack.c.bf16 %v23027_v36, %v23027_v36  ;;  %v19939_v36 = vld [vmem:[%s21916_s4 + $0x2e10] ss:$8 sps:$4 sm:$0xff]  }
 0x395   : > { %13950 = vmatpush1.bf16.msra.mxu1 %v19850_v46  ;;  %v19929_v46 = vld [vmem:[%s21916_s4 + $0xe00] ss:$8 sps:$4 sm:$0xff]  }
 0x396   : > { %15262 = vmatpush1.bf16.msra.mxu0 %v19853_v47  ;;  %13951 = vmatprep.subr.bf16.mxu1 %v19858_v9  ;;  %v19933_v47 = vld [vmem:[%s21916_s4 + $0x2e00] ss:$8 sps:$4 sm:$0xff]   ;;  %v19938_v9 = vld [vmem:[%s21916_s4 + $0xe14] ss:$8 sps:$4 sm:$0xff]  }
 0x397   : > { %15263 = vmatprep.subr.bf16.mxu0 %v19861_v10  ;;  %v19941_v10 = vld [vmem:[%s21916_s4 + $0x2e14] ss:$8 sps:$4 sm:$0xff]  }
 0x399   : > { %13952 = vmatpush1.bf16.msra.mxu1 %v19856_v13  ;;  %v1023_v13 = vpack.c.bf16 %v456_v5, %v456_v5  ;;  %v20008_v5 = vld [vmem:[%s21916_s4 + $0xed0] ss:$8 sps:$4 sm:$0xff]  }
 0x39a   : > { %15264 = vmatpush1.bf16.msra.mxu0 %v19859_v14  ;;  %13953 = vmatprep.subr.bf16.mxu1 %v19864_v17  ;;  %v1087_v14 = vpack.c.bf16 %v728_v6, %v728_v6  ;;  %v19944_v17 = vld [vmem:[%s21916_s4 + $0xe24] ss:$8 sps:$4 sm:$0xff]   ;;  %v20011_v6 = vld [vmem:[%s21916_s4 + $0x2ed0] ss:$8 sps:$4 sm:$0xff]  }
 0x39b   : > { %15265 = vmatprep.subr.bf16.mxu0 %v19867_v18  ;;  %v19947_v18 = vld [vmem:[%s21916_s4 + $0x2e24] ss:$8 sps:$4 sm:$0xff]  }
 0x39d   : > { %13954 = vmatpush1.bf16.msra.mxu1 %v19862_v57  ;;  %v19942_v57 = vld [vmem:[%s21916_s4 + $0xe20] ss:$8 sps:$4 sm:$0xff]  }
 0x39e   : > { %15266 = vmatpush1.bf16.msra.mxu0 %v19865_v58  ;;  %13955 = vmatprep.subr.bf16.mxu1 %v19870_v21  ;;  %v19945_v58 = vld [vmem:[%s21916_s4 + $0x2e20] ss:$8 sps:$4 sm:$0xff]   ;;  %v19950_v21 = vld [vmem:[%s21916_s4 + $0xe34] ss:$8 sps:$4 sm:$0xff]  }
 0x39f   : > { %15267 = vmatprep.subr.bf16.mxu0 %v19873_v22  ;;  %v19953_v22 = vld [vmem:[%s21916_s4 + $0x2e34] ss:$8 sps:$4 sm:$0xff]  }
 0x3a1   : > { %13956 = vmatpush1.bf16.msra.mxu1 %v19868_v23  ;;  %v19948_v23 = vld [vmem:[%s21916_s4 + $0xe30] ss:$8 sps:$4 sm:$0xff]  }
 0x3a2   : > { %15268 = vmatpush1.bf16.msra.mxu0 %v19871_v24  ;;  %13957 = vmatprep.subr.bf16.mxu1 %v19876_v3  ;;  %v19951_v24 = vld [vmem:[%s21916_s4 + $0x2e30] ss:$8 sps:$4 sm:$0xff]   ;;  %v19956_v3 = vld [vmem:[%s21916_s4 + $0xe44] ss:$8 sps:$4 sm:$0xff]  }
 0x3a3   : > { %15269 = vmatprep.subr.bf16.mxu0 %v19879_v4  ;;  %v19959_v4 = vld [vmem:[%s21916_s4 + $0x2e44] ss:$8 sps:$4 sm:$0xff]  }
 0x3a5   : > { %13958 = vmatpush1.bf16.msra.mxu1 %v19874_v25  ;;  %v19954_v25 = vld [vmem:[%s21916_s4 + $0xe40] ss:$8 sps:$4 sm:$0xff]  }
 0x3a6   : > { %15270 = vmatpush1.bf16.msra.mxu0 %v19877_v26  ;;  %13959 = vmatprep.subr.bf16.mxu1 %v19882_v27  ;;  %v19957_v26 = vld [vmem:[%s21916_s4 + $0x2e40] ss:$8 sps:$4 sm:$0xff]   ;;  %v19962_v27 = vld [vmem:[%s21916_s4 + $0xe54] ss:$8 sps:$4 sm:$0xff]  }
 0x3a7   : > { %15271 = vmatprep.subr.bf16.mxu0 %v19885_v28  ;;  %v19965_v28 = vld [vmem:[%s21916_s4 + $0x2e54] ss:$8 sps:$4 sm:$0xff]  }
 0x3a9   : > { %13960 = vmatpush1.bf16.msra.mxu1 %v19880_v31  ;;  %v19960_v31 = vld [vmem:[%s21916_s4 + $0xe50] ss:$8 sps:$4 sm:$0xff]  }
 0x3aa   : > { %15272 = vmatpush1.bf16.msra.mxu0 %v19883_v32  ;;  %13961 = vmatprep.subr.bf16.mxu1 %v19888_v11  ;;  %v19963_v32 = vld [vmem:[%s21916_s4 + $0x2e50] ss:$8 sps:$4 sm:$0xff]   ;;  %v19968_v11 = vld [vmem:[%s21916_s4 + $0xe64] ss:$8 sps:$4 sm:$0xff]  }
 0x3ab   : > { %15273 = vmatprep.subr.bf16.mxu0 %v19891_v12  ;;  %v19971_v12 = vld [vmem:[%s21916_s4 + $0x2e64] ss:$8 sps:$4 sm:$0xff]  }
 0x3ad   : > { %13962 = vmatpush1.bf16.msra.mxu1 %v19886_v7  ;;  %v19966_v7 = vld [vmem:[%s21916_s4 + $0xe60] ss:$8 sps:$4 sm:$0xff]  }
 0x3ae   : > { %15274 = vmatpush1.bf16.msra.mxu0 %v19889_v8  ;;  %13963 = vmatprep.subr.bf16.mxu1 %v19894_v35  ;;  %v19969_v8 = vld [vmem:[%s21916_s4 + $0x2e60] ss:$8 sps:$4 sm:$0xff]   ;;  %v19974_v35 = vld [vmem:[%s21916_s4 + $0xe74] ss:$8 sps:$4 sm:$0xff]  }
 0x3af   : > { %15275 = vmatprep.subr.bf16.mxu0 %v19897_v37  ;;  %v19977_v37 = vld [vmem:[%s21916_s4 + $0x2e74] ss:$8 sps:$4 sm:$0xff]  }
 0x3b1   : > { %13964 = vmatpush1.bf16.msra.mxu1 %v19892_v40  ;;  %v19972_v40 = vld [vmem:[%s21916_s4 + $0xe70] ss:$8 sps:$4 sm:$0xff]  }
 0x3b2   : > { %15276 = vmatpush1.bf16.msra.mxu0 %v19895_v42  ;;  %13965 = vmatprep.subr.bf16.mxu1 %v19900_v45  ;;  %v19975_v42 = vld [vmem:[%s21916_s4 + $0x2e70] ss:$8 sps:$4 sm:$0xff]   ;;  %v19980_v45 = vld [vmem:[%s21916_s4 + $0xe84] ss:$8 sps:$4 sm:$0xff]  }
 0x3b3   : > { %15277 = vmatprep.subr.bf16.mxu0 %v19903_v15  ;;  %v19983_v15 = vld [vmem:[%s21916_s4 + $0x2e84] ss:$8 sps:$4 sm:$0xff]  }
 0x3b5   : > { %13966 = vmatpush1.bf16.msra.mxu1 %v19898_v19  ;;  %v19978_v19 = vld [vmem:[%s21916_s4 + $0xe80] ss:$8 sps:$4 sm:$0xff]  }
 0x3b6   : > { %15278 = vmatpush1.bf16.msra.mxu0 %v19901_v20  ;;  %13967 = vmatprep.subr.bf16.mxu1 %v19906_v48  ;;  %v19981_v20 = vld [vmem:[%s21916_s4 + $0x2e80] ss:$8 sps:$4 sm:$0xff]   ;;  %v19986_v48 = vld [vmem:[%s21916_s4 + $0xe94] ss:$8 sps:$4 sm:$0xff]  }
 0x3b7   : > { %15279 = vmatprep.subr.bf16.mxu0 %v19909_v49  ;;  %v19989_v49 = vld [vmem:[%s21916_s4 + $0x2e94] ss:$8 sps:$4 sm:$0xff]  }
 0x3b9   : > { %13968 = vmatpush1.bf16.msra.mxu1 %v19904_v53  ;;  %v19984_v53 = vld [vmem:[%s21916_s4 + $0xe90] ss:$8 sps:$4 sm:$0xff]  }
 0x3ba   : > { %15280 = vmatpush1.bf16.msra.mxu0 %v19907_v54  ;;  %13969 = vmatprep.subr.bf16.mxu1 %v19912_v29  ;;  %v19987_v54 = vld [vmem:[%s21916_s4 + $0x2e90] ss:$8 sps:$4 sm:$0xff]   ;;  %v19992_v29 = vld [vmem:[%s21916_s4 + $0xea4] ss:$8 sps:$4 sm:$0xff]  }
 0x3bb   : > { %15281 = vmatprep.subr.bf16.mxu0 %v19915_v30  ;;  %v19995_v30 = vld [vmem:[%s21916_s4 + $0x2ea4] ss:$8 sps:$4 sm:$0xff]  }
 0x3bd   : > { %13970 = vmatpush1.bf16.msra.mxu1 %v19910_v55  ;;  %v19990_v55 = vld [vmem:[%s21916_s4 + $0xea0] ss:$8 sps:$4 sm:$0xff]  }
 0x3be   : > { %15282 = vmatpush1.bf16.msra.mxu0 %v19913_v56  ;;  %13971 = vmatprep.subr.bf16.mxu1 %v19918_v59  ;;  %v19993_v56 = vld [vmem:[%s21916_s4 + $0x2ea0] ss:$8 sps:$4 sm:$0xff]   ;;  %v19998_v59 = vld [vmem:[%s21916_s4 + $0xeb4] ss:$8 sps:$4 sm:$0xff]  }
 0x3bf   : > { %15283 = vmatprep.subr.bf16.mxu0 %v19921_v38  ;;  %v20001_v38 = vld [vmem:[%s21916_s4 + $0x2eb4] ss:$8 sps:$4 sm:$0xff]  }
 0x3c1   : > { %13972 = vmatpush1.bf16.msra.mxu1 %v19916_v61  ;;  %v19996_v61 = vld [vmem:[%s21916_s4 + $0xeb0] ss:$8 sps:$4 sm:$0xff]  }
 0x3c2   : > { %15284 = vmatpush1.bf16.msra.mxu0 %v19919_v62  ;;  %13973 = vmatprep.subr.bf16.mxu1 %v19924_v16  ;;  %v19999_v62 = vld [vmem:[%s21916_s4 + $0x2eb0] ss:$8 sps:$4 sm:$0xff]   ;;  %v20004_v16 = vld [vmem:[%s21916_s4 + $0xec4] ss:$8 sps:$4 sm:$0xff]  }
 0x3c3   : > { %15285 = vmatprep.subr.bf16.mxu0 %v19927_v39  ;;  %v20007_v39 = vld [vmem:[%s21916_s4 + $0x2ec4] ss:$8 sps:$4 sm:$0xff]  }
 0x3c5   : > { %13974 = vmatpush1.bf16.msra.mxu1 %v19922_v33  ;;  %v20002_v33 = vld [vmem:[%s21916_s4 + $0xec0] ss:$8 sps:$4 sm:$0xff]  }
 0x3c6   : > { %15286 = vmatpush1.bf16.msra.mxu0 %v19925_v34  ;;  %13984 = vmatprep.subr.bf16.mxu1 %v19931_v1  ;;  %v20005_v34 = vld [vmem:[%s21916_s4 + $0x2ec0] ss:$8 sps:$4 sm:$0xff]   ;;  %v20010_v1 = vld [vmem:[%s21916_s4 + $0xed4] ss:$8 sps:$4 sm:$0xff]  }
 0x3c7   : > { %15296 = vmatprep.subr.bf16.mxu0 %v19935_v2  ;;  %v20013_v2 = vld [vmem:[%s21916_s4 + $0x2ed4] ss:$8 sps:$4 sm:$0xff]  }
 0x3c8   : > { %13976 = vmatmul.mubr.bf16.vlgmr.msra.gmra.mrb[0].mxu1 %v1020_v51  ;;  %v20016_v51 = vld [vmem:[%s21916_s4 + $0xee4] ss:$8 sps:$4 sm:$0xff]  }
 0x3c9   : > { %15288 = vmatmul.mubr.bf16.vlgmr.msra.gmra.mrb[0].mxu0 %v1084_v52  ;;  %13985 = vmatpush1.bf16.msra.mxu1 %v19929_v46  ;;  %v20019_v52 = vld [vmem:[%s21916_s4 + $0x2ee4] ss:$8 sps:$4 sm:$0xff]   ;;  %v441_v46 = vcombine.high %v23098_v41, %v23098_v41  ;;  %v20020_v41 = vld [vmem:[%s21916_s4 + $0xef0] ss:$8 sps:$4 sm:$0xff]  }
 0x3ca   : > { %15297 = vmatpush1.bf16.msra.mxu0 %v19933_v47  ;;  %13986 = vmatprep.subr.bf16.mxu1 %v19938_v9  ;;  %v713_v47 = vcombine.high %v23101_v60, %v23101_v60  ;;  %v20014_v9 = vld [vmem:[%s21916_s4 + $0xee0] ss:$8 sps:$4 sm:$0xff]   ;;  %v20023_v60 = vld [vmem:[%s21916_s4 + $0x2ef0] ss:$8 sps:$4 sm:$0xff]  }
 0x3cb   : > { %15298 = vmatprep.subr.bf16.mxu0 %v19941_v10  ;;  %14016 = vmatprep.mubr.bf16.mxu1 %v1023_v13  ;;  %v20017_v10 = vld [vmem:[%s21916_s4 + $0x2ee0] ss:$8 sps:$4 sm:$0xff]   ;;  %v20022_v13 = vld [vmem:[%s21916_s4 + $0xef4] ss:$8 sps:$4 sm:$0xff]  }
 0x3cc   : > { %15328 = vmatprep.mubr.bf16.mxu0 %v1087_v14  ;;  %v20025_v14 = vld [vmem:[%s21916_s4 + $0x2ef4] ss:$8 sps:$4 sm:$0xff]  }
 0x3cd   : > { %13987 = vmatpush1.bf16.msra.mxu1 %v19936_v43  ;;  %v23192_v43 = vrot.slane %v441_v46, %v21989_v50  ;;  %v20092_v46 = vld [vmem:[%s21916_s4 + $0xfb0] ss:$8 sps:$4 sm:$0xff]  }
 0x3ce   : > { %15299 = vmatpush1.bf16.msra.mxu0 %v19939_v36  ;;  %13988 = vmatprep.subr.bf16.mxu1 %v19944_v17  ;;  %v23195_v36 = vrot.slane %v713_v47, %v21989_v50  ;;  %v20028_v17 = vld [vmem:[%s21916_s4 + $0xf04] ss:$8 sps:$4 sm:$0xff]   ;;  %v20095_v47 = vld [vmem:[%s21916_s4 + $0x2fb0] ss:$8 sps:$4 sm:$0xff]  }
 0x3cf   : > { %15300 = vmatprep.subr.bf16.mxu0 %v19947_v18  ;;  %v20031_v18 = vld [vmem:[%s21916_s4 + $0x2f04] ss:$8 sps:$4 sm:$0xff]  }
 0x3d1   : > { %13989 = vmatpush1.bf16.msra.mxu1 %v19942_v57  ;;  %v457_v57 = vcombine.high %v23192_v43, %v23192_v43 }
 0x3d2   : > { %15301 = vmatpush1.bf16.msra.mxu0 %v19945_v58  ;;  %13990 = vmatprep.subr.bf16.mxu1 %v19950_v21  ;;  %v729_v58 = vcombine.high %v23195_v36, %v23195_v36  ;;  %v1022_v21 = vpack.c.bf16 %v23109_v63, %v23109_v63  ;;  %v20032_v63 = vld [vmem:[%s21916_s4 + $0xf10] ss:$8 sps:$4 sm:$0xff]  }
 0x3d3   : > { %15302 = vmatprep.subr.bf16.mxu0 %v19953_v22  ;;  %v1086_v22 = vpack.c.bf16 %v23113_v0, %v23113_v0  ;;  %v20035_v0 = vld [vmem:[%s21916_s4 + $0x2f10] ss:$8 sps:$4 sm:$0xff]  }
 0x3d5   : > { %13991 = vmatpush1.bf16.msra.mxu1 %v19948_v23  ;;  %v20026_v23 = vld [vmem:[%s21916_s4 + $0xf00] ss:$8 sps:$4 sm:$0xff]  }
 0x3d6   : > { %15303 = vmatpush1.bf16.msra.mxu0 %v19951_v24  ;;  %13992 = vmatprep.subr.bf16.mxu1 %v19956_v3  ;;  %v20029_v24 = vld [vmem:[%s21916_s4 + $0x2f00] ss:$8 sps:$4 sm:$0xff]   ;;  %v20034_v3 = vld [vmem:[%s21916_s4 + $0xf14] ss:$8 sps:$4 sm:$0xff]  }
 0x3d7   : > { %15304 = vmatprep.subr.bf16.mxu0 %v19959_v4  ;;  %v20037_v4 = vld [vmem:[%s21916_s4 + $0x2f14] ss:$8 sps:$4 sm:$0xff]  }
 0x3d9   : > { %13993 = vmatpush1.bf16.msra.mxu1 %v19954_v25  ;;  %v1025_v25 = vpack.c.bf16 %v457_v57, %v457_v57  ;;  %v20112_v57 = vld [vmem:[%s21916_s4 + $0xfe4] ss:$8 sps:$4 sm:$0xff]  }
 0x3da   : > { %15305 = vmatpush1.bf16.msra.mxu0 %v19957_v26  ;;  %13994 = vmatprep.subr.bf16.mxu1 %v19962_v27  ;;  %v1089_v26 = vpack.c.bf16 %v729_v58, %v729_v58  ;;  %v20040_v27 = vld [vmem:[%s21916_s4 + $0xf24] ss:$8 sps:$4 sm:$0xff]  }
 0x3db   : > { %15306 = vmatprep.subr.bf16.mxu0 %v19965_v28  ;;  %v20043_v28 = vld [vmem:[%s21916_s4 + $0x2f24] ss:$8 sps:$4 sm:$0xff]  }
 0x3dc   : > { %v20115_v58 = vld [vmem:[%s21916_s4 + $0x2fe4] ss:$8 sps:$4 sm:$0xff]  }
 0x3dd   : > { %13995 = vmatpush1.bf16.msra.mxu1 %v19960_v31  ;;  %v20038_v31 = vld [vmem:[%s21916_s4 + $0xf20] ss:$8 sps:$4 sm:$0xff]  }
 0x3de   : > { %15307 = vmatpush1.bf16.msra.mxu0 %v19963_v32  ;;  %13996 = vmatprep.subr.bf16.mxu1 %v19968_v11  ;;  %v20041_v32 = vld [vmem:[%s21916_s4 + $0x2f20] ss:$8 sps:$4 sm:$0xff]   ;;  %v20046_v11 = vld [vmem:[%s21916_s4 + $0xf34] ss:$8 sps:$4 sm:$0xff]  }
 0x3df   : > { %15308 = vmatprep.subr.bf16.mxu0 %v19971_v12  ;;  %v20049_v12 = vld [vmem:[%s21916_s4 + $0x2f34] ss:$8 sps:$4 sm:$0xff]  }
 0x3e1   : > { %13997 = vmatpush1.bf16.msra.mxu1 %v19966_v7  ;;  %v20044_v7 = vld [vmem:[%s21916_s4 + $0xf30] ss:$8 sps:$4 sm:$0xff]  }
 0x3e2   : > { %15309 = vmatpush1.bf16.msra.mxu0 %v19969_v8  ;;  %13998 = vmatprep.subr.bf16.mxu1 %v19974_v35  ;;  %v20047_v8 = vld [vmem:[%s21916_s4 + $0x2f30] ss:$8 sps:$4 sm:$0xff]   ;;  %v20052_v35 = vld [vmem:[%s21916_s4 + $0xf44] ss:$8 sps:$4 sm:$0xff]  }
 0x3e3   : > { %15310 = vmatprep.subr.bf16.mxu0 %v19977_v37  ;;  %v20055_v37 = vld [vmem:[%s21916_s4 + $0x2f44] ss:$8 sps:$4 sm:$0xff]  }
 0x3e5   : > { %13999 = vmatpush1.bf16.msra.mxu1 %v19972_v40  ;;  %v20050_v40 = vld [vmem:[%s21916_s4 + $0xf40] ss:$8 sps:$4 sm:$0xff]  }
 0x3e6   : > { %15311 = vmatpush1.bf16.msra.mxu0 %v19975_v42  ;;  %14000 = vmatprep.subr.bf16.mxu1 %v19980_v45  ;;  %v20053_v42 = vld [vmem:[%s21916_s4 + $0x2f40] ss:$8 sps:$4 sm:$0xff]   ;;  %v20058_v45 = vld [vmem:[%s21916_s4 + $0xf54] ss:$8 sps:$4 sm:$0xff]  }
 0x3e7   : > { %15312 = vmatprep.subr.bf16.mxu0 %v19983_v15  ;;  %v20061_v15 = vld [vmem:[%s21916_s4 + $0x2f54] ss:$8 sps:$4 sm:$0xff]  }
 0x3e9   : > { %14001 = vmatpush1.bf16.msra.mxu1 %v19978_v19  ;;  %v20056_v19 = vld [vmem:[%s21916_s4 + $0xf50] ss:$8 sps:$4 sm:$0xff]  }
 0x3ea   : > { %15313 = vmatpush1.bf16.msra.mxu0 %v19981_v20  ;;  %14002 = vmatprep.subr.bf16.mxu1 %v19986_v48  ;;  %v20059_v20 = vld [vmem:[%s21916_s4 + $0x2f50] ss:$8 sps:$4 sm:$0xff]   ;;  %v20064_v48 = vld [vmem:[%s21916_s4 + $0xf64] ss:$8 sps:$4 sm:$0xff]  }
 0x3eb   : > { %15314 = vmatprep.subr.bf16.mxu0 %v19989_v49  ;;  %v20067_v49 = vld [vmem:[%s21916_s4 + $0x2f64] ss:$8 sps:$4 sm:$0xff]  }
 0x3ed   : > { %14003 = vmatpush1.bf16.msra.mxu1 %v19984_v53  ;;  %v20062_v53 = vld [vmem:[%s21916_s4 + $0xf60] ss:$8 sps:$4 sm:$0xff]  }
 0x3ee   : > { %15315 = vmatpush1.bf16.msra.mxu0 %v19987_v54  ;;  %14004 = vmatprep.subr.bf16.mxu1 %v19992_v29  ;;  %v20065_v54 = vld [vmem:[%s21916_s4 + $0x2f60] ss:$8 sps:$4 sm:$0xff]   ;;  %v20070_v29 = vld [vmem:[%s21916_s4 + $0xf74] ss:$8 sps:$4 sm:$0xff]  }
 0x3ef   : > { %15316 = vmatprep.subr.bf16.mxu0 %v19995_v30  ;;  %v20073_v30 = vld [vmem:[%s21916_s4 + $0x2f74] ss:$8 sps:$4 sm:$0xff]  }
 0x3f1   : > { %14005 = vmatpush1.bf16.msra.mxu1 %v19990_v55  ;;  %v20068_v55 = vld [vmem:[%s21916_s4 + $0xf70] ss:$8 sps:$4 sm:$0xff]  }
 0x3f2   : > { %15317 = vmatpush1.bf16.msra.mxu0 %v19993_v56  ;;  %14006 = vmatprep.subr.bf16.mxu1 %v19998_v59  ;;  %v20071_v56 = vld [vmem:[%s21916_s4 + $0x2f70] ss:$8 sps:$4 sm:$0xff]   ;;  %v20076_v59 = vld [vmem:[%s21916_s4 + $0xf84] ss:$8 sps:$4 sm:$0xff]  }
 0x3f3   : > { %15318 = vmatprep.subr.bf16.mxu0 %v20001_v38  ;;  %v20079_v38 = vld [vmem:[%s21916_s4 + $0x2f84] ss:$8 sps:$4 sm:$0xff]  }
 0x3f5   : > { %14007 = vmatpush1.bf16.msra.mxu1 %v19996_v61  ;;  %v20074_v61 = vld [vmem:[%s21916_s4 + $0xf80] ss:$8 sps:$4 sm:$0xff]  }
 0x3f6   : > { %15319 = vmatpush1.bf16.msra.mxu0 %v19999_v62  ;;  %14008 = vmatprep.subr.bf16.mxu1 %v20004_v16  ;;  %v20077_v62 = vld [vmem:[%s21916_s4 + $0x2f80] ss:$8 sps:$4 sm:$0xff]   ;;  %v20082_v16 = vld [vmem:[%s21916_s4 + $0xf94] ss:$8 sps:$4 sm:$0xff]  }
 0x3f7   : > { %15320 = vmatprep.subr.bf16.mxu0 %v20007_v39  ;;  %v20085_v39 = vld [vmem:[%s21916_s4 + $0x2f94] ss:$8 sps:$4 sm:$0xff]  }
 0x3f9   : > { %14009 = vmatpush1.bf16.msra.mxu1 %v20002_v33  ;;  %v20080_v33 = vld [vmem:[%s21916_s4 + $0xf90] ss:$8 sps:$4 sm:$0xff]  }
 0x3fa   : > { %15321 = vmatpush1.bf16.msra.mxu0 %v20005_v34  ;;  %14010 = vmatprep.subr.bf16.mxu1 %v20010_v1  ;;  %v20083_v34 = vld [vmem:[%s21916_s4 + $0x2f90] ss:$8 sps:$4 sm:$0xff]   ;;  %v20088_v1 = vld [vmem:[%s21916_s4 + $0xfa4] ss:$8 sps:$4 sm:$0xff]  }
 0x3fb   : > { %15322 = vmatprep.subr.bf16.mxu0 %v20013_v2  ;;  %v20091_v2 = vld [vmem:[%s21916_s4 + $0x2fa4] ss:$8 sps:$4 sm:$0xff]  }
 0x3fd   : > { %14011 = vmatpush1.bf16.msra.mxu1 %v20008_v5  ;;  %v20086_v5 = vld [vmem:[%s21916_s4 + $0xfa0] ss:$8 sps:$4 sm:$0xff]  }
 0x3fe   : > { %15323 = vmatpush1.bf16.msra.mxu0 %v20011_v6  ;;  %14012 = vmatprep.subr.bf16.mxu1 %v20016_v51  ;;  %v20089_v6 = vld [vmem:[%s21916_s4 + $0x2fa0] ss:$8 sps:$4 sm:$0xff]   ;;  %v20094_v51 = vld [vmem:[%s21916_s4 + $0xfb4] ss:$8 sps:$4 sm:$0xff]  }
 0x3ff   : > { %15324 = vmatprep.subr.bf16.mxu0 %v20019_v52  ;;  %v20097_v52 = vld [vmem:[%s21916_s4 + $0x2fb4] ss:$8 sps:$4 sm:$0xff]  }
 0x401   : > { %14013 = vmatpush1.bf16.msra.mxu1 %v20014_v9  ;;  %v20100_v9 = vld [vmem:[%s21916_s4 + $0xfc4] ss:$8 sps:$4 sm:$0xff]  }
 0x402   : > { %15325 = vmatpush1.bf16.msra.mxu0 %v20017_v10  ;;  %14014 = vmatprep.subr.bf16.mxu1 %v20022_v13  ;;  %v20103_v10 = vld [vmem:[%s21916_s4 + $0x2fc4] ss:$8 sps:$4 sm:$0xff]   ;;  %v20098_v13 = vld [vmem:[%s21916_s4 + $0xfc0] ss:$8 sps:$4 sm:$0xff]  }
 0x403   : > { %15326 = vmatprep.subr.bf16.mxu0 %v20025_v14  ;;  %v20101_v14 = vld [vmem:[%s21916_s4 + $0x2fc0] ss:$8 sps:$4 sm:$0xff]  }
 0x405   : > { %14015 = vmatpush1.bf16.msra.mxu1 %v20020_v41  ;;  %v20106_v41 = vld [vmem:[%s21916_s4 + $0xfd4] ss:$8 sps:$4 sm:$0xff]  }
 0x406   : > { %15327 = vmatpush1.bf16.msra.mxu0 %v20023_v60  ;;  %14025 = vmatprep.subr.bf16.mxu1 %v20028_v17  ;;  %v20109_v60 = vld [vmem:[%s21916_s4 + $0x2fd4] ss:$8 sps:$4 sm:$0xff]   ;;  %v20104_v17 = vld [vmem:[%s21916_s4 + $0xfd0] ss:$8 sps:$4 sm:$0xff]  }
 0x407   : > { %15337 = vmatprep.subr.bf16.mxu0 %v20031_v18  ;;  %v20107_v18 = vld [vmem:[%s21916_s4 + $0x2fd0] ss:$8 sps:$4 sm:$0xff]  }
 0x408   : > { %14017 = vmatmul.mubr.bf16.vlgmr.msra.gmra.mrb[0].mxu1 %v1022_v21  ;;  %v23266_v21 = vld [vmem:[%s21929_s29 + $0x40] sm:$0xff] }
 0x409   : > { %15329 = vmatmul.mubr.bf16.vlgmr.msra.gmra.mrb[0].mxu0 %v1086_v22  ;;  %14026 = vmatpush1.bf16.msra.mxu1 %v20026_v23  ;;  %v23269_v22 = vld [vmem:[%s21929_s29 + $0xc0] sm:$0xff] }
 0x40a   : > { %15338 = vmatpush1.bf16.msra.mxu0 %v20029_v24  ;;  %14027 = vmatprep.subr.bf16.mxu1 %v20034_v3  ;;  %v20110_v23 = vld [vmem:[%s21916_s4 + $0xfe0] ss:$8 sps:$4 sm:$0xff]   ;;  %v20118_v3 = vld [vmem:[%s21916_s4 + $0xff4] ss:$8 sps:$4 sm:$0xff]  }
 0x40b   : > { %15339 = vmatprep.subr.bf16.mxu0 %v20037_v4  ;;  %14057 = vmatprep.mubr.bf16.mxu1 %v1025_v25  ;;  %v20113_v24 = vld [vmem:[%s21916_s4 + $0x2fe0] ss:$8 sps:$4 sm:$0xff]   ;;  %v20121_v4 = vld [vmem:[%s21916_s4 + $0x2ff4] ss:$8 sps:$4 sm:$0xff]   ;;  %v23277_v25 = vrot.slane %v23266_v21, %v21989_v50 }
 0x40c   : > { %15369 = vmatprep.mubr.bf16.mxu0 %v1089_v26  ;;  %v23281_v26 = vrot.slane %v23269_v22, %v21989_v50 }
 0x40d   : > { %14028 = vmatpush1.bf16.msra.mxu1 %v20032_v63  ;;  %v20116_v63 = vld [vmem:[%s21916_s4 + $0xff0] ss:$8 sps:$4 sm:$0xff]  }
 0x40e   : > { %15340 = vmatpush1.bf16.msra.mxu0 %v20035_v0  ;;  %14029 = vmatprep.subr.bf16.mxu1 %v20040_v27  ;;  %v20119_v0 = vld [vmem:[%s21916_s4 + $0x2ff0] ss:$8 sps:$4 sm:$0xff]   ;;  %v20125_v27 = vld [vmem:[%s21916_s4 + $0x1004] ss:$8 sps:$4 sm:$0xff]  }
 0x40f   : > { %15341 = vmatprep.subr.bf16.mxu0 %v20043_v28  ;;  %v20129_v28 = vld [vmem:[%s21916_s4 + $0x3004] ss:$8 sps:$4 sm:$0xff]  }
 0x411   : > { %14030 = vmatpush1.bf16.msra.mxu1 %v20038_v31  ;;  %v473_v31 = vcombine.high %v23277_v25, %v23277_v25 }
 0x412   : > { %15342 = vmatpush1.bf16.msra.mxu0 %v20041_v32  ;;  %14031 = vmatprep.subr.bf16.mxu1 %v20046_v11  ;;  %v745_v32 = vcombine.high %v23281_v26, %v23281_v26  ;;  %v1024_v11 = vpack.c.bf16 %v23192_v43, %v23192_v43  ;;  %v20130_v43 = vld [vmem:[%s21916_s4 + $0x1010] ss:$8 sps:$4 sm:$0xff]  }
 0x413   : > { %15343 = vmatprep.subr.bf16.mxu0 %v20049_v12  ;;  %v1088_v12 = vpack.c.bf16 %v23195_v36, %v23195_v36  ;;  %v20133_v36 = vld [vmem:[%s21916_s4 + $0x3010] ss:$8 sps:$4 sm:$0xff]  }
 0x415   : > { %14032 = vmatpush1.bf16.msra.mxu1 %v20044_v7  ;;  %v20123_v7 = vld [vmem:[%s21916_s4 + $0x1000] ss:$8 sps:$4 sm:$0xff]  }
 0x416   : > { %15344 = vmatpush1.bf16.msra.mxu0 %v20047_v8  ;;  %14033 = vmatprep.subr.bf16.mxu1 %v20052_v35  ;;  %v20127_v8 = vld [vmem:[%s21916_s4 + $0x3000] ss:$8 sps:$4 sm:$0xff]   ;;  %v20132_v35 = vld [vmem:[%s21916_s4 + $0x1014] ss:$8 sps:$4 sm:$0xff]  }
 0x417   : > { %15345 = vmatprep.subr.bf16.mxu0 %v20055_v37  ;;  %v20135_v37 = vld [vmem:[%s21916_s4 + $0x3014] ss:$8 sps:$4 sm:$0xff]  }
 0x419   : > { %14034 = vmatpush1.bf16.msra.mxu1 %v20050_v40  ;;  %v1027_v40 = vpack.c.bf16 %v473_v31, %v473_v31  ;;  %v20202_v31 = vld [vmem:[%s21916_s4 + $0x10d0] ss:$8 sps:$4 sm:$0xff]  }
 0x41a   : > { %15346 = vmatpush1.bf16.msra.mxu0 %v20053_v42  ;;  %14035 = vmatprep.subr.bf16.mxu1 %v20058_v45  ;;  %v1091_v42 = vpack.c.bf16 %v745_v32, %v745_v32  ;;  %v20138_v45 = vld [vmem:[%s21916_s4 + $0x1024] ss:$8 sps:$4 sm:$0xff]   ;;  %v20205_v32 = vld [vmem:[%s21916_s4 + $0x30d0] ss:$8 sps:$4 sm:$0xff]  }
 0x41b   : > { %15347 = vmatprep.subr.bf16.mxu0 %v20061_v15  ;;  %v20141_v15 = vld [vmem:[%s21916_s4 + $0x3024] ss:$8 sps:$4 sm:$0xff]  }
 0x41d   : > { %14036 = vmatpush1.bf16.msra.mxu1 %v20056_v19  ;;  %v20136_v19 = vld [vmem:[%s21916_s4 + $0x1020] ss:$8 sps:$4 sm:$0xff]  }
 0x41e   : > { %15348 = vmatpush1.bf16.msra.mxu0 %v20059_v20  ;;  %14037 = vmatprep.subr.bf16.mxu1 %v20064_v48  ;;  %v20139_v20 = vld [vmem:[%s21916_s4 + $0x3020] ss:$8 sps:$4 sm:$0xff]   ;;  %v20144_v48 = vld [vmem:[%s21916_s4 + $0x1034] ss:$8 sps:$4 sm:$0xff]  }
 0x41f   : > { %15349 = vmatprep.subr.bf16.mxu0 %v20067_v49  ;;  %v20147_v49 = vld [vmem:[%s21916_s4 + $0x3034] ss:$8 sps:$4 sm:$0xff]  }
 0x421   : > { %14038 = vmatpush1.bf16.msra.mxu1 %v20062_v53  ;;  %v20142_v53 = vld [vmem:[%s21916_s4 + $0x1030] ss:$8 sps:$4 sm:$0xff]  }
 0x422   : > { %15350 = vmatpush1.bf16.msra.mxu0 %v20065_v54  ;;  %14039 = vmatprep.subr.bf16.mxu1 %v20070_v29  ;;  %v20145_v54 = vld [vmem:[%s21916_s4 + $0x3030] ss:$8 sps:$4 sm:$0xff]   ;;  %v20150_v29 = vld [vmem:[%s21916_s4 + $0x1044] ss:$8 sps:$4 sm:$0xff]  }
 0x423   : > { %15351 = vmatprep.subr.bf16.mxu0 %v20073_v30  ;;  %v20153_v30 = vld [vmem:[%s21916_s4 + $0x3044] ss:$8 sps:$4 sm:$0xff]  }
 0x425   : > { %14040 = vmatpush1.bf16.msra.mxu1 %v20068_v55  ;;  %v20148_v55 = vld [vmem:[%s21916_s4 + $0x1040] ss:$8 sps:$4 sm:$0xff]  }
 0x426   : > { %15352 = vmatpush1.bf16.msra.mxu0 %v20071_v56  ;;  %14041 = vmatprep.subr.bf16.mxu1 %v20076_v59  ;;  %v20151_v56 = vld [vmem:[%s21916_s4 + $0x3040] ss:$8 sps:$4 sm:$0xff]   ;;  %v20156_v59 = vld [vmem:[%s21916_s4 + $0x1054] ss:$8 sps:$4 sm:$0xff]  }
 0x427   : > { %15353 = vmatprep.subr.bf16.mxu0 %v20079_v38  ;;  %v20159_v38 = vld [vmem:[%s21916_s4 + $0x3054] ss:$8 sps:$4 sm:$0xff]  }
 0x429   : > { %14042 = vmatpush1.bf16.msra.mxu1 %v20074_v61  ;;  %v20154_v61 = vld [vmem:[%s21916_s4 + $0x1050] ss:$8 sps:$4 sm:$0xff]  }
 0x42a   : > { %15354 = vmatpush1.bf16.msra.mxu0 %v20077_v62  ;;  %14043 = vmatprep.subr.bf16.mxu1 %v20082_v16  ;;  %v20157_v62 = vld [vmem:[%s21916_s4 + $0x3050] ss:$8 sps:$4 sm:$0xff]   ;;  %v20162_v16 = vld [vmem:[%s21916_s4 + $0x1064] ss:$8 sps:$4 sm:$0xff]  }
 0x42b   : > { %15355 = vmatprep.subr.bf16.mxu0 %v20085_v39  ;;  %v20165_v39 = vld [vmem:[%s21916_s4 + $0x3064] ss:$8 sps:$4 sm:$0xff]  }
 0x42d   : > { %14044 = vmatpush1.bf16.msra.mxu1 %v20080_v33  ;;  %v20160_v33 = vld [vmem:[%s21916_s4 + $0x1060] ss:$8 sps:$4 sm:$0xff]  }
 0x42e   : > { %15356 = vmatpush1.bf16.msra.mxu0 %v20083_v34  ;;  %14045 = vmatprep.subr.bf16.mxu1 %v20088_v1  ;;  %v20163_v34 = vld [vmem:[%s21916_s4 + $0x3060] ss:$8 sps:$4 sm:$0xff]   ;;  %v20168_v1 = vld [vmem:[%s21916_s4 + $0x1074] ss:$8 sps:$4 sm:$0xff]  }
 0x42f   : > { %15357 = vmatprep.subr.bf16.mxu0 %v20091_v2  ;;  %v20171_v2 = vld [vmem:[%s21916_s4 + $0x3074] ss:$8 sps:$4 sm:$0xff]  }
 0x431   : > { %14046 = vmatpush1.bf16.msra.mxu1 %v20086_v5  ;;  %v20166_v5 = vld [vmem:[%s21916_s4 + $0x1070] ss:$8 sps:$4 sm:$0xff]  }
 0x432   : > { %15358 = vmatpush1.bf16.msra.mxu0 %v20089_v6  ;;  %14047 = vmatprep.subr.bf16.mxu1 %v20094_v51  ;;  %v20169_v6 = vld [vmem:[%s21916_s4 + $0x3070] ss:$8 sps:$4 sm:$0xff]   ;;  %v20174_v51 = vld [vmem:[%s21916_s4 + $0x1084] ss:$8 sps:$4 sm:$0xff]  }
 0x433   : > { %15359 = vmatprep.subr.bf16.mxu0 %v20097_v52  ;;  %v20177_v52 = vld [vmem:[%s21916_s4 + $0x3084] ss:$8 sps:$4 sm:$0xff]  }
 0x435   : > { %14048 = vmatpush1.bf16.msra.mxu1 %v20092_v46  ;;  %v20172_v46 = vld [vmem:[%s21916_s4 + $0x1080] ss:$8 sps:$4 sm:$0xff]  }
 0x436   : > { %15360 = vmatpush1.bf16.msra.mxu0 %v20095_v47  ;;  %14049 = vmatprep.subr.bf16.mxu1 %v20100_v9  ;;  %v20175_v47 = vld [vmem:[%s21916_s4 + $0x3080] ss:$8 sps:$4 sm:$0xff]   ;;  %v20180_v9 = vld [vmem:[%s21916_s4 + $0x1094] ss:$8 sps:$4 sm:$0xff]  }
 0x437   : > { %15361 = vmatprep.subr.bf16.mxu0 %v20103_v10  ;;  %v20183_v10 = vld [vmem:[%s21916_s4 + $0x3094] ss:$8 sps:$4 sm:$0xff]  }
 0x439   : > { %14050 = vmatpush1.bf16.msra.mxu1 %v20098_v13  ;;  %v20178_v13 = vld [vmem:[%s21916_s4 + $0x1090] ss:$8 sps:$4 sm:$0xff]  }
 0x43a   : > { %15362 = vmatpush1.bf16.msra.mxu0 %v20101_v14  ;;  %14051 = vmatprep.subr.bf16.mxu1 %v20106_v41  ;;  %v20181_v14 = vld [vmem:[%s21916_s4 + $0x3090] ss:$8 sps:$4 sm:$0xff]   ;;  %v20186_v41 = vld [vmem:[%s21916_s4 + $0x10a4] ss:$8 sps:$4 sm:$0xff]  }
 0x43b   : > { %15363 = vmatprep.subr.bf16.mxu0 %v20109_v60  ;;  %v20189_v60 = vld [vmem:[%s21916_s4 + $0x30a4] ss:$8 sps:$4 sm:$0xff]  }
 0x43d   : > { %14052 = vmatpush1.bf16.msra.mxu1 %v20104_v17  ;;  %v20184_v17 = vld [vmem:[%s21916_s4 + $0x10a0] ss:$8 sps:$4 sm:$0xff]  }
 0x43e   : > { %15364 = vmatpush1.bf16.msra.mxu0 %v20107_v18  ;;  %14053 = vmatprep.subr.bf16.mxu1 %v20112_v57  ;;  %v20187_v18 = vld [vmem:[%s21916_s4 + $0x30a0] ss:$8 sps:$4 sm:$0xff]   ;;  %v20192_v57 = vld [vmem:[%s21916_s4 + $0x10b4] ss:$8 sps:$4 sm:$0xff]  }
 0x43f   : > { %15365 = vmatprep.subr.bf16.mxu0 %v20115_v58  ;;  %v20195_v58 = vld [vmem:[%s21916_s4 + $0x30b4] ss:$8 sps:$4 sm:$0xff]  }
 0x441   : > { %14054 = vmatpush1.bf16.msra.mxu1 %v20110_v23  ;;  %v20190_v23 = vld [vmem:[%s21916_s4 + $0x10b0] ss:$8 sps:$4 sm:$0xff]  }
 0x442   : > { %15366 = vmatpush1.bf16.msra.mxu0 %v20113_v24  ;;  %14055 = vmatprep.subr.bf16.mxu1 %v20118_v3  ;;  %v20193_v24 = vld [vmem:[%s21916_s4 + $0x30b0] ss:$8 sps:$4 sm:$0xff]   ;;  %v20198_v3 = vld [vmem:[%s21916_s4 + $0x10c4] ss:$8 sps:$4 sm:$0xff]  }
 0x443   : > { %15367 = vmatprep.subr.bf16.mxu0 %v20121_v4  ;;  %v20201_v4 = vld [vmem:[%s21916_s4 + $0x30c4] ss:$8 sps:$4 sm:$0xff]  }
 0x445   : > { %14056 = vmatpush1.bf16.msra.mxu1 %v20116_v63  ;;  %v20196_v63 = vld [vmem:[%s21916_s4 + $0x10c0] ss:$8 sps:$4 sm:$0xff]  }
 0x446   : > { %15368 = vmatpush1.bf16.msra.mxu0 %v20119_v0  ;;  %14066 = vmatprep.subr.bf16.mxu1 %v20125_v27  ;;  %v20199_v0 = vld [vmem:[%s21916_s4 + $0x30c0] ss:$8 sps:$4 sm:$0xff]   ;;  %v20204_v27 = vld [vmem:[%s21916_s4 + $0x10d4] ss:$8 sps:$4 sm:$0xff]  }
 0x447   : > { %15378 = vmatprep.subr.bf16.mxu0 %v20129_v28  ;;  %v20207_v28 = vld [vmem:[%s21916_s4 + $0x30d4] ss:$8 sps:$4 sm:$0xff]  }
 0x448   : > { %14058 = vmatmul.mubr.bf16.vlgmr.msra.gmra.mrb[0].mxu1 %v1024_v11  ;;  %v20210_v11 = vld [vmem:[%s21916_s4 + $0x10e4] ss:$8 sps:$4 sm:$0xff]  }
 0x449   : > { %15370 = vmatmul.mubr.bf16.vlgmr.msra.gmra.mrb[0].mxu0 %v1088_v12  ;;  %14067 = vmatpush1.bf16.msra.mxu1 %v20123_v7  ;;  %v20213_v12 = vld [vmem:[%s21916_s4 + $0x30e4] ss:$8 sps:$4 sm:$0xff]   ;;  %v458_v7 = vcombine.high %v23266_v21, %v23266_v21  ;;  %v20214_v21 = vld [vmem:[%s21916_s4 + $0x10f0] ss:$8 sps:$4 sm:$0xff]  }
 0x44a   : > { %15379 = vmatpush1.bf16.msra.mxu0 %v20127_v8  ;;  %14068 = vmatprep.subr.bf16.mxu1 %v20132_v35  ;;  %v730_v8 = vcombine.high %v23269_v22, %v23269_v22  ;;  %v20208_v35 = vld [vmem:[%s21916_s4 + $0x10e0] ss:$8 sps:$4 sm:$0xff]   ;;  %v20217_v22 = vld [vmem:[%s21916_s4 + $0x30f0] ss:$8 sps:$4 sm:$0xff]  }
 0x44b   : > { %15380 = vmatprep.subr.bf16.mxu0 %v20135_v37  ;;  %14098 = vmatprep.mubr.bf16.mxu1 %v1027_v40  ;;  %v20211_v37 = vld [vmem:[%s21916_s4 + $0x30e0] ss:$8 sps:$4 sm:$0xff]   ;;  %v20216_v40 = vld [vmem:[%s21916_s4 + $0x10f4] ss:$8 sps:$4 sm:$0xff]  }
 0x44c   : > { %15410 = vmatprep.mubr.bf16.mxu0 %v1091_v42  ;;  %v20219_v42 = vld [vmem:[%s21916_s4 + $0x30f4] ss:$8 sps:$4 sm:$0xff]  }
 0x44d   : > { %14069 = vmatpush1.bf16.msra.mxu1 %v20130_v43  ;;  %v23360_v43 = vrot.slane %v458_v7, %v21989_v50  ;;  %v20286_v7 = vld [vmem:[%s21916_s4 + $0x11b0] ss:$8 sps:$4 sm:$0xff]  }
 0x44e   : > { %15381 = vmatpush1.bf16.msra.mxu0 %v20133_v36  ;;  %14070 = vmatprep.subr.bf16.mxu1 %v20138_v45  ;;  %v23363_v36 = vrot.slane %v730_v8, %v21989_v50  ;;  %v20222_v45 = vld [vmem:[%s21916_s4 + $0x1104] ss:$8 sps:$4 sm:$0xff]   ;;  %v20289_v8 = vld [vmem:[%s21916_s4 + $0x31b0] ss:$8 sps:$4 sm:$0xff]  }
 0x44f   : > { %15382 = vmatprep.subr.bf16.mxu0 %v20141_v15  ;;  %v20225_v15 = vld [vmem:[%s21916_s4 + $0x3104] ss:$8 sps:$4 sm:$0xff]  }
 0x451   : > { %14071 = vmatpush1.bf16.msra.mxu1 %v20136_v19  ;;  %v474_v19 = vcombine.high %v23360_v43, %v23360_v43 }
 0x452   : > { %15383 = vmatpush1.bf16.msra.mxu0 %v20139_v20  ;;  %14072 = vmatprep.subr.bf16.mxu1 %v20144_v48  ;;  %v746_v20 = vcombine.high %v23363_v36, %v23363_v36  ;;  %v1026_v48 = vpack.c.bf16 %v23277_v25, %v23277_v25  ;;  %v20226_v25 = vld [vmem:[%s21916_s4 + $0x1110] ss:$8 sps:$4 sm:$0xff]  }
 0x453   : > { %15384 = vmatprep.subr.bf16.mxu0 %v20147_v49  ;;  %v1090_v49 = vpack.c.bf16 %v23281_v26, %v23281_v26  ;;  %v20229_v26 = vld [vmem:[%s21916_s4 + $0x3110] ss:$8 sps:$4 sm:$0xff]  }
 0x455   : > { %14073 = vmatpush1.bf16.msra.mxu1 %v20142_v53  ;;  %v20220_v53 = vld [vmem:[%s21916_s4 + $0x1100] ss:$8 sps:$4 sm:$0xff]  }
 0x456   : > { %15385 = vmatpush1.bf16.msra.mxu0 %v20145_v54  ;;  %14074 = vmatprep.subr.bf16.mxu1 %v20150_v29  ;;  %v20223_v54 = vld [vmem:[%s21916_s4 + $0x3100] ss:$8 sps:$4 sm:$0xff]   ;;  %v20228_v29 = vld [vmem:[%s21916_s4 + $0x1114] ss:$8 sps:$4 sm:$0xff]  }
 0x457   : > { %15386 = vmatprep.subr.bf16.mxu0 %v20153_v30  ;;  %v20231_v30 = vld [vmem:[%s21916_s4 + $0x3114] ss:$8 sps:$4 sm:$0xff]  }
 0x459   : > { %14075 = vmatpush1.bf16.msra.mxu1 %v20148_v55  ;;  %v1029_v55 = vpack.c.bf16 %v474_v19, %v474_v19  ;;  %v20306_v19 = vld [vmem:[%s21916_s4 + $0x11e4] ss:$8 sps:$4 sm:$0xff]  }
 0x45a   : > { %15387 = vmatpush1.bf16.msra.mxu0 %v20151_v56  ;;  %14076 = vmatprep.subr.bf16.mxu1 %v20156_v59  ;;  %v1093_v56 = vpack.c.bf16 %v746_v20, %v746_v20  ;;  %v20234_v59 = vld [vmem:[%s21916_s4 + $0x1124] ss:$8 sps:$4 sm:$0xff]  }
 0x45b   : > { %15388 = vmatprep.subr.bf16.mxu0 %v20159_v38  ;;  %v20237_v38 = vld [vmem:[%s21916_s4 + $0x3124] ss:$8 sps:$4 sm:$0xff]  }
 0x45c   : > { %v20309_v20 = vld [vmem:[%s21916_s4 + $0x31e4] ss:$8 sps:$4 sm:$0xff]  }
 0x45d   : > { %14077 = vmatpush1.bf16.msra.mxu1 %v20154_v61  ;;  %v20232_v61 = vld [vmem:[%s21916_s4 + $0x1120] ss:$8 sps:$4 sm:$0xff]  }
 0x45e   : > { %15389 = vmatpush1.bf16.msra.mxu0 %v20157_v62  ;;  %14078 = vmatprep.subr.bf16.mxu1 %v20162_v16  ;;  %v20235_v62 = vld [vmem:[%s21916_s4 + $0x3120] ss:$8 sps:$4 sm:$0xff]   ;;  %v20240_v16 = vld [vmem:[%s21916_s4 + $0x1134] ss:$8 sps:$4 sm:$0xff]  }
 0x45f   : > { %15390 = vmatprep.subr.bf16.mxu0 %v20165_v39  ;;  %v20243_v39 = vld [vmem:[%s21916_s4 + $0x3134] ss:$8 sps:$4 sm:$0xff]  }
 0x461   : > { %14079 = vmatpush1.bf16.msra.mxu1 %v20160_v33  ;;  %v20238_v33 = vld [vmem:[%s21916_s4 + $0x1130] ss:$8 sps:$4 sm:$0xff]  }
 0x462   : > { %15391 = vmatpush1.bf16.msra.mxu0 %v20163_v34  ;;  %14080 = vmatprep.subr.bf16.mxu1 %v20168_v1  ;;  %v20241_v34 = vld [vmem:[%s21916_s4 + $0x3130] ss:$8 sps:$4 sm:$0xff]   ;;  %v20246_v1 = vld [vmem:[%s21916_s4 + $0x1144] ss:$8 sps:$4 sm:$0xff]  }
 0x463   : > { %15392 = vmatprep.subr.bf16.mxu0 %v20171_v2  ;;  %v20249_v2 = vld [vmem:[%s21916_s4 + $0x3144] ss:$8 sps:$4 sm:$0xff]  }
 0x465   : > { %14081 = vmatpush1.bf16.msra.mxu1 %v20166_v5  ;;  %v20244_v5 = vld [vmem:[%s21916_s4 + $0x1140] ss:$8 sps:$4 sm:$0xff]  }
 0x466   : > { %15393 = vmatpush1.bf16.msra.mxu0 %v20169_v6  ;;  %14082 = vmatprep.subr.bf16.mxu1 %v20174_v51  ;;  %v20247_v6 = vld [vmem:[%s21916_s4 + $0x3140] ss:$8 sps:$4 sm:$0xff]   ;;  %v20252_v51 = vld [vmem:[%s21916_s4 + $0x1154] ss:$8 sps:$4 sm:$0xff]  }
 0x467   : > { %15394 = vmatprep.subr.bf16.mxu0 %v20177_v52  ;;  %v20255_v52 = vld [vmem:[%s21916_s4 + $0x3154] ss:$8 sps:$4 sm:$0xff]  }
 0x469   : > { %14083 = vmatpush1.bf16.msra.mxu1 %v20172_v46  ;;  %v20250_v46 = vld [vmem:[%s21916_s4 + $0x1150] ss:$8 sps:$4 sm:$0xff]  }
 0x46a   : > { %15395 = vmatpush1.bf16.msra.mxu0 %v20175_v47  ;;  %14084 = vmatprep.subr.bf16.mxu1 %v20180_v9  ;;  %v20253_v47 = vld [vmem:[%s21916_s4 + $0x3150] ss:$8 sps:$4 sm:$0xff]   ;;  %v20258_v9 = vld [vmem:[%s21916_s4 + $0x1164] ss:$8 sps:$4 sm:$0xff]  }
 0x46b   : > { %15396 = vmatprep.subr.bf16.mxu0 %v20183_v10  ;;  %v20261_v10 = vld [vmem:[%s21916_s4 + $0x3164] ss:$8 sps:$4 sm:$0xff]  }
 0x46d   : > { %14085 = vmatpush1.bf16.msra.mxu1 %v20178_v13  ;;  %v20256_v13 = vld [vmem:[%s21916_s4 + $0x1160] ss:$8 sps:$4 sm:$0xff]  }
 0x46e   : > { %15397 = vmatpush1.bf16.msra.mxu0 %v20181_v14  ;;  %14086 = vmatprep.subr.bf16.mxu1 %v20186_v41  ;;  %v20259_v14 = vld [vmem:[%s21916_s4 + $0x3160] ss:$8 sps:$4 sm:$0xff]   ;;  %v20264_v41 = vld [vmem:[%s21916_s4 + $0x1174] ss:$8 sps:$4 sm:$0xff]  }
 0x46f   : > { %15398 = vmatprep.subr.bf16.mxu0 %v20189_v60  ;;  %v20267_v60 = vld [vmem:[%s21916_s4 + $0x3174] ss:$8 sps:$4 sm:$0xff]  }
 0x471   : > { %14087 = vmatpush1.bf16.msra.mxu1 %v20184_v17  ;;  %v20262_v17 = vld [vmem:[%s21916_s4 + $0x1170] ss:$8 sps:$4 sm:$0xff]  }
 0x472   : > { %15399 = vmatpush1.bf16.msra.mxu0 %v20187_v18  ;;  %14088 = vmatprep.subr.bf16.mxu1 %v20192_v57  ;;  %v20265_v18 = vld [vmem:[%s21916_s4 + $0x3170] ss:$8 sps:$4 sm:$0xff]   ;;  %v20270_v57 = vld [vmem:[%s21916_s4 + $0x1184] ss:$8 sps:$4 sm:$0xff]  }
 0x473   : > { %15400 = vmatprep.subr.bf16.mxu0 %v20195_v58  ;;  %v20273_v58 = vld [vmem:[%s21916_s4 + $0x3184] ss:$8 sps:$4 sm:$0xff]  }
 0x475   : > { %14089 = vmatpush1.bf16.msra.mxu1 %v20190_v23  ;;  %v20268_v23 = vld [vmem:[%s21916_s4 + $0x1180] ss:$8 sps:$4 sm:$0xff]  }
 0x476   : > { %15401 = vmatpush1.bf16.msra.mxu0 %v20193_v24  ;;  %14090 = vmatprep.subr.bf16.mxu1 %v20198_v3  ;;  %v20271_v24 = vld [vmem:[%s21916_s4 + $0x3180] ss:$8 sps:$4 sm:$0xff]   ;;  %v20276_v3 = vld [vmem:[%s21916_s4 + $0x1194] ss:$8 sps:$4 sm:$0xff]  }
 0x477   : > { %15402 = vmatprep.subr.bf16.mxu0 %v20201_v4  ;;  %v20279_v4 = vld [vmem:[%s21916_s4 + $0x3194] ss:$8 sps:$4 sm:$0xff]  }
 0x479   : > { %14091 = vmatpush1.bf16.msra.mxu1 %v20196_v63  ;;  %v20274_v63 = vld [vmem:[%s21916_s4 + $0x1190] ss:$8 sps:$4 sm:$0xff]  }
 0x47a   : > { %15403 = vmatpush1.bf16.msra.mxu0 %v20199_v0  ;;  %14092 = vmatprep.subr.bf16.mxu1 %v20204_v27  ;;  %v20277_v0 = vld [vmem:[%s21916_s4 + $0x3190] ss:$8 sps:$4 sm:$0xff]   ;;  %v20282_v27 = vld [vmem:[%s21916_s4 + $0x11a4] ss:$8 sps:$4 sm:$0xff]  }
 0x47b   : > { %15404 = vmatprep.subr.bf16.mxu0 %v20207_v28  ;;  %v20285_v28 = vld [vmem:[%s21916_s4 + $0x31a4] ss:$8 sps:$4 sm:$0xff]  }
 0x47d   : > { %14093 = vmatpush1.bf16.msra.mxu1 %v20202_v31  ;;  %v20280_v31 = vld [vmem:[%s21916_s4 + $0x11a0] ss:$8 sps:$4 sm:$0xff]  }
 0x47e   : > { %15405 = vmatpush1.bf16.msra.mxu0 %v20205_v32  ;;  %14094 = vmatprep.subr.bf16.mxu1 %v20210_v11  ;;  %v20283_v32 = vld [vmem:[%s21916_s4 + $0x31a0] ss:$8 sps:$4 sm:$0xff]   ;;  %v20288_v11 = vld [vmem:[%s21916_s4 + $0x11b4] ss:$8 sps:$4 sm:$0xff]  }
 0x47f   : > { %15406 = vmatprep.subr.bf16.mxu0 %v20213_v12  ;;  %v20291_v12 = vld [vmem:[%s21916_s4 + $0x31b4] ss:$8 sps:$4 sm:$0xff]  }
 0x481   : > { %14095 = vmatpush1.bf16.msra.mxu1 %v20208_v35  ;;  %v20294_v35 = vld [vmem:[%s21916_s4 + $0x11c4] ss:$8 sps:$4 sm:$0xff]  }
 0x482   : > { %15407 = vmatpush1.bf16.msra.mxu0 %v20211_v37  ;;  %14096 = vmatprep.subr.bf16.mxu1 %v20216_v40  ;;  %v20297_v37 = vld [vmem:[%s21916_s4 + $0x31c4] ss:$8 sps:$4 sm:$0xff]   ;;  %v20292_v40 = vld [vmem:[%s21916_s4 + $0x11c0] ss:$8 sps:$4 sm:$0xff]  }
 0x483   : > { %15408 = vmatprep.subr.bf16.mxu0 %v20219_v42  ;;  %v20295_v42 = vld [vmem:[%s21916_s4 + $0x31c0] ss:$8 sps:$4 sm:$0xff]  }
 0x485   : > { %14097 = vmatpush1.bf16.msra.mxu1 %v20214_v21  ;;  %v20300_v21 = vld [vmem:[%s21916_s4 + $0x11d4] ss:$8 sps:$4 sm:$0xff]  }
 0x486   : > { %15409 = vmatpush1.bf16.msra.mxu0 %v20217_v22  ;;  %14107 = vmatprep.subr.bf16.mxu1 %v20222_v45  ;;  %v20303_v22 = vld [vmem:[%s21916_s4 + $0x31d4] ss:$8 sps:$4 sm:$0xff]   ;;  %v20298_v45 = vld [vmem:[%s21916_s4 + $0x11d0] ss:$8 sps:$4 sm:$0xff]  }
 0x487   : > { %15419 = vmatprep.subr.bf16.mxu0 %v20225_v15  ;;  %v20301_v15 = vld [vmem:[%s21916_s4 + $0x31d0] ss:$8 sps:$4 sm:$0xff]  }
 0x488   : > { %14099 = vmatmul.mubr.bf16.vlgmr.msra.gmra.mrb[0].mxu1 %v1026_v48  ;;  %v23434_v48 = vld [vmem:[%s21929_s29 + $0x48] sm:$0xff] }
 0x489   : > { %15411 = vmatmul.mubr.bf16.vlgmr.msra.gmra.mrb[0].mxu0 %v1090_v49  ;;  %14108 = vmatpush1.bf16.msra.mxu1 %v20220_v53  ;;  %v23437_v49 = vld [vmem:[%s21929_s29 + $0xc8] sm:$0xff] }
 0x48a   : > { %15420 = vmatpush1.bf16.msra.mxu0 %v20223_v54  ;;  %14109 = vmatprep.subr.bf16.mxu1 %v20228_v29  ;;  %v20304_v53 = vld [vmem:[%s21916_s4 + $0x11e0] ss:$8 sps:$4 sm:$0xff]   ;;  %v20312_v29 = vld [vmem:[%s21916_s4 + $0x11f4] ss:$8 sps:$4 sm:$0xff]  }
 0x48b   : > { %15421 = vmatprep.subr.bf16.mxu0 %v20231_v30  ;;  %14139 = vmatprep.mubr.bf16.mxu1 %v1029_v55  ;;  %v20307_v54 = vld [vmem:[%s21916_s4 + $0x31e0] ss:$8 sps:$4 sm:$0xff]   ;;  %v20315_v30 = vld [vmem:[%s21916_s4 + $0x31f4] ss:$8 sps:$4 sm:$0xff]   ;;  %v23445_v55 = vrot.slane %v23434_v48, %v21989_v50 }
 0x48c   : > { %15451 = vmatprep.mubr.bf16.mxu0 %v1093_v56  ;;  %v23449_v56 = vrot.slane %v23437_v49, %v21989_v50 }
 0x48d   : > { %14110 = vmatpush1.bf16.msra.mxu1 %v20226_v25  ;;  %v20310_v25 = vld [vmem:[%s21916_s4 + $0x11f0] ss:$8 sps:$4 sm:$0xff]  }
 0x48e   : > { %15422 = vmatpush1.bf16.msra.mxu0 %v20229_v26  ;;  %14111 = vmatprep.subr.bf16.mxu1 %v20234_v59  ;;  %v20313_v26 = vld [vmem:[%s21916_s4 + $0x31f0] ss:$8 sps:$4 sm:$0xff]   ;;  %v20319_v59 = vld [vmem:[%s21916_s4 + $0x1204] ss:$8 sps:$4 sm:$0xff]  }
 0x48f   : > { %15423 = vmatprep.subr.bf16.mxu0 %v20237_v38  ;;  %v20323_v38 = vld [vmem:[%s21916_s4 + $0x3204] ss:$8 sps:$4 sm:$0xff]  }
 0x491   : > { %14112 = vmatpush1.bf16.msra.mxu1 %v20232_v61  ;;  %v490_v61 = vcombine.high %v23445_v55, %v23445_v55 }
 0x492   : > { %15424 = vmatpush1.bf16.msra.mxu0 %v20235_v62  ;;  %14113 = vmatprep.subr.bf16.mxu1 %v20240_v16  ;;  %v762_v62 = vcombine.high %v23449_v56, %v23449_v56  ;;  %v1028_v16 = vpack.c.bf16 %v23360_v43, %v23360_v43  ;;  %v20324_v43 = vld [vmem:[%s21916_s4 + $0x1210] ss:$8 sps:$4 sm:$0xff]  }
 0x493   : > { %15425 = vmatprep.subr.bf16.mxu0 %v20243_v39  ;;  %v1092_v39 = vpack.c.bf16 %v23363_v36, %v23363_v36  ;;  %v20327_v36 = vld [vmem:[%s21916_s4 + $0x3210] ss:$8 sps:$4 sm:$0xff]  }
 0x495   : > { %14114 = vmatpush1.bf16.msra.mxu1 %v20238_v33  ;;  %v20317_v33 = vld [vmem:[%s21916_s4 + $0x1200] ss:$8 sps:$4 sm:$0xff]  }
 0x496   : > { %15426 = vmatpush1.bf16.msra.mxu0 %v20241_v34  ;;  %14115 = vmatprep.subr.bf16.mxu1 %v20246_v1  ;;  %v20321_v34 = vld [vmem:[%s21916_s4 + $0x3200] ss:$8 sps:$4 sm:$0xff]   ;;  %v20326_v1 = vld [vmem:[%s21916_s4 + $0x1214] ss:$8 sps:$4 sm:$0xff]  }
 0x497   : > { %15427 = vmatprep.subr.bf16.mxu0 %v20249_v2  ;;  %v20329_v2 = vld [vmem:[%s21916_s4 + $0x3214] ss:$8 sps:$4 sm:$0xff]  }
 0x499   : > { %14116 = vmatpush1.bf16.msra.mxu1 %v20244_v5  ;;  %v1031_v5 = vpack.c.bf16 %v490_v61, %v490_v61  ;;  %v20396_v61 = vld [vmem:[%s21916_s4 + $0x12d0] ss:$8 sps:$4 sm:$0xff]  }
 0x49a   : > { %15428 = vmatpush1.bf16.msra.mxu0 %v20247_v6  ;;  %14117 = vmatprep.subr.bf16.mxu1 %v20252_v51  ;;  %v1095_v6 = vpack.c.bf16 %v762_v62, %v762_v62  ;;  %v20332_v51 = vld [vmem:[%s21916_s4 + $0x1224] ss:$8 sps:$4 sm:$0xff]   ;;  %v20399_v62 = vld [vmem:[%s21916_s4 + $0x32d0] ss:$8 sps:$4 sm:$0xff]  }
 0x49b   : > { %15429 = vmatprep.subr.bf16.mxu0 %v20255_v52  ;;  %v20335_v52 = vld [vmem:[%s21916_s4 + $0x3224] ss:$8 sps:$4 sm:$0xff]  }
 0x49d   : > { %14118 = vmatpush1.bf16.msra.mxu1 %v20250_v46  ;;  %v20330_v46 = vld [vmem:[%s21916_s4 + $0x1220] ss:$8 sps:$4 sm:$0xff]  }
 0x49e   : > { %15430 = vmatpush1.bf16.msra.mxu0 %v20253_v47  ;;  %14119 = vmatprep.subr.bf16.mxu1 %v20258_v9  ;;  %v20333_v47 = vld [vmem:[%s21916_s4 + $0x3220] ss:$8 sps:$4 sm:$0xff]   ;;  %v20338_v9 = vld [vmem:[%s21916_s4 + $0x1234] ss:$8 sps:$4 sm:$0xff]  }
 0x49f   : > { %15431 = vmatprep.subr.bf16.mxu0 %v20261_v10  ;;  %v20341_v10 = vld [vmem:[%s21916_s4 + $0x3234] ss:$8 sps:$4 sm:$0xff]  }
 0x4a1   : > { %14120 = vmatpush1.bf16.msra.mxu1 %v20256_v13  ;;  %v20336_v13 = vld [vmem:[%s21916_s4 + $0x1230] ss:$8 sps:$4 sm:$0xff]  }
 0x4a2   : > { %15432 = vmatpush1.bf16.msra.mxu0 %v20259_v14  ;;  %14121 = vmatprep.subr.bf16.mxu1 %v20264_v41  ;;  %v20339_v14 = vld [vmem:[%s21916_s4 + $0x3230] ss:$8 sps:$4 sm:$0xff]   ;;  %v20344_v41 = vld [vmem:[%s21916_s4 + $0x1244] ss:$8 sps:$4 sm:$0xff]  }
 0x4a3   : > { %15433 = vmatprep.subr.bf16.mxu0 %v20267_v60  ;;  %v20347_v60 = vld [vmem:[%s21916_s4 + $0x3244] ss:$8 sps:$4 sm:$0xff]  }
 0x4a5   : > { %14122 = vmatpush1.bf16.msra.mxu1 %v20262_v17  ;;  %v20342_v17 = vld [vmem:[%s21916_s4 + $0x1240] ss:$8 sps:$4 sm:$0xff]  }
 0x4a6   : > { %15434 = vmatpush1.bf16.msra.mxu0 %v20265_v18  ;;  %14123 = vmatprep.subr.bf16.mxu1 %v20270_v57  ;;  %v20345_v18 = vld [vmem:[%s21916_s4 + $0x3240] ss:$8 sps:$4 sm:$0xff]   ;;  %v20350_v57 = vld [vmem:[%s21916_s4 + $0x1254] ss:$8 sps:$4 sm:$0xff]  }
 0x4a7   : > { %15435 = vmatprep.subr.bf16.mxu0 %v20273_v58  ;;  %v20353_v58 = vld [vmem:[%s21916_s4 + $0x3254] ss:$8 sps:$4 sm:$0xff]  }
 0x4a9   : > { %14124 = vmatpush1.bf16.msra.mxu1 %v20268_v23  ;;  %v20348_v23 = vld [vmem:[%s21916_s4 + $0x1250] ss:$8 sps:$4 sm:$0xff]  }
 0x4aa   : > { %15436 = vmatpush1.bf16.msra.mxu0 %v20271_v24  ;;  %14125 = vmatprep.subr.bf16.mxu1 %v20276_v3  ;;  %v20351_v24 = vld [vmem:[%s21916_s4 + $0x3250] ss:$8 sps:$4 sm:$0xff]   ;;  %v20356_v3 = vld [vmem:[%s21916_s4 + $0x1264] ss:$8 sps:$4 sm:$0xff]  }
 0x4ab   : > { %15437 = vmatprep.subr.bf16.mxu0 %v20279_v4  ;;  %v20359_v4 = vld [vmem:[%s21916_s4 + $0x3264] ss:$8 sps:$4 sm:$0xff]  }
 0x4ad   : > { %14126 = vmatpush1.bf16.msra.mxu1 %v20274_v63  ;;  %v20354_v63 = vld [vmem:[%s21916_s4 + $0x1260] ss:$8 sps:$4 sm:$0xff]  }
 0x4ae   : > { %15438 = vmatpush1.bf16.msra.mxu0 %v20277_v0  ;;  %14127 = vmatprep.subr.bf16.mxu1 %v20282_v27  ;;  %v20357_v0 = vld [vmem:[%s21916_s4 + $0x3260] ss:$8 sps:$4 sm:$0xff]   ;;  %v20362_v27 = vld [vmem:[%s21916_s4 + $0x1274] ss:$8 sps:$4 sm:$0xff]  }
 0x4af   : > { %15439 = vmatprep.subr.bf16.mxu0 %v20285_v28  ;;  %v20365_v28 = vld [vmem:[%s21916_s4 + $0x3274] ss:$8 sps:$4 sm:$0xff]  }
 0x4b1   : > { %14128 = vmatpush1.bf16.msra.mxu1 %v20280_v31  ;;  %v20360_v31 = vld [vmem:[%s21916_s4 + $0x1270] ss:$8 sps:$4 sm:$0xff]  }
 0x4b2   : > { %15440 = vmatpush1.bf16.msra.mxu0 %v20283_v32  ;;  %14129 = vmatprep.subr.bf16.mxu1 %v20288_v11  ;;  %v20363_v32 = vld [vmem:[%s21916_s4 + $0x3270] ss:$8 sps:$4 sm:$0xff]   ;;  %v20368_v11 = vld [vmem:[%s21916_s4 + $0x1284] ss:$8 sps:$4 sm:$0xff]  }
 0x4b3   : > { %15441 = vmatprep.subr.bf16.mxu0 %v20291_v12  ;;  %v20371_v12 = vld [vmem:[%s21916_s4 + $0x3284] ss:$8 sps:$4 sm:$0xff]  }
 0x4b5   : > { %14130 = vmatpush1.bf16.msra.mxu1 %v20286_v7  ;;  %v20366_v7 = vld [vmem:[%s21916_s4 + $0x1280] ss:$8 sps:$4 sm:$0xff]  }
 0x4b6   : > { %15442 = vmatpush1.bf16.msra.mxu0 %v20289_v8  ;;  %14131 = vmatprep.subr.bf16.mxu1 %v20294_v35  ;;  %v20369_v8 = vld [vmem:[%s21916_s4 + $0x3280] ss:$8 sps:$4 sm:$0xff]   ;;  %v20374_v35 = vld [vmem:[%s21916_s4 + $0x1294] ss:$8 sps:$4 sm:$0xff]  }
 0x4b7   : > { %15443 = vmatprep.subr.bf16.mxu0 %v20297_v37  ;;  %v20377_v37 = vld [vmem:[%s21916_s4 + $0x3294] ss:$8 sps:$4 sm:$0xff]  }
 0x4b9   : > { %14132 = vmatpush1.bf16.msra.mxu1 %v20292_v40  ;;  %v20372_v40 = vld [vmem:[%s21916_s4 + $0x1290] ss:$8 sps:$4 sm:$0xff]  }
 0x4ba   : > { %15444 = vmatpush1.bf16.msra.mxu0 %v20295_v42  ;;  %14133 = vmatprep.subr.bf16.mxu1 %v20300_v21  ;;  %v20375_v42 = vld [vmem:[%s21916_s4 + $0x3290] ss:$8 sps:$4 sm:$0xff]   ;;  %v20380_v21 = vld [vmem:[%s21916_s4 + $0x12a4] ss:$8 sps:$4 sm:$0xff]  }
 0x4bb   : > { %15445 = vmatprep.subr.bf16.mxu0 %v20303_v22  ;;  %v20383_v22 = vld [vmem:[%s21916_s4 + $0x32a4] ss:$8 sps:$4 sm:$0xff]  }
 0x4bd   : > { %14134 = vmatpush1.bf16.msra.mxu1 %v20298_v45  ;;  %v20378_v45 = vld [vmem:[%s21916_s4 + $0x12a0] ss:$8 sps:$4 sm:$0xff]  }
 0x4be   : > { %15446 = vmatpush1.bf16.msra.mxu0 %v20301_v15  ;;  %14135 = vmatprep.subr.bf16.mxu1 %v20306_v19  ;;  %v20381_v15 = vld [vmem:[%s21916_s4 + $0x32a0] ss:$8 sps:$4 sm:$0xff]   ;;  %v20386_v19 = vld [vmem:[%s21916_s4 + $0x12b4] ss:$8 sps:$4 sm:$0xff]  }
 0x4bf   : > { %15447 = vmatprep.subr.bf16.mxu0 %v20309_v20  ;;  %v20389_v20 = vld [vmem:[%s21916_s4 + $0x32b4] ss:$8 sps:$4 sm:$0xff]  }
 0x4c1   : > { %14136 = vmatpush1.bf16.msra.mxu1 %v20304_v53  ;;  %v20384_v53 = vld [vmem:[%s21916_s4 + $0x12b0] ss:$8 sps:$4 sm:$0xff]  }
 0x4c2   : > { %15448 = vmatpush1.bf16.msra.mxu0 %v20307_v54  ;;  %14137 = vmatprep.subr.bf16.mxu1 %v20312_v29  ;;  %v20387_v54 = vld [vmem:[%s21916_s4 + $0x32b0] ss:$8 sps:$4 sm:$0xff]   ;;  %v20392_v29 = vld [vmem:[%s21916_s4 + $0x12c4] ss:$8 sps:$4 sm:$0xff]  }
 0x4c3   : > { %15449 = vmatprep.subr.bf16.mxu0 %v20315_v30  ;;  %v20395_v30 = vld [vmem:[%s21916_s4 + $0x32c4] ss:$8 sps:$4 sm:$0xff]  }
 0x4c5   : > { %14138 = vmatpush1.bf16.msra.mxu1 %v20310_v25  ;;  %v20390_v25 = vld [vmem:[%s21916_s4 + $0x12c0] ss:$8 sps:$4 sm:$0xff]  }
 0x4c6   : > { %15450 = vmatpush1.bf16.msra.mxu0 %v20313_v26  ;;  %14148 = vmatprep.subr.bf16.mxu1 %v20319_v59  ;;  %v20393_v26 = vld [vmem:[%s21916_s4 + $0x32c0] ss:$8 sps:$4 sm:$0xff]   ;;  %v20398_v59 = vld [vmem:[%s21916_s4 + $0x12d4] ss:$8 sps:$4 sm:$0xff]  }
 0x4c7   : > { %15460 = vmatprep.subr.bf16.mxu0 %v20323_v38  ;;  %v20401_v38 = vld [vmem:[%s21916_s4 + $0x32d4] ss:$8 sps:$4 sm:$0xff]  }
 0x4c8   : > { %14140 = vmatmul.mubr.bf16.vlgmr.msra.gmra.mrb[0].mxu1 %v1028_v16  ;;  %v20404_v16 = vld [vmem:[%s21916_s4 + $0x12e4] ss:$8 sps:$4 sm:$0xff]  }
 0x4c9   : > { %15452 = vmatmul.mubr.bf16.vlgmr.msra.gmra.mrb[0].mxu0 %v1092_v39  ;;  %14149 = vmatpush1.bf16.msra.mxu1 %v20317_v33  ;;  %v20407_v39 = vld [vmem:[%s21916_s4 + $0x32e4] ss:$8 sps:$4 sm:$0xff]   ;;  %v475_v33 = vcombine.high %v23434_v48, %v23434_v48  ;;  %v20408_v48 = vld [vmem:[%s21916_s4 + $0x12f0] ss:$8 sps:$4 sm:$0xff]  }
 0x4ca   : > { %15461 = vmatpush1.bf16.msra.mxu0 %v20321_v34  ;;  %14150 = vmatprep.subr.bf16.mxu1 %v20326_v1  ;;  %v747_v34 = vcombine.high %v23437_v49, %v23437_v49  ;;  %v20402_v1 = vld [vmem:[%s21916_s4 + $0x12e0] ss:$8 sps:$4 sm:$0xff]   ;;  %v20411_v49 = vld [vmem:[%s21916_s4 + $0x32f0] ss:$8 sps:$4 sm:$0xff]  }
 0x4cb   : > { %15462 = vmatprep.subr.bf16.mxu0 %v20329_v2  ;;  %14180 = vmatprep.mubr.bf16.mxu1 %v1031_v5  ;;  %v20405_v2 = vld [vmem:[%s21916_s4 + $0x32e0] ss:$8 sps:$4 sm:$0xff]   ;;  %v20410_v5 = vld [vmem:[%s21916_s4 + $0x12f4] ss:$8 sps:$4 sm:$0xff]  }
 0x4cc   : > { %15492 = vmatprep.mubr.bf16.mxu0 %v1095_v6  ;;  %v20413_v6 = vld [vmem:[%s21916_s4 + $0x32f4] ss:$8 sps:$4 sm:$0xff]  }
 0x4cd   : > { %14151 = vmatpush1.bf16.msra.mxu1 %v20324_v43  ;;  %v23528_v43 = vrot.slane %v475_v33, %v21989_v50  ;;  %v20480_v33 = vld [vmem:[%s21916_s4 + $0x13b0] ss:$8 sps:$4 sm:$0xff]  }
 0x4ce   : > { %15463 = vmatpush1.bf16.msra.mxu0 %v20327_v36  ;;  %14152 = vmatprep.subr.bf16.mxu1 %v20332_v51  ;;  %v23531_v36 = vrot.slane %v747_v34, %v21989_v50  ;;  %v20416_v51 = vld [vmem:[%s21916_s4 + $0x1304] ss:$8 sps:$4 sm:$0xff]   ;;  %v20483_v34 = vld [vmem:[%s21916_s4 + $0x33b0] ss:$8 sps:$4 sm:$0xff]  }
 0x4cf   : > { %15464 = vmatprep.subr.bf16.mxu0 %v20335_v52  ;;  %v20419_v52 = vld [vmem:[%s21916_s4 + $0x3304] ss:$8 sps:$4 sm:$0xff]  }
 0x4d1   : > { %14153 = vmatpush1.bf16.msra.mxu1 %v20330_v46  ;;  %v491_v46 = vcombine.high %v23528_v43, %v23528_v43 }
 0x4d2   : > { %15465 = vmatpush1.bf16.msra.mxu0 %v20333_v47  ;;  %14154 = vmatprep.subr.bf16.mxu1 %v20338_v9  ;;  %v763_v47 = vcombine.high %v23531_v36, %v23531_v36  ;;  %v1030_v9 = vpack.c.bf16 %v23445_v55, %v23445_v55  ;;  %v20420_v55 = vld [vmem:[%s21916_s4 + $0x1310] ss:$8 sps:$4 sm:$0xff]  }
 0x4d3   : > { %15466 = vmatprep.subr.bf16.mxu0 %v20341_v10  ;;  %v1094_v10 = vpack.c.bf16 %v23449_v56, %v23449_v56  ;;  %v20423_v56 = vld [vmem:[%s21916_s4 + $0x3310] ss:$8 sps:$4 sm:$0xff]  }
 0x4d5   : > { %14155 = vmatpush1.bf16.msra.mxu1 %v20336_v13  ;;  %v20414_v13 = vld [vmem:[%s21916_s4 + $0x1300] ss:$8 sps:$4 sm:$0xff]  }
 0x4d6   : > { %15467 = vmatpush1.bf16.msra.mxu0 %v20339_v14  ;;  %14156 = vmatprep.subr.bf16.mxu1 %v20344_v41  ;;  %v20417_v14 = vld [vmem:[%s21916_s4 + $0x3300] ss:$8 sps:$4 sm:$0xff]   ;;  %v20422_v41 = vld [vmem:[%s21916_s4 + $0x1314] ss:$8 sps:$4 sm:$0xff]  }
 0x4d7   : > { %15468 = vmatprep.subr.bf16.mxu0 %v20347_v60  ;;  %v20425_v60 = vld [vmem:[%s21916_s4 + $0x3314] ss:$8 sps:$4 sm:$0xff]  }
 0x4d9   : > { %14157 = vmatpush1.bf16.msra.mxu1 %v20342_v17  ;;  %v1033_v17 = vpack.c.bf16 %v491_v46, %v491_v46  ;;  %v20500_v46 = vld [vmem:[%s21916_s4 + $0x13e4] ss:$8 sps:$4 sm:$0xff]  }
 0x4da   : > { %15469 = vmatpush1.bf16.msra.mxu0 %v20345_v18  ;;  %14158 = vmatprep.subr.bf16.mxu1 %v20350_v57  ;;  %v1097_v18 = vpack.c.bf16 %v763_v47, %v763_v47  ;;  %v20428_v57 = vld [vmem:[%s21916_s4 + $0x1324] ss:$8 sps:$4 sm:$0xff]  }
 0x4db   : > { %15470 = vmatprep.subr.bf16.mxu0 %v20353_v58  ;;  %v20431_v58 = vld [vmem:[%s21916_s4 + $0x3324] ss:$8 sps:$4 sm:$0xff]  }
 0x4dc   : > { %v20503_v47 = vld [vmem:[%s21916_s4 + $0x33e4] ss:$8 sps:$4 sm:$0xff]  }
 0x4dd   : > { %14159 = vmatpush1.bf16.msra.mxu1 %v20348_v23  ;;  %v20426_v23 = vld [vmem:[%s21916_s4 + $0x1320] ss:$8 sps:$4 sm:$0xff]  }
 0x4de   : > { %15471 = vmatpush1.bf16.msra.mxu0 %v20351_v24  ;;  %14160 = vmatprep.subr.bf16.mxu1 %v20356_v3  ;;  %v20429_v24 = vld [vmem:[%s21916_s4 + $0x3320] ss:$8 sps:$4 sm:$0xff]   ;;  %v20434_v3 = vld [vmem:[%s21916_s4 + $0x1334] ss:$8 sps:$4 sm:$0xff]  }
 0x4df   : > { %15472 = vmatprep.subr.bf16.mxu0 %v20359_v4  ;;  %v20437_v4 = vld [vmem:[%s21916_s4 + $0x3334] ss:$8 sps:$4 sm:$0xff]  }
 0x4e1   : > { %14161 = vmatpush1.bf16.msra.mxu1 %v20354_v63  ;;  %v20432_v63 = vld [vmem:[%s21916_s4 + $0x1330] ss:$8 sps:$4 sm:$0xff]  }
 0x4e2   : > { %15473 = vmatpush1.bf16.msra.mxu0 %v20357_v0  ;;  %14162 = vmatprep.subr.bf16.mxu1 %v20362_v27  ;;  %v20435_v0 = vld [vmem:[%s21916_s4 + $0x3330] ss:$8 sps:$4 sm:$0xff]   ;;  %v20440_v27 = vld [vmem:[%s21916_s4 + $0x1344] ss:$8 sps:$4 sm:$0xff]  }
 0x4e3   : > { %15474 = vmatprep.subr.bf16.mxu0 %v20365_v28  ;;  %v20443_v28 = vld [vmem:[%s21916_s4 + $0x3344] ss:$8 sps:$4 sm:$0xff]  }
 0x4e5   : > { %14163 = vmatpush1.bf16.msra.mxu1 %v20360_v31  ;;  %v20438_v31 = vld [vmem:[%s21916_s4 + $0x1340] ss:$8 sps:$4 sm:$0xff]  }
 0x4e6   : > { %15475 = vmatpush1.bf16.msra.mxu0 %v20363_v32  ;;  %14164 = vmatprep.subr.bf16.mxu1 %v20368_v11  ;;  %v20441_v32 = vld [vmem:[%s21916_s4 + $0x3340] ss:$8 sps:$4 sm:$0xff]   ;;  %v20446_v11 = vld [vmem:[%s21916_s4 + $0x1354] ss:$8 sps:$4 sm:$0xff]  }
 0x4e7   : > { %15476 = vmatprep.subr.bf16.mxu0 %v20371_v12  ;;  %v20449_v12 = vld [vmem:[%s21916_s4 + $0x3354] ss:$8 sps:$4 sm:$0xff]  }
 0x4e9   : > { %14165 = vmatpush1.bf16.msra.mxu1 %v20366_v7  ;;  %v20444_v7 = vld [vmem:[%s21916_s4 + $0x1350] ss:$8 sps:$4 sm:$0xff]  }
 0x4ea   : > { %15477 = vmatpush1.bf16.msra.mxu0 %v20369_v8  ;;  %14166 = vmatprep.subr.bf16.mxu1 %v20374_v35  ;;  %v20447_v8 = vld [vmem:[%s21916_s4 + $0x3350] ss:$8 sps:$4 sm:$0xff]   ;;  %v20452_v35 = vld [vmem:[%s21916_s4 + $0x1364] ss:$8 sps:$4 sm:$0xff]  }
 0x4eb   : > { %15478 = vmatprep.subr.bf16.mxu0 %v20377_v37  ;;  %v20455_v37 = vld [vmem:[%s21916_s4 + $0x3364] ss:$8 sps:$4 sm:$0xff]  }
 0x4ed   : > { %14167 = vmatpush1.bf16.msra.mxu1 %v20372_v40  ;;  %v20450_v40 = vld [vmem:[%s21916_s4 + $0x1360] ss:$8 sps:$4 sm:$0xff]  }
 0x4ee   : > { %15479 = vmatpush1.bf16.msra.mxu0 %v20375_v42  ;;  %14168 = vmatprep.subr.bf16.mxu1 %v20380_v21  ;;  %v20453_v42 = vld [vmem:[%s21916_s4 + $0x3360] ss:$8 sps:$4 sm:$0xff]   ;;  %v20458_v21 = vld [vmem:[%s21916_s4 + $0x1374] ss:$8 sps:$4 sm:$0xff]  }
 0x4ef   : > { %15480 = vmatprep.subr.bf16.mxu0 %v20383_v22  ;;  %v20461_v22 = vld [vmem:[%s21916_s4 + $0x3374] ss:$8 sps:$4 sm:$0xff]  }
 0x4f1   : > { %14169 = vmatpush1.bf16.msra.mxu1 %v20378_v45  ;;  %v20456_v45 = vld [vmem:[%s21916_s4 + $0x1370] ss:$8 sps:$4 sm:$0xff]  }
 0x4f2   : > { %15481 = vmatpush1.bf16.msra.mxu0 %v20381_v15  ;;  %14170 = vmatprep.subr.bf16.mxu1 %v20386_v19  ;;  %v20459_v15 = vld [vmem:[%s21916_s4 + $0x3370] ss:$8 sps:$4 sm:$0xff]   ;;  %v20464_v19 = vld [vmem:[%s21916_s4 + $0x1384] ss:$8 sps:$4 sm:$0xff]  }
 0x4f3   : > { %15482 = vmatprep.subr.bf16.mxu0 %v20389_v20  ;;  %v20467_v20 = vld [vmem:[%s21916_s4 + $0x3384] ss:$8 sps:$4 sm:$0xff]  }
 0x4f5   : > { %14171 = vmatpush1.bf16.msra.mxu1 %v20384_v53  ;;  %v20462_v53 = vld [vmem:[%s21916_s4 + $0x1380] ss:$8 sps:$4 sm:$0xff]  }
 0x4f6   : > { %15483 = vmatpush1.bf16.msra.mxu0 %v20387_v54  ;;  %14172 = vmatprep.subr.bf16.mxu1 %v20392_v29  ;;  %v20465_v54 = vld [vmem:[%s21916_s4 + $0x3380] ss:$8 sps:$4 sm:$0xff]   ;;  %v20470_v29 = vld [vmem:[%s21916_s4 + $0x1394] ss:$8 sps:$4 sm:$0xff]  }
 0x4f7   : > { %15484 = vmatprep.subr.bf16.mxu0 %v20395_v30  ;;  %v20473_v30 = vld [vmem:[%s21916_s4 + $0x3394] ss:$8 sps:$4 sm:$0xff]  }
 0x4f9   : > { %14173 = vmatpush1.bf16.msra.mxu1 %v20390_v25  ;;  %v20468_v25 = vld [vmem:[%s21916_s4 + $0x1390] ss:$8 sps:$4 sm:$0xff]  }
 0x4fa   : > { %15485 = vmatpush1.bf16.msra.mxu0 %v20393_v26  ;;  %14174 = vmatprep.subr.bf16.mxu1 %v20398_v59  ;;  %v20471_v26 = vld [vmem:[%s21916_s4 + $0x3390] ss:$8 sps:$4 sm:$0xff]   ;;  %v20476_v59 = vld [vmem:[%s21916_s4 + $0x13a4] ss:$8 sps:$4 sm:$0xff]  }
 0x4fb   : > { %15486 = vmatprep.subr.bf16.mxu0 %v20401_v38  ;;  %v20479_v38 = vld [vmem:[%s21916_s4 + $0x33a4] ss:$8 sps:$4 sm:$0xff]  }
 0x4fd   : > { %14175 = vmatpush1.bf16.msra.mxu1 %v20396_v61  ;;  %v20474_v61 = vld [vmem:[%s21916_s4 + $0x13a0] ss:$8 sps:$4 sm:$0xff]  }
 0x4fe   : > { %15487 = vmatpush1.bf16.msra.mxu0 %v20399_v62  ;;  %14176 = vmatprep.subr.bf16.mxu1 %v20404_v16  ;;  %v20477_v62 = vld [vmem:[%s21916_s4 + $0x33a0] ss:$8 sps:$4 sm:$0xff]   ;;  %v20482_v16 = vld [vmem:[%s21916_s4 + $0x13b4] ss:$8 sps:$4 sm:$0xff]  }
 0x4ff   : > { %15488 = vmatprep.subr.bf16.mxu0 %v20407_v39  ;;  %v20485_v39 = vld [vmem:[%s21916_s4 + $0x33b4] ss:$8 sps:$4 sm:$0xff]  }
 0x501   : > { %14177 = vmatpush1.bf16.msra.mxu1 %v20402_v1  ;;  %v20488_v1 = vld [vmem:[%s21916_s4 + $0x13c4] ss:$8 sps:$4 sm:$0xff]  }
 0x502   : > { %15489 = vmatpush1.bf16.msra.mxu0 %v20405_v2  ;;  %14178 = vmatprep.subr.bf16.mxu1 %v20410_v5  ;;  %v20491_v2 = vld [vmem:[%s21916_s4 + $0x33c4] ss:$8 sps:$4 sm:$0xff]   ;;  %v20486_v5 = vld [vmem:[%s21916_s4 + $0x13c0] ss:$8 sps:$4 sm:$0xff]  }
 0x503   : > { %15490 = vmatprep.subr.bf16.mxu0 %v20413_v6  ;;  %v20489_v6 = vld [vmem:[%s21916_s4 + $0x33c0] ss:$8 sps:$4 sm:$0xff]  }
 0x505   : > { %14179 = vmatpush1.bf16.msra.mxu1 %v20408_v48  ;;  %v20494_v48 = vld [vmem:[%s21916_s4 + $0x13d4] ss:$8 sps:$4 sm:$0xff]  }
 0x506   : > { %15491 = vmatpush1.bf16.msra.mxu0 %v20411_v49  ;;  %14189 = vmatprep.subr.bf16.mxu1 %v20416_v51  ;;  %v20497_v49 = vld [vmem:[%s21916_s4 + $0x33d4] ss:$8 sps:$4 sm:$0xff]   ;;  %v20492_v51 = vld [vmem:[%s21916_s4 + $0x13d0] ss:$8 sps:$4 sm:$0xff]  }
 0x507   : > { %15501 = vmatprep.subr.bf16.mxu0 %v20419_v52  ;;  %v20495_v52 = vld [vmem:[%s21916_s4 + $0x33d0] ss:$8 sps:$4 sm:$0xff]  }
 0x508   : > { %14181 = vmatmul.mubr.bf16.vlgmr.msra.gmra.mrb[0].mxu1 %v1030_v9  ;;  %v23602_v9 = vld [vmem:[%s21929_s29 + $0x50] sm:$0xff] }
 0x509   : > { %15493 = vmatmul.mubr.bf16.vlgmr.msra.gmra.mrb[0].mxu0 %v1094_v10  ;;  %14190 = vmatpush1.bf16.msra.mxu1 %v20414_v13  ;;  %v23605_v10 = vld [vmem:[%s21929_s29 + $0xd0] sm:$0xff]  ;;  %v20498_v13 = vld [vmem:[%s21916_s4 + $0x13e0] ss:$8 sps:$4 sm:$0xff]  }
 0x50a   : > { %15502 = vmatpush1.bf16.msra.mxu0 %v20417_v14  ;;  %14191 = vmatprep.subr.bf16.mxu1 %v20422_v41  ;;  %v20501_v14 = vld [vmem:[%s21916_s4 + $0x33e0] ss:$8 sps:$4 sm:$0xff]   ;;  %v20506_v41 = vld [vmem:[%s21916_s4 + $0x13f4] ss:$8 sps:$4 sm:$0xff]  }
 0x50b   : > { %15503 = vmatprep.subr.bf16.mxu0 %v20425_v60  ;;  %14221 = vmatprep.mubr.bf16.mxu1 %v1033_v17  ;;  %v20509_v60 = vld [vmem:[%s21916_s4 + $0x33f4] ss:$8 sps:$4 sm:$0xff]   ;;  %v23613_v17 = vrot.slane %v23602_v9, %v21989_v50 }
 0x50c   : > { %15533 = vmatprep.mubr.bf16.mxu0 %v1097_v18  ;;  %v23617_v18 = vrot.slane %v23605_v10, %v21989_v50 }
 0x50d   : > { %14192 = vmatpush1.bf16.msra.mxu1 %v20420_v55  ;;  %v20504_v55 = vld [vmem:[%s21916_s4 + $0x13f0] ss:$8 sps:$4 sm:$0xff]  }
 0x50e   : > { %15504 = vmatpush1.bf16.msra.mxu0 %v20423_v56  ;;  %14193 = vmatprep.subr.bf16.mxu1 %v20428_v57  ;;  %v20507_v56 = vld [vmem:[%s21916_s4 + $0x33f0] ss:$8 sps:$4 sm:$0xff]   ;;  %v20513_v57 = vld [vmem:[%s21916_s4 + $0x1404] ss:$8 sps:$4 sm:$0xff]  }
 0x50f   : > { %15505 = vmatprep.subr.bf16.mxu0 %v20431_v58  ;;  %v20517_v58 = vld [vmem:[%s21916_s4 + $0x3404] ss:$8 sps:$4 sm:$0xff]  }
 0x511   : > { %14194 = vmatpush1.bf16.msra.mxu1 %v20426_v23  ;;  %v507_v23 = vcombine.high %v23613_v17, %v23613_v17 }
 0x512   : > { %15506 = vmatpush1.bf16.msra.mxu0 %v20429_v24  ;;  %14195 = vmatprep.subr.bf16.mxu1 %v20434_v3  ;;  %v779_v24 = vcombine.high %v23617_v18, %v23617_v18  ;;  %v1032_v3 = vpack.c.bf16 %v23528_v43, %v23528_v43  ;;  %v20518_v43 = vld [vmem:[%s21916_s4 + $0x1410] ss:$8 sps:$4 sm:$0xff]  }
 0x513   : > { %15507 = vmatprep.subr.bf16.mxu0 %v20437_v4  ;;  %v1096_v4 = vpack.c.bf16 %v23531_v36, %v23531_v36  ;;  %v20521_v36 = vld [vmem:[%s21916_s4 + $0x3410] ss:$8 sps:$4 sm:$0xff]  }
 0x515   : > { %14196 = vmatpush1.bf16.msra.mxu1 %v20432_v63  ;;  %v20511_v63 = vld [vmem:[%s21916_s4 + $0x1400] ss:$8 sps:$4 sm:$0xff]  }
 0x516   : > { %15508 = vmatpush1.bf16.msra.mxu0 %v20435_v0  ;;  %14197 = vmatprep.subr.bf16.mxu1 %v20440_v27  ;;  %v20515_v0 = vld [vmem:[%s21916_s4 + $0x3400] ss:$8 sps:$4 sm:$0xff]   ;;  %v20520_v27 = vld [vmem:[%s21916_s4 + $0x1414] ss:$8 sps:$4 sm:$0xff]  }
 0x517   : > { %15509 = vmatprep.subr.bf16.mxu0 %v20443_v28  ;;  %v20523_v28 = vld [vmem:[%s21916_s4 + $0x3414] ss:$8 sps:$4 sm:$0xff]  }
 0x519   : > { %14198 = vmatpush1.bf16.msra.mxu1 %v20438_v31  ;;  %v1035_v31 = vpack.c.bf16 %v507_v23, %v507_v23  ;;  %v20590_v23 = vld [vmem:[%s21916_s4 + $0x14d0] ss:$8 sps:$4 sm:$0xff]  }
 0x51a   : > { %15510 = vmatpush1.bf16.msra.mxu0 %v20441_v32  ;;  %14199 = vmatprep.subr.bf16.mxu1 %v20446_v11  ;;  %v1099_v32 = vpack.c.bf16 %v779_v24, %v779_v24  ;;  %v20526_v11 = vld [vmem:[%s21916_s4 + $0x1424] ss:$8 sps:$4 sm:$0xff]   ;;  %v20593_v24 = vld [vmem:[%s21916_s4 + $0x34d0] ss:$8 sps:$4 sm:$0xff]  }
 0x51b   : > { %15511 = vmatprep.subr.bf16.mxu0 %v20449_v12  ;;  %v20529_v12 = vld [vmem:[%s21916_s4 + $0x3424] ss:$8 sps:$4 sm:$0xff]  }
 0x51d   : > { %14200 = vmatpush1.bf16.msra.mxu1 %v20444_v7  ;;  %v20524_v7 = vld [vmem:[%s21916_s4 + $0x1420] ss:$8 sps:$4 sm:$0xff]  }
 0x51e   : > { %15512 = vmatpush1.bf16.msra.mxu0 %v20447_v8  ;;  %14201 = vmatprep.subr.bf16.mxu1 %v20452_v35  ;;  %v20527_v8 = vld [vmem:[%s21916_s4 + $0x3420] ss:$8 sps:$4 sm:$0xff]   ;;  %v20532_v35 = vld [vmem:[%s21916_s4 + $0x1434] ss:$8 sps:$4 sm:$0xff]  }
 0x51f   : > { %15513 = vmatprep.subr.bf16.mxu0 %v20455_v37  ;;  %v20535_v37 = vld [vmem:[%s21916_s4 + $0x3434] ss:$8 sps:$4 sm:$0xff]  }
 0x521   : > { %14202 = vmatpush1.bf16.msra.mxu1 %v20450_v40  ;;  %v20530_v40 = vld [vmem:[%s21916_s4 + $0x1430] ss:$8 sps:$4 sm:$0xff]  }
 0x522   : > { %15514 = vmatpush1.bf16.msra.mxu0 %v20453_v42  ;;  %14203 = vmatprep.subr.bf16.mxu1 %v20458_v21  ;;  %v20533_v42 = vld [vmem:[%s21916_s4 + $0x3430] ss:$8 sps:$4 sm:$0xff]   ;;  %v20538_v21 = vld [vmem:[%s21916_s4 + $0x1444] ss:$8 sps:$4 sm:$0xff]  }
 0x523   : > { %15515 = vmatprep.subr.bf16.mxu0 %v20461_v22  ;;  %v20541_v22 = vld [vmem:[%s21916_s4 + $0x3444] ss:$8 sps:$4 sm:$0xff]  }
 0x525   : > { %14204 = vmatpush1.bf16.msra.mxu1 %v20456_v45  ;;  %v20536_v45 = vld [vmem:[%s21916_s4 + $0x1440] ss:$8 sps:$4 sm:$0xff]  }
 0x526   : > { %15516 = vmatpush1.bf16.msra.mxu0 %v20459_v15  ;;  %14205 = vmatprep.subr.bf16.mxu1 %v20464_v19  ;;  %v20539_v15 = vld [vmem:[%s21916_s4 + $0x3440] ss:$8 sps:$4 sm:$0xff]   ;;  %v20544_v19 = vld [vmem:[%s21916_s4 + $0x1454] ss:$8 sps:$4 sm:$0xff]  }
 0x527   : > { %15517 = vmatprep.subr.bf16.mxu0 %v20467_v20  ;;  %v20547_v20 = vld [vmem:[%s21916_s4 + $0x3454] ss:$8 sps:$4 sm:$0xff]  }
 0x529   : > { %14206 = vmatpush1.bf16.msra.mxu1 %v20462_v53  ;;  %v20542_v53 = vld [vmem:[%s21916_s4 + $0x1450] ss:$8 sps:$4 sm:$0xff]  }
 0x52a   : > { %15518 = vmatpush1.bf16.msra.mxu0 %v20465_v54  ;;  %14207 = vmatprep.subr.bf16.mxu1 %v20470_v29  ;;  %v20545_v54 = vld [vmem:[%s21916_s4 + $0x3450] ss:$8 sps:$4 sm:$0xff]   ;;  %v20550_v29 = vld [vmem:[%s21916_s4 + $0x1464] ss:$8 sps:$4 sm:$0xff]  }
 0x52b   : > { %15519 = vmatprep.subr.bf16.mxu0 %v20473_v30  ;;  %v20553_v30 = vld [vmem:[%s21916_s4 + $0x3464] ss:$8 sps:$4 sm:$0xff]  }
 0x52d   : > { %14208 = vmatpush1.bf16.msra.mxu1 %v20468_v25  ;;  %v20548_v25 = vld [vmem:[%s21916_s4 + $0x1460] ss:$8 sps:$4 sm:$0xff]  }
 0x52e   : > { %15520 = vmatpush1.bf16.msra.mxu0 %v20471_v26  ;;  %14209 = vmatprep.subr.bf16.mxu1 %v20476_v59  ;;  %v20551_v26 = vld [vmem:[%s21916_s4 + $0x3460] ss:$8 sps:$4 sm:$0xff]   ;;  %v20556_v59 = vld [vmem:[%s21916_s4 + $0x1474] ss:$8 sps:$4 sm:$0xff]  }
 0x52f   : > { %15521 = vmatprep.subr.bf16.mxu0 %v20479_v38  ;;  %v20559_v38 = vld [vmem:[%s21916_s4 + $0x3474] ss:$8 sps:$4 sm:$0xff]  }
 0x531   : > { %14210 = vmatpush1.bf16.msra.mxu1 %v20474_v61  ;;  %v20554_v61 = vld [vmem:[%s21916_s4 + $0x1470] ss:$8 sps:$4 sm:$0xff]  }
 0x532   : > { %15522 = vmatpush1.bf16.msra.mxu0 %v20477_v62  ;;  %14211 = vmatprep.subr.bf16.mxu1 %v20482_v16  ;;  %v20557_v62 = vld [vmem:[%s21916_s4 + $0x3470] ss:$8 sps:$4 sm:$0xff]   ;;  %v20562_v16 = vld [vmem:[%s21916_s4 + $0x1484] ss:$8 sps:$4 sm:$0xff]  }
 0x533   : > { %15523 = vmatprep.subr.bf16.mxu0 %v20485_v39  ;;  %v20565_v39 = vld [vmem:[%s21916_s4 + $0x3484] ss:$8 sps:$4 sm:$0xff]  }
 0x535   : > { %14212 = vmatpush1.bf16.msra.mxu1 %v20480_v33  ;;  %v20560_v33 = vld [vmem:[%s21916_s4 + $0x1480] ss:$8 sps:$4 sm:$0xff]  }
 0x536   : > { %15524 = vmatpush1.bf16.msra.mxu0 %v20483_v34  ;;  %14213 = vmatprep.subr.bf16.mxu1 %v20488_v1  ;;  %v20563_v34 = vld [vmem:[%s21916_s4 + $0x3480] ss:$8 sps:$4 sm:$0xff]   ;;  %v20568_v1 = vld [vmem:[%s21916_s4 + $0x1494] ss:$8 sps:$4 sm:$0xff]  }
 0x537   : > { %15525 = vmatprep.subr.bf16.mxu0 %v20491_v2  ;;  %v20571_v2 = vld [vmem:[%s21916_s4 + $0x3494] ss:$8 sps:$4 sm:$0xff]  }
 0x539   : > { %14214 = vmatpush1.bf16.msra.mxu1 %v20486_v5  ;;  %v20566_v5 = vld [vmem:[%s21916_s4 + $0x1490] ss:$8 sps:$4 sm:$0xff]  }
 0x53a   : > { %15526 = vmatpush1.bf16.msra.mxu0 %v20489_v6  ;;  %14215 = vmatprep.subr.bf16.mxu1 %v20494_v48  ;;  %v20569_v6 = vld [vmem:[%s21916_s4 + $0x3490] ss:$8 sps:$4 sm:$0xff]   ;;  %v20574_v48 = vld [vmem:[%s21916_s4 + $0x14a4] ss:$8 sps:$4 sm:$0xff]  }
 0x53b   : > { %15527 = vmatprep.subr.bf16.mxu0 %v20497_v49  ;;  %v20577_v49 = vld [vmem:[%s21916_s4 + $0x34a4] ss:$8 sps:$4 sm:$0xff]  }
 0x53d   : > { %14216 = vmatpush1.bf16.msra.mxu1 %v20492_v51  ;;  %v20572_v51 = vld [vmem:[%s21916_s4 + $0x14a0] ss:$8 sps:$4 sm:$0xff]  }
 0x53e   : > { %15528 = vmatpush1.bf16.msra.mxu0 %v20495_v52  ;;  %14217 = vmatprep.subr.bf16.mxu1 %v20500_v46  ;;  %v20575_v52 = vld [vmem:[%s21916_s4 + $0x34a0] ss:$8 sps:$4 sm:$0xff]   ;;  %v20580_v46 = vld [vmem:[%s21916_s4 + $0x14b4] ss:$8 sps:$4 sm:$0xff]  }
 0x53f   : > { %15529 = vmatprep.subr.bf16.mxu0 %v20503_v47  ;;  %v20583_v47 = vld [vmem:[%s21916_s4 + $0x34b4] ss:$8 sps:$4 sm:$0xff]  }
 0x541   : > { %14218 = vmatpush1.bf16.msra.mxu1 %v20498_v13  ;;  %v20578_v13 = vld [vmem:[%s21916_s4 + $0x14b0] ss:$8 sps:$4 sm:$0xff]  }
 0x542   : > { %15530 = vmatpush1.bf16.msra.mxu0 %v20501_v14  ;;  %14219 = vmatprep.subr.bf16.mxu1 %v20506_v41  ;;  %v20581_v14 = vld [vmem:[%s21916_s4 + $0x34b0] ss:$8 sps:$4 sm:$0xff]   ;;  %v20586_v41 = vld [vmem:[%s21916_s4 + $0x14c4] ss:$8 sps:$4 sm:$0xff]  }
 0x543   : > { %15531 = vmatprep.subr.bf16.mxu0 %v20509_v60  ;;  %v20589_v60 = vld [vmem:[%s21916_s4 + $0x34c4] ss:$8 sps:$4 sm:$0xff]  }
 0x545   : > { %14220 = vmatpush1.bf16.msra.mxu1 %v20504_v55  ;;  %v20584_v55 = vld [vmem:[%s21916_s4 + $0x14c0] ss:$8 sps:$4 sm:$0xff]  }
 0x546   : > { %15532 = vmatpush1.bf16.msra.mxu0 %v20507_v56  ;;  %14230 = vmatprep.subr.bf16.mxu1 %v20513_v57  ;;  %v20587_v56 = vld [vmem:[%s21916_s4 + $0x34c0] ss:$8 sps:$4 sm:$0xff]   ;;  %v20592_v57 = vld [vmem:[%s21916_s4 + $0x14d4] ss:$8 sps:$4 sm:$0xff]  }
 0x547   : > { %15542 = vmatprep.subr.bf16.mxu0 %v20517_v58  ;;  %v20595_v58 = vld [vmem:[%s21916_s4 + $0x34d4] ss:$8 sps:$4 sm:$0xff]  }
 0x548   : > { %14222 = vmatmul.mubr.bf16.vlgmr.msra.gmra.mrb[0].mxu1 %v1032_v3  ;;  %v20598_v3 = vld [vmem:[%s21916_s4 + $0x14e4] ss:$8 sps:$4 sm:$0xff]  }
 0x549   : > { %15534 = vmatmul.mubr.bf16.vlgmr.msra.gmra.mrb[0].mxu0 %v1096_v4  ;;  %14231 = vmatpush1.bf16.msra.mxu1 %v20511_v63  ;;  %v20601_v4 = vld [vmem:[%s21916_s4 + $0x34e4] ss:$8 sps:$4 sm:$0xff]   ;;  %v492_v63 = vcombine.high %v23602_v9, %v23602_v9  ;;  %v20602_v9 = vld [vmem:[%s21916_s4 + $0x14f0] ss:$8 sps:$4 sm:$0xff]  }
 0x54a   : > { %15543 = vmatpush1.bf16.msra.mxu0 %v20515_v0  ;;  %14232 = vmatprep.subr.bf16.mxu1 %v20520_v27  ;;  %v764_v0 = vcombine.high %v23605_v10, %v23605_v10  ;;  %v20596_v27 = vld [vmem:[%s21916_s4 + $0x14e0] ss:$8 sps:$4 sm:$0xff]   ;;  %v20605_v10 = vld [vmem:[%s21916_s4 + $0x34f0] ss:$8 sps:$4 sm:$0xff]  }
 0x54b   : > { %15544 = vmatprep.subr.bf16.mxu0 %v20523_v28  ;;  %14262 = vmatprep.mubr.bf16.mxu1 %v1035_v31  ;;  %v20599_v28 = vld [vmem:[%s21916_s4 + $0x34e0] ss:$8 sps:$4 sm:$0xff]   ;;  %v20604_v31 = vld [vmem:[%s21916_s4 + $0x14f4] ss:$8 sps:$4 sm:$0xff]  }
 0x54c   : > { %15574 = vmatprep.mubr.bf16.mxu0 %v1099_v32  ;;  %v20607_v32 = vld [vmem:[%s21916_s4 + $0x34f4] ss:$8 sps:$4 sm:$0xff]  }
 0x54d   : > { %14233 = vmatpush1.bf16.msra.mxu1 %v20518_v43  ;;  %v23696_v43 = vrot.slane %v492_v63, %v21989_v50  ;;  %v20674_v63 = vld [vmem:[%s21916_s4 + $0x15b0] ss:$8 sps:$4 sm:$0xff]  }
 0x54e   : > { %15545 = vmatpush1.bf16.msra.mxu0 %v20521_v36  ;;  %14234 = vmatprep.subr.bf16.mxu1 %v20526_v11  ;;  %v23699_v36 = vrot.slane %v764_v0, %v21989_v50  ;;  %v20610_v11 = vld [vmem:[%s21916_s4 + $0x1504] ss:$8 sps:$4 sm:$0xff]   ;;  %v20677_v0 = vld [vmem:[%s21916_s4 + $0x35b0] ss:$8 sps:$4 sm:$0xff]  }
 0x54f   : > { %15546 = vmatprep.subr.bf16.mxu0 %v20529_v12  ;;  %v20613_v12 = vld [vmem:[%s21916_s4 + $0x3504] ss:$8 sps:$4 sm:$0xff]  }
 0x551   : > { %14235 = vmatpush1.bf16.msra.mxu1 %v20524_v7  ;;  %v508_v7 = vcombine.high %v23696_v43, %v23696_v43 }
 0x552   : > { %15547 = vmatpush1.bf16.msra.mxu0 %v20527_v8  ;;  %14236 = vmatprep.subr.bf16.mxu1 %v20532_v35  ;;  %v780_v8 = vcombine.high %v23699_v36, %v23699_v36  ;;  %v1034_v35 = vpack.c.bf16 %v23613_v17, %v23613_v17  ;;  %v20614_v17 = vld [vmem:[%s21916_s4 + $0x1510] ss:$8 sps:$4 sm:$0xff]  }
 0x553   : > { %15548 = vmatprep.subr.bf16.mxu0 %v20535_v37  ;;  %v1098_v37 = vpack.c.bf16 %v23617_v18, %v23617_v18  ;;  %v20617_v18 = vld [vmem:[%s21916_s4 + $0x3510] ss:$8 sps:$4 sm:$0xff]  }
 0x555   : > { %14237 = vmatpush1.bf16.msra.mxu1 %v20530_v40  ;;  %v20608_v40 = vld [vmem:[%s21916_s4 + $0x1500] ss:$8 sps:$4 sm:$0xff]  }
 0x556   : > { %15549 = vmatpush1.bf16.msra.mxu0 %v20533_v42  ;;  %14238 = vmatprep.subr.bf16.mxu1 %v20538_v21  ;;  %v20611_v42 = vld [vmem:[%s21916_s4 + $0x3500] ss:$8 sps:$4 sm:$0xff]   ;;  %v20616_v21 = vld [vmem:[%s21916_s4 + $0x1514] ss:$8 sps:$4 sm:$0xff]  }
 0x557   : > { %15550 = vmatprep.subr.bf16.mxu0 %v20541_v22  ;;  %v20619_v22 = vld [vmem:[%s21916_s4 + $0x3514] ss:$8 sps:$4 sm:$0xff]  }
 0x559   : > { %14239 = vmatpush1.bf16.msra.mxu1 %v20536_v45  ;;  %v1037_v45 = vpack.c.bf16 %v508_v7, %v508_v7  ;;  %v20694_v7 = vld [vmem:[%s21916_s4 + $0x15e4] ss:$8 sps:$4 sm:$0xff]  }
 0x55a   : > { %15551 = vmatpush1.bf16.msra.mxu0 %v20539_v15  ;;  %14240 = vmatprep.subr.bf16.mxu1 %v20544_v19  ;;  %v1101_v15 = vpack.c.bf16 %v780_v8, %v780_v8  ;;  %v20622_v19 = vld [vmem:[%s21916_s4 + $0x1524] ss:$8 sps:$4 sm:$0xff]  }
 0x55b   : > { %15552 = vmatprep.subr.bf16.mxu0 %v20547_v20  ;;  %v20625_v20 = vld [vmem:[%s21916_s4 + $0x3524] ss:$8 sps:$4 sm:$0xff]  }
 0x55c   : > { %v20697_v8 = vld [vmem:[%s21916_s4 + $0x35e4] ss:$8 sps:$4 sm:$0xff]  }
 0x55d   : > { %14241 = vmatpush1.bf16.msra.mxu1 %v20542_v53  ;;  %v20620_v53 = vld [vmem:[%s21916_s4 + $0x1520] ss:$8 sps:$4 sm:$0xff]  }
 0x55e   : > { %15553 = vmatpush1.bf16.msra.mxu0 %v20545_v54  ;;  %14242 = vmatprep.subr.bf16.mxu1 %v20550_v29  ;;  %v20623_v54 = vld [vmem:[%s21916_s4 + $0x3520] ss:$8 sps:$4 sm:$0xff]   ;;  %v20628_v29 = vld [vmem:[%s21916_s4 + $0x1534] ss:$8 sps:$4 sm:$0xff]  }
 0x55f   : > { %15554 = vmatprep.subr.bf16.mxu0 %v20553_v30  ;;  %v20631_v30 = vld [vmem:[%s21916_s4 + $0x3534] ss:$8 sps:$4 sm:$0xff]  }
 0x561   : > { %14243 = vmatpush1.bf16.msra.mxu1 %v20548_v25  ;;  %v20626_v25 = vld [vmem:[%s21916_s4 + $0x1530] ss:$8 sps:$4 sm:$0xff]  }
 0x562   : > { %15555 = vmatpush1.bf16.msra.mxu0 %v20551_v26  ;;  %14244 = vmatprep.subr.bf16.mxu1 %v20556_v59  ;;  %v20629_v26 = vld [vmem:[%s21916_s4 + $0x3530] ss:$8 sps:$4 sm:$0xff]   ;;  %v20634_v59 = vld [vmem:[%s21916_s4 + $0x1544] ss:$8 sps:$4 sm:$0xff]  }
 0x563   : > { %15556 = vmatprep.subr.bf16.mxu0 %v20559_v38  ;;  %v20637_v38 = vld [vmem:[%s21916_s4 + $0x3544] ss:$8 sps:$4 sm:$0xff]  }
 0x565   : > { %14245 = vmatpush1.bf16.msra.mxu1 %v20554_v61  ;;  %v20632_v61 = vld [vmem:[%s21916_s4 + $0x1540] ss:$8 sps:$4 sm:$0xff]  }
 0x566   : > { %15557 = vmatpush1.bf16.msra.mxu0 %v20557_v62  ;;  %14246 = vmatprep.subr.bf16.mxu1 %v20562_v16  ;;  %v20635_v62 = vld [vmem:[%s21916_s4 + $0x3540] ss:$8 sps:$4 sm:$0xff]   ;;  %v20640_v16 = vld [vmem:[%s21916_s4 + $0x1554] ss:$8 sps:$4 sm:$0xff]  }
 0x567   : > { %15558 = vmatprep.subr.bf16.mxu0 %v20565_v39  ;;  %v20643_v39 = vld [vmem:[%s21916_s4 + $0x3554] ss:$8 sps:$4 sm:$0xff]  }
 0x569   : > { %14247 = vmatpush1.bf16.msra.mxu1 %v20560_v33  ;;  %v20638_v33 = vld [vmem:[%s21916_s4 + $0x1550] ss:$8 sps:$4 sm:$0xff]  }
 0x56a   : > { %15559 = vmatpush1.bf16.msra.mxu0 %v20563_v34  ;;  %14248 = vmatprep.subr.bf16.mxu1 %v20568_v1  ;;  %v20641_v34 = vld [vmem:[%s21916_s4 + $0x3550] ss:$8 sps:$4 sm:$0xff]   ;;  %v20646_v1 = vld [vmem:[%s21916_s4 + $0x1564] ss:$8 sps:$4 sm:$0xff]  }
 0x56b   : > { %15560 = vmatprep.subr.bf16.mxu0 %v20571_v2  ;;  %v20649_v2 = vld [vmem:[%s21916_s4 + $0x3564] ss:$8 sps:$4 sm:$0xff]  }
 0x56d   : > { %14249 = vmatpush1.bf16.msra.mxu1 %v20566_v5  ;;  %v20644_v5 = vld [vmem:[%s21916_s4 + $0x1560] ss:$8 sps:$4 sm:$0xff]  }
 0x56e   : > { %15561 = vmatpush1.bf16.msra.mxu0 %v20569_v6  ;;  %14250 = vmatprep.subr.bf16.mxu1 %v20574_v48  ;;  %v20647_v6 = vld [vmem:[%s21916_s4 + $0x3560] ss:$8 sps:$4 sm:$0xff]   ;;  %v20652_v48 = vld [vmem:[%s21916_s4 + $0x1574] ss:$8 sps:$4 sm:$0xff]  }
 0x56f   : > { %15562 = vmatprep.subr.bf16.mxu0 %v20577_v49  ;;  %v20655_v49 = vld [vmem:[%s21916_s4 + $0x3574] ss:$8 sps:$4 sm:$0xff]  }
 0x571   : > { %14251 = vmatpush1.bf16.msra.mxu1 %v20572_v51  ;;  %v20650_v51 = vld [vmem:[%s21916_s4 + $0x1570] ss:$8 sps:$4 sm:$0xff]  }
 0x572   : > { %15563 = vmatpush1.bf16.msra.mxu0 %v20575_v52  ;;  %14252 = vmatprep.subr.bf16.mxu1 %v20580_v46  ;;  %v20653_v52 = vld [vmem:[%s21916_s4 + $0x3570] ss:$8 sps:$4 sm:$0xff]   ;;  %v20658_v46 = vld [vmem:[%s21916_s4 + $0x1584] ss:$8 sps:$4 sm:$0xff]  }
 0x573   : > { %15564 = vmatprep.subr.bf16.mxu0 %v20583_v47  ;;  %v20661_v47 = vld [vmem:[%s21916_s4 + $0x3584] ss:$8 sps:$4 sm:$0xff]  }
 0x575   : > { %14253 = vmatpush1.bf16.msra.mxu1 %v20578_v13  ;;  %v20656_v13 = vld [vmem:[%s21916_s4 + $0x1580] ss:$8 sps:$4 sm:$0xff]  }
 0x576   : > { %15565 = vmatpush1.bf16.msra.mxu0 %v20581_v14  ;;  %14254 = vmatprep.subr.bf16.mxu1 %v20586_v41  ;;  %v20659_v14 = vld [vmem:[%s21916_s4 + $0x3580] ss:$8 sps:$4 sm:$0xff]   ;;  %v20664_v41 = vld [vmem:[%s21916_s4 + $0x1594] ss:$8 sps:$4 sm:$0xff]  }
 0x577   : > { %15566 = vmatprep.subr.bf16.mxu0 %v20589_v60  ;;  %v20667_v60 = vld [vmem:[%s21916_s4 + $0x3594] ss:$8 sps:$4 sm:$0xff]  }
 0x579   : > { %14255 = vmatpush1.bf16.msra.mxu1 %v20584_v55  ;;  %v20662_v55 = vld [vmem:[%s21916_s4 + $0x1590] ss:$8 sps:$4 sm:$0xff]  }
 0x57a   : > { %15567 = vmatpush1.bf16.msra.mxu0 %v20587_v56  ;;  %14256 = vmatprep.subr.bf16.mxu1 %v20592_v57  ;;  %v20665_v56 = vld [vmem:[%s21916_s4 + $0x3590] ss:$8 sps:$4 sm:$0xff]   ;;  %v20670_v57 = vld [vmem:[%s21916_s4 + $0x15a4] ss:$8 sps:$4 sm:$0xff]  }
 0x57b   : > { %15568 = vmatprep.subr.bf16.mxu0 %v20595_v58  ;;  %v20673_v58 = vld [vmem:[%s21916_s4 + $0x35a4] ss:$8 sps:$4 sm:$0xff]  }
 0x57d   : > { %14257 = vmatpush1.bf16.msra.mxu1 %v20590_v23  ;;  %v20668_v23 = vld [vmem:[%s21916_s4 + $0x15a0] ss:$8 sps:$4 sm:$0xff]  }
 0x57e   : > { %15569 = vmatpush1.bf16.msra.mxu0 %v20593_v24  ;;  %14258 = vmatprep.subr.bf16.mxu1 %v20598_v3  ;;  %v20671_v24 = vld [vmem:[%s21916_s4 + $0x35a0] ss:$8 sps:$4 sm:$0xff]   ;;  %v20676_v3 = vld [vmem:[%s21916_s4 + $0x15b4] ss:$8 sps:$4 sm:$0xff]  }
 0x57f   : > { %15570 = vmatprep.subr.bf16.mxu0 %v20601_v4  ;;  %v20679_v4 = vld [vmem:[%s21916_s4 + $0x35b4] ss:$8 sps:$4 sm:$0xff]  }
 0x581   : > { %14259 = vmatpush1.bf16.msra.mxu1 %v20596_v27  ;;  %v20682_v27 = vld [vmem:[%s21916_s4 + $0x15c4] ss:$8 sps:$4 sm:$0xff]  }
 0x582   : > { %15571 = vmatpush1.bf16.msra.mxu0 %v20599_v28  ;;  %14260 = vmatprep.subr.bf16.mxu1 %v20604_v31  ;;  %v20685_v28 = vld [vmem:[%s21916_s4 + $0x35c4] ss:$8 sps:$4 sm:$0xff]   ;;  %v20680_v31 = vld [vmem:[%s21916_s4 + $0x15c0] ss:$8 sps:$4 sm:$0xff]  }
 0x583   : > { %15572 = vmatprep.subr.bf16.mxu0 %v20607_v32  ;;  %v20683_v32 = vld [vmem:[%s21916_s4 + $0x35c0] ss:$8 sps:$4 sm:$0xff]  }
 0x585   : > { %14261 = vmatpush1.bf16.msra.mxu1 %v20602_v9  ;;  %v20688_v9 = vld [vmem:[%s21916_s4 + $0x15d4] ss:$8 sps:$4 sm:$0xff]  }
 0x586   : > { %15573 = vmatpush1.bf16.msra.mxu0 %v20605_v10  ;;  %14271 = vmatprep.subr.bf16.mxu1 %v20610_v11  ;;  %v20691_v10 = vld [vmem:[%s21916_s4 + $0x35d4] ss:$8 sps:$4 sm:$0xff]   ;;  %v20686_v11 = vld [vmem:[%s21916_s4 + $0x15d0] ss:$8 sps:$4 sm:$0xff]  }
 0x587   : > { %15583 = vmatprep.subr.bf16.mxu0 %v20613_v12  ;;  %v20689_v12 = vld [vmem:[%s21916_s4 + $0x35d0] ss:$8 sps:$4 sm:$0xff]  }
 0x588   : > { %14263 = vmatmul.mubr.bf16.vlgmr.msra.gmra.mrb[0].mxu1 %v1034_v35  ;;  %v23770_v35 = vld [vmem:[%s21929_s29 + $0x58] sm:$0xff] }
 0x589   : > { %15575 = vmatmul.mubr.bf16.vlgmr.msra.gmra.mrb[0].mxu0 %v1098_v37  ;;  %14272 = vmatpush1.bf16.msra.mxu1 %v20608_v40  ;;  %v23773_v37 = vld [vmem:[%s21929_s29 + $0xd8] sm:$0xff]  ;;  %v20692_v40 = vld [vmem:[%s21916_s4 + $0x15e0] ss:$8 sps:$4 sm:$0xff]  }
 0x58a   : > { %15584 = vmatpush1.bf16.msra.mxu0 %v20611_v42  ;;  %14273 = vmatprep.subr.bf16.mxu1 %v20616_v21  ;;  %v20695_v42 = vld [vmem:[%s21916_s4 + $0x35e0] ss:$8 sps:$4 sm:$0xff]   ;;  %v20700_v21 = vld [vmem:[%s21916_s4 + $0x15f4] ss:$8 sps:$4 sm:$0xff]  }
 0x58b   : > { %15585 = vmatprep.subr.bf16.mxu0 %v20619_v22  ;;  %14303 = vmatprep.mubr.bf16.mxu1 %v1037_v45  ;;  %v20703_v22 = vld [vmem:[%s21916_s4 + $0x35f4] ss:$8 sps:$4 sm:$0xff]   ;;  %v23781_v45 = vrot.slane %v23770_v35, %v21989_v50 }
 0x58c   : > { %15615 = vmatprep.mubr.bf16.mxu0 %v1101_v15  ;;  %v23785_v15 = vrot.slane %v23773_v37, %v21989_v50 }
 0x58d   : > { %14274 = vmatpush1.bf16.msra.mxu1 %v20614_v17  ;;  %v20698_v17 = vld [vmem:[%s21916_s4 + $0x15f0] ss:$8 sps:$4 sm:$0xff]  }
 0x58e   : > { %15586 = vmatpush1.bf16.msra.mxu0 %v20617_v18  ;;  %14275 = vmatprep.subr.bf16.mxu1 %v20622_v19  ;;  %v20701_v18 = vld [vmem:[%s21916_s4 + $0x35f0] ss:$8 sps:$4 sm:$0xff]   ;;  %v20707_v19 = vld [vmem:[%s21916_s4 + $0x1604] ss:$8 sps:$4 sm:$0xff]  }
 0x58f   : > { %15587 = vmatprep.subr.bf16.mxu0 %v20625_v20  ;;  %v20711_v20 = vld [vmem:[%s21916_s4 + $0x3604] ss:$8 sps:$4 sm:$0xff]  }
 0x591   : > { %14276 = vmatpush1.bf16.msra.mxu1 %v20620_v53  ;;  %v524_v53 = vcombine.high %v23781_v45, %v23781_v45 }
 0x592   : > { %15588 = vmatpush1.bf16.msra.mxu0 %v20623_v54  ;;  %14277 = vmatprep.subr.bf16.mxu1 %v20628_v29  ;;  %v796_v54 = vcombine.high %v23785_v15, %v23785_v15  ;;  %v1036_v29 = vpack.c.bf16 %v23696_v43, %v23696_v43  ;;  %v20712_v43 = vld [vmem:[%s21916_s4 + $0x1610] ss:$8 sps:$4 sm:$0xff]  }
 0x593   : > { %15589 = vmatprep.subr.bf16.mxu0 %v20631_v30  ;;  %v1100_v30 = vpack.c.bf16 %v23699_v36, %v23699_v36  ;;  %v20715_v36 = vld [vmem:[%s21916_s4 + $0x3610] ss:$8 sps:$4 sm:$0xff]  }
 0x595   : > { %14278 = vmatpush1.bf16.msra.mxu1 %v20626_v25  ;;  %v20705_v25 = vld [vmem:[%s21916_s4 + $0x1600] ss:$8 sps:$4 sm:$0xff]  }
 0x596   : > { %15590 = vmatpush1.bf16.msra.mxu0 %v20629_v26  ;;  %14279 = vmatprep.subr.bf16.mxu1 %v20634_v59  ;;  %v20709_v26 = vld [vmem:[%s21916_s4 + $0x3600] ss:$8 sps:$4 sm:$0xff]   ;;  %v20714_v59 = vld [vmem:[%s21916_s4 + $0x1614] ss:$8 sps:$4 sm:$0xff]  }
 0x597   : > { %15591 = vmatprep.subr.bf16.mxu0 %v20637_v38  ;;  %v20717_v38 = vld [vmem:[%s21916_s4 + $0x3614] ss:$8 sps:$4 sm:$0xff]  }
 0x599   : > { %14280 = vmatpush1.bf16.msra.mxu1 %v20632_v61  ;;  %v1039_v61 = vpack.c.bf16 %v524_v53, %v524_v53  ;;  %v20784_v53 = vld [vmem:[%s21916_s4 + $0x16d0] ss:$8 sps:$4 sm:$0xff]  }
 0x59a   : > { %15592 = vmatpush1.bf16.msra.mxu0 %v20635_v62  ;;  %14281 = vmatprep.subr.bf16.mxu1 %v20640_v16  ;;  %v1103_v62 = vpack.c.bf16 %v796_v54, %v796_v54  ;;  %v20720_v16 = vld [vmem:[%s21916_s4 + $0x1624] ss:$8 sps:$4 sm:$0xff]   ;;  %v20787_v54 = vld [vmem:[%s21916_s4 + $0x36d0] ss:$8 sps:$4 sm:$0xff]  }
 0x59b   : > { %15593 = vmatprep.subr.bf16.mxu0 %v20643_v39  ;;  %v20723_v39 = vld [vmem:[%s21916_s4 + $0x3624] ss:$8 sps:$4 sm:$0xff]  }
 0x59d   : > { %14282 = vmatpush1.bf16.msra.mxu1 %v20638_v33  ;;  %v20718_v33 = vld [vmem:[%s21916_s4 + $0x1620] ss:$8 sps:$4 sm:$0xff]  }
 0x59e   : > { %15594 = vmatpush1.bf16.msra.mxu0 %v20641_v34  ;;  %14283 = vmatprep.subr.bf16.mxu1 %v20646_v1  ;;  %v20721_v34 = vld [vmem:[%s21916_s4 + $0x3620] ss:$8 sps:$4 sm:$0xff]   ;;  %v20726_v1 = vld [vmem:[%s21916_s4 + $0x1634] ss:$8 sps:$4 sm:$0xff]  }
 0x59f   : > { %15595 = vmatprep.subr.bf16.mxu0 %v20649_v2  ;;  %v20729_v2 = vld [vmem:[%s21916_s4 + $0x3634] ss:$8 sps:$4 sm:$0xff]  }
 0x5a1   : > { %14284 = vmatpush1.bf16.msra.mxu1 %v20644_v5  ;;  %v20724_v5 = vld [vmem:[%s21916_s4 + $0x1630] ss:$8 sps:$4 sm:$0xff]  }
 0x5a2   : > { %15596 = vmatpush1.bf16.msra.mxu0 %v20647_v6  ;;  %14285 = vmatprep.subr.bf16.mxu1 %v20652_v48  ;;  %v20727_v6 = vld [vmem:[%s21916_s4 + $0x3630] ss:$8 sps:$4 sm:$0xff]   ;;  %v20732_v48 = vld [vmem:[%s21916_s4 + $0x1644] ss:$8 sps:$4 sm:$0xff]  }
 0x5a3   : > { %15597 = vmatprep.subr.bf16.mxu0 %v20655_v49  ;;  %v20735_v49 = vld [vmem:[%s21916_s4 + $0x3644] ss:$8 sps:$4 sm:$0xff]  }
 0x5a5   : > { %14286 = vmatpush1.bf16.msra.mxu1 %v20650_v51  ;;  %v20730_v51 = vld [vmem:[%s21916_s4 + $0x1640] ss:$8 sps:$4 sm:$0xff]  }
 0x5a6   : > { %15598 = vmatpush1.bf16.msra.mxu0 %v20653_v52  ;;  %14287 = vmatprep.subr.bf16.mxu1 %v20658_v46  ;;  %v20733_v52 = vld [vmem:[%s21916_s4 + $0x3640] ss:$8 sps:$4 sm:$0xff]   ;;  %v20738_v46 = vld [vmem:[%s21916_s4 + $0x1654] ss:$8 sps:$4 sm:$0xff]  }
 0x5a7   : > { %15599 = vmatprep.subr.bf16.mxu0 %v20661_v47  ;;  %v20741_v47 = vld [vmem:[%s21916_s4 + $0x3654] ss:$8 sps:$4 sm:$0xff]  }
 0x5a9   : > { %14288 = vmatpush1.bf16.msra.mxu1 %v20656_v13  ;;  %v20736_v13 = vld [vmem:[%s21916_s4 + $0x1650] ss:$8 sps:$4 sm:$0xff]  }
 0x5aa   : > { %15600 = vmatpush1.bf16.msra.mxu0 %v20659_v14  ;;  %14289 = vmatprep.subr.bf16.mxu1 %v20664_v41  ;;  %v20739_v14 = vld [vmem:[%s21916_s4 + $0x3650] ss:$8 sps:$4 sm:$0xff]   ;;  %v20744_v41 = vld [vmem:[%s21916_s4 + $0x1664] ss:$8 sps:$4 sm:$0xff]  }
 0x5ab   : > { %15601 = vmatprep.subr.bf16.mxu0 %v20667_v60  ;;  %v20747_v60 = vld [vmem:[%s21916_s4 + $0x3664] ss:$8 sps:$4 sm:$0xff]  }
 0x5ad   : > { %14290 = vmatpush1.bf16.msra.mxu1 %v20662_v55  ;;  %v20742_v55 = vld [vmem:[%s21916_s4 + $0x1660] ss:$8 sps:$4 sm:$0xff]  }
 0x5ae   : > { %15602 = vmatpush1.bf16.msra.mxu0 %v20665_v56  ;;  %14291 = vmatprep.subr.bf16.mxu1 %v20670_v57  ;;  %v20745_v56 = vld [vmem:[%s21916_s4 + $0x3660] ss:$8 sps:$4 sm:$0xff]   ;;  %v20750_v57 = vld [vmem:[%s21916_s4 + $0x1674] ss:$8 sps:$4 sm:$0xff]  }
 0x5af   : > { %15603 = vmatprep.subr.bf16.mxu0 %v20673_v58  ;;  %v20753_v58 = vld [vmem:[%s21916_s4 + $0x3674] ss:$8 sps:$4 sm:$0xff]  }
 0x5b1   : > { %14292 = vmatpush1.bf16.msra.mxu1 %v20668_v23  ;;  %v20748_v23 = vld [vmem:[%s21916_s4 + $0x1670] ss:$8 sps:$4 sm:$0xff]  }
 0x5b2   : > { %15604 = vmatpush1.bf16.msra.mxu0 %v20671_v24  ;;  %14293 = vmatprep.subr.bf16.mxu1 %v20676_v3  ;;  %v20751_v24 = vld [vmem:[%s21916_s4 + $0x3670] ss:$8 sps:$4 sm:$0xff]   ;;  %v20756_v3 = vld [vmem:[%s21916_s4 + $0x1684] ss:$8 sps:$4 sm:$0xff]  }
 0x5b3   : > { %15605 = vmatprep.subr.bf16.mxu0 %v20679_v4  ;;  %v20759_v4 = vld [vmem:[%s21916_s4 + $0x3684] ss:$8 sps:$4 sm:$0xff]  }
 0x5b5   : > { %14294 = vmatpush1.bf16.msra.mxu1 %v20674_v63  ;;  %v20754_v63 = vld [vmem:[%s21916_s4 + $0x1680] ss:$8 sps:$4 sm:$0xff]  }
 0x5b6   : > { %15606 = vmatpush1.bf16.msra.mxu0 %v20677_v0  ;;  %14295 = vmatprep.subr.bf16.mxu1 %v20682_v27  ;;  %v20757_v0 = vld [vmem:[%s21916_s4 + $0x3680] ss:$8 sps:$4 sm:$0xff]   ;;  %v20762_v27 = vld [vmem:[%s21916_s4 + $0x1694] ss:$8 sps:$4 sm:$0xff]  }
 0x5b7   : > { %15607 = vmatprep.subr.bf16.mxu0 %v20685_v28  ;;  %v20765_v28 = vld [vmem:[%s21916_s4 + $0x3694] ss:$8 sps:$4 sm:$0xff]  }
 0x5b9   : > { %14296 = vmatpush1.bf16.msra.mxu1 %v20680_v31  ;;  %v20760_v31 = vld [vmem:[%s21916_s4 + $0x1690] ss:$8 sps:$4 sm:$0xff]  }
 0x5ba   : > { %15608 = vmatpush1.bf16.msra.mxu0 %v20683_v32  ;;  %14297 = vmatprep.subr.bf16.mxu1 %v20688_v9  ;;  %v20763_v32 = vld [vmem:[%s21916_s4 + $0x3690] ss:$8 sps:$4 sm:$0xff]   ;;  %v20768_v9 = vld [vmem:[%s21916_s4 + $0x16a4] ss:$8 sps:$4 sm:$0xff]  }
 0x5bb   : > { %15609 = vmatprep.subr.bf16.mxu0 %v20691_v10  ;;  %v20771_v10 = vld [vmem:[%s21916_s4 + $0x36a4] ss:$8 sps:$4 sm:$0xff]  }
 0x5bd   : > { %14298 = vmatpush1.bf16.msra.mxu1 %v20686_v11  ;;  %v20766_v11 = vld [vmem:[%s21916_s4 + $0x16a0] ss:$8 sps:$4 sm:$0xff]  }
 0x5be   : > { %15610 = vmatpush1.bf16.msra.mxu0 %v20689_v12  ;;  %14299 = vmatprep.subr.bf16.mxu1 %v20694_v7  ;;  %v20769_v12 = vld [vmem:[%s21916_s4 + $0x36a0] ss:$8 sps:$4 sm:$0xff]   ;;  %v20774_v7 = vld [vmem:[%s21916_s4 + $0x16b4] ss:$8 sps:$4 sm:$0xff]  }
 0x5bf   : > { %15611 = vmatprep.subr.bf16.mxu0 %v20697_v8  ;;  %v20777_v8 = vld [vmem:[%s21916_s4 + $0x36b4] ss:$8 sps:$4 sm:$0xff]  }
 0x5c1   : > { %14300 = vmatpush1.bf16.msra.mxu1 %v20692_v40  ;;  %v20772_v40 = vld [vmem:[%s21916_s4 + $0x16b0] ss:$8 sps:$4 sm:$0xff]  }
 0x5c2   : > { %15612 = vmatpush1.bf16.msra.mxu0 %v20695_v42  ;;  %14301 = vmatprep.subr.bf16.mxu1 %v20700_v21  ;;  %v20775_v42 = vld [vmem:[%s21916_s4 + $0x36b0] ss:$8 sps:$4 sm:$0xff]   ;;  %v20780_v21 = vld [vmem:[%s21916_s4 + $0x16c4] ss:$8 sps:$4 sm:$0xff]  }
 0x5c3   : > { %15613 = vmatprep.subr.bf16.mxu0 %v20703_v22  ;;  %v20783_v22 = vld [vmem:[%s21916_s4 + $0x36c4] ss:$8 sps:$4 sm:$0xff]  }
 0x5c5   : > { %14302 = vmatpush1.bf16.msra.mxu1 %v20698_v17  ;;  %v20778_v17 = vld [vmem:[%s21916_s4 + $0x16c0] ss:$8 sps:$4 sm:$0xff]  }
 0x5c6   : > { %15614 = vmatpush1.bf16.msra.mxu0 %v20701_v18  ;;  %14312 = vmatprep.subr.bf16.mxu1 %v20707_v19  ;;  %v20781_v18 = vld [vmem:[%s21916_s4 + $0x36c0] ss:$8 sps:$4 sm:$0xff]   ;;  %v20786_v19 = vld [vmem:[%s21916_s4 + $0x16d4] ss:$8 sps:$4 sm:$0xff]  }
 0x5c7   : > { %15624 = vmatprep.subr.bf16.mxu0 %v20711_v20  ;;  %v20789_v20 = vld [vmem:[%s21916_s4 + $0x36d4] ss:$8 sps:$4 sm:$0xff]  }
 0x5c8   : > { %14304 = vmatmul.mubr.bf16.vlgmr.msra.gmra.mrb[0].mxu1 %v1036_v29  ;;  %v20792_v29 = vld [vmem:[%s21916_s4 + $0x16e4] ss:$8 sps:$4 sm:$0xff]  }
 0x5c9   : > { %15616 = vmatmul.mubr.bf16.vlgmr.msra.gmra.mrb[0].mxu0 %v1100_v30  ;;  %14313 = vmatpush1.bf16.msra.mxu1 %v20705_v25  ;;  %v20795_v30 = vld [vmem:[%s21916_s4 + $0x36e4] ss:$8 sps:$4 sm:$0xff]   ;;  %v509_v25 = vcombine.high %v23770_v35, %v23770_v35  ;;  %v20796_v35 = vld [vmem:[%s21916_s4 + $0x16f0] ss:$8 sps:$4 sm:$0xff]  }
 0x5ca   : > { %15625 = vmatpush1.bf16.msra.mxu0 %v20709_v26  ;;  %14314 = vmatprep.subr.bf16.mxu1 %v20714_v59  ;;  %v781_v26 = vcombine.high %v23773_v37, %v23773_v37  ;;  %v20790_v59 = vld [vmem:[%s21916_s4 + $0x16e0] ss:$8 sps:$4 sm:$0xff]   ;;  %v20799_v37 = vld [vmem:[%s21916_s4 + $0x36f0] ss:$8 sps:$4 sm:$0xff]  }
 0x5cb   : > { %15626 = vmatprep.subr.bf16.mxu0 %v20717_v38  ;;  %14344 = vmatprep.mubr.bf16.mxu1 %v1039_v61  ;;  %v20793_v38 = vld [vmem:[%s21916_s4 + $0x36e0] ss:$8 sps:$4 sm:$0xff]   ;;  %v20798_v61 = vld [vmem:[%s21916_s4 + $0x16f4] ss:$8 sps:$4 sm:$0xff]  }
 0x5cc   : > { %15656 = vmatprep.mubr.bf16.mxu0 %v1103_v62  ;;  %v20801_v62 = vld [vmem:[%s21916_s4 + $0x36f4] ss:$8 sps:$4 sm:$0xff]  }
 0x5cd   : > { %14315 = vmatpush1.bf16.msra.mxu1 %v20712_v43  ;;  %v23864_v43 = vrot.slane %v509_v25, %v21989_v50  ;;  %v20868_v25 = vld [vmem:[%s21916_s4 + $0x17b0] ss:$8 sps:$4 sm:$0xff]  }
 0x5ce   : > { %15627 = vmatpush1.bf16.msra.mxu0 %v20715_v36  ;;  %14316 = vmatprep.subr.bf16.mxu1 %v20720_v16  ;;  %v23867_v36 = vrot.slane %v781_v26, %v21989_v50  ;;  %v20804_v16 = vld [vmem:[%s21916_s4 + $0x1704] ss:$8 sps:$4 sm:$0xff]   ;;  %v20871_v26 = vld [vmem:[%s21916_s4 + $0x37b0] ss:$8 sps:$4 sm:$0xff]  }
 0x5cf   : > { %15628 = vmatprep.subr.bf16.mxu0 %v20723_v39  ;;  %v20807_v39 = vld [vmem:[%s21916_s4 + $0x3704] ss:$8 sps:$4 sm:$0xff]  }
 0x5d1   : > { %14317 = vmatpush1.bf16.msra.mxu1 %v20718_v33  ;;  %v525_v33 = vcombine.high %v23864_v43, %v23864_v43 }
 0x5d2   : > { %15629 = vmatpush1.bf16.msra.mxu0 %v20721_v34  ;;  %14318 = vmatprep.subr.bf16.mxu1 %v20726_v1  ;;  %v797_v34 = vcombine.high %v23867_v36, %v23867_v36  ;;  %v1038_v1 = vpack.c.bf16 %v23781_v45, %v23781_v45  ;;  %v20808_v45 = vld [vmem:[%s21916_s4 + $0x1710] ss:$8 sps:$4 sm:$0xff]  }
 0x5d3   : > { %15630 = vmatprep.subr.bf16.mxu0 %v20729_v2  ;;  %v1102_v2 = vpack.c.bf16 %v23785_v15, %v23785_v15  ;;  %v20811_v15 = vld [vmem:[%s21916_s4 + $0x3710] ss:$8 sps:$4 sm:$0xff]  }
 0x5d5   : > { %14319 = vmatpush1.bf16.msra.mxu1 %v20724_v5  ;;  %v20802_v5 = vld [vmem:[%s21916_s4 + $0x1700] ss:$8 sps:$4 sm:$0xff]  }
 0x5d6   : > { %15631 = vmatpush1.bf16.msra.mxu0 %v20727_v6  ;;  %14320 = vmatprep.subr.bf16.mxu1 %v20732_v48  ;;  %v20805_v6 = vld [vmem:[%s21916_s4 + $0x3700] ss:$8 sps:$4 sm:$0xff]   ;;  %v20810_v48 = vld [vmem:[%s21916_s4 + $0x1714] ss:$8 sps:$4 sm:$0xff]  }
 0x5d7   : > { %15632 = vmatprep.subr.bf16.mxu0 %v20735_v49  ;;  %v20813_v49 = vld [vmem:[%s21916_s4 + $0x3714] ss:$8 sps:$4 sm:$0xff]  }
 0x5d9   : > { %14321 = vmatpush1.bf16.msra.mxu1 %v20730_v51  ;;  %v1041_v51 = vpack.c.bf16 %v525_v33, %v525_v33  ;;  %v20888_v33 = vld [vmem:[%s21916_s4 + $0x17e4] ss:$8 sps:$4 sm:$0xff]  }
 0x5da   : > { %15633 = vmatpush1.bf16.msra.mxu0 %v20733_v52  ;;  %14322 = vmatprep.subr.bf16.mxu1 %v20738_v46  ;;  %v1105_v52 = vpack.c.bf16 %v797_v34, %v797_v34  ;;  %v20816_v46 = vld [vmem:[%s21916_s4 + $0x1724] ss:$8 sps:$4 sm:$0xff]  }
 0x5db   : > { %15634 = vmatprep.subr.bf16.mxu0 %v20741_v47  ;;  %v20819_v47 = vld [vmem:[%s21916_s4 + $0x3724] ss:$8 sps:$4 sm:$0xff]  }
 0x5dc   : > { %v20891_v34 = vld [vmem:[%s21916_s4 + $0x37e4] ss:$8 sps:$4 sm:$0xff]  }
 0x5dd   : > { %14323 = vmatpush1.bf16.msra.mxu1 %v20736_v13  ;;  %v20814_v13 = vld [vmem:[%s21916_s4 + $0x1720] ss:$8 sps:$4 sm:$0xff]  }
 0x5de   : > { %15635 = vmatpush1.bf16.msra.mxu0 %v20739_v14  ;;  %14324 = vmatprep.subr.bf16.mxu1 %v20744_v41  ;;  %v20817_v14 = vld [vmem:[%s21916_s4 + $0x3720] ss:$8 sps:$4 sm:$0xff]   ;;  %v20822_v41 = vld [vmem:[%s21916_s4 + $0x1734] ss:$8 sps:$4 sm:$0xff]  }
 0x5df   : > { %15636 = vmatprep.subr.bf16.mxu0 %v20747_v60  ;;  %v20825_v60 = vld [vmem:[%s21916_s4 + $0x3734] ss:$8 sps:$4 sm:$0xff]  }
 0x5e1   : > { %14325 = vmatpush1.bf16.msra.mxu1 %v20742_v55  ;;  %v20820_v55 = vld [vmem:[%s21916_s4 + $0x1730] ss:$8 sps:$4 sm:$0xff]  }
 0x5e2   : > { %15637 = vmatpush1.bf16.msra.mxu0 %v20745_v56  ;;  %14326 = vmatprep.subr.bf16.mxu1 %v20750_v57  ;;  %v20823_v56 = vld [vmem:[%s21916_s4 + $0x3730] ss:$8 sps:$4 sm:$0xff]   ;;  %v20828_v57 = vld [vmem:[%s21916_s4 + $0x1744] ss:$8 sps:$4 sm:$0xff]  }
 0x5e3   : > { %15638 = vmatprep.subr.bf16.mxu0 %v20753_v58  ;;  %v20831_v58 = vld [vmem:[%s21916_s4 + $0x3744] ss:$8 sps:$4 sm:$0xff]  }
 0x5e5   : > { %14327 = vmatpush1.bf16.msra.mxu1 %v20748_v23  ;;  %v20826_v23 = vld [vmem:[%s21916_s4 + $0x1740] ss:$8 sps:$4 sm:$0xff]  }
 0x5e6   : > { %15639 = vmatpush1.bf16.msra.mxu0 %v20751_v24  ;;  %14328 = vmatprep.subr.bf16.mxu1 %v20756_v3  ;;  %v20829_v24 = vld [vmem:[%s21916_s4 + $0x3740] ss:$8 sps:$4 sm:$0xff]   ;;  %v20834_v3 = vld [vmem:[%s21916_s4 + $0x1754] ss:$8 sps:$4 sm:$0xff]  }
 0x5e7   : > { %15640 = vmatprep.subr.bf16.mxu0 %v20759_v4  ;;  %v20837_v4 = vld [vmem:[%s21916_s4 + $0x3754] ss:$8 sps:$4 sm:$0xff]  }
 0x5e9   : > { %14329 = vmatpush1.bf16.msra.mxu1 %v20754_v63  ;;  %v20832_v63 = vld [vmem:[%s21916_s4 + $0x1750] ss:$8 sps:$4 sm:$0xff]  }
 0x5ea   : > { %15641 = vmatpush1.bf16.msra.mxu0 %v20757_v0  ;;  %14330 = vmatprep.subr.bf16.mxu1 %v20762_v27  ;;  %v20835_v0 = vld [vmem:[%s21916_s4 + $0x3750] ss:$8 sps:$4 sm:$0xff]   ;;  %v20840_v27 = vld [vmem:[%s21916_s4 + $0x1764] ss:$8 sps:$4 sm:$0xff]  }
 0x5eb   : > { %15642 = vmatprep.subr.bf16.mxu0 %v20765_v28  ;;  %v20843_v28 = vld [vmem:[%s21916_s4 + $0x3764] ss:$8 sps:$4 sm:$0xff]  }
 0x5ed   : > { %14331 = vmatpush1.bf16.msra.mxu1 %v20760_v31  ;;  %v20838_v31 = vld [vmem:[%s21916_s4 + $0x1760] ss:$8 sps:$4 sm:$0xff]  }
 0x5ee   : > { %15643 = vmatpush1.bf16.msra.mxu0 %v20763_v32  ;;  %14332 = vmatprep.subr.bf16.mxu1 %v20768_v9  ;;  %v20841_v32 = vld [vmem:[%s21916_s4 + $0x3760] ss:$8 sps:$4 sm:$0xff]   ;;  %v20846_v9 = vld [vmem:[%s21916_s4 + $0x1774] ss:$8 sps:$4 sm:$0xff]  }
 0x5ef   : > { %15644 = vmatprep.subr.bf16.mxu0 %v20771_v10  ;;  %v20849_v10 = vld [vmem:[%s21916_s4 + $0x3774] ss:$8 sps:$4 sm:$0xff]  }
 0x5f1   : > { %14333 = vmatpush1.bf16.msra.mxu1 %v20766_v11  ;;  %v20844_v11 = vld [vmem:[%s21916_s4 + $0x1770] ss:$8 sps:$4 sm:$0xff]  }
 0x5f2   : > { %15645 = vmatpush1.bf16.msra.mxu0 %v20769_v12  ;;  %14334 = vmatprep.subr.bf16.mxu1 %v20774_v7  ;;  %v20847_v12 = vld [vmem:[%s21916_s4 + $0x3770] ss:$8 sps:$4 sm:$0xff]   ;;  %v20852_v7 = vld [vmem:[%s21916_s4 + $0x1784] ss:$8 sps:$4 sm:$0xff]  }
 0x5f3   : > { %15646 = vmatprep.subr.bf16.mxu0 %v20777_v8  ;;  %v20855_v8 = vld [vmem:[%s21916_s4 + $0x3784] ss:$8 sps:$4 sm:$0xff]  }
 0x5f5   : > { %14335 = vmatpush1.bf16.msra.mxu1 %v20772_v40  ;;  %v20850_v40 = vld [vmem:[%s21916_s4 + $0x1780] ss:$8 sps:$4 sm:$0xff]  }
 0x5f6   : > { %15647 = vmatpush1.bf16.msra.mxu0 %v20775_v42  ;;  %14336 = vmatprep.subr.bf16.mxu1 %v20780_v21  ;;  %v20853_v42 = vld [vmem:[%s21916_s4 + $0x3780] ss:$8 sps:$4 sm:$0xff]   ;;  %v20858_v21 = vld [vmem:[%s21916_s4 + $0x1794] ss:$8 sps:$4 sm:$0xff]  }
 0x5f7   : > { %15648 = vmatprep.subr.bf16.mxu0 %v20783_v22  ;;  %v20861_v22 = vld [vmem:[%s21916_s4 + $0x3794] ss:$8 sps:$4 sm:$0xff]  }
 0x5f9   : > { %14337 = vmatpush1.bf16.msra.mxu1 %v20778_v17  ;;  %v20856_v17 = vld [vmem:[%s21916_s4 + $0x1790] ss:$8 sps:$4 sm:$0xff]  }
 0x5fa   : > { %15649 = vmatpush1.bf16.msra.mxu0 %v20781_v18  ;;  %14338 = vmatprep.subr.bf16.mxu1 %v20786_v19  ;;  %v20859_v18 = vld [vmem:[%s21916_s4 + $0x3790] ss:$8 sps:$4 sm:$0xff]   ;;  %v20864_v19 = vld [vmem:[%s21916_s4 + $0x17a4] ss:$8 sps:$4 sm:$0xff]  }
 0x5fb   : > { %15650 = vmatprep.subr.bf16.mxu0 %v20789_v20  ;;  %v20867_v20 = vld [vmem:[%s21916_s4 + $0x37a4] ss:$8 sps:$4 sm:$0xff]  }
 0x5fd   : > { %14339 = vmatpush1.bf16.msra.mxu1 %v20784_v53  ;;  %v20862_v53 = vld [vmem:[%s21916_s4 + $0x17a0] ss:$8 sps:$4 sm:$0xff]  }
 0x5fe   : > { %15651 = vmatpush1.bf16.msra.mxu0 %v20787_v54  ;;  %14340 = vmatprep.subr.bf16.mxu1 %v20792_v29  ;;  %v20865_v54 = vld [vmem:[%s21916_s4 + $0x37a0] ss:$8 sps:$4 sm:$0xff]   ;;  %v20870_v29 = vld [vmem:[%s21916_s4 + $0x17b4] ss:$8 sps:$4 sm:$0xff]  }
 0x5ff   : > { %15652 = vmatprep.subr.bf16.mxu0 %v20795_v30  ;;  %v20873_v30 = vld [vmem:[%s21916_s4 + $0x37b4] ss:$8 sps:$4 sm:$0xff]  }
 0x601   : > { %14341 = vmatpush1.bf16.msra.mxu1 %v20790_v59  ;;  %v20876_v59 = vld [vmem:[%s21916_s4 + $0x17c4] ss:$8 sps:$4 sm:$0xff]  }
 0x602   : > { %15653 = vmatpush1.bf16.msra.mxu0 %v20793_v38  ;;  %14342 = vmatprep.subr.bf16.mxu1 %v20798_v61  ;;  %v20879_v38 = vld [vmem:[%s21916_s4 + $0x37c4] ss:$8 sps:$4 sm:$0xff]   ;;  %v20874_v61 = vld [vmem:[%s21916_s4 + $0x17c0] ss:$8 sps:$4 sm:$0xff]  }
 0x603   : > { %15654 = vmatprep.subr.bf16.mxu0 %v20801_v62  ;;  %v20877_v62 = vld [vmem:[%s21916_s4 + $0x37c0] ss:$8 sps:$4 sm:$0xff]  }
 0x605   : > { %14343 = vmatpush1.bf16.msra.mxu1 %v20796_v35  ;;  %v20882_v35 = vld [vmem:[%s21916_s4 + $0x17d4] ss:$8 sps:$4 sm:$0xff]  }
 0x606   : > { %15655 = vmatpush1.bf16.msra.mxu0 %v20799_v37  ;;  %14353 = vmatprep.subr.bf16.mxu1 %v20804_v16  ;;  %v20885_v37 = vld [vmem:[%s21916_s4 + $0x37d4] ss:$8 sps:$4 sm:$0xff]   ;;  %v20880_v16 = vld [vmem:[%s21916_s4 + $0x17d0] ss:$8 sps:$4 sm:$0xff]  }
 0x607   : > { %15665 = vmatprep.subr.bf16.mxu0 %v20807_v39  ;;  %v20883_v39 = vld [vmem:[%s21916_s4 + $0x37d0] ss:$8 sps:$4 sm:$0xff]  }
 0x608   : > { %14345 = vmatmul.mubr.bf16.vlgmr.msra.gmra.mrb[0].mxu1 %v1038_v1  ;;  %v23938_v1 = vld [vmem:[%s21929_s29 + $0x60] sm:$0xff] }
 0x609   : > { %15657 = vmatmul.mubr.bf16.vlgmr.msra.gmra.mrb[0].mxu0 %v1102_v2  ;;  %14354 = vmatpush1.bf16.msra.mxu1 %v20802_v5  ;;  %v23941_v2 = vld [vmem:[%s21929_s29 + $0xe0] sm:$0xff] }
 0x60a   : > { %15666 = vmatpush1.bf16.msra.mxu0 %v20805_v6  ;;  %14355 = vmatprep.subr.bf16.mxu1 %v20810_v48  ;;  %v20886_v5 = vld [vmem:[%s21916_s4 + $0x17e0] ss:$8 sps:$4 sm:$0xff]   ;;  %v20894_v48 = vld [vmem:[%s21916_s4 + $0x17f4] ss:$8 sps:$4 sm:$0xff]  }
 0x60b   : > { %15667 = vmatprep.subr.bf16.mxu0 %v20813_v49  ;;  %14385 = vmatprep.mubr.bf16.mxu1 %v1041_v51  ;;  %v20889_v6 = vld [vmem:[%s21916_s4 + $0x37e0] ss:$8 sps:$4 sm:$0xff]   ;;  %v20897_v49 = vld [vmem:[%s21916_s4 + $0x37f4] ss:$8 sps:$4 sm:$0xff]   ;;  %v23949_v51 = vrot.slane %v23938_v1, %v21989_v50 }
 0x60c   : > { %15697 = vmatprep.mubr.bf16.mxu0 %v1105_v52  ;;  %v23953_v52 = vrot.slane %v23941_v2, %v21989_v50 }
 0x60d   : > { %14356 = vmatpush1.bf16.msra.mxu1 %v20808_v45  ;;  %v20892_v45 = vld [vmem:[%s21916_s4 + $0x17f0] ss:$8 sps:$4 sm:$0xff]  }
 0x60e   : > { %15668 = vmatpush1.bf16.msra.mxu0 %v20811_v15  ;;  %14357 = vmatprep.subr.bf16.mxu1 %v20816_v46  ;;  %v20895_v15 = vld [vmem:[%s21916_s4 + $0x37f0] ss:$8 sps:$4 sm:$0xff]   ;;  %v20901_v46 = vld [vmem:[%s21916_s4 + $0x1804] ss:$8 sps:$4 sm:$0xff]  }
 0x60f   : > { %15669 = vmatprep.subr.bf16.mxu0 %v20819_v47  ;;  %v20905_v47 = vld [vmem:[%s21916_s4 + $0x3804] ss:$8 sps:$4 sm:$0xff]  }
 0x611   : > { %14358 = vmatpush1.bf16.msra.mxu1 %v20814_v13  ;;  %v541_v13 = vcombine.high %v23949_v51, %v23949_v51 }
 0x612   : > { %15670 = vmatpush1.bf16.msra.mxu0 %v20817_v14  ;;  %14359 = vmatprep.subr.bf16.mxu1 %v20822_v41  ;;  %v813_v14 = vcombine.high %v23953_v52, %v23953_v52  ;;  %v1040_v41 = vpack.c.bf16 %v23864_v43, %v23864_v43  ;;  %v20906_v43 = vld [vmem:[%s21916_s4 + $0x1810] ss:$8 sps:$4 sm:$0xff]  }
 0x613   : > { %15671 = vmatprep.subr.bf16.mxu0 %v20825_v60  ;;  %v1104_v60 = vpack.c.bf16 %v23867_v36, %v23867_v36  ;;  %v20909_v36 = vld [vmem:[%s21916_s4 + $0x3810] ss:$8 sps:$4 sm:$0xff]  }
 0x615   : > { %14360 = vmatpush1.bf16.msra.mxu1 %v20820_v55  ;;  %v20899_v55 = vld [vmem:[%s21916_s4 + $0x1800] ss:$8 sps:$4 sm:$0xff]  }
 0x616   : > { %15672 = vmatpush1.bf16.msra.mxu0 %v20823_v56  ;;  %14361 = vmatprep.subr.bf16.mxu1 %v20828_v57  ;;  %v20903_v56 = vld [vmem:[%s21916_s4 + $0x3800] ss:$8 sps:$4 sm:$0xff]   ;;  %v20908_v57 = vld [vmem:[%s21916_s4 + $0x1814] ss:$8 sps:$4 sm:$0xff]  }
 0x617   : > { %15673 = vmatprep.subr.bf16.mxu0 %v20831_v58  ;;  %v20911_v58 = vld [vmem:[%s21916_s4 + $0x3814] ss:$8 sps:$4 sm:$0xff]  }
 0x619   : > { %14362 = vmatpush1.bf16.msra.mxu1 %v20826_v23  ;;  %v1043_v23 = vpack.c.bf16 %v541_v13, %v541_v13  ;;  %v20978_v13 = vld [vmem:[%s21916_s4 + $0x18d0] ss:$8 sps:$4 sm:$0xff]  }
 0x61a   : > { %15674 = vmatpush1.bf16.msra.mxu0 %v20829_v24  ;;  %14363 = vmatprep.subr.bf16.mxu1 %v20834_v3  ;;  %v1107_v24 = vpack.c.bf16 %v813_v14, %v813_v14  ;;  %v20914_v3 = vld [vmem:[%s21916_s4 + $0x1824] ss:$8 sps:$4 sm:$0xff]   ;;  %v20981_v14 = vld [vmem:[%s21916_s4 + $0x38d0] ss:$8 sps:$4 sm:$0xff]  }
 0x61b   : > { %15675 = vmatprep.subr.bf16.mxu0 %v20837_v4  ;;  %v20917_v4 = vld [vmem:[%s21916_s4 + $0x3824] ss:$8 sps:$4 sm:$0xff]  }
 0x61d   : > { %14364 = vmatpush1.bf16.msra.mxu1 %v20832_v63  ;;  %v20912_v63 = vld [vmem:[%s21916_s4 + $0x1820] ss:$8 sps:$4 sm:$0xff]  }
 0x61e   : > { %15676 = vmatpush1.bf16.msra.mxu0 %v20835_v0  ;;  %14365 = vmatprep.subr.bf16.mxu1 %v20840_v27  ;;  %v20915_v0 = vld [vmem:[%s21916_s4 + $0x3820] ss:$8 sps:$4 sm:$0xff]   ;;  %v20920_v27 = vld [vmem:[%s21916_s4 + $0x1834] ss:$8 sps:$4 sm:$0xff]  }
 0x61f   : > { %15677 = vmatprep.subr.bf16.mxu0 %v20843_v28  ;;  %v20923_v28 = vld [vmem:[%s21916_s4 + $0x3834] ss:$8 sps:$4 sm:$0xff]  }
 0x621   : > { %14366 = vmatpush1.bf16.msra.mxu1 %v20838_v31  ;;  %v20918_v31 = vld [vmem:[%s21916_s4 + $0x1830] ss:$8 sps:$4 sm:$0xff]  }
 0x622   : > { %15678 = vmatpush1.bf16.msra.mxu0 %v20841_v32  ;;  %14367 = vmatprep.subr.bf16.mxu1 %v20846_v9  ;;  %v20921_v32 = vld [vmem:[%s21916_s4 + $0x3830] ss:$8 sps:$4 sm:$0xff]   ;;  %v20926_v9 = vld [vmem:[%s21916_s4 + $0x1844] ss:$8 sps:$4 sm:$0xff]  }
 0x623   : > { %15679 = vmatprep.subr.bf16.mxu0 %v20849_v10  ;;  %v20929_v10 = vld [vmem:[%s21916_s4 + $0x3844] ss:$8 sps:$4 sm:$0xff]  }
 0x625   : > { %14368 = vmatpush1.bf16.msra.mxu1 %v20844_v11  ;;  %v20924_v11 = vld [vmem:[%s21916_s4 + $0x1840] ss:$8 sps:$4 sm:$0xff]  }
 0x626   : > { %15680 = vmatpush1.bf16.msra.mxu0 %v20847_v12  ;;  %14369 = vmatprep.subr.bf16.mxu1 %v20852_v7  ;;  %v20927_v12 = vld [vmem:[%s21916_s4 + $0x3840] ss:$8 sps:$4 sm:$0xff]   ;;  %v20932_v7 = vld [vmem:[%s21916_s4 + $0x1854] ss:$8 sps:$4 sm:$0xff]  }
 0x627   : > { %15681 = vmatprep.subr.bf16.mxu0 %v20855_v8  ;;  %v20935_v8 = vld [vmem:[%s21916_s4 + $0x3854] ss:$8 sps:$4 sm:$0xff]  }
 0x629   : > { %14370 = vmatpush1.bf16.msra.mxu1 %v20850_v40  ;;  %v20930_v40 = vld [vmem:[%s21916_s4 + $0x1850] ss:$8 sps:$4 sm:$0xff]  }
 0x62a   : > { %15682 = vmatpush1.bf16.msra.mxu0 %v20853_v42  ;;  %14371 = vmatprep.subr.bf16.mxu1 %v20858_v21  ;;  %v20933_v42 = vld [vmem:[%s21916_s4 + $0x3850] ss:$8 sps:$4 sm:$0xff]   ;;  %v20938_v21 = vld [vmem:[%s21916_s4 + $0x1864] ss:$8 sps:$4 sm:$0xff]  }
 0x62b   : > { %15683 = vmatprep.subr.bf16.mxu0 %v20861_v22  ;;  %v20941_v22 = vld [vmem:[%s21916_s4 + $0x3864] ss:$8 sps:$4 sm:$0xff]  }
 0x62d   : > { %14372 = vmatpush1.bf16.msra.mxu1 %v20856_v17  ;;  %v20936_v17 = vld [vmem:[%s21916_s4 + $0x1860] ss:$8 sps:$4 sm:$0xff]  }
 0x62e   : > { %15684 = vmatpush1.bf16.msra.mxu0 %v20859_v18  ;;  %14373 = vmatprep.subr.bf16.mxu1 %v20864_v19  ;;  %v20939_v18 = vld [vmem:[%s21916_s4 + $0x3860] ss:$8 sps:$4 sm:$0xff]   ;;  %v20944_v19 = vld [vmem:[%s21916_s4 + $0x1874] ss:$8 sps:$4 sm:$0xff]  }
 0x62f   : > { %15685 = vmatprep.subr.bf16.mxu0 %v20867_v20  ;;  %v20947_v20 = vld [vmem:[%s21916_s4 + $0x3874] ss:$8 sps:$4 sm:$0xff]  }
 0x631   : > { %14374 = vmatpush1.bf16.msra.mxu1 %v20862_v53  ;;  %v20942_v53 = vld [vmem:[%s21916_s4 + $0x1870] ss:$8 sps:$4 sm:$0xff]  }
 0x632   : > { %15686 = vmatpush1.bf16.msra.mxu0 %v20865_v54  ;;  %14375 = vmatprep.subr.bf16.mxu1 %v20870_v29  ;;  %v20945_v54 = vld [vmem:[%s21916_s4 + $0x3870] ss:$8 sps:$4 sm:$0xff]   ;;  %v20950_v29 = vld [vmem:[%s21916_s4 + $0x1884] ss:$8 sps:$4 sm:$0xff]  }
 0x633   : > { %15687 = vmatprep.subr.bf16.mxu0 %v20873_v30  ;;  %v20953_v30 = vld [vmem:[%s21916_s4 + $0x3884] ss:$8 sps:$4 sm:$0xff]  }
 0x635   : > { %14376 = vmatpush1.bf16.msra.mxu1 %v20868_v25  ;;  %v20948_v25 = vld [vmem:[%s21916_s4 + $0x1880] ss:$8 sps:$4 sm:$0xff]  }
 0x636   : > { %15688 = vmatpush1.bf16.msra.mxu0 %v20871_v26  ;;  %14377 = vmatprep.subr.bf16.mxu1 %v20876_v59  ;;  %v20951_v26 = vld [vmem:[%s21916_s4 + $0x3880] ss:$8 sps:$4 sm:$0xff]   ;;  %v20956_v59 = vld [vmem:[%s21916_s4 + $0x1894] ss:$8 sps:$4 sm:$0xff]  }
 0x637   : > { %15689 = vmatprep.subr.bf16.mxu0 %v20879_v38  ;;  %v20959_v38 = vld [vmem:[%s21916_s4 + $0x3894] ss:$8 sps:$4 sm:$0xff]  }
 0x639   : > { %14378 = vmatpush1.bf16.msra.mxu1 %v20874_v61  ;;  %v20954_v61 = vld [vmem:[%s21916_s4 + $0x1890] ss:$8 sps:$4 sm:$0xff]  }
 0x63a   : > { %15690 = vmatpush1.bf16.msra.mxu0 %v20877_v62  ;;  %14379 = vmatprep.subr.bf16.mxu1 %v20882_v35  ;;  %v20957_v62 = vld [vmem:[%s21916_s4 + $0x3890] ss:$8 sps:$4 sm:$0xff]   ;;  %v20962_v35 = vld [vmem:[%s21916_s4 + $0x18a4] ss:$8 sps:$4 sm:$0xff]  }
 0x63b   : > { %15691 = vmatprep.subr.bf16.mxu0 %v20885_v37  ;;  %v20965_v37 = vld [vmem:[%s21916_s4 + $0x38a4] ss:$8 sps:$4 sm:$0xff]  }
 0x63d   : > { %14380 = vmatpush1.bf16.msra.mxu1 %v20880_v16  ;;  %v20960_v16 = vld [vmem:[%s21916_s4 + $0x18a0] ss:$8 sps:$4 sm:$0xff]  }
 0x63e   : > { %15692 = vmatpush1.bf16.msra.mxu0 %v20883_v39  ;;  %14381 = vmatprep.subr.bf16.mxu1 %v20888_v33  ;;  %v20963_v39 = vld [vmem:[%s21916_s4 + $0x38a0] ss:$8 sps:$4 sm:$0xff]   ;;  %v20968_v33 = vld [vmem:[%s21916_s4 + $0x18b4] ss:$8 sps:$4 sm:$0xff]  }
 0x63f   : > { %15693 = vmatprep.subr.bf16.mxu0 %v20891_v34  ;;  %v20971_v34 = vld [vmem:[%s21916_s4 + $0x38b4] ss:$8 sps:$4 sm:$0xff]  }
 0x641   : > { %14382 = vmatpush1.bf16.msra.mxu1 %v20886_v5  ;;  %v20966_v5 = vld [vmem:[%s21916_s4 + $0x18b0] ss:$8 sps:$4 sm:$0xff]  }
 0x642   : > { %15694 = vmatpush1.bf16.msra.mxu0 %v20889_v6  ;;  %14383 = vmatprep.subr.bf16.mxu1 %v20894_v48  ;;  %v20969_v6 = vld [vmem:[%s21916_s4 + $0x38b0] ss:$8 sps:$4 sm:$0xff]   ;;  %v20974_v48 = vld [vmem:[%s21916_s4 + $0x18c4] ss:$8 sps:$4 sm:$0xff]  }
 0x643   : > { %15695 = vmatprep.subr.bf16.mxu0 %v20897_v49  ;;  %v20977_v49 = vld [vmem:[%s21916_s4 + $0x38c4] ss:$8 sps:$4 sm:$0xff]  }
 0x645   : > { %14384 = vmatpush1.bf16.msra.mxu1 %v20892_v45  ;;  %v20972_v45 = vld [vmem:[%s21916_s4 + $0x18c0] ss:$8 sps:$4 sm:$0xff]  }
 0x646   : > { %15696 = vmatpush1.bf16.msra.mxu0 %v20895_v15  ;;  %14394 = vmatprep.subr.bf16.mxu1 %v20901_v46  ;;  %v20975_v15 = vld [vmem:[%s21916_s4 + $0x38c0] ss:$8 sps:$4 sm:$0xff]   ;;  %v20980_v46 = vld [vmem:[%s21916_s4 + $0x18d4] ss:$8 sps:$4 sm:$0xff]  }
 0x647   : > { %15706 = vmatprep.subr.bf16.mxu0 %v20905_v47  ;;  %v20983_v47 = vld [vmem:[%s21916_s4 + $0x38d4] ss:$8 sps:$4 sm:$0xff]  }
 0x648   : > { %14386 = vmatmul.mubr.bf16.vlgmr.msra.gmra.mrb[0].mxu1 %v1040_v41  ;;  %v20986_v41 = vld [vmem:[%s21916_s4 + $0x18e4] ss:$8 sps:$4 sm:$0xff]  }
 0x649   : > { %15698 = vmatmul.mubr.bf16.vlgmr.msra.gmra.mrb[0].mxu0 %v1104_v60  ;;  %14395 = vmatpush1.bf16.msra.mxu1 %v20899_v55  ;;  %v20989_v60 = vld [vmem:[%s21916_s4 + $0x38e4] ss:$8 sps:$4 sm:$0xff]   ;;  %v526_v55 = vcombine.high %v23938_v1, %v23938_v1  ;;  %v20990_v1 = vld [vmem:[%s21916_s4 + $0x18f0] ss:$8 sps:$4 sm:$0xff]  }
 0x64a   : > { %15707 = vmatpush1.bf16.msra.mxu0 %v20903_v56  ;;  %14396 = vmatprep.subr.bf16.mxu1 %v20908_v57  ;;  %v798_v56 = vcombine.high %v23941_v2, %v23941_v2  ;;  %v20984_v57 = vld [vmem:[%s21916_s4 + $0x18e0] ss:$8 sps:$4 sm:$0xff]   ;;  %v20993_v2 = vld [vmem:[%s21916_s4 + $0x38f0] ss:$8 sps:$4 sm:$0xff]  }
 0x64b   : > { %15708 = vmatprep.subr.bf16.mxu0 %v20911_v58  ;;  %14426 = vmatprep.mubr.bf16.mxu1 %v1043_v23  ;;  %v20987_v58 = vld [vmem:[%s21916_s4 + $0x38e0] ss:$8 sps:$4 sm:$0xff]   ;;  %v20992_v23 = vld [vmem:[%s21916_s4 + $0x18f4] ss:$8 sps:$4 sm:$0xff]  }
 0x64c   : > { %15738 = vmatprep.mubr.bf16.mxu0 %v1107_v24  ;;  %v20995_v24 = vld [vmem:[%s21916_s4 + $0x38f4] ss:$8 sps:$4 sm:$0xff]  }
 0x64d   : > { %14397 = vmatpush1.bf16.msra.mxu1 %v20906_v43  ;;  %v24032_v43 = vrot.slane %v526_v55, %v21989_v50  ;;  %v21062_v55 = vld [vmem:[%s21916_s4 + $0x19b0] ss:$8 sps:$4 sm:$0xff]  }
 0x64e   : > { %15709 = vmatpush1.bf16.msra.mxu0 %v20909_v36  ;;  %14398 = vmatprep.subr.bf16.mxu1 %v20914_v3  ;;  %v24035_v36 = vrot.slane %v798_v56, %v21989_v50  ;;  %v20998_v3 = vld [vmem:[%s21916_s4 + $0x1904] ss:$8 sps:$4 sm:$0xff]   ;;  %v21065_v56 = vld [vmem:[%s21916_s4 + $0x39b0] ss:$8 sps:$4 sm:$0xff]  }
 0x64f   : > { %15710 = vmatprep.subr.bf16.mxu0 %v20917_v4  ;;  %v21001_v4 = vld [vmem:[%s21916_s4 + $0x3904] ss:$8 sps:$4 sm:$0xff]  }
 0x651   : > { %14399 = vmatpush1.bf16.msra.mxu1 %v20912_v63  ;;  %v542_v63 = vcombine.high %v24032_v43, %v24032_v43 }
 0x652   : > { %15711 = vmatpush1.bf16.msra.mxu0 %v20915_v0  ;;  %14400 = vmatprep.subr.bf16.mxu1 %v20920_v27  ;;  %v814_v0 = vcombine.high %v24035_v36, %v24035_v36  ;;  %v1042_v27 = vpack.c.bf16 %v23949_v51, %v23949_v51  ;;  %v21002_v51 = vld [vmem:[%s21916_s4 + $0x1910] ss:$8 sps:$4 sm:$0xff]  }
 0x653   : > { %15712 = vmatprep.subr.bf16.mxu0 %v20923_v28  ;;  %v1106_v28 = vpack.c.bf16 %v23953_v52, %v23953_v52  ;;  %v21005_v52 = vld [vmem:[%s21916_s4 + $0x3910] ss:$8 sps:$4 sm:$0xff]  }
 0x655   : > { %14401 = vmatpush1.bf16.msra.mxu1 %v20918_v31  ;;  %v20996_v31 = vld [vmem:[%s21916_s4 + $0x1900] ss:$8 sps:$4 sm:$0xff]  }
 0x656   : > { %15713 = vmatpush1.bf16.msra.mxu0 %v20921_v32  ;;  %14402 = vmatprep.subr.bf16.mxu1 %v20926_v9  ;;  %v20999_v32 = vld [vmem:[%s21916_s4 + $0x3900] ss:$8 sps:$4 sm:$0xff]   ;;  %v21004_v9 = vld [vmem:[%s21916_s4 + $0x1914] ss:$8 sps:$4 sm:$0xff]  }
 0x657   : > { %15714 = vmatprep.subr.bf16.mxu0 %v20929_v10  ;;  %v21007_v10 = vld [vmem:[%s21916_s4 + $0x3914] ss:$8 sps:$4 sm:$0xff]  }
 0x659   : > { %14403 = vmatpush1.bf16.msra.mxu1 %v20924_v11  ;;  %v1045_v11 = vpack.c.bf16 %v542_v63, %v542_v63  ;;  %v21082_v63 = vld [vmem:[%s21916_s4 + $0x19e4] ss:$8 sps:$4 sm:$0xff]  }
 0x65a   : > { %15715 = vmatpush1.bf16.msra.mxu0 %v20927_v12  ;;  %14404 = vmatprep.subr.bf16.mxu1 %v20932_v7  ;;  %v1109_v12 = vpack.c.bf16 %v814_v0, %v814_v0  ;;  %v21010_v7 = vld [vmem:[%s21916_s4 + $0x1924] ss:$8 sps:$4 sm:$0xff]  }
 0x65b   : > { %15716 = vmatprep.subr.bf16.mxu0 %v20935_v8  ;;  %v21013_v8 = vld [vmem:[%s21916_s4 + $0x3924] ss:$8 sps:$4 sm:$0xff]  }
 0x65c   : > { %v21085_v0 = vld [vmem:[%s21916_s4 + $0x39e4] ss:$8 sps:$4 sm:$0xff]  }
 0x65d   : > { %14405 = vmatpush1.bf16.msra.mxu1 %v20930_v40  ;;  %v21008_v40 = vld [vmem:[%s21916_s4 + $0x1920] ss:$8 sps:$4 sm:$0xff]  }
 0x65e   : > { %15717 = vmatpush1.bf16.msra.mxu0 %v20933_v42  ;;  %14406 = vmatprep.subr.bf16.mxu1 %v20938_v21  ;;  %v21011_v42 = vld [vmem:[%s21916_s4 + $0x3920] ss:$8 sps:$4 sm:$0xff]   ;;  %v21016_v21 = vld [vmem:[%s21916_s4 + $0x1934] ss:$8 sps:$4 sm:$0xff]  }
 0x65f   : > { %15718 = vmatprep.subr.bf16.mxu0 %v20941_v22  ;;  %v21019_v22 = vld [vmem:[%s21916_s4 + $0x3934] ss:$8 sps:$4 sm:$0xff]  }
 0x661   : > { %14407 = vmatpush1.bf16.msra.mxu1 %v20936_v17  ;;  %v21014_v17 = vld [vmem:[%s21916_s4 + $0x1930] ss:$8 sps:$4 sm:$0xff]  }
 0x662   : > { %15719 = vmatpush1.bf16.msra.mxu0 %v20939_v18  ;;  %14408 = vmatprep.subr.bf16.mxu1 %v20944_v19  ;;  %v21017_v18 = vld [vmem:[%s21916_s4 + $0x3930] ss:$8 sps:$4 sm:$0xff]   ;;  %v21022_v19 = vld [vmem:[%s21916_s4 + $0x1944] ss:$8 sps:$4 sm:$0xff]  }
 0x663   : > { %15720 = vmatprep.subr.bf16.mxu0 %v20947_v20  ;;  %v21025_v20 = vld [vmem:[%s21916_s4 + $0x3944] ss:$8 sps:$4 sm:$0xff]  }
 0x665   : > { %14409 = vmatpush1.bf16.msra.mxu1 %v20942_v53  ;;  %v21020_v53 = vld [vmem:[%s21916_s4 + $0x1940] ss:$8 sps:$4 sm:$0xff]  }
 0x666   : > { %15721 = vmatpush1.bf16.msra.mxu0 %v20945_v54  ;;  %14410 = vmatprep.subr.bf16.mxu1 %v20950_v29  ;;  %v21023_v54 = vld [vmem:[%s21916_s4 + $0x3940] ss:$8 sps:$4 sm:$0xff]   ;;  %v21028_v29 = vld [vmem:[%s21916_s4 + $0x1954] ss:$8 sps:$4 sm:$0xff]  }
 0x667   : > { %15722 = vmatprep.subr.bf16.mxu0 %v20953_v30  ;;  %v21031_v30 = vld [vmem:[%s21916_s4 + $0x3954] ss:$8 sps:$4 sm:$0xff]  }
 0x669   : > { %14411 = vmatpush1.bf16.msra.mxu1 %v20948_v25  ;;  %v21026_v25 = vld [vmem:[%s21916_s4 + $0x1950] ss:$8 sps:$4 sm:$0xff]  }
 0x66a   : > { %15723 = vmatpush1.bf16.msra.mxu0 %v20951_v26  ;;  %14412 = vmatprep.subr.bf16.mxu1 %v20956_v59  ;;  %v21029_v26 = vld [vmem:[%s21916_s4 + $0x3950] ss:$8 sps:$4 sm:$0xff]   ;;  %v21034_v59 = vld [vmem:[%s21916_s4 + $0x1964] ss:$8 sps:$4 sm:$0xff]  }
 0x66b   : > { %15724 = vmatprep.subr.bf16.mxu0 %v20959_v38  ;;  %v21037_v38 = vld [vmem:[%s21916_s4 + $0x3964] ss:$8 sps:$4 sm:$0xff]  }
 0x66d   : > { %14413 = vmatpush1.bf16.msra.mxu1 %v20954_v61  ;;  %v21032_v61 = vld [vmem:[%s21916_s4 + $0x1960] ss:$8 sps:$4 sm:$0xff]  }
 0x66e   : > { %15725 = vmatpush1.bf16.msra.mxu0 %v20957_v62  ;;  %14414 = vmatprep.subr.bf16.mxu1 %v20962_v35  ;;  %v21035_v62 = vld [vmem:[%s21916_s4 + $0x3960] ss:$8 sps:$4 sm:$0xff]   ;;  %v21040_v35 = vld [vmem:[%s21916_s4 + $0x1974] ss:$8 sps:$4 sm:$0xff]  }
 0x66f   : > { %15726 = vmatprep.subr.bf16.mxu0 %v20965_v37  ;;  %v21043_v37 = vld [vmem:[%s21916_s4 + $0x3974] ss:$8 sps:$4 sm:$0xff]  }
 0x671   : > { %14415 = vmatpush1.bf16.msra.mxu1 %v20960_v16  ;;  %v21038_v16 = vld [vmem:[%s21916_s4 + $0x1970] ss:$8 sps:$4 sm:$0xff]  }
 0x672   : > { %15727 = vmatpush1.bf16.msra.mxu0 %v20963_v39  ;;  %14416 = vmatprep.subr.bf16.mxu1 %v20968_v33  ;;  %v21041_v39 = vld [vmem:[%s21916_s4 + $0x3970] ss:$8 sps:$4 sm:$0xff]   ;;  %v21046_v33 = vld [vmem:[%s21916_s4 + $0x1984] ss:$8 sps:$4 sm:$0xff]  }
 0x673   : > { %15728 = vmatprep.subr.bf16.mxu0 %v20971_v34  ;;  %v21049_v34 = vld [vmem:[%s21916_s4 + $0x3984] ss:$8 sps:$4 sm:$0xff]  }
 0x675   : > { %14417 = vmatpush1.bf16.msra.mxu1 %v20966_v5  ;;  %v21044_v5 = vld [vmem:[%s21916_s4 + $0x1980] ss:$8 sps:$4 sm:$0xff]  }
 0x676   : > { %15729 = vmatpush1.bf16.msra.mxu0 %v20969_v6  ;;  %14418 = vmatprep.subr.bf16.mxu1 %v20974_v48  ;;  %v21047_v6 = vld [vmem:[%s21916_s4 + $0x3980] ss:$8 sps:$4 sm:$0xff]   ;;  %v21052_v48 = vld [vmem:[%s21916_s4 + $0x1994] ss:$8 sps:$4 sm:$0xff]  }
 0x677   : > { %15730 = vmatprep.subr.bf16.mxu0 %v20977_v49  ;;  %v21055_v49 = vld [vmem:[%s21916_s4 + $0x3994] ss:$8 sps:$4 sm:$0xff]  }
 0x679   : > { %14419 = vmatpush1.bf16.msra.mxu1 %v20972_v45  ;;  %v21050_v45 = vld [vmem:[%s21916_s4 + $0x1990] ss:$8 sps:$4 sm:$0xff]  }
 0x67a   : > { %15731 = vmatpush1.bf16.msra.mxu0 %v20975_v15  ;;  %14420 = vmatprep.subr.bf16.mxu1 %v20980_v46  ;;  %v21053_v15 = vld [vmem:[%s21916_s4 + $0x3990] ss:$8 sps:$4 sm:$0xff]   ;;  %v21058_v46 = vld [vmem:[%s21916_s4 + $0x19a4] ss:$8 sps:$4 sm:$0xff]  }
 0x67b   : > { %15732 = vmatprep.subr.bf16.mxu0 %v20983_v47  ;;  %v21061_v47 = vld [vmem:[%s21916_s4 + $0x39a4] ss:$8 sps:$4 sm:$0xff]  }
 0x67d   : > { %14421 = vmatpush1.bf16.msra.mxu1 %v20978_v13  ;;  %v21056_v13 = vld [vmem:[%s21916_s4 + $0x19a0] ss:$8 sps:$4 sm:$0xff]  }
 0x67e   : > { %15733 = vmatpush1.bf16.msra.mxu0 %v20981_v14  ;;  %14422 = vmatprep.subr.bf16.mxu1 %v20986_v41  ;;  %v21059_v14 = vld [vmem:[%s21916_s4 + $0x39a0] ss:$8 sps:$4 sm:$0xff]   ;;  %v21064_v41 = vld [vmem:[%s21916_s4 + $0x19b4] ss:$8 sps:$4 sm:$0xff]  }
 0x67f   : > { %15734 = vmatprep.subr.bf16.mxu0 %v20989_v60  ;;  %v21067_v60 = vld [vmem:[%s21916_s4 + $0x39b4] ss:$8 sps:$4 sm:$0xff]  }
 0x681   : > { %14423 = vmatpush1.bf16.msra.mxu1 %v20984_v57  ;;  %v21070_v57 = vld [vmem:[%s21916_s4 + $0x19c4] ss:$8 sps:$4 sm:$0xff]  }
 0x682   : > { %15735 = vmatpush1.bf16.msra.mxu0 %v20987_v58  ;;  %14424 = vmatprep.subr.bf16.mxu1 %v20992_v23  ;;  %v21073_v58 = vld [vmem:[%s21916_s4 + $0x39c4] ss:$8 sps:$4 sm:$0xff]   ;;  %v21068_v23 = vld [vmem:[%s21916_s4 + $0x19c0] ss:$8 sps:$4 sm:$0xff]  }
 0x683   : > { %15736 = vmatprep.subr.bf16.mxu0 %v20995_v24  ;;  %v21071_v24 = vld [vmem:[%s21916_s4 + $0x39c0] ss:$8 sps:$4 sm:$0xff]  }
 0x685   : > { %14425 = vmatpush1.bf16.msra.mxu1 %v20990_v1  ;;  %v21076_v1 = vld [vmem:[%s21916_s4 + $0x19d4] ss:$8 sps:$4 sm:$0xff]  }
 0x686   : > { %15737 = vmatpush1.bf16.msra.mxu0 %v20993_v2  ;;  %14435 = vmatprep.subr.bf16.mxu1 %v20998_v3  ;;  %v21079_v2 = vld [vmem:[%s21916_s4 + $0x39d4] ss:$8 sps:$4 sm:$0xff]   ;;  %v21074_v3 = vld [vmem:[%s21916_s4 + $0x19d0] ss:$8 sps:$4 sm:$0xff]  }
 0x687   : > { %15747 = vmatprep.subr.bf16.mxu0 %v21001_v4  ;;  %v21077_v4 = vld [vmem:[%s21916_s4 + $0x39d0] ss:$8 sps:$4 sm:$0xff]  }
 0x688   : > { %14427 = vmatmul.mubr.bf16.vlgmr.msra.gmra.mrb[0].mxu1 %v1042_v27  ;;  %v24106_v27 = vld [vmem:[%s21929_s29 + $0x68] sm:$0xff] }
 0x689   : > { %15739 = vmatmul.mubr.bf16.vlgmr.msra.gmra.mrb[0].mxu0 %v1106_v28  ;;  %14436 = vmatpush1.bf16.msra.mxu1 %v20996_v31  ;;  %v24109_v28 = vld [vmem:[%s21929_s29 + $0xe8] sm:$0xff] }
 0x68a   : > { %15748 = vmatpush1.bf16.msra.mxu0 %v20999_v32  ;;  %14437 = vmatprep.subr.bf16.mxu1 %v21004_v9  ;;  %v21080_v31 = vld [vmem:[%s21916_s4 + $0x19e0] ss:$8 sps:$4 sm:$0xff]   ;;  %v21088_v9 = vld [vmem:[%s21916_s4 + $0x19f4] ss:$8 sps:$4 sm:$0xff]  }
 0x68b   : > { %15749 = vmatprep.subr.bf16.mxu0 %v21007_v10  ;;  %14467 = vmatprep.mubr.bf16.mxu1 %v1045_v11  ;;  %v21083_v32 = vld [vmem:[%s21916_s4 + $0x39e0] ss:$8 sps:$4 sm:$0xff]   ;;  %v21091_v10 = vld [vmem:[%s21916_s4 + $0x39f4] ss:$8 sps:$4 sm:$0xff]   ;;  %v24117_v11 = vrot.slane %v24106_v27, %v21989_v50 }
 0x68c   : > { %15779 = vmatprep.mubr.bf16.mxu0 %v1109_v12  ;;  %v24121_v12 = vrot.slane %v24109_v28, %v21989_v50 }
 0x68d   : > { %14438 = vmatpush1.bf16.msra.mxu1 %v21002_v51  ;;  %v21086_v51 = vld [vmem:[%s21916_s4 + $0x19f0] ss:$8 sps:$4 sm:$0xff]  }
 0x68e   : > { %15750 = vmatpush1.bf16.msra.mxu0 %v21005_v52  ;;  %14439 = vmatprep.subr.bf16.mxu1 %v21010_v7  ;;  %v21089_v52 = vld [vmem:[%s21916_s4 + $0x39f0] ss:$8 sps:$4 sm:$0xff]   ;;  %v21095_v7 = vld [vmem:[%s21916_s4 + $0x1a04] ss:$8 sps:$4 sm:$0xff]  }
 0x68f   : > { %15751 = vmatprep.subr.bf16.mxu0 %v21013_v8  ;;  %v21099_v8 = vld [vmem:[%s21916_s4 + $0x3a04] ss:$8 sps:$4 sm:$0xff]  }
 0x691   : > { %14440 = vmatpush1.bf16.msra.mxu1 %v21008_v40  ;;  %v558_v40 = vcombine.high %v24117_v11, %v24117_v11 }
 0x692   : > { %15752 = vmatpush1.bf16.msra.mxu0 %v21011_v42  ;;  %14441 = vmatprep.subr.bf16.mxu1 %v21016_v21  ;;  %v830_v42 = vcombine.high %v24121_v12, %v24121_v12  ;;  %v1044_v21 = vpack.c.bf16 %v24032_v43, %v24032_v43  ;;  %v21100_v43 = vld [vmem:[%s21916_s4 + $0x1a10] ss:$8 sps:$4 sm:$0xff]  }
 0x693   : > { %15753 = vmatprep.subr.bf16.mxu0 %v21019_v22  ;;  %v1108_v22 = vpack.c.bf16 %v24035_v36, %v24035_v36  ;;  %v21103_v36 = vld [vmem:[%s21916_s4 + $0x3a10] ss:$8 sps:$4 sm:$0xff]  }
 0x695   : > { %14442 = vmatpush1.bf16.msra.mxu1 %v21014_v17  ;;  %v21093_v17 = vld [vmem:[%s21916_s4 + $0x1a00] ss:$8 sps:$4 sm:$0xff]  }
 0x696   : > { %15754 = vmatpush1.bf16.msra.mxu0 %v21017_v18  ;;  %14443 = vmatprep.subr.bf16.mxu1 %v21022_v19  ;;  %v21097_v18 = vld [vmem:[%s21916_s4 + $0x3a00] ss:$8 sps:$4 sm:$0xff]   ;;  %v21102_v19 = vld [vmem:[%s21916_s4 + $0x1a14] ss:$8 sps:$4 sm:$0xff]  }
 0x697   : > { %15755 = vmatprep.subr.bf16.mxu0 %v21025_v20  ;;  %v21105_v20 = vld [vmem:[%s21916_s4 + $0x3a14] ss:$8 sps:$4 sm:$0xff]  }
 0x699   : > { %14444 = vmatpush1.bf16.msra.mxu1 %v21020_v53  ;;  %v1047_v53 = vpack.c.bf16 %v558_v40, %v558_v40  ;;  %v21172_v40 = vld [vmem:[%s21916_s4 + $0x1ad0] ss:$8 sps:$4 sm:$0xff]  }
 0x69a   : > { %15756 = vmatpush1.bf16.msra.mxu0 %v21023_v54  ;;  %14445 = vmatprep.subr.bf16.mxu1 %v21028_v29  ;;  %v1111_v54 = vpack.c.bf16 %v830_v42, %v830_v42  ;;  %v21108_v29 = vld [vmem:[%s21916_s4 + $0x1a24] ss:$8 sps:$4 sm:$0xff]   ;;  %v21175_v42 = vld [vmem:[%s21916_s4 + $0x3ad0] ss:$8 sps:$4 sm:$0xff]  }
 0x69b   : > { %15757 = vmatprep.subr.bf16.mxu0 %v21031_v30  ;;  %v21111_v30 = vld [vmem:[%s21916_s4 + $0x3a24] ss:$8 sps:$4 sm:$0xff]  }
 0x69d   : > { %14446 = vmatpush1.bf16.msra.mxu1 %v21026_v25  ;;  %v21106_v25 = vld [vmem:[%s21916_s4 + $0x1a20] ss:$8 sps:$4 sm:$0xff]  }
 0x69e   : > { %15758 = vmatpush1.bf16.msra.mxu0 %v21029_v26  ;;  %14447 = vmatprep.subr.bf16.mxu1 %v21034_v59  ;;  %v21109_v26 = vld [vmem:[%s21916_s4 + $0x3a20] ss:$8 sps:$4 sm:$0xff]   ;;  %v21114_v59 = vld [vmem:[%s21916_s4 + $0x1a34] ss:$8 sps:$4 sm:$0xff]  }
 0x69f   : > { %15759 = vmatprep.subr.bf16.mxu0 %v21037_v38  ;;  %v21117_v38 = vld [vmem:[%s21916_s4 + $0x3a34] ss:$8 sps:$4 sm:$0xff]  }
 0x6a1   : > { %14448 = vmatpush1.bf16.msra.mxu1 %v21032_v61  ;;  %v21112_v61 = vld [vmem:[%s21916_s4 + $0x1a30] ss:$8 sps:$4 sm:$0xff]  }
 0x6a2   : > { %15760 = vmatpush1.bf16.msra.mxu0 %v21035_v62  ;;  %14449 = vmatprep.subr.bf16.mxu1 %v21040_v35  ;;  %v21115_v62 = vld [vmem:[%s21916_s4 + $0x3a30] ss:$8 sps:$4 sm:$0xff]   ;;  %v21120_v35 = vld [vmem:[%s21916_s4 + $0x1a44] ss:$8 sps:$4 sm:$0xff]  }
 0x6a3   : > { %15761 = vmatprep.subr.bf16.mxu0 %v21043_v37  ;;  %v21123_v37 = vld [vmem:[%s21916_s4 + $0x3a44] ss:$8 sps:$4 sm:$0xff]  }
 0x6a5   : > { %14450 = vmatpush1.bf16.msra.mxu1 %v21038_v16  ;;  %v21118_v16 = vld [vmem:[%s21916_s4 + $0x1a40] ss:$8 sps:$4 sm:$0xff]  }
 0x6a6   : > { %15762 = vmatpush1.bf16.msra.mxu0 %v21041_v39  ;;  %14451 = vmatprep.subr.bf16.mxu1 %v21046_v33  ;;  %v21121_v39 = vld [vmem:[%s21916_s4 + $0x3a40] ss:$8 sps:$4 sm:$0xff]   ;;  %v21126_v33 = vld [vmem:[%s21916_s4 + $0x1a54] ss:$8 sps:$4 sm:$0xff]  }
 0x6a7   : > { %15763 = vmatprep.subr.bf16.mxu0 %v21049_v34  ;;  %v21129_v34 = vld [vmem:[%s21916_s4 + $0x3a54] ss:$8 sps:$4 sm:$0xff]  }
 0x6a9   : > { %14452 = vmatpush1.bf16.msra.mxu1 %v21044_v5  ;;  %v21124_v5 = vld [vmem:[%s21916_s4 + $0x1a50] ss:$8 sps:$4 sm:$0xff]  }
 0x6aa   : > { %15764 = vmatpush1.bf16.msra.mxu0 %v21047_v6  ;;  %14453 = vmatprep.subr.bf16.mxu1 %v21052_v48  ;;  %v21127_v6 = vld [vmem:[%s21916_s4 + $0x3a50] ss:$8 sps:$4 sm:$0xff]   ;;  %v21132_v48 = vld [vmem:[%s21916_s4 + $0x1a64] ss:$8 sps:$4 sm:$0xff]  }
 0x6ab   : > { %15765 = vmatprep.subr.bf16.mxu0 %v21055_v49  ;;  %v21135_v49 = vld [vmem:[%s21916_s4 + $0x3a64] ss:$8 sps:$4 sm:$0xff]  }
 0x6ad   : > { %14454 = vmatpush1.bf16.msra.mxu1 %v21050_v45  ;;  %v21130_v45 = vld [vmem:[%s21916_s4 + $0x1a60] ss:$8 sps:$4 sm:$0xff]  }
 0x6ae   : > { %15766 = vmatpush1.bf16.msra.mxu0 %v21053_v15  ;;  %14455 = vmatprep.subr.bf16.mxu1 %v21058_v46  ;;  %v21133_v15 = vld [vmem:[%s21916_s4 + $0x3a60] ss:$8 sps:$4 sm:$0xff]   ;;  %v21138_v46 = vld [vmem:[%s21916_s4 + $0x1a74] ss:$8 sps:$4 sm:$0xff]  }
 0x6af   : > { %15767 = vmatprep.subr.bf16.mxu0 %v21061_v47  ;;  %v21141_v47 = vld [vmem:[%s21916_s4 + $0x3a74] ss:$8 sps:$4 sm:$0xff]  }
 0x6b1   : > { %14456 = vmatpush1.bf16.msra.mxu1 %v21056_v13  ;;  %v21136_v13 = vld [vmem:[%s21916_s4 + $0x1a70] ss:$8 sps:$4 sm:$0xff]  }
 0x6b2   : > { %15768 = vmatpush1.bf16.msra.mxu0 %v21059_v14  ;;  %14457 = vmatprep.subr.bf16.mxu1 %v21064_v41  ;;  %v21139_v14 = vld [vmem:[%s21916_s4 + $0x3a70] ss:$8 sps:$4 sm:$0xff]   ;;  %v21144_v41 = vld [vmem:[%s21916_s4 + $0x1a84] ss:$8 sps:$4 sm:$0xff]  }
 0x6b3   : > { %15769 = vmatprep.subr.bf16.mxu0 %v21067_v60  ;;  %v21147_v60 = vld [vmem:[%s21916_s4 + $0x3a84] ss:$8 sps:$4 sm:$0xff]  }
 0x6b5   : > { %14458 = vmatpush1.bf16.msra.mxu1 %v21062_v55  ;;  %v21142_v55 = vld [vmem:[%s21916_s4 + $0x1a80] ss:$8 sps:$4 sm:$0xff]  }
 0x6b6   : > { %15770 = vmatpush1.bf16.msra.mxu0 %v21065_v56  ;;  %14459 = vmatprep.subr.bf16.mxu1 %v21070_v57  ;;  %v21145_v56 = vld [vmem:[%s21916_s4 + $0x3a80] ss:$8 sps:$4 sm:$0xff]   ;;  %v21150_v57 = vld [vmem:[%s21916_s4 + $0x1a94] ss:$8 sps:$4 sm:$0xff]  }
 0x6b7   : > { %15771 = vmatprep.subr.bf16.mxu0 %v21073_v58  ;;  %v21153_v58 = vld [vmem:[%s21916_s4 + $0x3a94] ss:$8 sps:$4 sm:$0xff]  }
 0x6b9   : > { %14460 = vmatpush1.bf16.msra.mxu1 %v21068_v23  ;;  %v21148_v23 = vld [vmem:[%s21916_s4 + $0x1a90] ss:$8 sps:$4 sm:$0xff]  }
 0x6ba   : > { %15772 = vmatpush1.bf16.msra.mxu0 %v21071_v24  ;;  %14461 = vmatprep.subr.bf16.mxu1 %v21076_v1  ;;  %v21151_v24 = vld [vmem:[%s21916_s4 + $0x3a90] ss:$8 sps:$4 sm:$0xff]   ;;  %v21156_v1 = vld [vmem:[%s21916_s4 + $0x1aa4] ss:$8 sps:$4 sm:$0xff]  }
 0x6bb   : > { %15773 = vmatprep.subr.bf16.mxu0 %v21079_v2  ;;  %v21159_v2 = vld [vmem:[%s21916_s4 + $0x3aa4] ss:$8 sps:$4 sm:$0xff]  }
 0x6bd   : > { %14462 = vmatpush1.bf16.msra.mxu1 %v21074_v3  ;;  %v21154_v3 = vld [vmem:[%s21916_s4 + $0x1aa0] ss:$8 sps:$4 sm:$0xff]  }
 0x6be   : > { %15774 = vmatpush1.bf16.msra.mxu0 %v21077_v4  ;;  %14463 = vmatprep.subr.bf16.mxu1 %v21082_v63  ;;  %v21157_v4 = vld [vmem:[%s21916_s4 + $0x3aa0] ss:$8 sps:$4 sm:$0xff]   ;;  %v21162_v63 = vld [vmem:[%s21916_s4 + $0x1ab4] ss:$8 sps:$4 sm:$0xff]  }
 0x6bf   : > { %15775 = vmatprep.subr.bf16.mxu0 %v21085_v0  ;;  %v21165_v0 = vld [vmem:[%s21916_s4 + $0x3ab4] ss:$8 sps:$4 sm:$0xff]  }
 0x6c1   : > { %14464 = vmatpush1.bf16.msra.mxu1 %v21080_v31  ;;  %v21160_v31 = vld [vmem:[%s21916_s4 + $0x1ab0] ss:$8 sps:$4 sm:$0xff]  }
 0x6c2   : > { %15776 = vmatpush1.bf16.msra.mxu0 %v21083_v32  ;;  %14465 = vmatprep.subr.bf16.mxu1 %v21088_v9  ;;  %v21163_v32 = vld [vmem:[%s21916_s4 + $0x3ab0] ss:$8 sps:$4 sm:$0xff]   ;;  %v21168_v9 = vld [vmem:[%s21916_s4 + $0x1ac4] ss:$8 sps:$4 sm:$0xff]  }
 0x6c3   : > { %15777 = vmatprep.subr.bf16.mxu0 %v21091_v10  ;;  %v21171_v10 = vld [vmem:[%s21916_s4 + $0x3ac4] ss:$8 sps:$4 sm:$0xff]  }
 0x6c5   : > { %14466 = vmatpush1.bf16.msra.mxu1 %v21086_v51  ;;  %v21166_v51 = vld [vmem:[%s21916_s4 + $0x1ac0] ss:$8 sps:$4 sm:$0xff]  }
 0x6c6   : > { %15778 = vmatpush1.bf16.msra.mxu0 %v21089_v52  ;;  %14476 = vmatprep.subr.bf16.mxu1 %v21095_v7  ;;  %v21169_v52 = vld [vmem:[%s21916_s4 + $0x3ac0] ss:$8 sps:$4 sm:$0xff]   ;;  %v21174_v7 = vld [vmem:[%s21916_s4 + $0x1ad4] ss:$8 sps:$4 sm:$0xff]  }
 0x6c7   : > { %15788 = vmatprep.subr.bf16.mxu0 %v21099_v8  ;;  %v21177_v8 = vld [vmem:[%s21916_s4 + $0x3ad4] ss:$8 sps:$4 sm:$0xff]  }
 0x6c8   : > { %14468 = vmatmul.mubr.bf16.vlgmr.msra.gmra.mrb[0].mxu1 %v1044_v21  ;;  %v21180_v21 = vld [vmem:[%s21916_s4 + $0x1ae4] ss:$8 sps:$4 sm:$0xff]  }
 0x6c9   : > { %15780 = vmatmul.mubr.bf16.vlgmr.msra.gmra.mrb[0].mxu0 %v1108_v22  ;;  %14477 = vmatpush1.bf16.msra.mxu1 %v21093_v17  ;;  %v21183_v22 = vld [vmem:[%s21916_s4 + $0x3ae4] ss:$8 sps:$4 sm:$0xff]   ;;  %v543_v17 = vcombine.high %v24106_v27, %v24106_v27  ;;  %v21184_v27 = vld [vmem:[%s21916_s4 + $0x1af0] ss:$8 sps:$4 sm:$0xff]  }
 0x6ca   : > { %15789 = vmatpush1.bf16.msra.mxu0 %v21097_v18  ;;  %14478 = vmatprep.subr.bf16.mxu1 %v21102_v19  ;;  %v815_v18 = vcombine.high %v24109_v28, %v24109_v28  ;;  %v21178_v19 = vld [vmem:[%s21916_s4 + $0x1ae0] ss:$8 sps:$4 sm:$0xff]   ;;  %v21187_v28 = vld [vmem:[%s21916_s4 + $0x3af0] ss:$8 sps:$4 sm:$0xff]  }
 0x6cb   : > { %15790 = vmatprep.subr.bf16.mxu0 %v21105_v20  ;;  %14508 = vmatprep.mubr.bf16.mxu1 %v1047_v53  ;;  %v21181_v20 = vld [vmem:[%s21916_s4 + $0x3ae0] ss:$8 sps:$4 sm:$0xff]   ;;  %v21186_v53 = vld [vmem:[%s21916_s4 + $0x1af4] ss:$8 sps:$4 sm:$0xff]  }
 0x6cc   : > { %15820 = vmatprep.mubr.bf16.mxu0 %v1111_v54  ;;  %v21189_v54 = vld [vmem:[%s21916_s4 + $0x3af4] ss:$8 sps:$4 sm:$0xff]  }
 0x6cd   : > { %14479 = vmatpush1.bf16.msra.mxu1 %v21100_v43  ;;  %v24200_v43 = vrot.slane %v543_v17, %v21989_v50  ;;  %v21256_v17 = vld [vmem:[%s21916_s4 + $0x1bb0] ss:$8 sps:$4 sm:$0xff]  }
 0x6ce   : > { %15791 = vmatpush1.bf16.msra.mxu0 %v21103_v36  ;;  %14480 = vmatprep.subr.bf16.mxu1 %v21108_v29  ;;  %v24203_v36 = vrot.slane %v815_v18, %v21989_v50  ;;  %v21192_v29 = vld [vmem:[%s21916_s4 + $0x1b04] ss:$8 sps:$4 sm:$0xff]   ;;  %v21259_v18 = vld [vmem:[%s21916_s4 + $0x3bb0] ss:$8 sps:$4 sm:$0xff]  }
 0x6cf   : > { %15792 = vmatprep.subr.bf16.mxu0 %v21111_v30  ;;  %v21195_v30 = vld [vmem:[%s21916_s4 + $0x3b04] ss:$8 sps:$4 sm:$0xff]  }
 0x6d1   : > { %14481 = vmatpush1.bf16.msra.mxu1 %v21106_v25  ;;  %v559_v25 = vcombine.high %v24200_v43, %v24200_v43 }
 0x6d2   : > { %15793 = vmatpush1.bf16.msra.mxu0 %v21109_v26  ;;  %14482 = vmatprep.subr.bf16.mxu1 %v21114_v59  ;;  %v831_v26 = vcombine.high %v24203_v36, %v24203_v36  ;;  %v1046_v59 = vpack.c.bf16 %v24117_v11, %v24117_v11  ;;  %v21196_v11 = vld [vmem:[%s21916_s4 + $0x1b10] ss:$8 sps:$4 sm:$0xff]  }
 0x6d3   : > { %15794 = vmatprep.subr.bf16.mxu0 %v21117_v38  ;;  %v1110_v38 = vpack.c.bf16 %v24121_v12, %v24121_v12  ;;  %v21199_v12 = vld [vmem:[%s21916_s4 + $0x3b10] ss:$8 sps:$4 sm:$0xff]  }
 0x6d5   : > { %14483 = vmatpush1.bf16.msra.mxu1 %v21112_v61  ;;  %v21190_v61 = vld [vmem:[%s21916_s4 + $0x1b00] ss:$8 sps:$4 sm:$0xff]  }
 0x6d6   : > { %15795 = vmatpush1.bf16.msra.mxu0 %v21115_v62  ;;  %14484 = vmatprep.subr.bf16.mxu1 %v21120_v35  ;;  %v21193_v62 = vld [vmem:[%s21916_s4 + $0x3b00] ss:$8 sps:$4 sm:$0xff]   ;;  %v21198_v35 = vld [vmem:[%s21916_s4 + $0x1b14] ss:$8 sps:$4 sm:$0xff]  }
 0x6d7   : > { %15796 = vmatprep.subr.bf16.mxu0 %v21123_v37  ;;  %v21201_v37 = vld [vmem:[%s21916_s4 + $0x3b14] ss:$8 sps:$4 sm:$0xff]  }
 0x6d9   : > { %14485 = vmatpush1.bf16.msra.mxu1 %v21118_v16  ;;  %v1049_v16 = vpack.c.bf16 %v559_v25, %v559_v25  ;;  %v21276_v25 = vld [vmem:[%s21916_s4 + $0x1be4] ss:$8 sps:$4 sm:$0xff]  }
 0x6da   : > { %15797 = vmatpush1.bf16.msra.mxu0 %v21121_v39  ;;  %14486 = vmatprep.subr.bf16.mxu1 %v21126_v33  ;;  %v1113_v39 = vpack.c.bf16 %v831_v26, %v831_v26  ;;  %v21204_v33 = vld [vmem:[%s21916_s4 + $0x1b24] ss:$8 sps:$4 sm:$0xff]  }
 0x6db   : > { %15798 = vmatprep.subr.bf16.mxu0 %v21129_v34  ;;  %v21207_v34 = vld [vmem:[%s21916_s4 + $0x3b24] ss:$8 sps:$4 sm:$0xff]  }
 0x6dc   : > { %v21279_v26 = vld [vmem:[%s21916_s4 + $0x3be4] ss:$8 sps:$4 sm:$0xff]  }
 0x6dd   : > { %14487 = vmatpush1.bf16.msra.mxu1 %v21124_v5  ;;  %v21202_v5 = vld [vmem:[%s21916_s4 + $0x1b20] ss:$8 sps:$4 sm:$0xff]  }
 0x6de   : > { %15799 = vmatpush1.bf16.msra.mxu0 %v21127_v6  ;;  %14488 = vmatprep.subr.bf16.mxu1 %v21132_v48  ;;  %v21205_v6 = vld [vmem:[%s21916_s4 + $0x3b20] ss:$8 sps:$4 sm:$0xff]   ;;  %v21210_v48 = vld [vmem:[%s21916_s4 + $0x1b34] ss:$8 sps:$4 sm:$0xff]  }
 0x6df   : > { %15800 = vmatprep.subr.bf16.mxu0 %v21135_v49  ;;  %v21213_v49 = vld [vmem:[%s21916_s4 + $0x3b34] ss:$8 sps:$4 sm:$0xff]  }
 0x6e1   : > { %14489 = vmatpush1.bf16.msra.mxu1 %v21130_v45  ;;  %v21208_v45 = vld [vmem:[%s21916_s4 + $0x1b30] ss:$8 sps:$4 sm:$0xff]  }
 0x6e2   : > { %15801 = vmatpush1.bf16.msra.mxu0 %v21133_v15  ;;  %14490 = vmatprep.subr.bf16.mxu1 %v21138_v46  ;;  %v21211_v15 = vld [vmem:[%s21916_s4 + $0x3b30] ss:$8 sps:$4 sm:$0xff]   ;;  %v21216_v46 = vld [vmem:[%s21916_s4 + $0x1b44] ss:$8 sps:$4 sm:$0xff]  }
 0x6e3   : > { %15802 = vmatprep.subr.bf16.mxu0 %v21141_v47  ;;  %v21219_v47 = vld [vmem:[%s21916_s4 + $0x3b44] ss:$8 sps:$4 sm:$0xff]  }
 0x6e5   : > { %14491 = vmatpush1.bf16.msra.mxu1 %v21136_v13  ;;  %v21214_v13 = vld [vmem:[%s21916_s4 + $0x1b40] ss:$8 sps:$4 sm:$0xff]  }
 0x6e6   : > { %15803 = vmatpush1.bf16.msra.mxu0 %v21139_v14  ;;  %14492 = vmatprep.subr.bf16.mxu1 %v21144_v41  ;;  %v21217_v14 = vld [vmem:[%s21916_s4 + $0x3b40] ss:$8 sps:$4 sm:$0xff]   ;;  %v21222_v41 = vld [vmem:[%s21916_s4 + $0x1b54] ss:$8 sps:$4 sm:$0xff]  }
 0x6e7   : > { %15804 = vmatprep.subr.bf16.mxu0 %v21147_v60  ;;  %v21225_v60 = vld [vmem:[%s21916_s4 + $0x3b54] ss:$8 sps:$4 sm:$0xff]  }
 0x6e9   : > { %14493 = vmatpush1.bf16.msra.mxu1 %v21142_v55  ;;  %v21220_v55 = vld [vmem:[%s21916_s4 + $0x1b50] ss:$8 sps:$4 sm:$0xff]  }
 0x6ea   : > { %15805 = vmatpush1.bf16.msra.mxu0 %v21145_v56  ;;  %14494 = vmatprep.subr.bf16.mxu1 %v21150_v57  ;;  %v21223_v56 = vld [vmem:[%s21916_s4 + $0x3b50] ss:$8 sps:$4 sm:$0xff]   ;;  %v21228_v57 = vld [vmem:[%s21916_s4 + $0x1b64] ss:$8 sps:$4 sm:$0xff]  }
 0x6eb   : > { %15806 = vmatprep.subr.bf16.mxu0 %v21153_v58  ;;  %v21231_v58 = vld [vmem:[%s21916_s4 + $0x3b64] ss:$8 sps:$4 sm:$0xff]  }
 0x6ed   : > { %14495 = vmatpush1.bf16.msra.mxu1 %v21148_v23  ;;  %v21226_v23 = vld [vmem:[%s21916_s4 + $0x1b60] ss:$8 sps:$4 sm:$0xff]  }
 0x6ee   : > { %15807 = vmatpush1.bf16.msra.mxu0 %v21151_v24  ;;  %14496 = vmatprep.subr.bf16.mxu1 %v21156_v1  ;;  %v21229_v24 = vld [vmem:[%s21916_s4 + $0x3b60] ss:$8 sps:$4 sm:$0xff]   ;;  %v21234_v1 = vld [vmem:[%s21916_s4 + $0x1b74] ss:$8 sps:$4 sm:$0xff]  }
 0x6ef   : > { %15808 = vmatprep.subr.bf16.mxu0 %v21159_v2  ;;  %v21237_v2 = vld [vmem:[%s21916_s4 + $0x3b74] ss:$8 sps:$4 sm:$0xff]  }
 0x6f1   : > { %14497 = vmatpush1.bf16.msra.mxu1 %v21154_v3  ;;  %v21232_v3 = vld [vmem:[%s21916_s4 + $0x1b70] ss:$8 sps:$4 sm:$0xff]  }
 0x6f2   : > { %15809 = vmatpush1.bf16.msra.mxu0 %v21157_v4  ;;  %14498 = vmatprep.subr.bf16.mxu1 %v21162_v63  ;;  %v21235_v4 = vld [vmem:[%s21916_s4 + $0x3b70] ss:$8 sps:$4 sm:$0xff]   ;;  %v21240_v63 = vld [vmem:[%s21916_s4 + $0x1b84] ss:$8 sps:$4 sm:$0xff]  }
 0x6f3   : > { %15810 = vmatprep.subr.bf16.mxu0 %v21165_v0  ;;  %v21243_v0 = vld [vmem:[%s21916_s4 + $0x3b84] ss:$8 sps:$4 sm:$0xff]  }
 0x6f5   : > { %14499 = vmatpush1.bf16.msra.mxu1 %v21160_v31  ;;  %v21238_v31 = vld [vmem:[%s21916_s4 + $0x1b80] ss:$8 sps:$4 sm:$0xff]  }
 0x6f6   : > { %15811 = vmatpush1.bf16.msra.mxu0 %v21163_v32  ;;  %14500 = vmatprep.subr.bf16.mxu1 %v21168_v9  ;;  %v21241_v32 = vld [vmem:[%s21916_s4 + $0x3b80] ss:$8 sps:$4 sm:$0xff]   ;;  %v21246_v9 = vld [vmem:[%s21916_s4 + $0x1b94] ss:$8 sps:$4 sm:$0xff]  }
 0x6f7   : > { %15812 = vmatprep.subr.bf16.mxu0 %v21171_v10  ;;  %v21249_v10 = vld [vmem:[%s21916_s4 + $0x3b94] ss:$8 sps:$4 sm:$0xff]  }
 0x6f9   : > { %14501 = vmatpush1.bf16.msra.mxu1 %v21166_v51  ;;  %v21244_v51 = vld [vmem:[%s21916_s4 + $0x1b90] ss:$8 sps:$4 sm:$0xff]  }
 0x6fa   : > { %15813 = vmatpush1.bf16.msra.mxu0 %v21169_v52  ;;  %14502 = vmatprep.subr.bf16.mxu1 %v21174_v7  ;;  %v21247_v52 = vld [vmem:[%s21916_s4 + $0x3b90] ss:$8 sps:$4 sm:$0xff]   ;;  %v21252_v7 = vld [vmem:[%s21916_s4 + $0x1ba4] ss:$8 sps:$4 sm:$0xff]  }
 0x6fb   : > { %15814 = vmatprep.subr.bf16.mxu0 %v21177_v8  ;;  %v21255_v8 = vld [vmem:[%s21916_s4 + $0x3ba4] ss:$8 sps:$4 sm:$0xff]  }
 0x6fd   : > { %14503 = vmatpush1.bf16.msra.mxu1 %v21172_v40  ;;  %v21250_v40 = vld [vmem:[%s21916_s4 + $0x1ba0] ss:$8 sps:$4 sm:$0xff]  }
 0x6fe   : > { %15815 = vmatpush1.bf16.msra.mxu0 %v21175_v42  ;;  %14504 = vmatprep.subr.bf16.mxu1 %v21180_v21  ;;  %v21253_v42 = vld [vmem:[%s21916_s4 + $0x3ba0] ss:$8 sps:$4 sm:$0xff]   ;;  %v21258_v21 = vld [vmem:[%s21916_s4 + $0x1bb4] ss:$8 sps:$4 sm:$0xff]  }
 0x6ff   : > { %15816 = vmatprep.subr.bf16.mxu0 %v21183_v22  ;;  %v21261_v22 = vld [vmem:[%s21916_s4 + $0x3bb4] ss:$8 sps:$4 sm:$0xff]  }
 0x701   : > { %14505 = vmatpush1.bf16.msra.mxu1 %v21178_v19  ;;  %v21264_v19 = vld [vmem:[%s21916_s4 + $0x1bc4] ss:$8 sps:$4 sm:$0xff]  }
 0x702   : > { %15817 = vmatpush1.bf16.msra.mxu0 %v21181_v20  ;;  %14506 = vmatprep.subr.bf16.mxu1 %v21186_v53  ;;  %v21267_v20 = vld [vmem:[%s21916_s4 + $0x3bc4] ss:$8 sps:$4 sm:$0xff]   ;;  %v21262_v53 = vld [vmem:[%s21916_s4 + $0x1bc0] ss:$8 sps:$4 sm:$0xff]  }
 0x703   : > { %15818 = vmatprep.subr.bf16.mxu0 %v21189_v54  ;;  %v21265_v54 = vld [vmem:[%s21916_s4 + $0x3bc0] ss:$8 sps:$4 sm:$0xff]  }
 0x705   : > { %14507 = vmatpush1.bf16.msra.mxu1 %v21184_v27  ;;  %v21270_v27 = vld [vmem:[%s21916_s4 + $0x1bd4] ss:$8 sps:$4 sm:$0xff]  }
 0x706   : > { %15819 = vmatpush1.bf16.msra.mxu0 %v21187_v28  ;;  %14517 = vmatprep.subr.bf16.mxu1 %v21192_v29  ;;  %v21273_v28 = vld [vmem:[%s21916_s4 + $0x3bd4] ss:$8 sps:$4 sm:$0xff]   ;;  %v21268_v29 = vld [vmem:[%s21916_s4 + $0x1bd0] ss:$8 sps:$4 sm:$0xff]  }
 0x707   : > { %15829 = vmatprep.subr.bf16.mxu0 %v21195_v30  ;;  %v21271_v30 = vld [vmem:[%s21916_s4 + $0x3bd0] ss:$8 sps:$4 sm:$0xff]  }
 0x708   : > { %14509 = vmatmul.mubr.bf16.vlgmr.msra.gmra.mrb[0].mxu1 %v1046_v59  ;;  %v24274_v59 = vld [vmem:[%s21929_s29 + $0x70] sm:$0xff] }
 0x709   : > { %15821 = vmatmul.mubr.bf16.vlgmr.msra.gmra.mrb[0].mxu0 %v1110_v38  ;;  %14518 = vmatpush1.bf16.msra.mxu1 %v21190_v61  ;;  %v24277_v38 = vld [vmem:[%s21929_s29 + $0xf0] sm:$0xff]  ;;  %v21274_v61 = vld [vmem:[%s21916_s4 + $0x1be0] ss:$8 sps:$4 sm:$0xff]  }
 0x70a   : > { %15830 = vmatpush1.bf16.msra.mxu0 %v21193_v62  ;;  %14519 = vmatprep.subr.bf16.mxu1 %v21198_v35  ;;  %v21277_v62 = vld [vmem:[%s21916_s4 + $0x3be0] ss:$8 sps:$4 sm:$0xff]   ;;  %v21282_v35 = vld [vmem:[%s21916_s4 + $0x1bf4] ss:$8 sps:$4 sm:$0xff]  }
 0x70b   : > { %15831 = vmatprep.subr.bf16.mxu0 %v21201_v37  ;;  %14549 = vmatprep.mubr.bf16.mxu1 %v1049_v16  ;;  %v21285_v37 = vld [vmem:[%s21916_s4 + $0x3bf4] ss:$8 sps:$4 sm:$0xff]   ;;  %v24285_v16 = vrot.slane %v24274_v59, %v21989_v50 }
 0x70c   : > { %15861 = vmatprep.mubr.bf16.mxu0 %v1113_v39  ;;  %v24289_v39 = vrot.slane %v24277_v38, %v21989_v50 }
 0x70d   : > { %14520 = vmatpush1.bf16.msra.mxu1 %v21196_v11  ;;  %v21280_v11 = vld [vmem:[%s21916_s4 + $0x1bf0] ss:$8 sps:$4 sm:$0xff]  }
 0x70e   : > { %15832 = vmatpush1.bf16.msra.mxu0 %v21199_v12  ;;  %14521 = vmatprep.subr.bf16.mxu1 %v21204_v33  ;;  %v21283_v12 = vld [vmem:[%s21916_s4 + $0x3bf0] ss:$8 sps:$4 sm:$0xff]   ;;  %v21289_v33 = vld [vmem:[%s21916_s4 + $0x1c04] ss:$8 sps:$4 sm:$0xff]  }
 0x70f   : > { %15833 = vmatprep.subr.bf16.mxu0 %v21207_v34  ;;  %v21293_v34 = vld [vmem:[%s21916_s4 + $0x3c04] ss:$8 sps:$4 sm:$0xff]  }
 0x711   : > { %14522 = vmatpush1.bf16.msra.mxu1 %v21202_v5  ;;  %v575_v5 = vcombine.high %v24285_v16, %v24285_v16 }
 0x712   : > { %15834 = vmatpush1.bf16.msra.mxu0 %v21205_v6  ;;  %14523 = vmatprep.subr.bf16.mxu1 %v21210_v48  ;;  %v847_v6 = vcombine.high %v24289_v39, %v24289_v39  ;;  %v1048_v48 = vpack.c.bf16 %v24200_v43, %v24200_v43  ;;  %v21294_v43 = vld [vmem:[%s21916_s4 + $0x1c10] ss:$8 sps:$4 sm:$0xff]  }
 0x713   : > { %15835 = vmatprep.subr.bf16.mxu0 %v21213_v49  ;;  %v1112_v49 = vpack.c.bf16 %v24203_v36, %v24203_v36  ;;  %v21297_v36 = vld [vmem:[%s21916_s4 + $0x3c10] ss:$8 sps:$4 sm:$0xff]  }
 0x715   : > { %14524 = vmatpush1.bf16.msra.mxu1 %v21208_v45  ;;  %v21287_v45 = vld [vmem:[%s21916_s4 + $0x1c00] ss:$8 sps:$4 sm:$0xff]  }
 0x716   : > { %15836 = vmatpush1.bf16.msra.mxu0 %v21211_v15  ;;  %14525 = vmatprep.subr.bf16.mxu1 %v21216_v46  ;;  %v21291_v15 = vld [vmem:[%s21916_s4 + $0x3c00] ss:$8 sps:$4 sm:$0xff]   ;;  %v21296_v46 = vld [vmem:[%s21916_s4 + $0x1c14] ss:$8 sps:$4 sm:$0xff]  }
 0x717   : > { %15837 = vmatprep.subr.bf16.mxu0 %v21219_v47  ;;  %v21299_v47 = vld [vmem:[%s21916_s4 + $0x3c14] ss:$8 sps:$4 sm:$0xff]  }
 0x719   : > { %14526 = vmatpush1.bf16.msra.mxu1 %v21214_v13  ;;  %v1051_v13 = vpack.c.bf16 %v575_v5, %v575_v5  ;;  %v21366_v5 = vld [vmem:[%s21916_s4 + $0x1cd0] ss:$8 sps:$4 sm:$0xff]  }
 0x71a   : > { %15838 = vmatpush1.bf16.msra.mxu0 %v21217_v14  ;;  %14527 = vmatprep.subr.bf16.mxu1 %v21222_v41  ;;  %v1115_v14 = vpack.c.bf16 %v847_v6, %v847_v6  ;;  %v21302_v41 = vld [vmem:[%s21916_s4 + $0x1c24] ss:$8 sps:$4 sm:$0xff]   ;;  %v21369_v6 = vld [vmem:[%s21916_s4 + $0x3cd0] ss:$8 sps:$4 sm:$0xff]  }
 0x71b   : > { %15839 = vmatprep.subr.bf16.mxu0 %v21225_v60  ;;  %v21305_v60 = vld [vmem:[%s21916_s4 + $0x3c24] ss:$8 sps:$4 sm:$0xff]  }
 0x71d   : > { %14528 = vmatpush1.bf16.msra.mxu1 %v21220_v55  ;;  %v21300_v55 = vld [vmem:[%s21916_s4 + $0x1c20] ss:$8 sps:$4 sm:$0xff]  }
 0x71e   : > { %15840 = vmatpush1.bf16.msra.mxu0 %v21223_v56  ;;  %14529 = vmatprep.subr.bf16.mxu1 %v21228_v57  ;;  %v21303_v56 = vld [vmem:[%s21916_s4 + $0x3c20] ss:$8 sps:$4 sm:$0xff]   ;;  %v21308_v57 = vld [vmem:[%s21916_s4 + $0x1c34] ss:$8 sps:$4 sm:$0xff]  }
 0x71f   : > { %15841 = vmatprep.subr.bf16.mxu0 %v21231_v58  ;;  %v21311_v58 = vld [vmem:[%s21916_s4 + $0x3c34] ss:$8 sps:$4 sm:$0xff]  }
 0x721   : > { %14530 = vmatpush1.bf16.msra.mxu1 %v21226_v23  ;;  %v21306_v23 = vld [vmem:[%s21916_s4 + $0x1c30] ss:$8 sps:$4 sm:$0xff]  }
 0x722   : > { %15842 = vmatpush1.bf16.msra.mxu0 %v21229_v24  ;;  %14531 = vmatprep.subr.bf16.mxu1 %v21234_v1  ;;  %v21309_v24 = vld [vmem:[%s21916_s4 + $0x3c30] ss:$8 sps:$4 sm:$0xff]   ;;  %v21314_v1 = vld [vmem:[%s21916_s4 + $0x1c44] ss:$8 sps:$4 sm:$0xff]  }
 0x723   : > { %15843 = vmatprep.subr.bf16.mxu0 %v21237_v2  ;;  %v21317_v2 = vld [vmem:[%s21916_s4 + $0x3c44] ss:$8 sps:$4 sm:$0xff]  }
 0x725   : > { %14532 = vmatpush1.bf16.msra.mxu1 %v21232_v3  ;;  %v21312_v3 = vld [vmem:[%s21916_s4 + $0x1c40] ss:$8 sps:$4 sm:$0xff]  }
 0x726   : > { %15844 = vmatpush1.bf16.msra.mxu0 %v21235_v4  ;;  %14533 = vmatprep.subr.bf16.mxu1 %v21240_v63  ;;  %v21315_v4 = vld [vmem:[%s21916_s4 + $0x3c40] ss:$8 sps:$4 sm:$0xff]   ;;  %v21320_v63 = vld [vmem:[%s21916_s4 + $0x1c54] ss:$8 sps:$4 sm:$0xff]  }
 0x727   : > { %15845 = vmatprep.subr.bf16.mxu0 %v21243_v0  ;;  %v21323_v0 = vld [vmem:[%s21916_s4 + $0x3c54] ss:$8 sps:$4 sm:$0xff]  }
 0x729   : > { %14534 = vmatpush1.bf16.msra.mxu1 %v21238_v31  ;;  %v21318_v31 = vld [vmem:[%s21916_s4 + $0x1c50] ss:$8 sps:$4 sm:$0xff]  }
 0x72a   : > { %15846 = vmatpush1.bf16.msra.mxu0 %v21241_v32  ;;  %14535 = vmatprep.subr.bf16.mxu1 %v21246_v9  ;;  %v21321_v32 = vld [vmem:[%s21916_s4 + $0x3c50] ss:$8 sps:$4 sm:$0xff]   ;;  %v21326_v9 = vld [vmem:[%s21916_s4 + $0x1c64] ss:$8 sps:$4 sm:$0xff]  }
 0x72b   : > { %15847 = vmatprep.subr.bf16.mxu0 %v21249_v10  ;;  %v21329_v10 = vld [vmem:[%s21916_s4 + $0x3c64] ss:$8 sps:$4 sm:$0xff]  }
 0x72d   : > { %14536 = vmatpush1.bf16.msra.mxu1 %v21244_v51  ;;  %v21324_v51 = vld [vmem:[%s21916_s4 + $0x1c60] ss:$8 sps:$4 sm:$0xff]  }
 0x72e   : > { %15848 = vmatpush1.bf16.msra.mxu0 %v21247_v52  ;;  %14537 = vmatprep.subr.bf16.mxu1 %v21252_v7  ;;  %v21327_v52 = vld [vmem:[%s21916_s4 + $0x3c60] ss:$8 sps:$4 sm:$0xff]   ;;  %v21332_v7 = vld [vmem:[%s21916_s4 + $0x1c74] ss:$8 sps:$4 sm:$0xff]  }
 0x72f   : > { %15849 = vmatprep.subr.bf16.mxu0 %v21255_v8  ;;  %v21335_v8 = vld [vmem:[%s21916_s4 + $0x3c74] ss:$8 sps:$4 sm:$0xff]  }
 0x731   : > { %14538 = vmatpush1.bf16.msra.mxu1 %v21250_v40  ;;  %v21330_v40 = vld [vmem:[%s21916_s4 + $0x1c70] ss:$8 sps:$4 sm:$0xff]  }
 0x732   : > { %15850 = vmatpush1.bf16.msra.mxu0 %v21253_v42  ;;  %14539 = vmatprep.subr.bf16.mxu1 %v21258_v21  ;;  %v21333_v42 = vld [vmem:[%s21916_s4 + $0x3c70] ss:$8 sps:$4 sm:$0xff]   ;;  %v21338_v21 = vld [vmem:[%s21916_s4 + $0x1c84] ss:$8 sps:$4 sm:$0xff]  }
 0x733   : > { %15851 = vmatprep.subr.bf16.mxu0 %v21261_v22  ;;  %v21341_v22 = vld [vmem:[%s21916_s4 + $0x3c84] ss:$8 sps:$4 sm:$0xff]  }
 0x735   : > { %14540 = vmatpush1.bf16.msra.mxu1 %v21256_v17  ;;  %v21336_v17 = vld [vmem:[%s21916_s4 + $0x1c80] ss:$8 sps:$4 sm:$0xff]  }
 0x736   : > { %15852 = vmatpush1.bf16.msra.mxu0 %v21259_v18  ;;  %14541 = vmatprep.subr.bf16.mxu1 %v21264_v19  ;;  %v21339_v18 = vld [vmem:[%s21916_s4 + $0x3c80] ss:$8 sps:$4 sm:$0xff]   ;;  %v21344_v19 = vld [vmem:[%s21916_s4 + $0x1c94] ss:$8 sps:$4 sm:$0xff]  }
 0x737   : > { %15853 = vmatprep.subr.bf16.mxu0 %v21267_v20  ;;  %v21347_v20 = vld [vmem:[%s21916_s4 + $0x3c94] ss:$8 sps:$4 sm:$0xff]  }
 0x739   : > { %14542 = vmatpush1.bf16.msra.mxu1 %v21262_v53  ;;  %v21342_v53 = vld [vmem:[%s21916_s4 + $0x1c90] ss:$8 sps:$4 sm:$0xff]  }
 0x73a   : > { %15854 = vmatpush1.bf16.msra.mxu0 %v21265_v54  ;;  %14543 = vmatprep.subr.bf16.mxu1 %v21270_v27  ;;  %v21345_v54 = vld [vmem:[%s21916_s4 + $0x3c90] ss:$8 sps:$4 sm:$0xff]   ;;  %v21350_v27 = vld [vmem:[%s21916_s4 + $0x1ca4] ss:$8 sps:$4 sm:$0xff]  }
 0x73b   : > { %15855 = vmatprep.subr.bf16.mxu0 %v21273_v28  ;;  %v21353_v28 = vld [vmem:[%s21916_s4 + $0x3ca4] ss:$8 sps:$4 sm:$0xff]  }
 0x73d   : > { %14544 = vmatpush1.bf16.msra.mxu1 %v21268_v29  ;;  %v21348_v29 = vld [vmem:[%s21916_s4 + $0x1ca0] ss:$8 sps:$4 sm:$0xff]  }
 0x73e   : > { %15856 = vmatpush1.bf16.msra.mxu0 %v21271_v30  ;;  %14545 = vmatprep.subr.bf16.mxu1 %v21276_v25  ;;  %v21351_v30 = vld [vmem:[%s21916_s4 + $0x3ca0] ss:$8 sps:$4 sm:$0xff]   ;;  %v21356_v25 = vld [vmem:[%s21916_s4 + $0x1cb4] ss:$8 sps:$4 sm:$0xff]  }
 0x73f   : > { %15857 = vmatprep.subr.bf16.mxu0 %v21279_v26  ;;  %v21359_v26 = vld [vmem:[%s21916_s4 + $0x3cb4] ss:$8 sps:$4 sm:$0xff]  }
 0x741   : > { %14546 = vmatpush1.bf16.msra.mxu1 %v21274_v61  ;;  %v21354_v61 = vld [vmem:[%s21916_s4 + $0x1cb0] ss:$8 sps:$4 sm:$0xff]  }
 0x742   : > { %15858 = vmatpush1.bf16.msra.mxu0 %v21277_v62  ;;  %14547 = vmatprep.subr.bf16.mxu1 %v21282_v35  ;;  %v21357_v62 = vld [vmem:[%s21916_s4 + $0x3cb0] ss:$8 sps:$4 sm:$0xff]   ;;  %v21362_v35 = vld [vmem:[%s21916_s4 + $0x1cc4] ss:$8 sps:$4 sm:$0xff]  }
 0x743   : > { %15859 = vmatprep.subr.bf16.mxu0 %v21285_v37  ;;  %v21365_v37 = vld [vmem:[%s21916_s4 + $0x3cc4] ss:$8 sps:$4 sm:$0xff]  }
 0x745   : > { %14548 = vmatpush1.bf16.msra.mxu1 %v21280_v11  ;;  %v21360_v11 = vld [vmem:[%s21916_s4 + $0x1cc0] ss:$8 sps:$4 sm:$0xff]  }
 0x746   : > { %15860 = vmatpush1.bf16.msra.mxu0 %v21283_v12  ;;  %14558 = vmatprep.subr.bf16.mxu1 %v21289_v33  ;;  %v21363_v12 = vld [vmem:[%s21916_s4 + $0x3cc0] ss:$8 sps:$4 sm:$0xff]   ;;  %v21368_v33 = vld [vmem:[%s21916_s4 + $0x1cd4] ss:$8 sps:$4 sm:$0xff]  }
 0x747   : > { %15870 = vmatprep.subr.bf16.mxu0 %v21293_v34  ;;  %v21371_v34 = vld [vmem:[%s21916_s4 + $0x3cd4] ss:$8 sps:$4 sm:$0xff]  }
 0x748   : > { %14550 = vmatmul.mubr.bf16.vlgmr.msra.gmra.mrb[0].mxu1 %v1048_v48  ;;  %v21374_v48 = vld [vmem:[%s21916_s4 + $0x1ce4] ss:$8 sps:$4 sm:$0xff]  }
 0x749   : > { %15862 = vmatmul.mubr.bf16.vlgmr.msra.gmra.mrb[0].mxu0 %v1112_v49  ;;  %14559 = vmatpush1.bf16.msra.mxu1 %v21287_v45  ;;  %v21377_v49 = vld [vmem:[%s21916_s4 + $0x3ce4] ss:$8 sps:$4 sm:$0xff]   ;;  %v560_v45 = vcombine.high %v24274_v59, %v24274_v59  ;;  %v21378_v59 = vld [vmem:[%s21916_s4 + $0x1cf0] ss:$8 sps:$4 sm:$0xff]  }
 0x74a   : > { %15871 = vmatpush1.bf16.msra.mxu0 %v21291_v15  ;;  %14560 = vmatprep.subr.bf16.mxu1 %v21296_v46  ;;  %v832_v15 = vcombine.high %v24277_v38, %v24277_v38  ;;  %v21372_v46 = vld [vmem:[%s21916_s4 + $0x1ce0] ss:$8 sps:$4 sm:$0xff]   ;;  %v21381_v38 = vld [vmem:[%s21916_s4 + $0x3cf0] ss:$8 sps:$4 sm:$0xff]  }
 0x74b   : > { %15872 = vmatprep.subr.bf16.mxu0 %v21299_v47  ;;  %14590 = vmatprep.mubr.bf16.mxu1 %v1051_v13  ;;  %v21375_v47 = vld [vmem:[%s21916_s4 + $0x3ce0] ss:$8 sps:$4 sm:$0xff]   ;;  %v21380_v13 = vld [vmem:[%s21916_s4 + $0x1cf4] ss:$8 sps:$4 sm:$0xff]  }
 0x74c   : > { %15902 = vmatprep.mubr.bf16.mxu0 %v1115_v14  ;;  %v21383_v14 = vld [vmem:[%s21916_s4 + $0x3cf4] ss:$8 sps:$4 sm:$0xff]  }
 0x74d   : > { %14561 = vmatpush1.bf16.msra.mxu1 %v21294_v43  ;;  %v24368_v43 = vrot.slane %v560_v45, %v21989_v50  ;;  %v21450_v45 = vld [vmem:[%s21916_s4 + $0x1db0] ss:$8 sps:$4 sm:$0xff]  }
 0x74e   : > { %15873 = vmatpush1.bf16.msra.mxu0 %v21297_v36  ;;  %14562 = vmatprep.subr.bf16.mxu1 %v21302_v41  ;;  %v24371_v36 = vrot.slane %v832_v15, %v21989_v50  ;;  %v21386_v41 = vld [vmem:[%s21916_s4 + $0x1d04] ss:$8 sps:$4 sm:$0xff]   ;;  %v21453_v15 = vld [vmem:[%s21916_s4 + $0x3db0] ss:$8 sps:$4 sm:$0xff]  }
 0x74f   : > { %15874 = vmatprep.subr.bf16.mxu0 %v21305_v60  ;;  %v21389_v60 = vld [vmem:[%s21916_s4 + $0x3d04] ss:$8 sps:$4 sm:$0xff]  }
 0x751   : > { %14563 = vmatpush1.bf16.msra.mxu1 %v21300_v55  ;;  %v576_v55 = vcombine.high %v24368_v43, %v24368_v43 }
 0x752   : > { %15875 = vmatpush1.bf16.msra.mxu0 %v21303_v56  ;;  %14564 = vmatprep.subr.bf16.mxu1 %v21308_v57  ;;  %v848_v56 = vcombine.high %v24371_v36, %v24371_v36  ;;  %v1050_v57 = vpack.c.bf16 %v24285_v16, %v24285_v16  ;;  %v21390_v16 = vld [vmem:[%s21916_s4 + $0x1d10] ss:$8 sps:$4 sm:$0xff]  }
 0x753   : > { %15876 = vmatprep.subr.bf16.mxu0 %v21311_v58  ;;  %v1114_v58 = vpack.c.bf16 %v24289_v39, %v24289_v39  ;;  %v21393_v39 = vld [vmem:[%s21916_s4 + $0x3d10] ss:$8 sps:$4 sm:$0xff]  }
 0x755   : > { %14565 = vmatpush1.bf16.msra.mxu1 %v21306_v23  ;;  %v21384_v23 = vld [vmem:[%s21916_s4 + $0x1d00] ss:$8 sps:$4 sm:$0xff]  }
 0x756   : > { %15877 = vmatpush1.bf16.msra.mxu0 %v21309_v24  ;;  %14566 = vmatprep.subr.bf16.mxu1 %v21314_v1  ;;  %v21387_v24 = vld [vmem:[%s21916_s4 + $0x3d00] ss:$8 sps:$4 sm:$0xff]   ;;  %v21392_v1 = vld [vmem:[%s21916_s4 + $0x1d14] ss:$8 sps:$4 sm:$0xff]  }
 0x757   : > { %15878 = vmatprep.subr.bf16.mxu0 %v21317_v2  ;;  %v21395_v2 = vld [vmem:[%s21916_s4 + $0x3d14] ss:$8 sps:$4 sm:$0xff]  }
 0x759   : > { %14567 = vmatpush1.bf16.msra.mxu1 %v21312_v3  ;;  %v1053_v3 = vpack.c.bf16 %v576_v55, %v576_v55  ;;  %v21470_v55 = vld [vmem:[%s21916_s4 + $0x1de4] ss:$8 sps:$4 sm:$0xff]  }
 0x75a   : > { %15879 = vmatpush1.bf16.msra.mxu0 %v21315_v4  ;;  %14568 = vmatprep.subr.bf16.mxu1 %v21320_v63  ;;  %v1117_v4 = vpack.c.bf16 %v848_v56, %v848_v56  ;;  %v21398_v63 = vld [vmem:[%s21916_s4 + $0x1d24] ss:$8 sps:$4 sm:$0xff]  }
 0x75b   : > { %15880 = vmatprep.subr.bf16.mxu0 %v21323_v0  ;;  %v21401_v0 = vld [vmem:[%s21916_s4 + $0x3d24] ss:$8 sps:$4 sm:$0xff]  }
 0x75c   : > { %v21473_v56 = vld [vmem:[%s21916_s4 + $0x3de4] ss:$8 sps:$4 sm:$0xff]  }
 0x75d   : > { %14569 = vmatpush1.bf16.msra.mxu1 %v21318_v31  ;;  %v21396_v31 = vld [vmem:[%s21916_s4 + $0x1d20] ss:$8 sps:$4 sm:$0xff]  }
 0x75e   : > { %15881 = vmatpush1.bf16.msra.mxu0 %v21321_v32  ;;  %14570 = vmatprep.subr.bf16.mxu1 %v21326_v9  ;;  %v21399_v32 = vld [vmem:[%s21916_s4 + $0x3d20] ss:$8 sps:$4 sm:$0xff]   ;;  %v21404_v9 = vld [vmem:[%s21916_s4 + $0x1d34] ss:$8 sps:$4 sm:$0xff]  }
 0x75f   : > { %15882 = vmatprep.subr.bf16.mxu0 %v21329_v10  ;;  %v21407_v10 = vld [vmem:[%s21916_s4 + $0x3d34] ss:$8 sps:$4 sm:$0xff]  }
 0x761   : > { %14571 = vmatpush1.bf16.msra.mxu1 %v21324_v51  ;;  %v21402_v51 = vld [vmem:[%s21916_s4 + $0x1d30] ss:$8 sps:$4 sm:$0xff]  }
 0x762   : > { %15883 = vmatpush1.bf16.msra.mxu0 %v21327_v52  ;;  %14572 = vmatprep.subr.bf16.mxu1 %v21332_v7  ;;  %v21405_v52 = vld [vmem:[%s21916_s4 + $0x3d30] ss:$8 sps:$4 sm:$0xff]   ;;  %v21410_v7 = vld [vmem:[%s21916_s4 + $0x1d44] ss:$8 sps:$4 sm:$0xff]  }
 0x763   : > { %15884 = vmatprep.subr.bf16.mxu0 %v21335_v8  ;;  %v21413_v8 = vld [vmem:[%s21916_s4 + $0x3d44] ss:$8 sps:$4 sm:$0xff]  }
 0x765   : > { %14573 = vmatpush1.bf16.msra.mxu1 %v21330_v40  ;;  %v21408_v40 = vld [vmem:[%s21916_s4 + $0x1d40] ss:$8 sps:$4 sm:$0xff]  }
 0x766   : > { %15885 = vmatpush1.bf16.msra.mxu0 %v21333_v42  ;;  %14574 = vmatprep.subr.bf16.mxu1 %v21338_v21  ;;  %v21411_v42 = vld [vmem:[%s21916_s4 + $0x3d40] ss:$8 sps:$4 sm:$0xff]   ;;  %v21416_v21 = vld [vmem:[%s21916_s4 + $0x1d54] ss:$8 sps:$4 sm:$0xff]  }
 0x767   : > { %15886 = vmatprep.subr.bf16.mxu0 %v21341_v22  ;;  %v21419_v22 = vld [vmem:[%s21916_s4 + $0x3d54] ss:$8 sps:$4 sm:$0xff]  }
 0x769   : > { %14575 = vmatpush1.bf16.msra.mxu1 %v21336_v17  ;;  %v21414_v17 = vld [vmem:[%s21916_s4 + $0x1d50] ss:$8 sps:$4 sm:$0xff]  }
 0x76a   : > { %15887 = vmatpush1.bf16.msra.mxu0 %v21339_v18  ;;  %14576 = vmatprep.subr.bf16.mxu1 %v21344_v19  ;;  %v21417_v18 = vld [vmem:[%s21916_s4 + $0x3d50] ss:$8 sps:$4 sm:$0xff]   ;;  %v21422_v19 = vld [vmem:[%s21916_s4 + $0x1d64] ss:$8 sps:$4 sm:$0xff]  }
 0x76b   : > { %15888 = vmatprep.subr.bf16.mxu0 %v21347_v20  ;;  %v21425_v20 = vld [vmem:[%s21916_s4 + $0x3d64] ss:$8 sps:$4 sm:$0xff]  }
 0x76d   : > { %14577 = vmatpush1.bf16.msra.mxu1 %v21342_v53  ;;  %v21420_v53 = vld [vmem:[%s21916_s4 + $0x1d60] ss:$8 sps:$4 sm:$0xff]  }
 0x76e   : > { %15889 = vmatpush1.bf16.msra.mxu0 %v21345_v54  ;;  %14578 = vmatprep.subr.bf16.mxu1 %v21350_v27  ;;  %v21423_v54 = vld [vmem:[%s21916_s4 + $0x3d60] ss:$8 sps:$4 sm:$0xff]   ;;  %v21428_v27 = vld [vmem:[%s21916_s4 + $0x1d74] ss:$8 sps:$4 sm:$0xff]  }
 0x76f   : > { %15890 = vmatprep.subr.bf16.mxu0 %v21353_v28  ;;  %v21431_v28 = vld [vmem:[%s21916_s4 + $0x3d74] ss:$8 sps:$4 sm:$0xff]  }
 0x771   : > { %14579 = vmatpush1.bf16.msra.mxu1 %v21348_v29  ;;  %v21426_v29 = vld [vmem:[%s21916_s4 + $0x1d70] ss:$8 sps:$4 sm:$0xff]  }
 0x772   : > { %15891 = vmatpush1.bf16.msra.mxu0 %v21351_v30  ;;  %14580 = vmatprep.subr.bf16.mxu1 %v21356_v25  ;;  %v21429_v30 = vld [vmem:[%s21916_s4 + $0x3d70] ss:$8 sps:$4 sm:$0xff]   ;;  %v21434_v25 = vld [vmem:[%s21916_s4 + $0x1d84] ss:$8 sps:$4 sm:$0xff]  }
 0x773   : > { %15892 = vmatprep.subr.bf16.mxu0 %v21359_v26  ;;  %v21437_v26 = vld [vmem:[%s21916_s4 + $0x3d84] ss:$8 sps:$4 sm:$0xff]  }
 0x775   : > { %14581 = vmatpush1.bf16.msra.mxu1 %v21354_v61  ;;  %v21432_v61 = vld [vmem:[%s21916_s4 + $0x1d80] ss:$8 sps:$4 sm:$0xff]  }
 0x776   : > { %15893 = vmatpush1.bf16.msra.mxu0 %v21357_v62  ;;  %14582 = vmatprep.subr.bf16.mxu1 %v21362_v35  ;;  %v21435_v62 = vld [vmem:[%s21916_s4 + $0x3d80] ss:$8 sps:$4 sm:$0xff]   ;;  %v21440_v35 = vld [vmem:[%s21916_s4 + $0x1d94] ss:$8 sps:$4 sm:$0xff]  }
 0x777   : > { %15894 = vmatprep.subr.bf16.mxu0 %v21365_v37  ;;  %v21443_v37 = vld [vmem:[%s21916_s4 + $0x3d94] ss:$8 sps:$4 sm:$0xff]  }
 0x779   : > { %14583 = vmatpush1.bf16.msra.mxu1 %v21360_v11  ;;  %v21438_v11 = vld [vmem:[%s21916_s4 + $0x1d90] ss:$8 sps:$4 sm:$0xff]  }
 0x77a   : > { %15895 = vmatpush1.bf16.msra.mxu0 %v21363_v12  ;;  %14584 = vmatprep.subr.bf16.mxu1 %v21368_v33  ;;  %v21441_v12 = vld [vmem:[%s21916_s4 + $0x3d90] ss:$8 sps:$4 sm:$0xff]   ;;  %v21446_v33 = vld [vmem:[%s21916_s4 + $0x1da4] ss:$8 sps:$4 sm:$0xff]  }
 0x77b   : > { %15896 = vmatprep.subr.bf16.mxu0 %v21371_v34  ;;  %v21449_v34 = vld [vmem:[%s21916_s4 + $0x3da4] ss:$8 sps:$4 sm:$0xff]  }
 0x77d   : > { %14585 = vmatpush1.bf16.msra.mxu1 %v21366_v5  ;;  %v21444_v5 = vld [vmem:[%s21916_s4 + $0x1da0] ss:$8 sps:$4 sm:$0xff]  }
 0x77e   : > { %15897 = vmatpush1.bf16.msra.mxu0 %v21369_v6  ;;  %14586 = vmatprep.subr.bf16.mxu1 %v21374_v48  ;;  %v21447_v6 = vld [vmem:[%s21916_s4 + $0x3da0] ss:$8 sps:$4 sm:$0xff]   ;;  %v21452_v48 = vld [vmem:[%s21916_s4 + $0x1db4] ss:$8 sps:$4 sm:$0xff]  }
 0x77f   : > { %15898 = vmatprep.subr.bf16.mxu0 %v21377_v49  ;;  %v21455_v49 = vld [vmem:[%s21916_s4 + $0x3db4] ss:$8 sps:$4 sm:$0xff]  }
 0x781   : > { %14587 = vmatpush1.bf16.msra.mxu1 %v21372_v46  ;;  %v21458_v46 = vld [vmem:[%s21916_s4 + $0x1dc4] ss:$8 sps:$4 sm:$0xff]  }
 0x782   : > { %15899 = vmatpush1.bf16.msra.mxu0 %v21375_v47  ;;  %14588 = vmatprep.subr.bf16.mxu1 %v21380_v13  ;;  %v21461_v47 = vld [vmem:[%s21916_s4 + $0x3dc4] ss:$8 sps:$4 sm:$0xff]   ;;  %v21456_v13 = vld [vmem:[%s21916_s4 + $0x1dc0] ss:$8 sps:$4 sm:$0xff]  }
 0x783   : > { %15900 = vmatprep.subr.bf16.mxu0 %v21383_v14  ;;  %v21459_v14 = vld [vmem:[%s21916_s4 + $0x3dc0] ss:$8 sps:$4 sm:$0xff]  }
 0x785   : > { %14589 = vmatpush1.bf16.msra.mxu1 %v21378_v59  ;;  %v21464_v59 = vld [vmem:[%s21916_s4 + $0x1dd4] ss:$8 sps:$4 sm:$0xff]  }
 0x786   : > { %15901 = vmatpush1.bf16.msra.mxu0 %v21381_v38  ;;  %14599 = vmatprep.subr.bf16.mxu1 %v21386_v41  ;;  %v21467_v38 = vld [vmem:[%s21916_s4 + $0x3dd4] ss:$8 sps:$4 sm:$0xff]   ;;  %v21462_v41 = vld [vmem:[%s21916_s4 + $0x1dd0] ss:$8 sps:$4 sm:$0xff]  }
 0x787   : > { %15911 = vmatprep.subr.bf16.mxu0 %v21389_v60  ;;  %v21465_v60 = vld [vmem:[%s21916_s4 + $0x3dd0] ss:$8 sps:$4 sm:$0xff]  }
 0x788   : > { %14591 = vmatmul.mubr.bf16.vlgmr.msra.gmra.mrb[0].mxu1 %v1050_v57  ;;  %v24442_v57 = vld [vmem:[%s21929_s29 + $0x78] sm:$0xff] }
 0x789   : > { %15903 = vmatmul.mubr.bf16.vlgmr.msra.gmra.mrb[0].mxu0 %v1114_v58  ;;  %14600 = vmatpush1.bf16.msra.mxu1 %v21384_v23  ;;  %v24445_v58 = vld [vmem:[%s21929_s29 + $0xf8] sm:$0xff]  ;;  %v21468_v23 = vld [vmem:[%s21916_s4 + $0x1de0] ss:$8 sps:$4 sm:$0xff]  }
 0x78a   : > { %15912 = vmatpush1.bf16.msra.mxu0 %v21387_v24  ;;  %14601 = vmatprep.subr.bf16.mxu1 %v21392_v1  ;;  %v21471_v24 = vld [vmem:[%s21916_s4 + $0x3de0] ss:$8 sps:$4 sm:$0xff]   ;;  %v21476_v1 = vld [vmem:[%s21916_s4 + $0x1df4] ss:$8 sps:$4 sm:$0xff]  }
 0x78b   : > { %15913 = vmatprep.subr.bf16.mxu0 %v21395_v2  ;;  %14631 = vmatprep.mubr.bf16.mxu1 %v1053_v3  ;;  %v21479_v2 = vld [vmem:[%s21916_s4 + $0x3df4] ss:$8 sps:$4 sm:$0xff]   ;;  %v24453_v3 = vrot.slane %v24442_v57, %v21989_v50 }
 0x78c   : > { %15943 = vmatprep.mubr.bf16.mxu0 %v1117_v4  ;;  %v24457_v4 = vrot.slane %v24445_v58, %v21989_v50 }
 0x78d   : > { %14602 = vmatpush1.bf16.msra.mxu1 %v21390_v16  ;;  %v21474_v16 = vld [vmem:[%s21916_s4 + $0x1df0] ss:$8 sps:$4 sm:$0xff]  }
 0x78e   : > { %15914 = vmatpush1.bf16.msra.mxu0 %v21393_v39  ;;  %14603 = vmatprep.subr.bf16.mxu1 %v21398_v63  ;;  %v21477_v39 = vld [vmem:[%s21916_s4 + $0x3df0] ss:$8 sps:$4 sm:$0xff]   ;;  %v21483_v63 = vld [vmem:[%s21916_s4 + $0x1e04] ss:$8 sps:$4 sm:$0xff]  }
 0x78f   : > { %15915 = vmatprep.subr.bf16.mxu0 %v21401_v0  ;;  %v21487_v0 = vld [vmem:[%s21916_s4 + $0x3e04] ss:$8 sps:$4 sm:$0xff]  }
 0x791   : > { %14604 = vmatpush1.bf16.msra.mxu1 %v21396_v31  ;;  %v592_v31 = vcombine.high %v24453_v3, %v24453_v3 }
 0x792   : > { %15916 = vmatpush1.bf16.msra.mxu0 %v21399_v32  ;;  %14605 = vmatprep.subr.bf16.mxu1 %v21404_v9  ;;  %v864_v32 = vcombine.high %v24457_v4, %v24457_v4  ;;  %v1052_v9 = vpack.c.bf16 %v24368_v43, %v24368_v43  ;;  %v21488_v43 = vld [vmem:[%s21916_s4 + $0x1e10] ss:$8 sps:$4 sm:$0xff]  }
 0x793   : > { %15917 = vmatprep.subr.bf16.mxu0 %v21407_v10  ;;  %v1116_v10 = vpack.c.bf16 %v24371_v36, %v24371_v36  ;;  %v21491_v36 = vld [vmem:[%s21916_s4 + $0x3e10] ss:$8 sps:$4 sm:$0xff]  }
 0x795   : > { %14606 = vmatpush1.bf16.msra.mxu1 %v21402_v51  ;;  %v21481_v51 = vld [vmem:[%s21916_s4 + $0x1e00] ss:$8 sps:$4 sm:$0xff]  }
 0x796   : > { %15918 = vmatpush1.bf16.msra.mxu0 %v21405_v52  ;;  %14607 = vmatprep.subr.bf16.mxu1 %v21410_v7  ;;  %v21485_v52 = vld [vmem:[%s21916_s4 + $0x3e00] ss:$8 sps:$4 sm:$0xff]   ;;  %v21490_v7 = vld [vmem:[%s21916_s4 + $0x1e14] ss:$8 sps:$4 sm:$0xff]  }
 0x797   : > { %15919 = vmatprep.subr.bf16.mxu0 %v21413_v8  ;;  %v21493_v8 = vld [vmem:[%s21916_s4 + $0x3e14] ss:$8 sps:$4 sm:$0xff]  }
 0x799   : > { %14608 = vmatpush1.bf16.msra.mxu1 %v21408_v40  ;;  %v1055_v40 = vpack.c.bf16 %v592_v31, %v592_v31  ;;  %v21560_v31 = vld [vmem:[%s21916_s4 + $0x1ed0] ss:$8 sps:$4 sm:$0xff]  }
 0x79a   : > { %15920 = vmatpush1.bf16.msra.mxu0 %v21411_v42  ;;  %14609 = vmatprep.subr.bf16.mxu1 %v21416_v21  ;;  %v1119_v42 = vpack.c.bf16 %v864_v32, %v864_v32  ;;  %v21496_v21 = vld [vmem:[%s21916_s4 + $0x1e24] ss:$8 sps:$4 sm:$0xff]   ;;  %v21563_v32 = vld [vmem:[%s21916_s4 + $0x3ed0] ss:$8 sps:$4 sm:$0xff]  }
 0x79b   : > { %15921 = vmatprep.subr.bf16.mxu0 %v21419_v22  ;;  %v21499_v22 = vld [vmem:[%s21916_s4 + $0x3e24] ss:$8 sps:$4 sm:$0xff]  }
 0x79d   : > { %14610 = vmatpush1.bf16.msra.mxu1 %v21414_v17  ;;  %v21494_v17 = vld [vmem:[%s21916_s4 + $0x1e20] ss:$8 sps:$4 sm:$0xff]  }
 0x79e   : > { %15922 = vmatpush1.bf16.msra.mxu0 %v21417_v18  ;;  %14611 = vmatprep.subr.bf16.mxu1 %v21422_v19  ;;  %v21497_v18 = vld [vmem:[%s21916_s4 + $0x3e20] ss:$8 sps:$4 sm:$0xff]   ;;  %v21502_v19 = vld [vmem:[%s21916_s4 + $0x1e34] ss:$8 sps:$4 sm:$0xff]  }
 0x79f   : > { %15923 = vmatprep.subr.bf16.mxu0 %v21425_v20  ;;  %v21505_v20 = vld [vmem:[%s21916_s4 + $0x3e34] ss:$8 sps:$4 sm:$0xff]  }
 0x7a1   : > { %14612 = vmatpush1.bf16.msra.mxu1 %v21420_v53  ;;  %v21500_v53 = vld [vmem:[%s21916_s4 + $0x1e30] ss:$8 sps:$4 sm:$0xff]  }
 0x7a2   : > { %15924 = vmatpush1.bf16.msra.mxu0 %v21423_v54  ;;  %14613 = vmatprep.subr.bf16.mxu1 %v21428_v27  ;;  %v21503_v54 = vld [vmem:[%s21916_s4 + $0x3e30] ss:$8 sps:$4 sm:$0xff]   ;;  %v21508_v27 = vld [vmem:[%s21916_s4 + $0x1e44] ss:$8 sps:$4 sm:$0xff]  }
 0x7a3   : > { %15925 = vmatprep.subr.bf16.mxu0 %v21431_v28  ;;  %v21511_v28 = vld [vmem:[%s21916_s4 + $0x3e44] ss:$8 sps:$4 sm:$0xff]  }
 0x7a5   : > { %14614 = vmatpush1.bf16.msra.mxu1 %v21426_v29  ;;  %v21506_v29 = vld [vmem:[%s21916_s4 + $0x1e40] ss:$8 sps:$4 sm:$0xff]  }
 0x7a6   : > { %15926 = vmatpush1.bf16.msra.mxu0 %v21429_v30  ;;  %14615 = vmatprep.subr.bf16.mxu1 %v21434_v25  ;;  %v21509_v30 = vld [vmem:[%s21916_s4 + $0x3e40] ss:$8 sps:$4 sm:$0xff]   ;;  %v21514_v25 = vld [vmem:[%s21916_s4 + $0x1e54] ss:$8 sps:$4 sm:$0xff]  }
 0x7a7   : > { %15927 = vmatprep.subr.bf16.mxu0 %v21437_v26  ;;  %v21517_v26 = vld [vmem:[%s21916_s4 + $0x3e54] ss:$8 sps:$4 sm:$0xff]  }
 0x7a9   : > { %14616 = vmatpush1.bf16.msra.mxu1 %v21432_v61  ;;  %v21512_v61 = vld [vmem:[%s21916_s4 + $0x1e50] ss:$8 sps:$4 sm:$0xff]  }
 0x7aa   : > { %15928 = vmatpush1.bf16.msra.mxu0 %v21435_v62  ;;  %14617 = vmatprep.subr.bf16.mxu1 %v21440_v35  ;;  %v21515_v62 = vld [vmem:[%s21916_s4 + $0x3e50] ss:$8 sps:$4 sm:$0xff]   ;;  %v21520_v35 = vld [vmem:[%s21916_s4 + $0x1e64] ss:$8 sps:$4 sm:$0xff]  }
 0x7ab   : > { %15929 = vmatprep.subr.bf16.mxu0 %v21443_v37  ;;  %v21523_v37 = vld [vmem:[%s21916_s4 + $0x3e64] ss:$8 sps:$4 sm:$0xff]  }
 0x7ad   : > { %14618 = vmatpush1.bf16.msra.mxu1 %v21438_v11  ;;  %v21518_v11 = vld [vmem:[%s21916_s4 + $0x1e60] ss:$8 sps:$4 sm:$0xff]  }
 0x7ae   : > { %15930 = vmatpush1.bf16.msra.mxu0 %v21441_v12  ;;  %14619 = vmatprep.subr.bf16.mxu1 %v21446_v33  ;;  %v21521_v12 = vld [vmem:[%s21916_s4 + $0x3e60] ss:$8 sps:$4 sm:$0xff]   ;;  %v21526_v33 = vld [vmem:[%s21916_s4 + $0x1e74] ss:$8 sps:$4 sm:$0xff]  }
 0x7af   : > { %15931 = vmatprep.subr.bf16.mxu0 %v21449_v34  ;;  %v21529_v34 = vld [vmem:[%s21916_s4 + $0x3e74] ss:$8 sps:$4 sm:$0xff]  }
 0x7b1   : > { %14620 = vmatpush1.bf16.msra.mxu1 %v21444_v5  ;;  %v21524_v5 = vld [vmem:[%s21916_s4 + $0x1e70] ss:$8 sps:$4 sm:$0xff]  }
 0x7b2   : > { %15932 = vmatpush1.bf16.msra.mxu0 %v21447_v6  ;;  %14621 = vmatprep.subr.bf16.mxu1 %v21452_v48  ;;  %v21527_v6 = vld [vmem:[%s21916_s4 + $0x3e70] ss:$8 sps:$4 sm:$0xff]   ;;  %v21532_v48 = vld [vmem:[%s21916_s4 + $0x1e84] ss:$8 sps:$4 sm:$0xff]  }
 0x7b3   : > { %15933 = vmatprep.subr.bf16.mxu0 %v21455_v49  ;;  %v21535_v49 = vld [vmem:[%s21916_s4 + $0x3e84] ss:$8 sps:$4 sm:$0xff]  }
 0x7b5   : > { %14622 = vmatpush1.bf16.msra.mxu1 %v21450_v45  ;;  %v21530_v45 = vld [vmem:[%s21916_s4 + $0x1e80] ss:$8 sps:$4 sm:$0xff]  }
 0x7b6   : > { %15934 = vmatpush1.bf16.msra.mxu0 %v21453_v15  ;;  %14623 = vmatprep.subr.bf16.mxu1 %v21458_v46  ;;  %v21533_v15 = vld [vmem:[%s21916_s4 + $0x3e80] ss:$8 sps:$4 sm:$0xff]   ;;  %v21538_v46 = vld [vmem:[%s21916_s4 + $0x1e94] ss:$8 sps:$4 sm:$0xff]  }
 0x7b7   : > { %15935 = vmatprep.subr.bf16.mxu0 %v21461_v47  ;;  %v21541_v47 = vld [vmem:[%s21916_s4 + $0x3e94] ss:$8 sps:$4 sm:$0xff]  }
 0x7b9   : > { %14624 = vmatpush1.bf16.msra.mxu1 %v21456_v13  ;;  %v21536_v13 = vld [vmem:[%s21916_s4 + $0x1e90] ss:$8 sps:$4 sm:$0xff]  }
 0x7ba   : > { %15936 = vmatpush1.bf16.msra.mxu0 %v21459_v14  ;;  %14625 = vmatprep.subr.bf16.mxu1 %v21464_v59  ;;  %v21539_v14 = vld [vmem:[%s21916_s4 + $0x3e90] ss:$8 sps:$4 sm:$0xff]   ;;  %v21544_v59 = vld [vmem:[%s21916_s4 + $0x1ea4] ss:$8 sps:$4 sm:$0xff]  }
 0x7bb   : > { %15937 = vmatprep.subr.bf16.mxu0 %v21467_v38  ;;  %v21547_v38 = vld [vmem:[%s21916_s4 + $0x3ea4] ss:$8 sps:$4 sm:$0xff]  }
 0x7bd   : > { %14626 = vmatpush1.bf16.msra.mxu1 %v21462_v41  ;;  %v21542_v41 = vld [vmem:[%s21916_s4 + $0x1ea0] ss:$8 sps:$4 sm:$0xff]  }
 0x7be   : > { %15938 = vmatpush1.bf16.msra.mxu0 %v21465_v60  ;;  %14627 = vmatprep.subr.bf16.mxu1 %v21470_v55  ;;  %v21545_v60 = vld [vmem:[%s21916_s4 + $0x3ea0] ss:$8 sps:$4 sm:$0xff]   ;;  %v21550_v55 = vld [vmem:[%s21916_s4 + $0x1eb4] ss:$8 sps:$4 sm:$0xff]  }
 0x7bf   : > { %15939 = vmatprep.subr.bf16.mxu0 %v21473_v56  ;;  %v21553_v56 = vld [vmem:[%s21916_s4 + $0x3eb4] ss:$8 sps:$4 sm:$0xff]  }
 0x7c1   : > { %14628 = vmatpush1.bf16.msra.mxu1 %v21468_v23  ;;  %v21548_v23 = vld [vmem:[%s21916_s4 + $0x1eb0] ss:$8 sps:$4 sm:$0xff]  }
 0x7c2   : > { %15940 = vmatpush1.bf16.msra.mxu0 %v21471_v24  ;;  %14629 = vmatprep.subr.bf16.mxu1 %v21476_v1  ;;  %v21551_v24 = vld [vmem:[%s21916_s4 + $0x3eb0] ss:$8 sps:$4 sm:$0xff]   ;;  %v21556_v1 = vld [vmem:[%s21916_s4 + $0x1ec4] ss:$8 sps:$4 sm:$0xff]  }
 0x7c3   : > { %15941 = vmatprep.subr.bf16.mxu0 %v21479_v2  ;;  %v21559_v2 = vld [vmem:[%s21916_s4 + $0x3ec4] ss:$8 sps:$4 sm:$0xff]  }
 0x7c5   : > { %14630 = vmatpush1.bf16.msra.mxu1 %v21474_v16  ;;  %v21554_v16 = vld [vmem:[%s21916_s4 + $0x1ec0] ss:$8 sps:$4 sm:$0xff]  }
 0x7c6   : > { %15942 = vmatpush1.bf16.msra.mxu0 %v21477_v39  ;;  %14640 = vmatprep.subr.bf16.mxu1 %v21483_v63  ;;  %v21557_v39 = vld [vmem:[%s21916_s4 + $0x3ec0] ss:$8 sps:$4 sm:$0xff]   ;;  %v21562_v63 = vld [vmem:[%s21916_s4 + $0x1ed4] ss:$8 sps:$4 sm:$0xff]  }
 0x7c7   : > { %15952 = vmatprep.subr.bf16.mxu0 %v21487_v0  ;;  %v21565_v0 = vld [vmem:[%s21916_s4 + $0x3ed4] ss:$8 sps:$4 sm:$0xff]  }
 0x7c8   : > { %14632 = vmatmul.mubr.bf16.vlgmr.msra.gmra.mrb[0].mxu1 %v1052_v9  ;;  %v21568_v9 = vld [vmem:[%s21916_s4 + $0x1ee4] ss:$8 sps:$4 sm:$0xff]  }
 0x7c9   : > { %15944 = vmatmul.mubr.bf16.vlgmr.msra.gmra.mrb[0].mxu0 %v1116_v10  ;;  %14641 = vmatpush1.bf16.msra.mxu1 %v21481_v51  ;;  %v21571_v10 = vld [vmem:[%s21916_s4 + $0x3ee4] ss:$8 sps:$4 sm:$0xff]   ;;  %v577_v51 = vcombine.high %v24442_v57, %v24442_v57  ;;  %v21572_v57 = vld [vmem:[%s21916_s4 + $0x1ef0] ss:$8 sps:$4 sm:$0xff]  }
 0x7ca   : > { %15953 = vmatpush1.bf16.msra.mxu0 %v21485_v52  ;;  %14642 = vmatprep.subr.bf16.mxu1 %v21490_v7  ;;  %v849_v52 = vcombine.high %v24445_v58, %v24445_v58  ;;  %v21566_v7 = vld [vmem:[%s21916_s4 + $0x1ee0] ss:$8 sps:$4 sm:$0xff]   ;;  %v21575_v58 = vld [vmem:[%s21916_s4 + $0x3ef0] ss:$8 sps:$4 sm:$0xff]  }
 0x7cb   : > { %15954 = vmatprep.subr.bf16.mxu0 %v21493_v8  ;;  %14672 = vmatprep.mubr.bf16.mxu1 %v1055_v40  ;;  %v21569_v8 = vld [vmem:[%s21916_s4 + $0x3ee0] ss:$8 sps:$4 sm:$0xff]   ;;  %v21574_v40 = vld [vmem:[%s21916_s4 + $0x1ef4] ss:$8 sps:$4 sm:$0xff]  }
 0x7cc   : > { %15984 = vmatprep.mubr.bf16.mxu0 %v1119_v42  ;;  %v21577_v42 = vld [vmem:[%s21916_s4 + $0x3ef4] ss:$8 sps:$4 sm:$0xff]  }
 0x7cd   : > { %14643 = vmatpush1.bf16.msra.mxu1 %v21488_v43  ;;  %v24536_v43 = vrot.slane %v577_v51, %v21989_v50  ;;  %v21644_v51 = vld [vmem:[%s21916_s4 + $0x1fb0] ss:$8 sps:$4 sm:$0xff]  }
 0x7ce   : > { %15955 = vmatpush1.bf16.msra.mxu0 %v21491_v36  ;;  %14644 = vmatprep.subr.bf16.mxu1 %v21496_v21  ;;  %v24539_v36 = vrot.slane %v849_v52, %v21989_v50  ;;  %v21580_v21 = vld [vmem:[%s21916_s4 + $0x1f04] ss:$8 sps:$4 sm:$0xff]   ;;  %v21647_v52 = vld [vmem:[%s21916_s4 + $0x3fb0] ss:$8 sps:$4 sm:$0xff]  }
 0x7cf   : > { %15956 = vmatprep.subr.bf16.mxu0 %v21499_v22  ;;  %v21583_v22 = vld [vmem:[%s21916_s4 + $0x3f04] ss:$8 sps:$4 sm:$0xff]  }
 0x7d1   : > { %14645 = vmatpush1.bf16.msra.mxu1 %v21494_v17  ;;  %v593_v17 = vcombine.high %v24536_v43, %v24536_v43 }
 0x7d2   : > { %15957 = vmatpush1.bf16.msra.mxu0 %v21497_v18  ;;  %14646 = vmatprep.subr.bf16.mxu1 %v21502_v19  ;;  %v865_v18 = vcombine.high %v24539_v36, %v24539_v36  ;;  %v1054_v19 = vpack.c.bf16 %v24453_v3, %v24453_v3  ;;  %v21584_v3 = vld [vmem:[%s21916_s4 + $0x1f10] ss:$8 sps:$4 sm:$0xff]  }
 0x7d3   : > { %15958 = vmatprep.subr.bf16.mxu0 %v21505_v20  ;;  %v1118_v20 = vpack.c.bf16 %v24457_v4, %v24457_v4  ;;  %v21587_v4 = vld [vmem:[%s21916_s4 + $0x3f10] ss:$8 sps:$4 sm:$0xff]  }
 0x7d5   : > { %14647 = vmatpush1.bf16.msra.mxu1 %v21500_v53  ;;  %v21578_v53 = vld [vmem:[%s21916_s4 + $0x1f00] ss:$8 sps:$4 sm:$0xff]  }
 0x7d6   : > { %15959 = vmatpush1.bf16.msra.mxu0 %v21503_v54  ;;  %14648 = vmatprep.subr.bf16.mxu1 %v21508_v27  ;;  %v21581_v54 = vld [vmem:[%s21916_s4 + $0x3f00] ss:$8 sps:$4 sm:$0xff]   ;;  %v21586_v27 = vld [vmem:[%s21916_s4 + $0x1f14] ss:$8 sps:$4 sm:$0xff]  }
 0x7d7   : > { %15960 = vmatprep.subr.bf16.mxu0 %v21511_v28  ;;  %v21589_v28 = vld [vmem:[%s21916_s4 + $0x3f14] ss:$8 sps:$4 sm:$0xff]  }
 0x7d9   : > { %14649 = vmatpush1.bf16.msra.mxu1 %v21506_v29  ;;  %v1057_v29 = vpack.c.bf16 %v593_v17, %v593_v17  ;;  %v21664_v17 = vld [vmem:[%s21916_s4 + $0x1fe4] ss:$8 sps:$4 sm:$0xff]  }
 0x7da   : > { %15961 = vmatpush1.bf16.msra.mxu0 %v21509_v30  ;;  %14650 = vmatprep.subr.bf16.mxu1 %v21514_v25  ;;  %v1121_v30 = vpack.c.bf16 %v865_v18, %v865_v18  ;;  %v21592_v25 = vld [vmem:[%s21916_s4 + $0x1f24] ss:$8 sps:$4 sm:$0xff]  }
 0x7db   : > { %15962 = vmatprep.subr.bf16.mxu0 %v21517_v26  ;;  %v21595_v26 = vld [vmem:[%s21916_s4 + $0x3f24] ss:$8 sps:$4 sm:$0xff]  }
 0x7dc   : > { %v21667_v18 = vld [vmem:[%s21916_s4 + $0x3fe4] ss:$8 sps:$4 sm:$0xff]  }
 0x7dd   : > { %14651 = vmatpush1.bf16.msra.mxu1 %v21512_v61  ;;  %v21590_v61 = vld [vmem:[%s21916_s4 + $0x1f20] ss:$8 sps:$4 sm:$0xff]  }
 0x7de   : > { %15963 = vmatpush1.bf16.msra.mxu0 %v21515_v62  ;;  %14652 = vmatprep.subr.bf16.mxu1 %v21520_v35  ;;  %v21593_v62 = vld [vmem:[%s21916_s4 + $0x3f20] ss:$8 sps:$4 sm:$0xff]   ;;  %v21598_v35 = vld [vmem:[%s21916_s4 + $0x1f34] ss:$8 sps:$4 sm:$0xff]  }
 0x7df   : > { %15964 = vmatprep.subr.bf16.mxu0 %v21523_v37  ;;  %v21601_v37 = vld [vmem:[%s21916_s4 + $0x3f34] ss:$8 sps:$4 sm:$0xff]  }
 0x7e1   : > { %14653 = vmatpush1.bf16.msra.mxu1 %v21518_v11  ;;  %v21596_v11 = vld [vmem:[%s21916_s4 + $0x1f30] ss:$8 sps:$4 sm:$0xff]  }
 0x7e2   : > { %15965 = vmatpush1.bf16.msra.mxu0 %v21521_v12  ;;  %14654 = vmatprep.subr.bf16.mxu1 %v21526_v33  ;;  %v21599_v12 = vld [vmem:[%s21916_s4 + $0x3f30] ss:$8 sps:$4 sm:$0xff]   ;;  %v21604_v33 = vld [vmem:[%s21916_s4 + $0x1f44] ss:$8 sps:$4 sm:$0xff]  }
 0x7e3   : > { %15966 = vmatprep.subr.bf16.mxu0 %v21529_v34  ;;  %v21607_v34 = vld [vmem:[%s21916_s4 + $0x3f44] ss:$8 sps:$4 sm:$0xff]  }
 0x7e5   : > { %14655 = vmatpush1.bf16.msra.mxu1 %v21524_v5  ;;  %v21602_v5 = vld [vmem:[%s21916_s4 + $0x1f40] ss:$8 sps:$4 sm:$0xff]  }
 0x7e6   : > { %15967 = vmatpush1.bf16.msra.mxu0 %v21527_v6  ;;  %14656 = vmatprep.subr.bf16.mxu1 %v21532_v48  ;;  %v21605_v6 = vld [vmem:[%s21916_s4 + $0x3f40] ss:$8 sps:$4 sm:$0xff]   ;;  %v21610_v48 = vld [vmem:[%s21916_s4 + $0x1f54] ss:$8 sps:$4 sm:$0xff]  }
 0x7e7   : > { %15968 = vmatprep.subr.bf16.mxu0 %v21535_v49  ;;  %v21613_v49 = vld [vmem:[%s21916_s4 + $0x3f54] ss:$8 sps:$4 sm:$0xff]  }
 0x7e9   : > { %14657 = vmatpush1.bf16.msra.mxu1 %v21530_v45  ;;  %v21608_v45 = vld [vmem:[%s21916_s4 + $0x1f50] ss:$8 sps:$4 sm:$0xff]  }
 0x7ea   : > { %15969 = vmatpush1.bf16.msra.mxu0 %v21533_v15  ;;  %14658 = vmatprep.subr.bf16.mxu1 %v21538_v46  ;;  %v21611_v15 = vld [vmem:[%s21916_s4 + $0x3f50] ss:$8 sps:$4 sm:$0xff]   ;;  %v21616_v46 = vld [vmem:[%s21916_s4 + $0x1f64] ss:$8 sps:$4 sm:$0xff]  }
 0x7eb   : > { %15970 = vmatprep.subr.bf16.mxu0 %v21541_v47  ;;  %v21619_v47 = vld [vmem:[%s21916_s4 + $0x3f64] ss:$8 sps:$4 sm:$0xff]  }
 0x7ed   : > { %14659 = vmatpush1.bf16.msra.mxu1 %v21536_v13  ;;  %v21614_v13 = vld [vmem:[%s21916_s4 + $0x1f60] ss:$8 sps:$4 sm:$0xff]  }
 0x7ee   : > { %15971 = vmatpush1.bf16.msra.mxu0 %v21539_v14  ;;  %14660 = vmatprep.subr.bf16.mxu1 %v21544_v59  ;;  %v21617_v14 = vld [vmem:[%s21916_s4 + $0x3f60] ss:$8 sps:$4 sm:$0xff]   ;;  %v21622_v59 = vld [vmem:[%s21916_s4 + $0x1f74] ss:$8 sps:$4 sm:$0xff]  }
 0x7ef   : > { %15972 = vmatprep.subr.bf16.mxu0 %v21547_v38  ;;  %v21625_v38 = vld [vmem:[%s21916_s4 + $0x3f74] ss:$8 sps:$4 sm:$0xff]  }
 0x7f1   : > { %14661 = vmatpush1.bf16.msra.mxu1 %v21542_v41  ;;  %v21620_v41 = vld [vmem:[%s21916_s4 + $0x1f70] ss:$8 sps:$4 sm:$0xff]  }
 0x7f2   : > { %15973 = vmatpush1.bf16.msra.mxu0 %v21545_v60  ;;  %14662 = vmatprep.subr.bf16.mxu1 %v21550_v55  ;;  %v21623_v60 = vld [vmem:[%s21916_s4 + $0x3f70] ss:$8 sps:$4 sm:$0xff]   ;;  %v21628_v55 = vld [vmem:[%s21916_s4 + $0x1f84] ss:$8 sps:$4 sm:$0xff]  }
 0x7f3   : > { %15974 = vmatprep.subr.bf16.mxu0 %v21553_v56  ;;  %v21631_v56 = vld [vmem:[%s21916_s4 + $0x3f84] ss:$8 sps:$4 sm:$0xff]  }
 0x7f5   : > { %14663 = vmatpush1.bf16.msra.mxu1 %v21548_v23  ;;  %v21626_v23 = vld [vmem:[%s21916_s4 + $0x1f80] ss:$8 sps:$4 sm:$0xff]  }
 0x7f6   : > { %15975 = vmatpush1.bf16.msra.mxu0 %v21551_v24  ;;  %14664 = vmatprep.subr.bf16.mxu1 %v21556_v1  ;;  %v21629_v24 = vld [vmem:[%s21916_s4 + $0x3f80] ss:$8 sps:$4 sm:$0xff]   ;;  %v21634_v1 = vld [vmem:[%s21916_s4 + $0x1f94] ss:$8 sps:$4 sm:$0xff]  }
 0x7f7   : > { %15976 = vmatprep.subr.bf16.mxu0 %v21559_v2  ;;  %v21637_v2 = vld [vmem:[%s21916_s4 + $0x3f94] ss:$8 sps:$4 sm:$0xff]  }
 0x7f9   : > { %14665 = vmatpush1.bf16.msra.mxu1 %v21554_v16  ;;  %v21632_v16 = vld [vmem:[%s21916_s4 + $0x1f90] ss:$8 sps:$4 sm:$0xff]  }
 0x7fa   : > { %15977 = vmatpush1.bf16.msra.mxu0 %v21557_v39  ;;  %14666 = vmatprep.subr.bf16.mxu1 %v21562_v63  ;;  %v21635_v39 = vld [vmem:[%s21916_s4 + $0x3f90] ss:$8 sps:$4 sm:$0xff]   ;;  %v21640_v63 = vld [vmem:[%s21916_s4 + $0x1fa4] ss:$8 sps:$4 sm:$0xff]  }
 0x7fb   : > { %15978 = vmatprep.subr.bf16.mxu0 %v21565_v0  ;;  %v21643_v0 = vld [vmem:[%s21916_s4 + $0x3fa4] ss:$8 sps:$4 sm:$0xff]  }
 0x7fd   : > { %14667 = vmatpush1.bf16.msra.mxu1 %v21560_v31  ;;  %v21638_v31 = vld [vmem:[%s21916_s4 + $0x1fa0] ss:$8 sps:$4 sm:$0xff]  }
 0x7fe   : > { %15979 = vmatpush1.bf16.msra.mxu0 %v21563_v32  ;;  %14668 = vmatprep.subr.bf16.mxu1 %v21568_v9  ;;  %v21641_v32 = vld [vmem:[%s21916_s4 + $0x3fa0] ss:$8 sps:$4 sm:$0xff]   ;;  %v21646_v9 = vld [vmem:[%s21916_s4 + $0x1fb4] ss:$8 sps:$4 sm:$0xff]  }
 0x7ff   : > { %15980 = vmatprep.subr.bf16.mxu0 %v21571_v10  ;;  %v21649_v10 = vld [vmem:[%s21916_s4 + $0x3fb4] ss:$8 sps:$4 sm:$0xff]  }
 0x801   : > { %14669 = vmatpush1.bf16.msra.mxu1 %v21566_v7  ;;  %v21652_v7 = vld [vmem:[%s21916_s4 + $0x1fc4] ss:$8 sps:$4 sm:$0xff]  }
 0x802   : > { %15981 = vmatpush1.bf16.msra.mxu0 %v21569_v8  ;;  %14670 = vmatprep.subr.bf16.mxu1 %v21574_v40  ;;  %v21655_v8 = vld [vmem:[%s21916_s4 + $0x3fc4] ss:$8 sps:$4 sm:$0xff]   ;;  %v21650_v40 = vld [vmem:[%s21916_s4 + $0x1fc0] ss:$8 sps:$4 sm:$0xff]  }
 0x803   : > { %15982 = vmatprep.subr.bf16.mxu0 %v21577_v42  ;;  %v21653_v42 = vld [vmem:[%s21916_s4 + $0x3fc0] ss:$8 sps:$4 sm:$0xff]  }
 0x805   : > { %14671 = vmatpush1.bf16.msra.mxu1 %v21572_v57  ;;  %v21658_v57 = vld [vmem:[%s21916_s4 + $0x1fd4] ss:$8 sps:$4 sm:$0xff]  }
 0x806   : > { %15983 = vmatpush1.bf16.msra.mxu0 %v21575_v58  ;;  %14681 = vmatprep.subr.bf16.mxu1 %v21580_v21  ;;  %v21661_v58 = vld [vmem:[%s21916_s4 + $0x3fd4] ss:$8 sps:$4 sm:$0xff]   ;;  %v21656_v21 = vld [vmem:[%s21916_s4 + $0x1fd0] ss:$8 sps:$4 sm:$0xff]  }
 0x807   : > { %15993 = vmatprep.subr.bf16.mxu0 %v21583_v22  ;;  %v21659_v22 = vld [vmem:[%s21916_s4 + $0x3fd0] ss:$8 sps:$4 sm:$0xff]  }
 0x808   : > { %14673 = vmatmul.mubr.bf16.vlgmr.msra.gmra.mrb[0].mxu1 %v1054_v19  ;;  %v21662_v19 = vld [vmem:[%s21916_s4 + $0x1fe0] ss:$8 sps:$4 sm:$0xff]  }
 0x809   : > { %15985 = vmatmul.mubr.bf16.vlgmr.msra.gmra.mrb[0].mxu0 %v1118_v20  ;;  %14682 = vmatpush1.bf16.msra.mxu1 %v21578_v53  ;;  %v21665_v20 = vld [vmem:[%s21916_s4 + $0x3fe0] ss:$8 sps:$4 sm:$0xff]   ;;  %v21670_v53 = vld [vmem:[%s21916_s4 + $0x1ff4] ss:$8 sps:$4 sm:$0xff]  }
 0x80a   : > { %15994 = vmatpush1.bf16.msra.mxu0 %v21581_v54  ;;  %14683 = vmatprep.subr.bf16.mxu1 %v21586_v27  ;;  %v21673_v54 = vld [vmem:[%s21916_s4 + $0x3ff4] ss:$8 sps:$4 sm:$0xff]   ;;  %v21668_v27 = vld [vmem:[%s21916_s4 + $0x1ff0] ss:$8 sps:$4 sm:$0xff]  }
 0x80b   : > { %15995 = vmatprep.subr.bf16.mxu0 %v21589_v28  ;;  %14713 = vmatprep.mubr.bf16.mxu1 %v1057_v29  ;;  %v21671_v28 = vld [vmem:[%s21916_s4 + $0x3ff0] ss:$8 sps:$4 sm:$0xff]   ;;  %v1056_v29 = vpack.c.bf16 %v24536_v43, %v24536_v43 }
 0x80c   : > { %16025 = vmatprep.mubr.bf16.mxu0 %v1121_v30  ;;  %v1120_v30 = vpack.c.bf16 %v24539_v36, %v24539_v36  ;;  %v16052_v36 = vld [vmem:[%s244_s8] sm:$0x3] (!%p18242_p6) }
 0x80d   : > { %14684 = vmatpush1.bf16.msra.mxu1 %v21584_v3 }
 0x80e   : > { %15996 = vmatpush1.bf16.msra.mxu0 %v21587_v4  ;;  %14685 = vmatprep.subr.bf16.mxu1 %v21592_v25 }
 0x80f   : > { %15997 = vmatprep.subr.bf16.mxu0 %v21595_v26 }
 0x811   : > { %14686 = vmatpush1.bf16.msra.mxu1 %v21590_v61 }
 0x812   : > { %15998 = vmatpush1.bf16.msra.mxu0 %v21593_v62  ;;  %14687 = vmatprep.subr.bf16.mxu1 %v21598_v35 }
 0x813   : > { %15999 = vmatprep.subr.bf16.mxu0 %v21601_v37 }
 0x815   : > { %14688 = vmatpush1.bf16.msra.mxu1 %v21596_v11 }
 0x816   : > { %16000 = vmatpush1.bf16.msra.mxu0 %v21599_v12  ;;  %14689 = vmatprep.subr.bf16.mxu1 %v21604_v33 }
 0x817   : > { %16001 = vmatprep.subr.bf16.mxu0 %v21607_v34  ;;  %v257_v34 = vld [vmem:[#allocation2] sm:$0xf] }
 0x819   : > { %14690 = vmatpush1.bf16.msra.mxu1 %v21602_v5 }
 0x81a   : > { %16002 = vmatpush1.bf16.msra.mxu0 %v21605_v6  ;;  %14691 = vmatprep.subr.bf16.mxu1 %v21610_v48  ;;  %v16056_v6 = vsub.s32 (!%p18242_p6), 0, %v21981_v44  ;;  %v16060_v48 = vsub.s32 (!%p18242_p6), 1, %v21981_v44 }
 0x81b   : > { %16003 = vmatprep.subr.bf16.mxu0 %v21613_v49 }
 0x81c   : > { %v16057_v49 = vrot.slane (!%p18242_p6), %v16052_v36, %v16056_v6 }
 0x81d   : > { %14692 = vmatpush1.bf16.msra.mxu1 %v21608_v45  ;;  %v16061_v45 = vrot.slane (!%p18242_p6), %v16052_v36, %v16060_v48 }
 0x81e   : > { %16004 = vmatpush1.bf16.msra.mxu0 %v21611_v15  ;;  %14693 = vmatprep.subr.bf16.mxu1 %v21616_v46 }
 0x81f   : > { %16005 = vmatprep.subr.bf16.mxu0 %v21619_v47  ;;  %v16062_v15 = vcombine.low (!%p18242_p6), %v16057_v49, %v16061_v45 }
 0x821   : > { %14694 = vmatpush1.bf16.msra.mxu1 %v21614_v13  ;;  %v16069_v47 = vrot.slane (!%p18242_p6), %v16062_v15, %v21989_v50 }
 0x822   : > { %16006 = vmatpush1.bf16.msra.mxu0 %v21617_v14  ;;  %14695 = vmatprep.subr.bf16.mxu1 %v21622_v59 }
 0x823   : > { %16007 = vmatprep.subr.bf16.mxu0 %v21625_v38 }
 0x825   : > { %14696 = vmatpush1.bf16.msra.mxu1 %v21620_v41 }
 0x826   : > { %16008 = vmatpush1.bf16.msra.mxu0 %v21623_v60  ;;  %14697 = vmatprep.subr.bf16.mxu1 %v21628_v55 }
 0x827   : > { %16009 = vmatprep.subr.bf16.mxu0 %v21631_v56 }
 0x829   : > { %14698 = vmatpush1.bf16.msra.mxu1 %v21626_v23 }
 0x82a   : > { %16010 = vmatpush1.bf16.msra.mxu0 %v21629_v24  ;;  %14699 = vmatprep.subr.bf16.mxu1 %v21634_v1 }
 0x82b   : > { %16011 = vmatprep.subr.bf16.mxu0 %v21637_v2 }
 0x82d   : > { %14700 = vmatpush1.bf16.msra.mxu1 %v21632_v16 }
 0x82e   : > { %16012 = vmatpush1.bf16.msra.mxu0 %v21635_v39  ;;  %14701 = vmatprep.subr.bf16.mxu1 %v21640_v63 }
 0x82f   : > { %16013 = vmatprep.subr.bf16.mxu0 %v21643_v0 }
 0x831   : > { %14702 = vmatpush1.bf16.msra.mxu1 %v21638_v31 }
 0x832   : > { %16014 = vmatpush1.bf16.msra.mxu0 %v21641_v32  ;;  %14703 = vmatprep.subr.bf16.mxu1 %v21646_v9 }
 0x833   : > { %16015 = vmatprep.subr.bf16.mxu0 %v21649_v10 }
 0x835   : > { %14704 = vmatpush1.bf16.msra.mxu1 %v21644_v51 }
 0x836   : > { %16016 = vmatpush1.bf16.msra.mxu0 %v21647_v52  ;;  %14705 = vmatprep.subr.bf16.mxu1 %v21652_v7 }
 0x837   : > { %16017 = vmatprep.subr.bf16.mxu0 %v21655_v8 }
 0x839   : > { %14706 = vmatpush1.bf16.msra.mxu1 %v21650_v40 }
 0x83a   : > { %16018 = vmatpush1.bf16.msra.mxu0 %v21653_v42  ;;  %14707 = vmatprep.subr.bf16.mxu1 %v21658_v57 }
 0x83b   : > { %16019 = vmatprep.subr.bf16.mxu0 %v21661_v58 }
 0x83d   : > { %14708 = vmatpush1.bf16.msra.mxu1 %v21656_v21 }
 0x83e   : > { %16020 = vmatpush1.bf16.msra.mxu0 %v21659_v22  ;;  %14709 = vmatprep.subr.bf16.mxu1 %v21664_v17 }
 0x83f   : > { %16021 = vmatprep.subr.bf16.mxu0 %v21667_v18 }
 0x841   : > { %14710 = vmatpush1.bf16.msra.mxu1 %v21662_v19 }
 0x842   : > { %16022 = vmatpush1.bf16.msra.mxu0 %v21665_v20  ;;  %14711 = vmatprep.subr.bf16.mxu1 %v21670_v53 }
 0x843   : > { %16023 = vmatprep.subr.bf16.mxu0 %v21673_v54 }
 0x845   : > { %14712 = vmatpush1.bf16.msra.mxu1 %v21668_v27 }
 0x846   : > { %16024 = vmatpush1.bf16.msra.mxu0 %v21671_v28 }
 0x848   : > { %14714 = vmatmul.mubr.bf16.vlgmr.msra.gmra.mrb[0].mxu1 %v1056_v29 }
 0x849   : > { %16026 = vmatmul.mubr.bf16.vlgmr.msra.gmra.mrb[0].mxu0 %v1120_v30 }
 0x91b   : > { %v14715_v3 = vpop.f32.mrb[0].mxu1 }
 0x91c   : > { %v16027_v4 = vpop.f32.mrb[0].mxu0  ;;  %v14717_v26 = vpop.f32.mrb[1].mxu1 }
 0x91d   : > { %v18246_v25 = vadd.f32 %v16027_v4, %v14715_v3  ;;  %v16029_v61 = vpop.f32.mrb[1].mxu0  ;;  %v14719_v35 = vpop.f32.mrb[2].mxu1 }
 0x91e   : > { %v18247_v62 = vadd.f32 %v16029_v61, %v14717_v26  ;;  %v16031_v37 = vpop.f32.mrb[2].mxu0  ;;  %v14720_v11 = vpop.f32.mrb[3].mxu1 }
 0x91f   : > { %v16032_v12 = vpop.f32.mrb[3].mxu0 }
 0x920   : > { %v16036_v33 = vcombine.low %v18246_v25, %v18247_v62  ;;  %16050 = sbr.rel (%p18242_p6) target bundleno = 2355 (0x933), region = 44 }
 0x922   : > { %v16043_v43 = vrot.slane %v16036_v33, %v21989_v50 }
 0x924   : > { %v16045_v5 = vadd.f32 %v16043_v43, %v257_v34 }
 0x926   : > { %16046 = vst [vmem:[#allocation2] sm:$0xf] %v16045_v5 }
 0x92d   : > { %v16051_v46 = vld [vmem:[#allocation2] sm:$0xf] }
 0x92e   : > { %v16071_v13 = vadd.f32 %v16069_v47, %v16051_v46 }
 0x930   : > { %v16072_v14 = vmax.f32 %v16071_v13, 0.0 }
 0x932   : > { %16073 = vst [vmem:[%s21939_s12] sm:$0xf] %v16072_v14 }
 0x933 PF: > { %s16_s19 = sadd.s32 1, %s21772_s19   ;;  %s24661_s12 = smov %s21748_s13 }
 0x934   : > { %p13_p8 = scmp.ge.s32.totalorder %s16_s19, 18   ;;  %s24662_s13 = smov %s21752_s14 }
 0x935   : > { %s24663_s14 = smov %s21867_s5  ;;  %s24664_s15 = smov %s21764_s17 }
 0x936   : > { %s24665_s16 = smov %s21768_s18  ;;  %s24666_s17 = smov %s24669_s21 }
 0x937   : > { %s24667_s18 = smov %s24673_s22  ;;  %15 = sbr.rel (!%p13_p8) target bundleno = 5 (0x5), region = 86 }
 0x93e   :  { %16096 = vsyncpa [#allocation4], 1 }
 0x93f   :  { %16098 = vsyncpa [#allocation4 + $0x1], 1 }

</bundles_post_ra>
